<compile_context>
chip_gen: v6e
topology: v6e:2x2x1
jax: 0.10.0
libtpu: 0.0.40
codegen_flags: <defaults>
</compile_context>

<pallas_src>
import jax
import jax.numpy as jnp
import numpy as np
from jax.experimental import pallas as pl
from jax.experimental.pallas import tpu as pltpu


# ----------------------------------------------------------------------------
# Pallas kernel: entire RITS sequence in one invocation.
# ----------------------------------------------------------------------------
def rits_kernel(
    # data (time-major, batch padded)
    x_ref, m_ref, d_ref,        # (T, Bp, F) each
    norm_ref,                   # (Bp, F)
    # packed weights
    w_decay_ref, b_decay_ref,   # (F, H+F)  [gamma_h | gamma_x], (1, H+F)
    w_h_ref, b_hist_ref,        # (H, 4H+F) [W_hh.T | W_hist.T], (1, F)
    w_feat_ref, b_feat_ref,     # (F, F) off-diag masked, (1, F)
    w_comb_g_ref, b_comb_ref,   # (F, F), (1, F)
    w_m_ref,                    # (F, 4H+F) [W_ih.T m-half | W_comb.T m-half]
    w_cc_ref, b_gates_ref,      # (F, 4H), (1, 4H)  (b_ih + b_hh)
    # outputs
    recon_ref,                  # (T, Bp, F)
    imputed_ref,                # (T, Bp, F)
    h_out_ref,                  # (Bp, H)
    loss_ref,                   # (1, 1)
):
    T, Bp, F = x_ref.shape
    H = h_out_ref.shape[1]
    H4 = 4 * H

    # Load all weights into values once (they stay resident in vregs/VMEM).
    norm = norm_ref[...]
    w_decay = w_decay_ref[...]
    b_decay = b_decay_ref[...]
    w_h = w_h_ref[...]
    b_hist = b_hist_ref[...]
    w_feat = w_feat_ref[...]
    b_feat = b_feat_ref[...]
    w_comb_g = w_comb_g_ref[...]
    b_comb = b_comb_ref[...]
    w_m = w_m_ref[...]
    w_cc = w_cc_ref[...]
    b_gates = b_gates_ref[...]

    def mm(a, w):
        return jnp.dot(a, w, preferred_element_type=jnp.float32)

    def step(t, carry):
        h, c, loss = carry
        x = x_ref[t]            # (Bp, F)
        m = m_ref[t]
        d = d_ref[t]

        xn = x * norm
        inv_msum = 1.0 / (jnp.sum(m) + 1e-12)   # one reduction / divide per step

        def mae(pred):
            return jnp.sum(jnp.abs(pred * norm - xn) * m) * inv_msum

        # fused temporal decays: one (Bp,F) x (F,H+F) matmul
        decay = jnp.exp(-jax.nn.relu(mm(d, w_decay) + b_decay))
        gamma_h = decay[:, :H]
        gamma_x = decay[:, H:]

        # decay hidden state; fused history regression + hidden->gates proj
        h = h * gamma_h
        hproj = mm(h, w_h)                       # (Bp, 4H+F)
        gates_h = hproj[:, :H4]
        x_h = hproj[:, H4:] + b_hist
        loss = loss + mae(x_h)

        # feature regression on complemented input
        x_c = m * x + (1.0 - m) * x_h
        z_h = mm(x_c, w_feat) + b_feat
        loss = loss + mae(z_h)

        # fused m-dependent projections (combining weight + gate contribution)
        mproj = mm(m, w_m)                       # (Bp, 4H+F)
        gates_m = mproj[:, :H4]
        comb_m = mproj[:, H4:]

        # combining weight
        alpha = jax.nn.sigmoid(mm(gamma_x, w_comb_g) + comb_m + b_comb)
        c_h = alpha * z_h + (1.0 - alpha) * x_h
        loss = loss + mae(c_h)

        c_c = m * x + (1.0 - m) * c_h
        recon_ref[t] = c_h
        imputed_ref[t] = c_c   # == missing_mask*X + (1-missing_mask)*reconstruction

        # LSTM cell: single fused (Bp,F) x (F,4H) matmul + precomputed halves
        gates = mm(c_c, w_cc) + gates_m + gates_h + b_gates   # (Bp, 4H)
        gi = jax.nn.sigmoid(gates[:, :H])
        gf = jax.nn.sigmoid(gates[:, H:2 * H])
        gg = jnp.tanh(gates[:, 2 * H:3 * H])
        go = jax.nn.sigmoid(gates[:, 3 * H:])
        c_new = gf * c + gi * gg
        h_new = go * jnp.tanh(c_new)
        return h_new, c_new, loss

    h0 = jnp.zeros((Bp, H), jnp.float32)
    c0 = jnp.zeros((Bp, H), jnp.float32)
    l0 = jnp.zeros((1, 1), jnp.float32)
    # Short fixed trip count -> fully unroll for LLO scheduler visibility.
    h_last, _, loss_sum = jax.lax.fori_loop(0, T, step, (h0, c0, l0), unroll=True)

    h_out_ref[...] = h_last
    loss_ref[...] = loss_sum / (T * 3.0)


# ----------------------------------------------------------------------------
# Wrapper: weight packing, batch padding, pallas_call plumbing
# ----------------------------------------------------------------------------
def backbone_rits_forward(params, X, missing_mask, deltas, norm_val):
    B, T, F = X.shape
    H = params["W_temp_h"].shape[0]
    f32 = jnp.float32
    eye = jnp.eye(F, dtype=f32)

    # --- pack weights (pre-transpose, pre-mask, concatenate by input operand) ---
    w_decay = jnp.concatenate(
        [params["W_temp_h"].T, (params["W_temp_x"] * eye).T], axis=1)        # (F, H+F)
    b_decay = jnp.concatenate(
        [params["b_temp_h"], params["b_temp_x"]]).reshape(1, H + F)

    wih_t = params["W_ih"].T                                                 # (2F, 4H)
    whh_t = params["W_hh"].T                                                 # (H, 4H)
    wcomb_t = params["W_comb"].T                                             # (2F, F)

    w_h = jnp.concatenate([whh_t, params["W_hist"].T], axis=1)               # (H, 4H+F)
    b_hist = params["b_hist"].reshape(1, F)
    w_feat = (params["W_feat"] * (1.0 - eye)).T                              # (F, F)
    b_feat = params["b_feat"].reshape(1, F)
    w_comb_g = wcomb_t[:F]                                                   # (F, F)
    b_comb = params["b_comb"].reshape(1, F)
    w_m = jnp.concatenate([wih_t[F:], wcomb_t[F:]], axis=1)                  # (F, 4H+F)
    w_cc = wih_t[:F]                                                         # (F, 4H)
    b_gates = (params["b_ih"] + params["b_hh"]).reshape(1, 4 * H)

    weights = [w_decay, b_decay, w_h, b_hist, w_feat, b_feat,
               w_comb_g, b_comb, w_m, w_cc, b_gates]
    weights = [w.astype(f32) for w in weights]

    # --- time-major data, batch zero-padded to the native 8-sublane tile ---
    Bp = max(8, ((B + 7) // 8) * 8)
    pad = Bp - B
    Xt = jnp.transpose(X, (1, 0, 2)).astype(f32)
    Mt = jnp.transpose(missing_mask, (1, 0, 2)).astype(f32)
    Dt = jnp.transpose(deltas, (1, 0, 2)).astype(f32)
    norm = norm_val[:, 0, :].astype(f32)
    if pad:
        pad3 = ((0, 0), (0, pad), (0, 0))
        Xt = jnp.pad(Xt, pad3)
        Mt = jnp.pad(Mt, pad3)   # padded rows have mask=0 -> no loss contribution
        Dt = jnp.pad(Dt, pad3)
        norm = jnp.pad(norm, ((0, pad), (0, 0)))

    data = [Xt, Mt, Dt, norm]

    def full_spec(shape):
        if len(shape) == 3:
            return pl.BlockSpec(shape, lambda i: (0, 0, 0))
        return pl.BlockSpec(shape, lambda i: (0, 0))

    in_specs = [full_spec(a.shape) for a in data + weights]

    out_shape = (
        jax.ShapeDtypeStruct((T, Bp, F), f32),   # reconstruction (time-major)
        jax.ShapeDtypeStruct((T, Bp, F), f32),   # imputed data (time-major)
        jax.ShapeDtypeStruct((Bp, H), f32),      # final hidden state
        jax.ShapeDtypeStruct((1, 1), f32),       # reconstruction loss
    )
    out_specs = (
        full_spec((T, Bp, F)),
        full_spec((T, Bp, F)),
        full_spec((Bp, H)),
        full_spec((1, 1)),
    )

    # Single kernel invocation: the recurrent time loop lives inside the kernel.
    # VMEM footprint at these sizes is a few KiB, so no vmem_limit override is
    # needed on any generation (v5e/v6e 128 MiB, v7x 64 MiB).
    # TODO(synk): for large B on v7x, add a leading "parallel" grid axis over
    # batch tiles so megacore can shard the two TensorCores.
    recon_t, imputed_t, h_pad, loss = pl.pallas_call(
        rits_kernel,
        out_shape=out_shape,
        grid=(1,),
        in_specs=in_specs,
        out_specs=out_specs,
        compiler_params=pltpu.CompilerParams(dimension_semantics=("arbitrary",)),
    )(*data, *weights)

    reconstruction = jnp.transpose(recon_t[:, :B, :], (1, 0, 2))
    imputed_data = jnp.transpose(imputed_t[:, :B, :], (1, 0, 2))
    return imputed_data, reconstruction, h_pad[:B], loss[0, 0]


# ----------------------------------------------------------------------------
# Pure-JAX reference (mirrors the PyTorch forward exactly)
# ----------------------------------------------------------------------------
def reference_forward(p, X, M, D, norm_val):
    B, T, F = X.shape
    H = p["W_temp_h"].shape[0]
    eye = jnp.eye(F, dtype=jnp.float32)
    norm = norm_val[:, 0, :]
    h = jnp.zeros((B, H), jnp.float32)
    c = jnp.zeros((B, H), jnp.float32)
    loss = jnp.float32(0.0)
    ests = []

    def mae(pred, tgt, mask):
        return jnp.sum(jnp.abs(pred - tgt) * mask) / (jnp.sum(mask) + 1e-12)

    for t in range(T):
        x, m, d = X[:, t, :], M[:, t, :], D[:, t, :]
        gamma_h = jnp.exp(-jax.nn.relu(d @ p["W_temp_h"].T + p["b_temp_h"]))
        gamma_x = jnp.exp(-jax.nn.relu(d @ (p["W_temp_x"] * eye).T + p["b_temp_x"]))
        h = h * gamma_h
        x_h = h @ p["W_hist"].T + p["b_hist"]
        loss = loss + mae(x_h * norm, x * norm, m)
        x_c = m * x + (1 - m) * x_h
        z_h = x_c @ (p["W_feat"] * (1 - eye)).T + p["b_feat"]
        loss = loss + mae(z_h * norm, x * norm, m)
        alpha = jax.nn.sigmoid(
            jnp.concatenate([gamma_x, m], axis=1) @ p["W_comb"].T + p["b_comb"])
        c_h = alpha * z_h + (1 - alpha) * x_h
        loss = loss + mae(c_h * norm, x * norm, m)
        c_c = m * x + (1 - m) * c_h
        ests.append(c_h[:, None, :])
        lstm_in = jnp.concatenate([c_c, m], axis=1)
        gates = lstm_in @ p["W_ih"].T + p["b_ih"] + h @ p["W_hh"].T + p["b_hh"]
        gi = jax.nn.sigmoid(gates[:, :H])
        gf = jax.nn.sigmoid(gates[:, H:2 * H])
        gg = jnp.tanh(gates[:, 2 * H:3 * H])
        go = jax.nn.sigmoid(gates[:, 3 * H:])
        c = gf * c + gi * gg
        h = go * jnp.tanh(c)

    loss = loss / (T * 3)
    recon = jnp.concatenate(ests, axis=1)
    imputed = M * X + (1 - M) * recon
    return imputed, recon, h, loss


# ----------------------------------------------------------------------------
if __name__ == "__main__":
    jax.config.update("jax_default_matmul_precision", "highest")

    B, T, F, H = 4, 8, 16, 32   # batch, n_steps, n_features, rnn_hidden_size
    key = jax.random.PRNGKey(0)
    ks = jax.random.split(key, 16)

    s = 0.2
    params = {
        "W_temp_h": s * jax.random.normal(ks[0], (H, F), jnp.float32),
        "b_temp_h": s * jax.random.normal(ks[1], (H,), jnp.float32),
        "W_temp_x": s * jax.random.normal(ks[2], (F, F), jnp.float32),
        "b_temp_x": s * jax.random.normal(ks[3], (F,), jnp.float32),
        "W_hist":   s * jax.random.normal(ks[4], (F, H), jnp.float32),
        "b_hist":   s * jax.random.normal(ks[5], (F,), jnp.float32),
        "W_feat":   s * jax.random.normal(ks[6], (F, F), jnp.float32),
        "b_feat":   s * jax.random.normal(ks[7], (F,), jnp.float32),
        "W_comb":   s * jax.random.normal(ks[8], (F, 2 * F), jnp.float32),
        "b_comb":   s * jax.random.normal(ks[9], (F,), jnp.float32),
        "W_ih":     s * jax.random.normal(ks[10], (4 * H, 2 * F), jnp.float32),
        "W_hh":     s * jax.random.normal(ks[11], (4 * H, H), jnp.float32),
        "b_ih":     s * jax.random.normal(ks[12], (4 * H,), jnp.float32),
        "b_hh":     s * jax.random.normal(ks[13], (4 * H,), jnp.float32),
    }

    dkeys = jax.random.split(ks[14], 4)
    X = jax.random.normal(dkeys[0], (B, T, F), jnp.float32)
    missing_mask = (jax.random.uniform(dkeys[1], (B, T, F)) > 0.3).astype(jnp.float32)
    deltas = jax.random.uniform(dkeys[2], (B, T, F), jnp.float32, 0.0, 2.0)
    norm_val = jax.random.uniform(dkeys[3], (B, T, F), jnp.float32, 0.5, 1.5)

    imputed, recon, h_last, loss = backbone_rits_forward(
        params, X, missing_mask, deltas, norm_val)
    jax.block_until_ready((imputed, recon, h_last, loss))

    imputed_r, recon_r, h_r, loss_r = reference_forward(
        params, X, missing_mask, deltas, norm_val)

    np.testing.assert_allclose(np.asarray(recon), np.asarray(recon_r), rtol=1e-2, atol=1e-2)
    np.testing.assert_allclose(np.asarray(imputed), np.asarray(imputed_r), rtol=1e-2, atol=1e-2)
    np.testing.assert_allclose(np.asarray(h_last), np.asarray(h_r), rtol=1e-2, atol=1e-2)
    np.testing.assert_allclose(np.asarray(loss), np.asarray(loss_r), rtol=1e-2, atol=1e-2)

    print("KERNEL_OK")
</pallas_src>

<mosaic_0001>
module attributes {stable_mosaic.version = 11 : i64} {
  func.func @rits_kernel(%arg0: i32, %arg1: memref<8x8x16xf32, #tpu.memory_space<vmem>>, %arg2: memref<8x8x16xf32, #tpu.memory_space<vmem>>, %arg3: memref<8x8x16xf32, #tpu.memory_space<vmem>>, %arg4: memref<8x16xf32, #tpu.memory_space<vmem>>, %arg5: memref<16x48xf32, #tpu.memory_space<vmem>>, %arg6: memref<1x48xf32, #tpu.memory_space<vmem>>, %arg7: memref<32x144xf32, #tpu.memory_space<vmem>>, %arg8: memref<1x16xf32, #tpu.memory_space<vmem>>, %arg9: memref<16x16xf32, #tpu.memory_space<vmem>>, %arg10: memref<1x16xf32, #tpu.memory_space<vmem>>, %arg11: memref<16x16xf32, #tpu.memory_space<vmem>>, %arg12: memref<1x16xf32, #tpu.memory_space<vmem>>, %arg13: memref<16x144xf32, #tpu.memory_space<vmem>>, %arg14: memref<16x128xf32, #tpu.memory_space<vmem>>, %arg15: memref<1x128xf32, #tpu.memory_space<vmem>>, %arg16: memref<8x8x16xf32, #tpu.memory_space<vmem>>, %arg17: memref<8x8x16xf32, #tpu.memory_space<vmem>>, %arg18: memref<8x32xf32, #tpu.memory_space<vmem>>, %arg19: memref<1x1xf32, #tpu.memory_space<vmem>>) attributes {dimension_semantics = [#tpu.dimension_semantics<arbitrary>], iteration_bounds = array<i64: 1>, scalar_prefetch = 0 : i64, scratch_operands = 0 : i64, tpu.core_type = #tpu.core_type<tc>, window_params = [{pipeline_mode = #tpu.pipeline_mode<synchronous>, transform_indices = @transform_0, window_bounds = array<i64: 8, 8, 16>}, {pipeline_mode = #tpu.pipeline_mode<synchronous>, transform_indices = @transform_1, window_bounds = array<i64: 8, 8, 16>}, {pipeline_mode = #tpu.pipeline_mode<synchronous>, transform_indices = @transform_2, window_bounds = array<i64: 8, 8, 16>}, {pipeline_mode = #tpu.pipeline_mode<synchronous>, transform_indices = @transform_3, window_bounds = array<i64: 8, 16>}, {pipeline_mode = #tpu.pipeline_mode<synchronous>, transform_indices = @transform_4, window_bounds = array<i64: 16, 48>}, {pipeline_mode = #tpu.pipeline_mode<synchronous>, transform_indices = @transform_5, window_bounds = array<i64: 1, 48>}, {pipeline_mode = #tpu.pipeline_mode<synchronous>, transform_indices = @transform_6, window_bounds = array<i64: 32, 144>}, {pipeline_mode = #tpu.pipeline_mode<synchronous>, transform_indices = @transform_7, window_bounds = array<i64: 1, 16>}, {pipeline_mode = #tpu.pipeline_mode<synchronous>, transform_indices = @transform_8, window_bounds = array<i64: 16, 16>}, {pipeline_mode = #tpu.pipeline_mode<synchronous>, transform_indices = @transform_9, window_bounds = array<i64: 1, 16>}, {pipeline_mode = #tpu.pipeline_mode<synchronous>, transform_indices = @transform_10, window_bounds = array<i64: 16, 16>}, {pipeline_mode = #tpu.pipeline_mode<synchronous>, transform_indices = @transform_11, window_bounds = array<i64: 1, 16>}, {pipeline_mode = #tpu.pipeline_mode<synchronous>, transform_indices = @transform_12, window_bounds = array<i64: 16, 144>}, {pipeline_mode = #tpu.pipeline_mode<synchronous>, transform_indices = @transform_13, window_bounds = array<i64: 16, 128>}, {pipeline_mode = #tpu.pipeline_mode<synchronous>, transform_indices = @transform_14, window_bounds = array<i64: 1, 128>}, {pipeline_mode = #tpu.pipeline_mode<synchronous>, transform_indices = @transform_15, window_bounds = array<i64: 8, 8, 16>}, {pipeline_mode = #tpu.pipeline_mode<synchronous>, transform_indices = @transform_16, window_bounds = array<i64: 8, 8, 16>}, {pipeline_mode = #tpu.pipeline_mode<synchronous>, transform_indices = @transform_17, window_bounds = array<i64: 8, 32>}, {pipeline_mode = #tpu.pipeline_mode<synchronous>, transform_indices = @transform_18, window_bounds = array<i64: 1, 1>}]} {
    %c0 = arith.constant 0 : index
    %c0_0 = arith.constant 0 : index
    %0 = vector.load %arg4[%c0, %c0_0] : memref<8x16xf32, #tpu.memory_space<vmem>>, vector<8x16xf32>
    %c0_1 = arith.constant 0 : index
    %c0_2 = arith.constant 0 : index
    %1 = vector.load %arg5[%c0_1, %c0_2] : memref<16x48xf32, #tpu.memory_space<vmem>>, vector<16x48xf32>
    %c0_3 = arith.constant 0 : index
    %c0_4 = arith.constant 0 : index
    %2 = vector.load %arg6[%c0_3, %c0_4] : memref<1x48xf32, #tpu.memory_space<vmem>>, vector<1x48xf32>
    %c0_5 = arith.constant 0 : index
    %c0_6 = arith.constant 0 : index
    %3 = vector.load %arg7[%c0_5, %c0_6] : memref<32x144xf32, #tpu.memory_space<vmem>>, vector<32x144xf32>
    %c0_7 = arith.constant 0 : index
    %c0_8 = arith.constant 0 : index
    %4 = vector.load %arg8[%c0_7, %c0_8] : memref<1x16xf32, #tpu.memory_space<vmem>>, vector<1x16xf32>
    %c0_9 = arith.constant 0 : index
    %c0_10 = arith.constant 0 : index
    %5 = vector.load %arg9[%c0_9, %c0_10] : memref<16x16xf32, #tpu.memory_space<vmem>>, vector<16x16xf32>
    %c0_11 = arith.constant 0 : index
    %c0_12 = arith.constant 0 : index
    %6 = vector.load %arg10[%c0_11, %c0_12] : memref<1x16xf32, #tpu.memory_space<vmem>>, vector<1x16xf32>
    %c0_13 = arith.constant 0 : index
    %c0_14 = arith.constant 0 : index
    %7 = vector.load %arg11[%c0_13, %c0_14] : memref<16x16xf32, #tpu.memory_space<vmem>>, vector<16x16xf32>
    %c0_15 = arith.constant 0 : index
    %c0_16 = arith.constant 0 : index
    %8 = vector.load %arg12[%c0_15, %c0_16] : memref<1x16xf32, #tpu.memory_space<vmem>>, vector<1x16xf32>
    %c0_17 = arith.constant 0 : index
    %c0_18 = arith.constant 0 : index
    %9 = vector.load %arg13[%c0_17, %c0_18] : memref<16x144xf32, #tpu.memory_space<vmem>>, vector<16x144xf32>
    %c0_19 = arith.constant 0 : index
    %c0_20 = arith.constant 0 : index
    %10 = vector.load %arg14[%c0_19, %c0_20] : memref<16x128xf32, #tpu.memory_space<vmem>>, vector<16x128xf32>
    %c0_21 = arith.constant 0 : index
    %c0_22 = arith.constant 0 : index
    %11 = vector.load %arg15[%c0_21, %c0_22] : memref<1x128xf32, #tpu.memory_space<vmem>>, vector<1x128xf32>
    %cst = arith.constant 0.000000e+00 : f32
    %12 = vector.broadcast %cst : f32 to vector<8x32xf32>
    %cst_23 = arith.constant 0.000000e+00 : f32
    %13 = vector.broadcast %cst_23 : f32 to vector<8x32xf32>
    %cst_24 = arith.constant 0.000000e+00 : f32
    %14 = vector.broadcast %cst_24 : f32 to vector<1x1xf32>
    %c0_i32 = arith.constant 0 : i32
    %15 = arith.index_cast %c0_i32 : i32 to index
    %c0_25 = arith.constant 0 : index
    %c0_26 = arith.constant 0 : index
    %16 = vector.load %arg1[%15, %c0_25, %c0_26] : memref<8x8x16xf32, #tpu.memory_space<vmem>>, vector<1x8x16xf32>
    %17 = vector.shape_cast %16 : vector<1x8x16xf32> to vector<8x16xf32>
    %18 = arith.index_cast %c0_i32 : i32 to index
    %c0_27 = arith.constant 0 : index
    %c0_28 = arith.constant 0 : index
    %19 = vector.load %arg2[%18, %c0_27, %c0_28] : memref<8x8x16xf32, #tpu.memory_space<vmem>>, vector<1x8x16xf32>
    %20 = vector.shape_cast %19 : vector<1x8x16xf32> to vector<8x16xf32>
    %21 = arith.index_cast %c0_i32 : i32 to index
    %c0_29 = arith.constant 0 : index
    %c0_30 = arith.constant 0 : index
    %22 = vector.load %arg3[%21, %c0_29, %c0_30] : memref<8x8x16xf32, #tpu.memory_space<vmem>>, vector<1x8x16xf32>
    %23 = vector.shape_cast %22 : vector<1x8x16xf32> to vector<8x16xf32>
    %24 = arith.mulf %17, %0 : vector<8x16xf32>
    %25 = vector.shape_cast %20 : vector<8x16xf32> to vector<1x8x16xf32>
    %cst_31 = arith.constant dense<0.000000e+00> : vector<1xf32>
    %26 = vector.multi_reduction <add>, %25, %cst_31 [1, 2] : vector<1x8x16xf32> to vector<1xf32>
    %27 = vector.shape_cast %26 : vector<1xf32> to vector<1x1x1xf32>
    %28 = vector.extract %27[0, 0, 0] : f32 from vector<1x1x1xf32>
    %cst_32 = arith.constant 9.99999996E-13 : f32
    %29 = arith.addf %28, %cst_32 : f32
    %cst_33 = arith.constant 1.000000e+00 : f32
    %30 = arith.divf %cst_33, %29 : f32
    %cst_34 = arith.constant dense<0.000000e+00> : vector<8x48xf32>
    %31 = tpu.matmul %23, %1, %cst_34 {dimension_numbers = #tpu.dot_dimension_numbers<[1], [0], [0], [1], [0, 0, 1, 1], [], []>, precision = #tpu.contract_precision<fp32>} : vector<8x16xf32>, vector<16x48xf32>, vector<8x48xf32> -> vector<8x48xf32>
    %32 = vector.broadcast %2 : vector<1x48xf32> to vector<8x48xf32>
    %33 = arith.addf %31, %32 : vector<8x48xf32>
    %cst_35 = arith.constant 0.000000e+00 : f32
    %34 = vector.broadcast %cst_35 : f32 to vector<8x48xf32>
    %35 = arith.maximumf %33, %34 : vector<8x48xf32>
    %cst_36 = arith.constant 0.000000e+00 : f32
    %36 = vector.broadcast %cst_36 : f32 to vector<8x48xf32>
    %37 = arith.subf %36, %35 : vector<8x48xf32>
    %38 = math.exp %37 : vector<8x48xf32>
    %39 = vector.extract_strided_slice %38 {offsets = [0, 0], sizes = [8, 32], strides = [1, 1]} : vector<8x48xf32> to vector<8x32xf32>
    %40 = vector.extract_strided_slice %38 {offsets = [0, 32], sizes = [8, 16], strides = [1, 1]} : vector<8x48xf32> to vector<8x16xf32>
    %41 = arith.mulf %12, %39 : vector<8x32xf32>
    %cst_37 = arith.constant dense<0.000000e+00> : vector<8x144xf32>
    %42 = tpu.matmul %41, %3, %cst_37 {dimension_numbers = #tpu.dot_dimension_numbers<[1], [0], [0], [1], [0, 0, 1, 1], [], []>, precision = #tpu.contract_precision<fp32>} : vector<8x32xf32>, vector<32x144xf32>, vector<8x144xf32> -> vector<8x144xf32>
    %43 = vector.extract_strided_slice %42 {offsets = [0, 0], sizes = [8, 128], strides = [1, 1]} : vector<8x144xf32> to vector<8x128xf32>
    %44 = vector.extract_strided_slice %42 {offsets = [0, 128], sizes = [8, 16], strides = [1, 1]} : vector<8x144xf32> to vector<8x16xf32>
    %45 = vector.broadcast %4 : vector<1x16xf32> to vector<8x16xf32>
    %46 = arith.addf %44, %45 : vector<8x16xf32>
    %47 = arith.mulf %46, %0 : vector<8x16xf32>
    %48 = arith.subf %47, %24 : vector<8x16xf32>
    %49 = math.absf %48 : vector<8x16xf32>
    %50 = arith.mulf %49, %20 : vector<8x16xf32>
    %51 = vector.shape_cast %50 : vector<8x16xf32> to vector<1x8x16xf32>
    %cst_38 = arith.constant dense<0.000000e+00> : vector<1xf32>
    %52 = vector.multi_reduction <add>, %51, %cst_38 [1, 2] : vector<1x8x16xf32> to vector<1xf32>
    %53 = vector.shape_cast %52 : vector<1xf32> to vector<1x1x1xf32>
    %54 = vector.extract %53[0, 0, 0] : f32 from vector<1x1x1xf32>
    %55 = arith.mulf %54, %30 : f32
    %56 = vector.broadcast %55 : f32 to vector<1x1xf32>
    %57 = arith.addf %14, %56 : vector<1x1xf32>
    %58 = arith.mulf %20, %17 : vector<8x16xf32>
    %cst_39 = arith.constant 1.000000e+00 : f32
    %59 = vector.broadcast %cst_39 : f32 to vector<8x16xf32>
    %60 = arith.subf %59, %20 : vector<8x16xf32>
    %61 = arith.mulf %60, %46 : vector<8x16xf32>
    %62 = arith.addf %58, %61 : vector<8x16xf32>
    %cst_40 = arith.constant dense<0.000000e+00> : vector<8x16xf32>
    %63 = tpu.matmul %62, %5, %cst_40 {dimension_numbers = #tpu.dot_dimension_numbers<[1], [0], [0], [1], [0, 0, 1, 1], [], []>, precision = #tpu.contract_precision<fp32>} : vector<8x16xf32>, vector<16x16xf32>, vector<8x16xf32> -> vector<8x16xf32>
    %64 = vector.broadcast %6 : vector<1x16xf32> to vector<8x16xf32>
    %65 = arith.addf %63, %64 : vector<8x16xf32>
    %66 = arith.mulf %65, %0 : vector<8x16xf32>
    %67 = arith.subf %66, %24 : vector<8x16xf32>
    %68 = math.absf %67 : vector<8x16xf32>
    %69 = arith.mulf %68, %20 : vector<8x16xf32>
    %70 = vector.shape_cast %69 : vector<8x16xf32> to vector<1x8x16xf32>
    %cst_41 = arith.constant dense<0.000000e+00> : vector<1xf32>
    %71 = vector.multi_reduction <add>, %70, %cst_41 [1, 2] : vector<1x8x16xf32> to vector<1xf32>
    %72 = vector.shape_cast %71 : vector<1xf32> to vector<1x1x1xf32>
    %73 = vector.extract %72[0, 0, 0] : f32 from vector<1x1x1xf32>
    %74 = arith.mulf %73, %30 : f32
    %75 = vector.broadcast %74 : f32 to vector<1x1xf32>
    %76 = arith.addf %57, %75 : vector<1x1xf32>
    %cst_42 = arith.constant dense<0.000000e+00> : vector<8x144xf32>
    %77 = tpu.matmul %20, %9, %cst_42 {dimension_numbers = #tpu.dot_dimension_numbers<[1], [0], [0], [1], [0, 0, 1, 1], [], []>, precision = #tpu.contract_precision<fp32>} : vector<8x16xf32>, vector<16x144xf32>, vector<8x144xf32> -> vector<8x144xf32>
    %78 = vector.extract_strided_slice %77 {offsets = [0, 0], sizes = [8, 128], strides = [1, 1]} : vector<8x144xf32> to vector<8x128xf32>
    %79 = vector.extract_strided_slice %77 {offsets = [0, 128], sizes = [8, 16], strides = [1, 1]} : vector<8x144xf32> to vector<8x16xf32>
    %cst_43 = arith.constant dense<0.000000e+00> : vector<8x16xf32>
    %80 = tpu.matmul %40, %7, %cst_43 {dimension_numbers = #tpu.dot_dimension_numbers<[1], [0], [0], [1], [0, 0, 1, 1], [], []>, precision = #tpu.contract_precision<fp32>} : vector<8x16xf32>, vector<16x16xf32>, vector<8x16xf32> -> vector<8x16xf32>
    %81 = arith.addf %80, %79 : vector<8x16xf32>
    %82 = vector.broadcast %8 : vector<1x16xf32> to vector<8x16xf32>
    %83 = arith.addf %81, %82 : vector<8x16xf32>
    %84 = arith.negf %83 : vector<8x16xf32>
    %85 = math.exp %84 : vector<8x16xf32>
    %cst_44 = arith.constant 1.000000e+00 : f32
    %86 = vector.broadcast %cst_44 : f32 to vector<8x16xf32>
    %87 = arith.addf %86, %85 : vector<8x16xf32>
    %88 = arith.divf %86, %87 : vector<8x16xf32>
    %89 = arith.mulf %88, %65 : vector<8x16xf32>
    %cst_45 = arith.constant 1.000000e+00 : f32
    %90 = vector.broadcast %cst_45 : f32 to vector<8x16xf32>
    %91 = arith.subf %90, %88 : vector<8x16xf32>
    %92 = arith.mulf %91, %46 : vector<8x16xf32>
    %93 = arith.addf %89, %92 : vector<8x16xf32>
    %94 = arith.mulf %93, %0 : vector<8x16xf32>
    %95 = arith.subf %94, %24 : vector<8x16xf32>
    %96 = math.absf %95 : vector<8x16xf32>
    %97 = arith.mulf %96, %20 : vector<8x16xf32>
    %98 = vector.shape_cast %97 : vector<8x16xf32> to vector<1x8x16xf32>
    %cst_46 = arith.constant dense<0.000000e+00> : vector<1xf32>
    %99 = vector.multi_reduction <add>, %98, %cst_46 [1, 2] : vector<1x8x16xf32> to vector<1xf32>
    %100 = vector.shape_cast %99 : vector<1xf32> to vector<1x1x1xf32>
    %101 = vector.extract %100[0, 0, 0] : f32 from vector<1x1x1xf32>
    %102 = arith.mulf %101, %30 : f32
    %103 = vector.broadcast %102 : f32 to vector<1x1xf32>
    %104 = arith.addf %76, %103 : vector<1x1xf32>
    %105 = arith.mulf %20, %17 : vector<8x16xf32>
    %cst_47 = arith.constant 1.000000e+00 : f32
    %106 = vector.broadcast %cst_47 : f32 to vector<8x16xf32>
    %107 = arith.subf %106, %20 : vector<8x16xf32>
    %108 = arith.mulf %107, %93 : vector<8x16xf32>
    %109 = arith.addf %105, %108 : vector<8x16xf32>
    %110 = arith.index_cast %c0_i32 : i32 to index
    %c0_48 = arith.constant 0 : index
    %c0_49 = arith.constant 0 : index
    %111 = vector.load %arg16[%110, %c0_48, %c0_49] : memref<8x8x16xf32, #tpu.memory_space<vmem>>, vector<1x8x16xf32>
    %112 = vector.shape_cast %111 : vector<1x8x16xf32> to vector<8x16xf32>
    %113 = vector.shape_cast %93 : vector<8x16xf32> to vector<1x8x16xf32>
    tpu.vector_store %arg16[%110, %c0_48, %c0_49], %113 {strides = array<i32>} : memref<8x8x16xf32, #tpu.memory_space<vmem>>, vector<1x8x16xf32>,
    %114 = arith.index_cast %c0_i32 : i32 to index
    %c0_50 = arith.constant 0 : index
    %c0_51 = arith.constant 0 : index
    %115 = vector.load %arg17[%114, %c0_50, %c0_51] : memref<8x8x16xf32, #tpu.memory_space<vmem>>, vector<1x8x16xf32>
    %116 = vector.shape_cast %115 : vector<1x8x16xf32> to vector<8x16xf32>
    %117 = vector.shape_cast %109 : vector<8x16xf32> to vector<1x8x16xf32>
    tpu.vector_store %arg17[%114, %c0_50, %c0_51], %117 {strides = array<i32>} : memref<8x8x16xf32, #tpu.memory_space<vmem>>, vector<1x8x16xf32>,
    %cst_52 = arith.constant dense<0.000000e+00> : vector<8x128xf32>
    %118 = tpu.matmul %109, %10, %cst_52 {dimension_numbers = #tpu.dot_dimension_numbers<[1], [0], [0], [1], [0, 0, 1, 1], [], []>, precision = #tpu.contract_precision<fp32>} : vector<8x16xf32>, vector<16x128xf32>, vector<8x128xf32> -> vector<8x128xf32>
    %119 = arith.addf %118, %78 : vector<8x128xf32>
    %120 = arith.addf %119, %43 : vector<8x128xf32>
    %121 = vector.broadcast %11 : vector<1x128xf32> to vector<8x128xf32>
    %122 = arith.addf %120, %121 : vector<8x128xf32>
    %123 = vector.extract_strided_slice %122 {offsets = [0, 0], sizes = [8, 32], strides = [1, 1]} : vector<8x128xf32> to vector<8x32xf32>
    %124 = arith.negf %123 : vector<8x32xf32>
    %125 = math.exp %124 : vector<8x32xf32>
    %cst_53 = arith.constant 1.000000e+00 : f32
    %126 = vector.broadcast %cst_53 : f32 to vector<8x32xf32>
    %127 = arith.addf %126, %125 : vector<8x32xf32>
    %128 = arith.divf %126, %127 : vector<8x32xf32>
    %129 = vector.extract_strided_slice %122 {offsets = [0, 32], sizes = [8, 32], strides = [1, 1]} : vector<8x128xf32> to vector<8x32xf32>
    %130 = arith.negf %129 : vector<8x32xf32>
    %131 = math.exp %130 : vector<8x32xf32>
    %cst_54 = arith.constant 1.000000e+00 : f32
    %132 = vector.broadcast %cst_54 : f32 to vector<8x32xf32>
    %133 = arith.addf %132, %131 : vector<8x32xf32>
    %134 = arith.divf %132, %133 : vector<8x32xf32>
    %135 = vector.extract_strided_slice %122 {offsets = [0, 64], sizes = [8, 32], strides = [1, 1]} : vector<8x128xf32> to vector<8x32xf32>
    %136 = math.tanh %135 : vector<8x32xf32>
    %137 = vector.extract_strided_slice %122 {offsets = [0, 96], sizes = [8, 32], strides = [1, 1]} : vector<8x128xf32> to vector<8x32xf32>
    %138 = arith.negf %137 : vector<8x32xf32>
    %139 = math.exp %138 : vector<8x32xf32>
    %cst_55 = arith.constant 1.000000e+00 : f32
    %140 = vector.broadcast %cst_55 : f32 to vector<8x32xf32>
    %141 = arith.addf %140, %139 : vector<8x32xf32>
    %142 = arith.divf %140, %141 : vector<8x32xf32>
    %143 = arith.mulf %134, %13 : vector<8x32xf32>
    %144 = arith.mulf %128, %136 : vector<8x32xf32>
    %145 = arith.addf %143, %144 : vector<8x32xf32>
    %146 = math.tanh %145 : vector<8x32xf32>
    %147 = arith.mulf %142, %146 : vector<8x32xf32>
    %c1_i32 = arith.constant 1 : i32
    %148 = arith.index_cast %c1_i32 : i32 to index
    %c0_56 = arith.constant 0 : index
    %c0_57 = arith.constant 0 : index
    %149 = vector.load %arg1[%148, %c0_56, %c0_57] : memref<8x8x16xf32, #tpu.memory_space<vmem>>, vector<1x8x16xf32>
    %150 = vector.shape_cast %149 : vector<1x8x16xf32> to vector<8x16xf32>
    %151 = arith.index_cast %c1_i32 : i32 to index
    %c0_58 = arith.constant 0 : index
    %c0_59 = arith.constant 0 : index
    %152 = vector.load %arg2[%151, %c0_58, %c0_59] : memref<8x8x16xf32, #tpu.memory_space<vmem>>, vector<1x8x16xf32>
    %153 = vector.shape_cast %152 : vector<1x8x16xf32> to vector<8x16xf32>
    %154 = arith.index_cast %c1_i32 : i32 to index
    %c0_60 = arith.constant 0 : index
    %c0_61 = arith.constant 0 : index
    %155 = vector.load %arg3[%154, %c0_60, %c0_61] : memref<8x8x16xf32, #tpu.memory_space<vmem>>, vector<1x8x16xf32>
    %156 = vector.shape_cast %155 : vector<1x8x16xf32> to vector<8x16xf32>
    %157 = arith.mulf %150, %0 : vector<8x16xf32>
    %158 = vector.shape_cast %153 : vector<8x16xf32> to vector<1x8x16xf32>
    %cst_62 = arith.constant dense<0.000000e+00> : vector<1xf32>
    %159 = vector.multi_reduction <add>, %158, %cst_62 [1, 2] : vector<1x8x16xf32> to vector<1xf32>
    %160 = vector.shape_cast %159 : vector<1xf32> to vector<1x1x1xf32>
    %161 = vector.extract %160[0, 0, 0] : f32 from vector<1x1x1xf32>
    %cst_63 = arith.constant 9.99999996E-13 : f32
    %162 = arith.addf %161, %cst_63 : f32
    %cst_64 = arith.constant 1.000000e+00 : f32
    %163 = arith.divf %cst_64, %162 : f32
    %cst_65 = arith.constant dense<0.000000e+00> : vector<8x48xf32>
    %164 = tpu.matmul %156, %1, %cst_65 {dimension_numbers = #tpu.dot_dimension_numbers<[1], [0], [0], [1], [0, 0, 1, 1], [], []>, precision = #tpu.contract_precision<fp32>} : vector<8x16xf32>, vector<16x48xf32>, vector<8x48xf32> -> vector<8x48xf32>
    %165 = vector.broadcast %2 : vector<1x48xf32> to vector<8x48xf32>
    %166 = arith.addf %164, %165 : vector<8x48xf32>
    %cst_66 = arith.constant 0.000000e+00 : f32
    %167 = vector.broadcast %cst_66 : f32 to vector<8x48xf32>
    %168 = arith.maximumf %166, %167 : vector<8x48xf32>
    %cst_67 = arith.constant 0.000000e+00 : f32
    %169 = vector.broadcast %cst_67 : f32 to vector<8x48xf32>
    %170 = arith.subf %169, %168 : vector<8x48xf32>
    %171 = math.exp %170 : vector<8x48xf32>
    %172 = vector.extract_strided_slice %171 {offsets = [0, 0], sizes = [8, 32], strides = [1, 1]} : vector<8x48xf32> to vector<8x32xf32>
    %173 = vector.extract_strided_slice %171 {offsets = [0, 32], sizes = [8, 16], strides = [1, 1]} : vector<8x48xf32> to vector<8x16xf32>
    %174 = arith.mulf %147, %172 : vector<8x32xf32>
    %cst_68 = arith.constant dense<0.000000e+00> : vector<8x144xf32>
    %175 = tpu.matmul %174, %3, %cst_68 {dimension_numbers = #tpu.dot_dimension_numbers<[1], [0], [0], [1], [0, 0, 1, 1], [], []>, precision = #tpu.contract_precision<fp32>} : vector<8x32xf32>, vector<32x144xf32>, vector<8x144xf32> -> vector<8x144xf32>
    %176 = vector.extract_strided_slice %175 {offsets = [0, 0], sizes = [8, 128], strides = [1, 1]} : vector<8x144xf32> to vector<8x128xf32>
    %177 = vector.extract_strided_slice %175 {offsets = [0, 128], sizes = [8, 16], strides = [1, 1]} : vector<8x144xf32> to vector<8x16xf32>
    %178 = vector.broadcast %4 : vector<1x16xf32> to vector<8x16xf32>
    %179 = arith.addf %177, %178 : vector<8x16xf32>
    %180 = arith.mulf %179, %0 : vector<8x16xf32>
    %181 = arith.subf %180, %157 : vector<8x16xf32>
    %182 = math.absf %181 : vector<8x16xf32>
    %183 = arith.mulf %182, %153 : vector<8x16xf32>
    %184 = vector.shape_cast %183 : vector<8x16xf32> to vector<1x8x16xf32>
    %cst_69 = arith.constant dense<0.000000e+00> : vector<1xf32>
    %185 = vector.multi_reduction <add>, %184, %cst_69 [1, 2] : vector<1x8x16xf32> to vector<1xf32>
    %186 = vector.shape_cast %185 : vector<1xf32> to vector<1x1x1xf32>
    %187 = vector.extract %186[0, 0, 0] : f32 from vector<1x1x1xf32>
    %188 = arith.mulf %187, %163 : f32
    %189 = vector.broadcast %188 : f32 to vector<1x1xf32>
    %190 = arith.addf %104, %189 : vector<1x1xf32>
    %191 = arith.mulf %153, %150 : vector<8x16xf32>
    %cst_70 = arith.constant 1.000000e+00 : f32
    %192 = vector.broadcast %cst_70 : f32 to vector<8x16xf32>
    %193 = arith.subf %192, %153 : vector<8x16xf32>
    %194 = arith.mulf %193, %179 : vector<8x16xf32>
    %195 = arith.addf %191, %194 : vector<8x16xf32>
    %cst_71 = arith.constant dense<0.000000e+00> : vector<8x16xf32>
    %196 = tpu.matmul %195, %5, %cst_71 {dimension_numbers = #tpu.dot_dimension_numbers<[1], [0], [0], [1], [0, 0, 1, 1], [], []>, precision = #tpu.contract_precision<fp32>} : vector<8x16xf32>, vector<16x16xf32>, vector<8x16xf32> -> vector<8x16xf32>
    %197 = vector.broadcast %6 : vector<1x16xf32> to vector<8x16xf32>
    %198 = arith.addf %196, %197 : vector<8x16xf32>
    %199 = arith.mulf %198, %0 : vector<8x16xf32>
    %200 = arith.subf %199, %157 : vector<8x16xf32>
    %201 = math.absf %200 : vector<8x16xf32>
    %202 = arith.mulf %201, %153 : vector<8x16xf32>
    %203 = vector.shape_cast %202 : vector<8x16xf32> to vector<1x8x16xf32>
    %cst_72 = arith.constant dense<0.000000e+00> : vector<1xf32>
    %204 = vector.multi_reduction <add>, %203, %cst_72 [1, 2] : vector<1x8x16xf32> to vector<1xf32>
    %205 = vector.shape_cast %204 : vector<1xf32> to vector<1x1x1xf32>
    %206 = vector.extract %205[0, 0, 0] : f32 from vector<1x1x1xf32>
    %207 = arith.mulf %206, %163 : f32
    %208 = vector.broadcast %207 : f32 to vector<1x1xf32>
    %209 = arith.addf %190, %208 : vector<1x1xf32>
    %cst_73 = arith.constant dense<0.000000e+00> : vector<8x144xf32>
    %210 = tpu.matmul %153, %9, %cst_73 {dimension_numbers = #tpu.dot_dimension_numbers<[1], [0], [0], [1], [0, 0, 1, 1], [], []>, precision = #tpu.contract_precision<fp32>} : vector<8x16xf32>, vector<16x144xf32>, vector<8x144xf32> -> vector<8x144xf32>
    %211 = vector.extract_strided_slice %210 {offsets = [0, 0], sizes = [8, 128], strides = [1, 1]} : vector<8x144xf32> to vector<8x128xf32>
    %212 = vector.extract_strided_slice %210 {offsets = [0, 128], sizes = [8, 16], strides = [1, 1]} : vector<8x144xf32> to vector<8x16xf32>
    %cst_74 = arith.constant dense<0.000000e+00> : vector<8x16xf32>
    %213 = tpu.matmul %173, %7, %cst_74 {dimension_numbers = #tpu.dot_dimension_numbers<[1], [0], [0], [1], [0, 0, 1, 1], [], []>, precision = #tpu.contract_precision<fp32>} : vector<8x16xf32>, vector<16x16xf32>, vector<8x16xf32> -> vector<8x16xf32>
    %214 = arith.addf %213, %212 : vector<8x16xf32>
    %215 = vector.broadcast %8 : vector<1x16xf32> to vector<8x16xf32>
    %216 = arith.addf %214, %215 : vector<8x16xf32>
    %217 = arith.negf %216 : vector<8x16xf32>
    %218 = math.exp %217 : vector<8x16xf32>
    %cst_75 = arith.constant 1.000000e+00 : f32
    %219 = vector.broadcast %cst_75 : f32 to vector<8x16xf32>
    %220 = arith.addf %219, %218 : vector<8x16xf32>
    %221 = arith.divf %219, %220 : vector<8x16xf32>
    %222 = arith.mulf %221, %198 : vector<8x16xf32>
    %cst_76 = arith.constant 1.000000e+00 : f32
    %223 = vector.broadcast %cst_76 : f32 to vector<8x16xf32>
    %224 = arith.subf %223, %221 : vector<8x16xf32>
    %225 = arith.mulf %224, %179 : vector<8x16xf32>
    %226 = arith.addf %222, %225 : vector<8x16xf32>
    %227 = arith.mulf %226, %0 : vector<8x16xf32>
    %228 = arith.subf %227, %157 : vector<8x16xf32>
    %229 = math.absf %228 : vector<8x16xf32>
    %230 = arith.mulf %229, %153 : vector<8x16xf32>
    %231 = vector.shape_cast %230 : vector<8x16xf32> to vector<1x8x16xf32>
    %cst_77 = arith.constant dense<0.000000e+00> : vector<1xf32>
    %232 = vector.multi_reduction <add>, %231, %cst_77 [1, 2] : vector<1x8x16xf32> to vector<1xf32>
    %233 = vector.shape_cast %232 : vector<1xf32> to vector<1x1x1xf32>
    %234 = vector.extract %233[0, 0, 0] : f32 from vector<1x1x1xf32>
    %235 = arith.mulf %234, %163 : f32
    %236 = vector.broadcast %235 : f32 to vector<1x1xf32>
    %237 = arith.addf %209, %236 : vector<1x1xf32>
    %238 = arith.mulf %153, %150 : vector<8x16xf32>
    %cst_78 = arith.constant 1.000000e+00 : f32
    %239 = vector.broadcast %cst_78 : f32 to vector<8x16xf32>
    %240 = arith.subf %239, %153 : vector<8x16xf32>
    %241 = arith.mulf %240, %226 : vector<8x16xf32>
    %242 = arith.addf %238, %241 : vector<8x16xf32>
    %243 = arith.index_cast %c1_i32 : i32 to index
    %c0_79 = arith.constant 0 : index
    %c0_80 = arith.constant 0 : index
    %244 = vector.load %arg16[%243, %c0_79, %c0_80] : memref<8x8x16xf32, #tpu.memory_space<vmem>>, vector<1x8x16xf32>
    %245 = vector.shape_cast %244 : vector<1x8x16xf32> to vector<8x16xf32>
    %246 = vector.shape_cast %226 : vector<8x16xf32> to vector<1x8x16xf32>
    tpu.vector_store %arg16[%243, %c0_79, %c0_80], %246 {strides = array<i32>} : memref<8x8x16xf32, #tpu.memory_space<vmem>>, vector<1x8x16xf32>,
    %247 = arith.index_cast %c1_i32 : i32 to index
    %c0_81 = arith.constant 0 : index
    %c0_82 = arith.constant 0 : index
    %248 = vector.load %arg17[%247, %c0_81, %c0_82] : memref<8x8x16xf32, #tpu.memory_space<vmem>>, vector<1x8x16xf32>
    %249 = vector.shape_cast %248 : vector<1x8x16xf32> to vector<8x16xf32>
    %250 = vector.shape_cast %242 : vector<8x16xf32> to vector<1x8x16xf32>
    tpu.vector_store %arg17[%247, %c0_81, %c0_82], %250 {strides = array<i32>} : memref<8x8x16xf32, #tpu.memory_space<vmem>>, vector<1x8x16xf32>,
    %cst_83 = arith.constant dense<0.000000e+00> : vector<8x128xf32>
    %251 = tpu.matmul %242, %10, %cst_83 {dimension_numbers = #tpu.dot_dimension_numbers<[1], [0], [0], [1], [0, 0, 1, 1], [], []>, precision = #tpu.contract_precision<fp32>} : vector<8x16xf32>, vector<16x128xf32>, vector<8x128xf32> -> vector<8x128xf32>
    %252 = arith.addf %251, %211 : vector<8x128xf32>
    %253 = arith.addf %252, %176 : vector<8x128xf32>
    %254 = vector.broadcast %11 : vector<1x128xf32> to vector<8x128xf32>
    %255 = arith.addf %253, %254 : vector<8x128xf32>
    %256 = vector.extract_strided_slice %255 {offsets = [0, 0], sizes = [8, 32], strides = [1, 1]} : vector<8x128xf32> to vector<8x32xf32>
    %257 = arith.negf %256 : vector<8x32xf32>
    %258 = math.exp %257 : vector<8x32xf32>
    %cst_84 = arith.constant 1.000000e+00 : f32
    %259 = vector.broadcast %cst_84 : f32 to vector<8x32xf32>
    %260 = arith.addf %259, %258 : vector<8x32xf32>
    %261 = arith.divf %259, %260 : vector<8x32xf32>
    %262 = vector.extract_strided_slice %255 {offsets = [0, 32], sizes = [8, 32], strides = [1, 1]} : vector<8x128xf32> to vector<8x32xf32>
    %263 = arith.negf %262 : vector<8x32xf32>
    %264 = math.exp %263 : vector<8x32xf32>
    %cst_85 = arith.constant 1.000000e+00 : f32
    %265 = vector.broadcast %cst_85 : f32 to vector<8x32xf32>
    %266 = arith.addf %265, %264 : vector<8x32xf32>
    %267 = arith.divf %265, %266 : vector<8x32xf32>
    %268 = vector.extract_strided_slice %255 {offsets = [0, 64], sizes = [8, 32], strides = [1, 1]} : vector<8x128xf32> to vector<8x32xf32>
    %269 = math.tanh %268 : vector<8x32xf32>
    %270 = vector.extract_strided_slice %255 {offsets = [0, 96], sizes = [8, 32], strides = [1, 1]} : vector<8x128xf32> to vector<8x32xf32>
    %271 = arith.negf %270 : vector<8x32xf32>
    %272 = math.exp %271 : vector<8x32xf32>
    %cst_86 = arith.constant 1.000000e+00 : f32
    %273 = vector.broadcast %cst_86 : f32 to vector<8x32xf32>
    %274 = arith.addf %273, %272 : vector<8x32xf32>
    %275 = arith.divf %273, %274 : vector<8x32xf32>
    %276 = arith.mulf %267, %145 : vector<8x32xf32>
    %277 = arith.mulf %261, %269 : vector<8x32xf32>
    %278 = arith.addf %276, %277 : vector<8x32xf32>
    %279 = math.tanh %278 : vector<8x32xf32>
    %280 = arith.mulf %275, %279 : vector<8x32xf32>
    %c2_i32 = arith.constant 2 : i32
    %281 = arith.index_cast %c2_i32 : i32 to index
    %c0_87 = arith.constant 0 : index
    %c0_88 = arith.constant 0 : index
    %282 = vector.load %arg1[%281, %c0_87, %c0_88] : memref<8x8x16xf32, #tpu.memory_space<vmem>>, vector<1x8x16xf32>
    %283 = vector.shape_cast %282 : vector<1x8x16xf32> to vector<8x16xf32>
    %284 = arith.index_cast %c2_i32 : i32 to index
    %c0_89 = arith.constant 0 : index
    %c0_90 = arith.constant 0 : index
    %285 = vector.load %arg2[%284, %c0_89, %c0_90] : memref<8x8x16xf32, #tpu.memory_space<vmem>>, vector<1x8x16xf32>
    %286 = vector.shape_cast %285 : vector<1x8x16xf32> to vector<8x16xf32>
    %287 = arith.index_cast %c2_i32 : i32 to index
    %c0_91 = arith.constant 0 : index
    %c0_92 = arith.constant 0 : index
    %288 = vector.load %arg3[%287, %c0_91, %c0_92] : memref<8x8x16xf32, #tpu.memory_space<vmem>>, vector<1x8x16xf32>
    %289 = vector.shape_cast %288 : vector<1x8x16xf32> to vector<8x16xf32>
    %290 = arith.mulf %283, %0 : vector<8x16xf32>
    %291 = vector.shape_cast %286 : vector<8x16xf32> to vector<1x8x16xf32>
    %cst_93 = arith.constant dense<0.000000e+00> : vector<1xf32>
    %292 = vector.multi_reduction <add>, %291, %cst_93 [1, 2] : vector<1x8x16xf32> to vector<1xf32>
    %293 = vector.shape_cast %292 : vector<1xf32> to vector<1x1x1xf32>
    %294 = vector.extract %293[0, 0, 0] : f32 from vector<1x1x1xf32>
    %cst_94 = arith.constant 9.99999996E-13 : f32
    %295 = arith.addf %294, %cst_94 : f32
    %cst_95 = arith.constant 1.000000e+00 : f32
    %296 = arith.divf %cst_95, %295 : f32
    %cst_96 = arith.constant dense<0.000000e+00> : vector<8x48xf32>
    %297 = tpu.matmul %289, %1, %cst_96 {dimension_numbers = #tpu.dot_dimension_numbers<[1], [0], [0], [1], [0, 0, 1, 1], [], []>, precision = #tpu.contract_precision<fp32>} : vector<8x16xf32>, vector<16x48xf32>, vector<8x48xf32> -> vector<8x48xf32>
    %298 = vector.broadcast %2 : vector<1x48xf32> to vector<8x48xf32>
    %299 = arith.addf %297, %298 : vector<8x48xf32>
    %cst_97 = arith.constant 0.000000e+00 : f32
    %300 = vector.broadcast %cst_97 : f32 to vector<8x48xf32>
    %301 = arith.maximumf %299, %300 : vector<8x48xf32>
    %cst_98 = arith.constant 0.000000e+00 : f32
    %302 = vector.broadcast %cst_98 : f32 to vector<8x48xf32>
    %303 = arith.subf %302, %301 : vector<8x48xf32>
    %304 = math.exp %303 : vector<8x48xf32>
    %305 = vector.extract_strided_slice %304 {offsets = [0, 0], sizes = [8, 32], strides = [1, 1]} : vector<8x48xf32> to vector<8x32xf32>
    %306 = vector.extract_strided_slice %304 {offsets = [0, 32], sizes = [8, 16], strides = [1, 1]} : vector<8x48xf32> to vector<8x16xf32>
    %307 = arith.mulf %280, %305 : vector<8x32xf32>
    %cst_99 = arith.constant dense<0.000000e+00> : vector<8x144xf32>
    %308 = tpu.matmul %307, %3, %cst_99 {dimension_numbers = #tpu.dot_dimension_numbers<[1], [0], [0], [1], [0, 0, 1, 1], [], []>, precision = #tpu.contract_precision<fp32>} : vector<8x32xf32>, vector<32x144xf32>, vector<8x144xf32> -> vector<8x144xf32>
    %309 = vector.extract_strided_slice %308 {offsets = [0, 0], sizes = [8, 128], strides = [1, 1]} : vector<8x144xf32> to vector<8x128xf32>
    %310 = vector.extract_strided_slice %308 {offsets = [0, 128], sizes = [8, 16], strides = [1, 1]} : vector<8x144xf32> to vector<8x16xf32>
    %311 = vector.broadcast %4 : vector<1x16xf32> to vector<8x16xf32>
    %312 = arith.addf %310, %311 : vector<8x16xf32>
    %313 = arith.mulf %312, %0 : vector<8x16xf32>
    %314 = arith.subf %313, %290 : vector<8x16xf32>
    %315 = math.absf %314 : vector<8x16xf32>
    %316 = arith.mulf %315, %286 : vector<8x16xf32>
    %317 = vector.shape_cast %316 : vector<8x16xf32> to vector<1x8x16xf32>
    %cst_100 = arith.constant dense<0.000000e+00> : vector<1xf32>
    %318 = vector.multi_reduction <add>, %317, %cst_100 [1, 2] : vector<1x8x16xf32> to vector<1xf32>
    %319 = vector.shape_cast %318 : vector<1xf32> to vector<1x1x1xf32>
    %320 = vector.extract %319[0, 0, 0] : f32 from vector<1x1x1xf32>
    %321 = arith.mulf %320, %296 : f32
    %322 = vector.broadcast %321 : f32 to vector<1x1xf32>
    %323 = arith.addf %237, %322 : vector<1x1xf32>
    %324 = arith.mulf %286, %283 : vector<8x16xf32>
    %cst_101 = arith.constant 1.000000e+00 : f32
    %325 = vector.broadcast %cst_101 : f32 to vector<8x16xf32>
    %326 = arith.subf %325, %286 : vector<8x16xf32>
    %327 = arith.mulf %326, %312 : vector<8x16xf32>
    %328 = arith.addf %324, %327 : vector<8x16xf32>
    %cst_102 = arith.constant dense<0.000000e+00> : vector<8x16xf32>
    %329 = tpu.matmul %328, %5, %cst_102 {dimension_numbers = #tpu.dot_dimension_numbers<[1], [0], [0], [1], [0, 0, 1, 1], [], []>, precision = #tpu.contract_precision<fp32>} : vector<8x16xf32>, vector<16x16xf32>, vector<8x16xf32> -> vector<8x16xf32>
    %330 = vector.broadcast %6 : vector<1x16xf32> to vector<8x16xf32>
    %331 = arith.addf %329, %330 : vector<8x16xf32>
    %332 = arith.mulf %331, %0 : vector<8x16xf32>
    %333 = arith.subf %332, %290 : vector<8x16xf32>
    %334 = math.absf %333 : vector<8x16xf32>
    %335 = arith.mulf %334, %286 : vector<8x16xf32>
    %336 = vector.shape_cast %335 : vector<8x16xf32> to vector<1x8x16xf32>
    %cst_103 = arith.constant dense<0.000000e+00> : vector<1xf32>
    %337 = vector.multi_reduction <add>, %336, %cst_103 [1, 2] : vector<1x8x16xf32> to vector<1xf32>
    %338 = vector.shape_cast %337 : vector<1xf32> to vector<1x1x1xf32>
    %339 = vector.extract %338[0, 0, 0] : f32 from vector<1x1x1xf32>
    %340 = arith.mulf %339, %296 : f32
    %341 = vector.broadcast %340 : f32 to vector<1x1xf32>
    %342 = arith.addf %323, %341 : vector<1x1xf32>
    %cst_104 = arith.constant dense<0.000000e+00> : vector<8x144xf32>
    %343 = tpu.matmul %286, %9, %cst_104 {dimension_numbers = #tpu.dot_dimension_numbers<[1], [0], [0], [1], [0, 0, 1, 1], [], []>, precision = #tpu.contract_precision<fp32>} : vector<8x16xf32>, vector<16x144xf32>, vector<8x144xf32> -> vector<8x144xf32>
    %344 = vector.extract_strided_slice %343 {offsets = [0, 0], sizes = [8, 128], strides = [1, 1]} : vector<8x144xf32> to vector<8x128xf32>
    %345 = vector.extract_strided_slice %343 {offsets = [0, 128], sizes = [8, 16], strides = [1, 1]} : vector<8x144xf32> to vector<8x16xf32>
    %cst_105 = arith.constant dense<0.000000e+00> : vector<8x16xf32>
    %346 = tpu.matmul %306, %7, %cst_105 {dimension_numbers = #tpu.dot_dimension_numbers<[1], [0], [0], [1], [0, 0, 1, 1], [], []>, precision = #tpu.contract_precision<fp32>} : vector<8x16xf32>, vector<16x16xf32>, vector<8x16xf32> -> vector<8x16xf32>
    %347 = arith.addf %346, %345 : vector<8x16xf32>
    %348 = vector.broadcast %8 : vector<1x16xf32> to vector<8x16xf32>
    %349 = arith.addf %347, %348 : vector<8x16xf32>
    %350 = arith.negf %349 : vector<8x16xf32>
    %351 = math.exp %350 : vector<8x16xf32>
    %cst_106 = arith.constant 1.000000e+00 : f32
    %352 = vector.broadcast %cst_106 : f32 to vector<8x16xf32>
    %353 = arith.addf %352, %351 : vector<8x16xf32>
    %354 = arith.divf %352, %353 : vector<8x16xf32>
    %355 = arith.mulf %354, %331 : vector<8x16xf32>
    %cst_107 = arith.constant 1.000000e+00 : f32
    %356 = vector.broadcast %cst_107 : f32 to vector<8x16xf32>
    %357 = arith.subf %356, %354 : vector<8x16xf32>
    %358 = arith.mulf %357, %312 : vector<8x16xf32>
    %359 = arith.addf %355, %358 : vector<8x16xf32>
    %360 = arith.mulf %359, %0 : vector<8x16xf32>
    %361 = arith.subf %360, %290 : vector<8x16xf32>
    %362 = math.absf %361 : vector<8x16xf32>
    %363 = arith.mulf %362, %286 : vector<8x16xf32>
    %364 = vector.shape_cast %363 : vector<8x16xf32> to vector<1x8x16xf32>
    %cst_108 = arith.constant dense<0.000000e+00> : vector<1xf32>
    %365 = vector.multi_reduction <add>, %364, %cst_108 [1, 2] : vector<1x8x16xf32> to vector<1xf32>
    %366 = vector.shape_cast %365 : vector<1xf32> to vector<1x1x1xf32>
    %367 = vector.extract %366[0, 0, 0] : f32 from vector<1x1x1xf32>
    %368 = arith.mulf %367, %296 : f32
    %369 = vector.broadcast %368 : f32 to vector<1x1xf32>
    %370 = arith.addf %342, %369 : vector<1x1xf32>
    %371 = arith.mulf %286, %283 : vector<8x16xf32>
    %cst_109 = arith.constant 1.000000e+00 : f32
    %372 = vector.broadcast %cst_109 : f32 to vector<8x16xf32>
    %373 = arith.subf %372, %286 : vector<8x16xf32>
    %374 = arith.mulf %373, %359 : vector<8x16xf32>
    %375 = arith.addf %371, %374 : vector<8x16xf32>
    %376 = arith.index_cast %c2_i32 : i32 to index
    %c0_110 = arith.constant 0 : index
    %c0_111 = arith.constant 0 : index
    %377 = vector.load %arg16[%376, %c0_110, %c0_111] : memref<8x8x16xf32, #tpu.memory_space<vmem>>, vector<1x8x16xf32>
    %378 = vector.shape_cast %377 : vector<1x8x16xf32> to vector<8x16xf32>
    %379 = vector.shape_cast %359 : vector<8x16xf32> to vector<1x8x16xf32>
    tpu.vector_store %arg16[%376, %c0_110, %c0_111], %379 {strides = array<i32>} : memref<8x8x16xf32, #tpu.memory_space<vmem>>, vector<1x8x16xf32>,
    %380 = arith.index_cast %c2_i32 : i32 to index
    %c0_112 = arith.constant 0 : index
    %c0_113 = arith.constant 0 : index
    %381 = vector.load %arg17[%380, %c0_112, %c0_113] : memref<8x8x16xf32, #tpu.memory_space<vmem>>, vector<1x8x16xf32>
    %382 = vector.shape_cast %381 : vector<1x8x16xf32> to vector<8x16xf32>
    %383 = vector.shape_cast %375 : vector<8x16xf32> to vector<1x8x16xf32>
    tpu.vector_store %arg17[%380, %c0_112, %c0_113], %383 {strides = array<i32>} : memref<8x8x16xf32, #tpu.memory_space<vmem>>, vector<1x8x16xf32>,
    %cst_114 = arith.constant dense<0.000000e+00> : vector<8x128xf32>
    %384 = tpu.matmul %375, %10, %cst_114 {dimension_numbers = #tpu.dot_dimension_numbers<[1], [0], [0], [1], [0, 0, 1, 1], [], []>, precision = #tpu.contract_precision<fp32>} : vector<8x16xf32>, vector<16x128xf32>, vector<8x128xf32> -> vector<8x128xf32>
    %385 = arith.addf %384, %344 : vector<8x128xf32>
    %386 = arith.addf %385, %309 : vector<8x128xf32>
    %387 = vector.broadcast %11 : vector<1x128xf32> to vector<8x128xf32>
    %388 = arith.addf %386, %387 : vector<8x128xf32>
    %389 = vector.extract_strided_slice %388 {offsets = [0, 0], sizes = [8, 32], strides = [1, 1]} : vector<8x128xf32> to vector<8x32xf32>
    %390 = arith.negf %389 : vector<8x32xf32>
    %391 = math.exp %390 : vector<8x32xf32>
    %cst_115 = arith.constant 1.000000e+00 : f32
    %392 = vector.broadcast %cst_115 : f32 to vector<8x32xf32>
    %393 = arith.addf %392, %391 : vector<8x32xf32>
    %394 = arith.divf %392, %393 : vector<8x32xf32>
    %395 = vector.extract_strided_slice %388 {offsets = [0, 32], sizes = [8, 32], strides = [1, 1]} : vector<8x128xf32> to vector<8x32xf32>
    %396 = arith.negf %395 : vector<8x32xf32>
    %397 = math.exp %396 : vector<8x32xf32>
    %cst_116 = arith.constant 1.000000e+00 : f32
    %398 = vector.broadcast %cst_116 : f32 to vector<8x32xf32>
    %399 = arith.addf %398, %397 : vector<8x32xf32>
    %400 = arith.divf %398, %399 : vector<8x32xf32>
    %401 = vector.extract_strided_slice %388 {offsets = [0, 64], sizes = [8, 32], strides = [1, 1]} : vector<8x128xf32> to vector<8x32xf32>
    %402 = math.tanh %401 : vector<8x32xf32>
    %403 = vector.extract_strided_slice %388 {offsets = [0, 96], sizes = [8, 32], strides = [1, 1]} : vector<8x128xf32> to vector<8x32xf32>
    %404 = arith.negf %403 : vector<8x32xf32>
    %405 = math.exp %404 : vector<8x32xf32>
    %cst_117 = arith.constant 1.000000e+00 : f32
    %406 = vector.broadcast %cst_117 : f32 to vector<8x32xf32>
    %407 = arith.addf %406, %405 : vector<8x32xf32>
    %408 = arith.divf %406, %407 : vector<8x32xf32>
    %409 = arith.mulf %400, %278 : vector<8x32xf32>
    %410 = arith.mulf %394, %402 : vector<8x32xf32>
    %411 = arith.addf %409, %410 : vector<8x32xf32>
    %412 = math.tanh %411 : vector<8x32xf32>
    %413 = arith.mulf %408, %412 : vector<8x32xf32>
    %c3_i32 = arith.constant 3 : i32
    %414 = arith.index_cast %c3_i32 : i32 to index
    %c0_118 = arith.constant 0 : index
    %c0_119 = arith.constant 0 : index
    %415 = vector.load %arg1[%414, %c0_118, %c0_119] : memref<8x8x16xf32, #tpu.memory_space<vmem>>, vector<1x8x16xf32>
    %416 = vector.shape_cast %415 : vector<1x8x16xf32> to vector<8x16xf32>
    %417 = arith.index_cast %c3_i32 : i32 to index
    %c0_120 = arith.constant 0 : index
    %c0_121 = arith.constant 0 : index
    %418 = vector.load %arg2[%417, %c0_120, %c0_121] : memref<8x8x16xf32, #tpu.memory_space<vmem>>, vector<1x8x16xf32>
    %419 = vector.shape_cast %418 : vector<1x8x16xf32> to vector<8x16xf32>
    %420 = arith.index_cast %c3_i32 : i32 to index
    %c0_122 = arith.constant 0 : index
    %c0_123 = arith.constant 0 : index
    %421 = vector.load %arg3[%420, %c0_122, %c0_123] : memref<8x8x16xf32, #tpu.memory_space<vmem>>, vector<1x8x16xf32>
    %422 = vector.shape_cast %421 : vector<1x8x16xf32> to vector<8x16xf32>
    %423 = arith.mulf %416, %0 : vector<8x16xf32>
    %424 = vector.shape_cast %419 : vector<8x16xf32> to vector<1x8x16xf32>
    %cst_124 = arith.constant dense<0.000000e+00> : vector<1xf32>
    %425 = vector.multi_reduction <add>, %424, %cst_124 [1, 2] : vector<1x8x16xf32> to vector<1xf32>
    %426 = vector.shape_cast %425 : vector<1xf32> to vector<1x1x1xf32>
    %427 = vector.extract %426[0, 0, 0] : f32 from vector<1x1x1xf32>
    %cst_125 = arith.constant 9.99999996E-13 : f32
    %428 = arith.addf %427, %cst_125 : f32
    %cst_126 = arith.constant 1.000000e+00 : f32
    %429 = arith.divf %cst_126, %428 : f32
    %cst_127 = arith.constant dense<0.000000e+00> : vector<8x48xf32>
    %430 = tpu.matmul %422, %1, %cst_127 {dimension_numbers = #tpu.dot_dimension_numbers<[1], [0], [0], [1], [0, 0, 1, 1], [], []>, precision = #tpu.contract_precision<fp32>} : vector<8x16xf32>, vector<16x48xf32>, vector<8x48xf32> -> vector<8x48xf32>
    %431 = vector.broadcast %2 : vector<1x48xf32> to vector<8x48xf32>
    %432 = arith.addf %430, %431 : vector<8x48xf32>
    %cst_128 = arith.constant 0.000000e+00 : f32
    %433 = vector.broadcast %cst_128 : f32 to vector<8x48xf32>
    %434 = arith.maximumf %432, %433 : vector<8x48xf32>
    %cst_129 = arith.constant 0.000000e+00 : f32
    %435 = vector.broadcast %cst_129 : f32 to vector<8x48xf32>
    %436 = arith.subf %435, %434 : vector<8x48xf32>
    %437 = math.exp %436 : vector<8x48xf32>
    %438 = vector.extract_strided_slice %437 {offsets = [0, 0], sizes = [8, 32], strides = [1, 1]} : vector<8x48xf32> to vector<8x32xf32>
    %439 = vector.extract_strided_slice %437 {offsets = [0, 32], sizes = [8, 16], strides = [1, 1]} : vector<8x48xf32> to vector<8x16xf32>
    %440 = arith.mulf %413, %438 : vector<8x32xf32>
    %cst_130 = arith.constant dense<0.000000e+00> : vector<8x144xf32>
    %441 = tpu.matmul %440, %3, %cst_130 {dimension_numbers = #tpu.dot_dimension_numbers<[1], [0], [0], [1], [0, 0, 1, 1], [], []>, precision = #tpu.contract_precision<fp32>} : vector<8x32xf32>, vector<32x144xf32>, vector<8x144xf32> -> vector<8x144xf32>
    %442 = vector.extract_strided_slice %441 {offsets = [0, 0], sizes = [8, 128], strides = [1, 1]} : vector<8x144xf32> to vector<8x128xf32>
    %443 = vector.extract_strided_slice %441 {offsets = [0, 128], sizes = [8, 16], strides = [1, 1]} : vector<8x144xf32> to vector<8x16xf32>
    %444 = vector.broadcast %4 : vector<1x16xf32> to vector<8x16xf32>
    %445 = arith.addf %443, %444 : vector<8x16xf32>
    %446 = arith.mulf %445, %0 : vector<8x16xf32>
    %447 = arith.subf %446, %423 : vector<8x16xf32>
    %448 = math.absf %447 : vector<8x16xf32>
    %449 = arith.mulf %448, %419 : vector<8x16xf32>
    %450 = vector.shape_cast %449 : vector<8x16xf32> to vector<1x8x16xf32>
    %cst_131 = arith.constant dense<0.000000e+00> : vector<1xf32>
    %451 = vector.multi_reduction <add>, %450, %cst_131 [1, 2] : vector<1x8x16xf32> to vector<1xf32>
    %452 = vector.shape_cast %451 : vector<1xf32> to vector<1x1x1xf32>
    %453 = vector.extract %452[0, 0, 0] : f32 from vector<1x1x1xf32>
    %454 = arith.mulf %453, %429 : f32
    %455 = vector.broadcast %454 : f32 to vector<1x1xf32>
    %456 = arith.addf %370, %455 : vector<1x1xf32>
    %457 = arith.mulf %419, %416 : vector<8x16xf32>
    %cst_132 = arith.constant 1.000000e+00 : f32
    %458 = vector.broadcast %cst_132 : f32 to vector<8x16xf32>
    %459 = arith.subf %458, %419 : vector<8x16xf32>
    %460 = arith.mulf %459, %445 : vector<8x16xf32>
    %461 = arith.addf %457, %460 : vector<8x16xf32>
    %cst_133 = arith.constant dense<0.000000e+00> : vector<8x16xf32>
    %462 = tpu.matmul %461, %5, %cst_133 {dimension_numbers = #tpu.dot_dimension_numbers<[1], [0], [0], [1], [0, 0, 1, 1], [], []>, precision = #tpu.contract_precision<fp32>} : vector<8x16xf32>, vector<16x16xf32>, vector<8x16xf32> -> vector<8x16xf32>
    %463 = vector.broadcast %6 : vector<1x16xf32> to vector<8x16xf32>
    %464 = arith.addf %462, %463 : vector<8x16xf32>
    %465 = arith.mulf %464, %0 : vector<8x16xf32>
    %466 = arith.subf %465, %423 : vector<8x16xf32>
    %467 = math.absf %466 : vector<8x16xf32>
    %468 = arith.mulf %467, %419 : vector<8x16xf32>
    %469 = vector.shape_cast %468 : vector<8x16xf32> to vector<1x8x16xf32>
    %cst_134 = arith.constant dense<0.000000e+00> : vector<1xf32>
    %470 = vector.multi_reduction <add>, %469, %cst_134 [1, 2] : vector<1x8x16xf32> to vector<1xf32>
    %471 = vector.shape_cast %470 : vector<1xf32> to vector<1x1x1xf32>
    %472 = vector.extract %471[0, 0, 0] : f32 from vector<1x1x1xf32>
    %473 = arith.mulf %472, %429 : f32
    %474 = vector.broadcast %473 : f32 to vector<1x1xf32>
    %475 = arith.addf %456, %474 : vector<1x1xf32>
    %cst_135 = arith.constant dense<0.000000e+00> : vector<8x144xf32>
    %476 = tpu.matmul %419, %9, %cst_135 {dimension_numbers = #tpu.dot_dimension_numbers<[1], [0], [0], [1], [0, 0, 1, 1], [], []>, precision = #tpu.contract_precision<fp32>} : vector<8x16xf32>, vector<16x144xf32>, vector<8x144xf32> -> vector<8x144xf32>
    %477 = vector.extract_strided_slice %476 {offsets = [0, 0], sizes = [8, 128], strides = [1, 1]} : vector<8x144xf32> to vector<8x128xf32>
    %478 = vector.extract_strided_slice %476 {offsets = [0, 128], sizes = [8, 16], strides = [1, 1]} : vector<8x144xf32> to vector<8x16xf32>
    %cst_136 = arith.constant dense<0.000000e+00> : vector<8x16xf32>
    %479 = tpu.matmul %439, %7, %cst_136 {dimension_numbers = #tpu.dot_dimension_numbers<[1], [0], [0], [1], [0, 0, 1, 1], [], []>, precision = #tpu.contract_precision<fp32>} : vector<8x16xf32>, vector<16x16xf32>, vector<8x16xf32> -> vector<8x16xf32>
    %480 = arith.addf %479, %478 : vector<8x16xf32>
    %481 = vector.broadcast %8 : vector<1x16xf32> to vector<8x16xf32>
    %482 = arith.addf %480, %481 : vector<8x16xf32>
    %483 = arith.negf %482 : vector<8x16xf32>
    %484 = math.exp %483 : vector<8x16xf32>
    %cst_137 = arith.constant 1.000000e+00 : f32
    %485 = vector.broadcast %cst_137 : f32 to vector<8x16xf32>
    %486 = arith.addf %485, %484 : vector<8x16xf32>
    %487 = arith.divf %485, %486 : vector<8x16xf32>
    %488 = arith.mulf %487, %464 : vector<8x16xf32>
    %cst_138 = arith.constant 1.000000e+00 : f32
    %489 = vector.broadcast %cst_138 : f32 to vector<8x16xf32>
    %490 = arith.subf %489, %487 : vector<8x16xf32>
    %491 = arith.mulf %490, %445 : vector<8x16xf32>
    %492 = arith.addf %488, %491 : vector<8x16xf32>
    %493 = arith.mulf %492, %0 : vector<8x16xf32>
    %494 = arith.subf %493, %423 : vector<8x16xf32>
    %495 = math.absf %494 : vector<8x16xf32>
    %496 = arith.mulf %495, %419 : vector<8x16xf32>
    %497 = vector.shape_cast %496 : vector<8x16xf32> to vector<1x8x16xf32>
    %cst_139 = arith.constant dense<0.000000e+00> : vector<1xf32>
    %498 = vector.multi_reduction <add>, %497, %cst_139 [1, 2] : vector<1x8x16xf32> to vector<1xf32>
    %499 = vector.shape_cast %498 : vector<1xf32> to vector<1x1x1xf32>
    %500 = vector.extract %499[0, 0, 0] : f32 from vector<1x1x1xf32>
    %501 = arith.mulf %500, %429 : f32
    %502 = vector.broadcast %501 : f32 to vector<1x1xf32>
    %503 = arith.addf %475, %502 : vector<1x1xf32>
    %504 = arith.mulf %419, %416 : vector<8x16xf32>
    %cst_140 = arith.constant 1.000000e+00 : f32
    %505 = vector.broadcast %cst_140 : f32 to vector<8x16xf32>
    %506 = arith.subf %505, %419 : vector<8x16xf32>
    %507 = arith.mulf %506, %492 : vector<8x16xf32>
    %508 = arith.addf %504, %507 : vector<8x16xf32>
    %509 = arith.index_cast %c3_i32 : i32 to index
    %c0_141 = arith.constant 0 : index
    %c0_142 = arith.constant 0 : index
    %510 = vector.load %arg16[%509, %c0_141, %c0_142] : memref<8x8x16xf32, #tpu.memory_space<vmem>>, vector<1x8x16xf32>
    %511 = vector.shape_cast %510 : vector<1x8x16xf32> to vector<8x16xf32>
    %512 = vector.shape_cast %492 : vector<8x16xf32> to vector<1x8x16xf32>
    tpu.vector_store %arg16[%509, %c0_141, %c0_142], %512 {strides = array<i32>} : memref<8x8x16xf32, #tpu.memory_space<vmem>>, vector<1x8x16xf32>,
    %513 = arith.index_cast %c3_i32 : i32 to index
    %c0_143 = arith.constant 0 : index
    %c0_144 = arith.constant 0 : index
    %514 = vector.load %arg17[%513, %c0_143, %c0_144] : memref<8x8x16xf32, #tpu.memory_space<vmem>>, vector<1x8x16xf32>
    %515 = vector.shape_cast %514 : vector<1x8x16xf32> to vector<8x16xf32>
    %516 = vector.shape_cast %508 : vector<8x16xf32> to vector<1x8x16xf32>
    tpu.vector_store %arg17[%513, %c0_143, %c0_144], %516 {strides = array<i32>} : memref<8x8x16xf32, #tpu.memory_space<vmem>>, vector<1x8x16xf32>,
    %cst_145 = arith.constant dense<0.000000e+00> : vector<8x128xf32>
    %517 = tpu.matmul %508, %10, %cst_145 {dimension_numbers = #tpu.dot_dimension_numbers<[1], [0], [0], [1], [0, 0, 1, 1], [], []>, precision = #tpu.contract_precision<fp32>} : vector<8x16xf32>, vector<16x128xf32>, vector<8x128xf32> -> vector<8x128xf32>
    %518 = arith.addf %517, %477 : vector<8x128xf32>
    %519 = arith.addf %518, %442 : vector<8x128xf32>
    %520 = vector.broadcast %11 : vector<1x128xf32> to vector<8x128xf32>
    %521 = arith.addf %519, %520 : vector<8x128xf32>
    %522 = vector.extract_strided_slice %521 {offsets = [0, 0], sizes = [8, 32], strides = [1, 1]} : vector<8x128xf32> to vector<8x32xf32>
    %523 = arith.negf %522 : vector<8x32xf32>
    %524 = math.exp %523 : vector<8x32xf32>
    %cst_146 = arith.constant 1.000000e+00 : f32
    %525 = vector.broadcast %cst_146 : f32 to vector<8x32xf32>
    %526 = arith.addf %525, %524 : vector<8x32xf32>
    %527 = arith.divf %525, %526 : vector<8x32xf32>
    %528 = vector.extract_strided_slice %521 {offsets = [0, 32], sizes = [8, 32], strides = [1, 1]} : vector<8x128xf32> to vector<8x32xf32>
    %529 = arith.negf %528 : vector<8x32xf32>
    %530 = math.exp %529 : vector<8x32xf32>
    %cst_147 = arith.constant 1.000000e+00 : f32
    %531 = vector.broadcast %cst_147 : f32 to vector<8x32xf32>
    %532 = arith.addf %531, %530 : vector<8x32xf32>
    %533 = arith.divf %531, %532 : vector<8x32xf32>
    %534 = vector.extract_strided_slice %521 {offsets = [0, 64], sizes = [8, 32], strides = [1, 1]} : vector<8x128xf32> to vector<8x32xf32>
    %535 = math.tanh %534 : vector<8x32xf32>
    %536 = vector.extract_strided_slice %521 {offsets = [0, 96], sizes = [8, 32], strides = [1, 1]} : vector<8x128xf32> to vector<8x32xf32>
    %537 = arith.negf %536 : vector<8x32xf32>
    %538 = math.exp %537 : vector<8x32xf32>
    %cst_148 = arith.constant 1.000000e+00 : f32
    %539 = vector.broadcast %cst_148 : f32 to vector<8x32xf32>
    %540 = arith.addf %539, %538 : vector<8x32xf32>
    %541 = arith.divf %539, %540 : vector<8x32xf32>
    %542 = arith.mulf %533, %411 : vector<8x32xf32>
    %543 = arith.mulf %527, %535 : vector<8x32xf32>
    %544 = arith.addf %542, %543 : vector<8x32xf32>
    %545 = math.tanh %544 : vector<8x32xf32>
    %546 = arith.mulf %541, %545 : vector<8x32xf32>
    %c4_i32 = arith.constant 4 : i32
    %547 = arith.index_cast %c4_i32 : i32 to index
    %c0_149 = arith.constant 0 : index
    %c0_150 = arith.constant 0 : index
    %548 = vector.load %arg1[%547, %c0_149, %c0_150] : memref<8x8x16xf32, #tpu.memory_space<vmem>>, vector<1x8x16xf32>
    %549 = vector.shape_cast %548 : vector<1x8x16xf32> to vector<8x16xf32>
    %550 = arith.index_cast %c4_i32 : i32 to index
    %c0_151 = arith.constant 0 : index
    %c0_152 = arith.constant 0 : index
    %551 = vector.load %arg2[%550, %c0_151, %c0_152] : memref<8x8x16xf32, #tpu.memory_space<vmem>>, vector<1x8x16xf32>
    %552 = vector.shape_cast %551 : vector<1x8x16xf32> to vector<8x16xf32>
    %553 = arith.index_cast %c4_i32 : i32 to index
    %c0_153 = arith.constant 0 : index
    %c0_154 = arith.constant 0 : index
    %554 = vector.load %arg3[%553, %c0_153, %c0_154] : memref<8x8x16xf32, #tpu.memory_space<vmem>>, vector<1x8x16xf32>
    %555 = vector.shape_cast %554 : vector<1x8x16xf32> to vector<8x16xf32>
    %556 = arith.mulf %549, %0 : vector<8x16xf32>
    %557 = vector.shape_cast %552 : vector<8x16xf32> to vector<1x8x16xf32>
    %cst_155 = arith.constant dense<0.000000e+00> : vector<1xf32>
    %558 = vector.multi_reduction <add>, %557, %cst_155 [1, 2] : vector<1x8x16xf32> to vector<1xf32>
    %559 = vector.shape_cast %558 : vector<1xf32> to vector<1x1x1xf32>
    %560 = vector.extract %559[0, 0, 0] : f32 from vector<1x1x1xf32>
    %cst_156 = arith.constant 9.99999996E-13 : f32
    %561 = arith.addf %560, %cst_156 : f32
    %cst_157 = arith.constant 1.000000e+00 : f32
    %562 = arith.divf %cst_157, %561 : f32
    %cst_158 = arith.constant dense<0.000000e+00> : vector<8x48xf32>
    %563 = tpu.matmul %555, %1, %cst_158 {dimension_numbers = #tpu.dot_dimension_numbers<[1], [0], [0], [1], [0, 0, 1, 1], [], []>, precision = #tpu.contract_precision<fp32>} : vector<8x16xf32>, vector<16x48xf32>, vector<8x48xf32> -> vector<8x48xf32>
    %564 = vector.broadcast %2 : vector<1x48xf32> to vector<8x48xf32>
    %565 = arith.addf %563, %564 : vector<8x48xf32>
    %cst_159 = arith.constant 0.000000e+00 : f32
    %566 = vector.broadcast %cst_159 : f32 to vector<8x48xf32>
    %567 = arith.maximumf %565, %566 : vector<8x48xf32>
    %cst_160 = arith.constant 0.000000e+00 : f32
    %568 = vector.broadcast %cst_160 : f32 to vector<8x48xf32>
    %569 = arith.subf %568, %567 : vector<8x48xf32>
    %570 = math.exp %569 : vector<8x48xf32>
    %571 = vector.extract_strided_slice %570 {offsets = [0, 0], sizes = [8, 32], strides = [1, 1]} : vector<8x48xf32> to vector<8x32xf32>
    %572 = vector.extract_strided_slice %570 {offsets = [0, 32], sizes = [8, 16], strides = [1, 1]} : vector<8x48xf32> to vector<8x16xf32>
    %573 = arith.mulf %546, %571 : vector<8x32xf32>
    %cst_161 = arith.constant dense<0.000000e+00> : vector<8x144xf32>
    %574 = tpu.matmul %573, %3, %cst_161 {dimension_numbers = #tpu.dot_dimension_numbers<[1], [0], [0], [1], [0, 0, 1, 1], [], []>, precision = #tpu.contract_precision<fp32>} : vector<8x32xf32>, vector<32x144xf32>, vector<8x144xf32> -> vector<8x144xf32>
    %575 = vector.extract_strided_slice %574 {offsets = [0, 0], sizes = [8, 128], strides = [1, 1]} : vector<8x144xf32> to vector<8x128xf32>
    %576 = vector.extract_strided_slice %574 {offsets = [0, 128], sizes = [8, 16], strides = [1, 1]} : vector<8x144xf32> to vector<8x16xf32>
    %577 = vector.broadcast %4 : vector<1x16xf32> to vector<8x16xf32>
    %578 = arith.addf %576, %577 : vector<8x16xf32>
    %579 = arith.mulf %578, %0 : vector<8x16xf32>
    %580 = arith.subf %579, %556 : vector<8x16xf32>
    %581 = math.absf %580 : vector<8x16xf32>
    %582 = arith.mulf %581, %552 : vector<8x16xf32>
    %583 = vector.shape_cast %582 : vector<8x16xf32> to vector<1x8x16xf32>
    %cst_162 = arith.constant dense<0.000000e+00> : vector<1xf32>
    %584 = vector.multi_reduction <add>, %583, %cst_162 [1, 2] : vector<1x8x16xf32> to vector<1xf32>
    %585 = vector.shape_cast %584 : vector<1xf32> to vector<1x1x1xf32>
    %586 = vector.extract %585[0, 0, 0] : f32 from vector<1x1x1xf32>
    %587 = arith.mulf %586, %562 : f32
    %588 = vector.broadcast %587 : f32 to vector<1x1xf32>
    %589 = arith.addf %503, %588 : vector<1x1xf32>
    %590 = arith.mulf %552, %549 : vector<8x16xf32>
    %cst_163 = arith.constant 1.000000e+00 : f32
    %591 = vector.broadcast %cst_163 : f32 to vector<8x16xf32>
    %592 = arith.subf %591, %552 : vector<8x16xf32>
    %593 = arith.mulf %592, %578 : vector<8x16xf32>
    %594 = arith.addf %590, %593 : vector<8x16xf32>
    %cst_164 = arith.constant dense<0.000000e+00> : vector<8x16xf32>
    %595 = tpu.matmul %594, %5, %cst_164 {dimension_numbers = #tpu.dot_dimension_numbers<[1], [0], [0], [1], [0, 0, 1, 1], [], []>, precision = #tpu.contract_precision<fp32>} : vector<8x16xf32>, vector<16x16xf32>, vector<8x16xf32> -> vector<8x16xf32>
    %596 = vector.broadcast %6 : vector<1x16xf32> to vector<8x16xf32>
    %597 = arith.addf %595, %596 : vector<8x16xf32>
    %598 = arith.mulf %597, %0 : vector<8x16xf32>
    %599 = arith.subf %598, %556 : vector<8x16xf32>
    %600 = math.absf %599 : vector<8x16xf32>
    %601 = arith.mulf %600, %552 : vector<8x16xf32>
    %602 = vector.shape_cast %601 : vector<8x16xf32> to vector<1x8x16xf32>
    %cst_165 = arith.constant dense<0.000000e+00> : vector<1xf32>
    %603 = vector.multi_reduction <add>, %602, %cst_165 [1, 2] : vector<1x8x16xf32> to vector<1xf32>
    %604 = vector.shape_cast %603 : vector<1xf32> to vector<1x1x1xf32>
    %605 = vector.extract %604[0, 0, 0] : f32 from vector<1x1x1xf32>
    %606 = arith.mulf %605, %562 : f32
    %607 = vector.broadcast %606 : f32 to vector<1x1xf32>
    %608 = arith.addf %589, %607 : vector<1x1xf32>
    %cst_166 = arith.constant dense<0.000000e+00> : vector<8x144xf32>
    %609 = tpu.matmul %552, %9, %cst_166 {dimension_numbers = #tpu.dot_dimension_numbers<[1], [0], [0], [1], [0, 0, 1, 1], [], []>, precision = #tpu.contract_precision<fp32>} : vector<8x16xf32>, vector<16x144xf32>, vector<8x144xf32> -> vector<8x144xf32>
    %610 = vector.extract_strided_slice %609 {offsets = [0, 0], sizes = [8, 128], strides = [1, 1]} : vector<8x144xf32> to vector<8x128xf32>
    %611 = vector.extract_strided_slice %609 {offsets = [0, 128], sizes = [8, 16], strides = [1, 1]} : vector<8x144xf32> to vector<8x16xf32>
    %cst_167 = arith.constant dense<0.000000e+00> : vector<8x16xf32>
    %612 = tpu.matmul %572, %7, %cst_167 {dimension_numbers = #tpu.dot_dimension_numbers<[1], [0], [0], [1], [0, 0, 1, 1], [], []>, precision = #tpu.contract_precision<fp32>} : vector<8x16xf32>, vector<16x16xf32>, vector<8x16xf32> -> vector<8x16xf32>
    %613 = arith.addf %612, %611 : vector<8x16xf32>
    %614 = vector.broadcast %8 : vector<1x16xf32> to vector<8x16xf32>
    %615 = arith.addf %613, %614 : vector<8x16xf32>
    %616 = arith.negf %615 : vector<8x16xf32>
    %617 = math.exp %616 : vector<8x16xf32>
    %cst_168 = arith.constant 1.000000e+00 : f32
    %618 = vector.broadcast %cst_168 : f32 to vector<8x16xf32>
    %619 = arith.addf %618, %617 : vector<8x16xf32>
    %620 = arith.divf %618, %619 : vector<8x16xf32>
    %621 = arith.mulf %620, %597 : vector<8x16xf32>
    %cst_169 = arith.constant 1.000000e+00 : f32
    %622 = vector.broadcast %cst_169 : f32 to vector<8x16xf32>
    %623 = arith.subf %622, %620 : vector<8x16xf32>
    %624 = arith.mulf %623, %578 : vector<8x16xf32>
    %625 = arith.addf %621, %624 : vector<8x16xf32>
    %626 = arith.mulf %625, %0 : vector<8x16xf32>
    %627 = arith.subf %626, %556 : vector<8x16xf32>
    %628 = math.absf %627 : vector<8x16xf32>
    %629 = arith.mulf %628, %552 : vector<8x16xf32>
    %630 = vector.shape_cast %629 : vector<8x16xf32> to vector<1x8x16xf32>
    %cst_170 = arith.constant dense<0.000000e+00> : vector<1xf32>
    %631 = vector.multi_reduction <add>, %630, %cst_170 [1, 2] : vector<1x8x16xf32> to vector<1xf32>
    %632 = vector.shape_cast %631 : vector<1xf32> to vector<1x1x1xf32>
    %633 = vector.extract %632[0, 0, 0] : f32 from vector<1x1x1xf32>
    %634 = arith.mulf %633, %562 : f32
    %635 = vector.broadcast %634 : f32 to vector<1x1xf32>
    %636 = arith.addf %608, %635 : vector<1x1xf32>
    %637 = arith.mulf %552, %549 : vector<8x16xf32>
    %cst_171 = arith.constant 1.000000e+00 : f32
    %638 = vector.broadcast %cst_171 : f32 to vector<8x16xf32>
    %639 = arith.subf %638, %552 : vector<8x16xf32>
    %640 = arith.mulf %639, %625 : vector<8x16xf32>
    %641 = arith.addf %637, %640 : vector<8x16xf32>
    %642 = arith.index_cast %c4_i32 : i32 to index
    %c0_172 = arith.constant 0 : index
    %c0_173 = arith.constant 0 : index
    %643 = vector.load %arg16[%642, %c0_172, %c0_173] : memref<8x8x16xf32, #tpu.memory_space<vmem>>, vector<1x8x16xf32>
    %644 = vector.shape_cast %643 : vector<1x8x16xf32> to vector<8x16xf32>
    %645 = vector.shape_cast %625 : vector<8x16xf32> to vector<1x8x16xf32>
    tpu.vector_store %arg16[%642, %c0_172, %c0_173], %645 {strides = array<i32>} : memref<8x8x16xf32, #tpu.memory_space<vmem>>, vector<1x8x16xf32>,
    %646 = arith.index_cast %c4_i32 : i32 to index
    %c0_174 = arith.constant 0 : index
    %c0_175 = arith.constant 0 : index
    %647 = vector.load %arg17[%646, %c0_174, %c0_175] : memref<8x8x16xf32, #tpu.memory_space<vmem>>, vector<1x8x16xf32>
    %648 = vector.shape_cast %647 : vector<1x8x16xf32> to vector<8x16xf32>
    %649 = vector.shape_cast %641 : vector<8x16xf32> to vector<1x8x16xf32>
    tpu.vector_store %arg17[%646, %c0_174, %c0_175], %649 {strides = array<i32>} : memref<8x8x16xf32, #tpu.memory_space<vmem>>, vector<1x8x16xf32>,
    %cst_176 = arith.constant dense<0.000000e+00> : vector<8x128xf32>
    %650 = tpu.matmul %641, %10, %cst_176 {dimension_numbers = #tpu.dot_dimension_numbers<[1], [0], [0], [1], [0, 0, 1, 1], [], []>, precision = #tpu.contract_precision<fp32>} : vector<8x16xf32>, vector<16x128xf32>, vector<8x128xf32> -> vector<8x128xf32>
    %651 = arith.addf %650, %610 : vector<8x128xf32>
    %652 = arith.addf %651, %575 : vector<8x128xf32>
    %653 = vector.broadcast %11 : vector<1x128xf32> to vector<8x128xf32>
    %654 = arith.addf %652, %653 : vector<8x128xf32>
    %655 = vector.extract_strided_slice %654 {offsets = [0, 0], sizes = [8, 32], strides = [1, 1]} : vector<8x128xf32> to vector<8x32xf32>
    %656 = arith.negf %655 : vector<8x32xf32>
    %657 = math.exp %656 : vector<8x32xf32>
    %cst_177 = arith.constant 1.000000e+00 : f32
    %658 = vector.broadcast %cst_177 : f32 to vector<8x32xf32>
    %659 = arith.addf %658, %657 : vector<8x32xf32>
    %660 = arith.divf %658, %659 : vector<8x32xf32>
    %661 = vector.extract_strided_slice %654 {offsets = [0, 32], sizes = [8, 32], strides = [1, 1]} : vector<8x128xf32> to vector<8x32xf32>
    %662 = arith.negf %661 : vector<8x32xf32>
    %663 = math.exp %662 : vector<8x32xf32>
    %cst_178 = arith.constant 1.000000e+00 : f32
    %664 = vector.broadcast %cst_178 : f32 to vector<8x32xf32>
    %665 = arith.addf %664, %663 : vector<8x32xf32>
    %666 = arith.divf %664, %665 : vector<8x32xf32>
    %667 = vector.extract_strided_slice %654 {offsets = [0, 64], sizes = [8, 32], strides = [1, 1]} : vector<8x128xf32> to vector<8x32xf32>
    %668 = math.tanh %667 : vector<8x32xf32>
    %669 = vector.extract_strided_slice %654 {offsets = [0, 96], sizes = [8, 32], strides = [1, 1]} : vector<8x128xf32> to vector<8x32xf32>
    %670 = arith.negf %669 : vector<8x32xf32>
    %671 = math.exp %670 : vector<8x32xf32>
    %cst_179 = arith.constant 1.000000e+00 : f32
    %672 = vector.broadcast %cst_179 : f32 to vector<8x32xf32>
    %673 = arith.addf %672, %671 : vector<8x32xf32>
    %674 = arith.divf %672, %673 : vector<8x32xf32>
    %675 = arith.mulf %666, %544 : vector<8x32xf32>
    %676 = arith.mulf %660, %668 : vector<8x32xf32>
    %677 = arith.addf %675, %676 : vector<8x32xf32>
    %678 = math.tanh %677 : vector<8x32xf32>
    %679 = arith.mulf %674, %678 : vector<8x32xf32>
    %c5_i32 = arith.constant 5 : i32
    %680 = arith.index_cast %c5_i32 : i32 to index
    %c0_180 = arith.constant 0 : index
    %c0_181 = arith.constant 0 : index
    %681 = vector.load %arg1[%680, %c0_180, %c0_181] : memref<8x8x16xf32, #tpu.memory_space<vmem>>, vector<1x8x16xf32>
    %682 = vector.shape_cast %681 : vector<1x8x16xf32> to vector<8x16xf32>
    %683 = arith.index_cast %c5_i32 : i32 to index
    %c0_182 = arith.constant 0 : index
    %c0_183 = arith.constant 0 : index
    %684 = vector.load %arg2[%683, %c0_182, %c0_183] : memref<8x8x16xf32, #tpu.memory_space<vmem>>, vector<1x8x16xf32>
    %685 = vector.shape_cast %684 : vector<1x8x16xf32> to vector<8x16xf32>
    %686 = arith.index_cast %c5_i32 : i32 to index
    %c0_184 = arith.constant 0 : index
    %c0_185 = arith.constant 0 : index
    %687 = vector.load %arg3[%686, %c0_184, %c0_185] : memref<8x8x16xf32, #tpu.memory_space<vmem>>, vector<1x8x16xf32>
    %688 = vector.shape_cast %687 : vector<1x8x16xf32> to vector<8x16xf32>
    %689 = arith.mulf %682, %0 : vector<8x16xf32>
    %690 = vector.shape_cast %685 : vector<8x16xf32> to vector<1x8x16xf32>
    %cst_186 = arith.constant dense<0.000000e+00> : vector<1xf32>
    %691 = vector.multi_reduction <add>, %690, %cst_186 [1, 2] : vector<1x8x16xf32> to vector<1xf32>
    %692 = vector.shape_cast %691 : vector<1xf32> to vector<1x1x1xf32>
    %693 = vector.extract %692[0, 0, 0] : f32 from vector<1x1x1xf32>
    %cst_187 = arith.constant 9.99999996E-13 : f32
    %694 = arith.addf %693, %cst_187 : f32
    %cst_188 = arith.constant 1.000000e+00 : f32
    %695 = arith.divf %cst_188, %694 : f32
    %cst_189 = arith.constant dense<0.000000e+00> : vector<8x48xf32>
    %696 = tpu.matmul %688, %1, %cst_189 {dimension_numbers = #tpu.dot_dimension_numbers<[1], [0], [0], [1], [0, 0, 1, 1], [], []>, precision = #tpu.contract_precision<fp32>} : vector<8x16xf32>, vector<16x48xf32>, vector<8x48xf32> -> vector<8x48xf32>
    %697 = vector.broadcast %2 : vector<1x48xf32> to vector<8x48xf32>
    %698 = arith.addf %696, %697 : vector<8x48xf32>
    %cst_190 = arith.constant 0.000000e+00 : f32
    %699 = vector.broadcast %cst_190 : f32 to vector<8x48xf32>
    %700 = arith.maximumf %698, %699 : vector<8x48xf32>
    %cst_191 = arith.constant 0.000000e+00 : f32
    %701 = vector.broadcast %cst_191 : f32 to vector<8x48xf32>
    %702 = arith.subf %701, %700 : vector<8x48xf32>
    %703 = math.exp %702 : vector<8x48xf32>
    %704 = vector.extract_strided_slice %703 {offsets = [0, 0], sizes = [8, 32], strides = [1, 1]} : vector<8x48xf32> to vector<8x32xf32>
    %705 = vector.extract_strided_slice %703 {offsets = [0, 32], sizes = [8, 16], strides = [1, 1]} : vector<8x48xf32> to vector<8x16xf32>
    %706 = arith.mulf %679, %704 : vector<8x32xf32>
    %cst_192 = arith.constant dense<0.000000e+00> : vector<8x144xf32>
    %707 = tpu.matmul %706, %3, %cst_192 {dimension_numbers = #tpu.dot_dimension_numbers<[1], [0], [0], [1], [0, 0, 1, 1], [], []>, precision = #tpu.contract_precision<fp32>} : vector<8x32xf32>, vector<32x144xf32>, vector<8x144xf32> -> vector<8x144xf32>
    %708 = vector.extract_strided_slice %707 {offsets = [0, 0], sizes = [8, 128], strides = [1, 1]} : vector<8x144xf32> to vector<8x128xf32>
    %709 = vector.extract_strided_slice %707 {offsets = [0, 128], sizes = [8, 16], strides = [1, 1]} : vector<8x144xf32> to vector<8x16xf32>
    %710 = vector.broadcast %4 : vector<1x16xf32> to vector<8x16xf32>
    %711 = arith.addf %709, %710 : vector<8x16xf32>
    %712 = arith.mulf %711, %0 : vector<8x16xf32>
    %713 = arith.subf %712, %689 : vector<8x16xf32>
    %714 = math.absf %713 : vector<8x16xf32>
    %715 = arith.mulf %714, %685 : vector<8x16xf32>
    %716 = vector.shape_cast %715 : vector<8x16xf32> to vector<1x8x16xf32>
    %cst_193 = arith.constant dense<0.000000e+00> : vector<1xf32>
    %717 = vector.multi_reduction <add>, %716, %cst_193 [1, 2] : vector<1x8x16xf32> to vector<1xf32>
    %718 = vector.shape_cast %717 : vector<1xf32> to vector<1x1x1xf32>
    %719 = vector.extract %718[0, 0, 0] : f32 from vector<1x1x1xf32>
    %720 = arith.mulf %719, %695 : f32
    %721 = vector.broadcast %720 : f32 to vector<1x1xf32>
    %722 = arith.addf %636, %721 : vector<1x1xf32>
    %723 = arith.mulf %685, %682 : vector<8x16xf32>
    %cst_194 = arith.constant 1.000000e+00 : f32
    %724 = vector.broadcast %cst_194 : f32 to vector<8x16xf32>
    %725 = arith.subf %724, %685 : vector<8x16xf32>
    %726 = arith.mulf %725, %711 : vector<8x16xf32>
    %727 = arith.addf %723, %726 : vector<8x16xf32>
    %cst_195 = arith.constant dense<0.000000e+00> : vector<8x16xf32>
    %728 = tpu.matmul %727, %5, %cst_195 {dimension_numbers = #tpu.dot_dimension_numbers<[1], [0], [0], [1], [0, 0, 1, 1], [], []>, precision = #tpu.contract_precision<fp32>} : vector<8x16xf32>, vector<16x16xf32>, vector<8x16xf32> -> vector<8x16xf32>
    %729 = vector.broadcast %6 : vector<1x16xf32> to vector<8x16xf32>
    %730 = arith.addf %728, %729 : vector<8x16xf32>
    %731 = arith.mulf %730, %0 : vector<8x16xf32>
    %732 = arith.subf %731, %689 : vector<8x16xf32>
    %733 = math.absf %732 : vector<8x16xf32>
    %734 = arith.mulf %733, %685 : vector<8x16xf32>
    %735 = vector.shape_cast %734 : vector<8x16xf32> to vector<1x8x16xf32>
    %cst_196 = arith.constant dense<0.000000e+00> : vector<1xf32>
    %736 = vector.multi_reduction <add>, %735, %cst_196 [1, 2] : vector<1x8x16xf32> to vector<1xf32>
    %737 = vector.shape_cast %736 : vector<1xf32> to vector<1x1x1xf32>
    %738 = vector.extract %737[0, 0, 0] : f32 from vector<1x1x1xf32>
    %739 = arith.mulf %738, %695 : f32
    %740 = vector.broadcast %739 : f32 to vector<1x1xf32>
    %741 = arith.addf %722, %740 : vector<1x1xf32>
    %cst_197 = arith.constant dense<0.000000e+00> : vector<8x144xf32>
    %742 = tpu.matmul %685, %9, %cst_197 {dimension_numbers = #tpu.dot_dimension_numbers<[1], [0], [0], [1], [0, 0, 1, 1], [], []>, precision = #tpu.contract_precision<fp32>} : vector<8x16xf32>, vector<16x144xf32>, vector<8x144xf32> -> vector<8x144xf32>
    %743 = vector.extract_strided_slice %742 {offsets = [0, 0], sizes = [8, 128], strides = [1, 1]} : vector<8x144xf32> to vector<8x128xf32>
    %744 = vector.extract_strided_slice %742 {offsets = [0, 128], sizes = [8, 16], strides = [1, 1]} : vector<8x144xf32> to vector<8x16xf32>
    %cst_198 = arith.constant dense<0.000000e+00> : vector<8x16xf32>
    %745 = tpu.matmul %705, %7, %cst_198 {dimension_numbers = #tpu.dot_dimension_numbers<[1], [0], [0], [1], [0, 0, 1, 1], [], []>, precision = #tpu.contract_precision<fp32>} : vector<8x16xf32>, vector<16x16xf32>, vector<8x16xf32> -> vector<8x16xf32>
    %746 = arith.addf %745, %744 : vector<8x16xf32>
    %747 = vector.broadcast %8 : vector<1x16xf32> to vector<8x16xf32>
    %748 = arith.addf %746, %747 : vector<8x16xf32>
    %749 = arith.negf %748 : vector<8x16xf32>
    %750 = math.exp %749 : vector<8x16xf32>
    %cst_199 = arith.constant 1.000000e+00 : f32
    %751 = vector.broadcast %cst_199 : f32 to vector<8x16xf32>
    %752 = arith.addf %751, %750 : vector<8x16xf32>
    %753 = arith.divf %751, %752 : vector<8x16xf32>
    %754 = arith.mulf %753, %730 : vector<8x16xf32>
    %cst_200 = arith.constant 1.000000e+00 : f32
    %755 = vector.broadcast %cst_200 : f32 to vector<8x16xf32>
    %756 = arith.subf %755, %753 : vector<8x16xf32>
    %757 = arith.mulf %756, %711 : vector<8x16xf32>
    %758 = arith.addf %754, %757 : vector<8x16xf32>
    %759 = arith.mulf %758, %0 : vector<8x16xf32>
    %760 = arith.subf %759, %689 : vector<8x16xf32>
    %761 = math.absf %760 : vector<8x16xf32>
    %762 = arith.mulf %761, %685 : vector<8x16xf32>
    %763 = vector.shape_cast %762 : vector<8x16xf32> to vector<1x8x16xf32>
    %cst_201 = arith.constant dense<0.000000e+00> : vector<1xf32>
    %764 = vector.multi_reduction <add>, %763, %cst_201 [1, 2] : vector<1x8x16xf32> to vector<1xf32>
    %765 = vector.shape_cast %764 : vector<1xf32> to vector<1x1x1xf32>
    %766 = vector.extract %765[0, 0, 0] : f32 from vector<1x1x1xf32>
    %767 = arith.mulf %766, %695 : f32
    %768 = vector.broadcast %767 : f32 to vector<1x1xf32>
    %769 = arith.addf %741, %768 : vector<1x1xf32>
    %770 = arith.mulf %685, %682 : vector<8x16xf32>
    %cst_202 = arith.constant 1.000000e+00 : f32
    %771 = vector.broadcast %cst_202 : f32 to vector<8x16xf32>
    %772 = arith.subf %771, %685 : vector<8x16xf32>
    %773 = arith.mulf %772, %758 : vector<8x16xf32>
    %774 = arith.addf %770, %773 : vector<8x16xf32>
    %775 = arith.index_cast %c5_i32 : i32 to index
    %c0_203 = arith.constant 0 : index
    %c0_204 = arith.constant 0 : index
    %776 = vector.load %arg16[%775, %c0_203, %c0_204] : memref<8x8x16xf32, #tpu.memory_space<vmem>>, vector<1x8x16xf32>
    %777 = vector.shape_cast %776 : vector<1x8x16xf32> to vector<8x16xf32>
    %778 = vector.shape_cast %758 : vector<8x16xf32> to vector<1x8x16xf32>
    tpu.vector_store %arg16[%775, %c0_203, %c0_204], %778 {strides = array<i32>} : memref<8x8x16xf32, #tpu.memory_space<vmem>>, vector<1x8x16xf32>,
    %779 = arith.index_cast %c5_i32 : i32 to index
    %c0_205 = arith.constant 0 : index
    %c0_206 = arith.constant 0 : index
    %780 = vector.load %arg17[%779, %c0_205, %c0_206] : memref<8x8x16xf32, #tpu.memory_space<vmem>>, vector<1x8x16xf32>
    %781 = vector.shape_cast %780 : vector<1x8x16xf32> to vector<8x16xf32>
    %782 = vector.shape_cast %774 : vector<8x16xf32> to vector<1x8x16xf32>
    tpu.vector_store %arg17[%779, %c0_205, %c0_206], %782 {strides = array<i32>} : memref<8x8x16xf32, #tpu.memory_space<vmem>>, vector<1x8x16xf32>,
    %cst_207 = arith.constant dense<0.000000e+00> : vector<8x128xf32>
    %783 = tpu.matmul %774, %10, %cst_207 {dimension_numbers = #tpu.dot_dimension_numbers<[1], [0], [0], [1], [0, 0, 1, 1], [], []>, precision = #tpu.contract_precision<fp32>} : vector<8x16xf32>, vector<16x128xf32>, vector<8x128xf32> -> vector<8x128xf32>
    %784 = arith.addf %783, %743 : vector<8x128xf32>
    %785 = arith.addf %784, %708 : vector<8x128xf32>
    %786 = vector.broadcast %11 : vector<1x128xf32> to vector<8x128xf32>
    %787 = arith.addf %785, %786 : vector<8x128xf32>
    %788 = vector.extract_strided_slice %787 {offsets = [0, 0], sizes = [8, 32], strides = [1, 1]} : vector<8x128xf32> to vector<8x32xf32>
    %789 = arith.negf %788 : vector<8x32xf32>
    %790 = math.exp %789 : vector<8x32xf32>
    %cst_208 = arith.constant 1.000000e+00 : f32
    %791 = vector.broadcast %cst_208 : f32 to vector<8x32xf32>
    %792 = arith.addf %791, %790 : vector<8x32xf32>
    %793 = arith.divf %791, %792 : vector<8x32xf32>
    %794 = vector.extract_strided_slice %787 {offsets = [0, 32], sizes = [8, 32], strides = [1, 1]} : vector<8x128xf32> to vector<8x32xf32>
    %795 = arith.negf %794 : vector<8x32xf32>
    %796 = math.exp %795 : vector<8x32xf32>
    %cst_209 = arith.constant 1.000000e+00 : f32
    %797 = vector.broadcast %cst_209 : f32 to vector<8x32xf32>
    %798 = arith.addf %797, %796 : vector<8x32xf32>
    %799 = arith.divf %797, %798 : vector<8x32xf32>
    %800 = vector.extract_strided_slice %787 {offsets = [0, 64], sizes = [8, 32], strides = [1, 1]} : vector<8x128xf32> to vector<8x32xf32>
    %801 = math.tanh %800 : vector<8x32xf32>
    %802 = vector.extract_strided_slice %787 {offsets = [0, 96], sizes = [8, 32], strides = [1, 1]} : vector<8x128xf32> to vector<8x32xf32>
    %803 = arith.negf %802 : vector<8x32xf32>
    %804 = math.exp %803 : vector<8x32xf32>
    %cst_210 = arith.constant 1.000000e+00 : f32
    %805 = vector.broadcast %cst_210 : f32 to vector<8x32xf32>
    %806 = arith.addf %805, %804 : vector<8x32xf32>
    %807 = arith.divf %805, %806 : vector<8x32xf32>
    %808 = arith.mulf %799, %677 : vector<8x32xf32>
    %809 = arith.mulf %793, %801 : vector<8x32xf32>
    %810 = arith.addf %808, %809 : vector<8x32xf32>
    %811 = math.tanh %810 : vector<8x32xf32>
    %812 = arith.mulf %807, %811 : vector<8x32xf32>
    %c6_i32 = arith.constant 6 : i32
    %813 = arith.index_cast %c6_i32 : i32 to index
    %c0_211 = arith.constant 0 : index
    %c0_212 = arith.constant 0 : index
    %814 = vector.load %arg1[%813, %c0_211, %c0_212] : memref<8x8x16xf32, #tpu.memory_space<vmem>>, vector<1x8x16xf32>
    %815 = vector.shape_cast %814 : vector<1x8x16xf32> to vector<8x16xf32>
    %816 = arith.index_cast %c6_i32 : i32 to index
    %c0_213 = arith.constant 0 : index
    %c0_214 = arith.constant 0 : index
    %817 = vector.load %arg2[%816, %c0_213, %c0_214] : memref<8x8x16xf32, #tpu.memory_space<vmem>>, vector<1x8x16xf32>
    %818 = vector.shape_cast %817 : vector<1x8x16xf32> to vector<8x16xf32>
    %819 = arith.index_cast %c6_i32 : i32 to index
    %c0_215 = arith.constant 0 : index
    %c0_216 = arith.constant 0 : index
    %820 = vector.load %arg3[%819, %c0_215, %c0_216] : memref<8x8x16xf32, #tpu.memory_space<vmem>>, vector<1x8x16xf32>
    %821 = vector.shape_cast %820 : vector<1x8x16xf32> to vector<8x16xf32>
    %822 = arith.mulf %815, %0 : vector<8x16xf32>
    %823 = vector.shape_cast %818 : vector<8x16xf32> to vector<1x8x16xf32>
    %cst_217 = arith.constant dense<0.000000e+00> : vector<1xf32>
    %824 = vector.multi_reduction <add>, %823, %cst_217 [1, 2] : vector<1x8x16xf32> to vector<1xf32>
    %825 = vector.shape_cast %824 : vector<1xf32> to vector<1x1x1xf32>
    %826 = vector.extract %825[0, 0, 0] : f32 from vector<1x1x1xf32>
    %cst_218 = arith.constant 9.99999996E-13 : f32
    %827 = arith.addf %826, %cst_218 : f32
    %cst_219 = arith.constant 1.000000e+00 : f32
    %828 = arith.divf %cst_219, %827 : f32
    %cst_220 = arith.constant dense<0.000000e+00> : vector<8x48xf32>
    %829 = tpu.matmul %821, %1, %cst_220 {dimension_numbers = #tpu.dot_dimension_numbers<[1], [0], [0], [1], [0, 0, 1, 1], [], []>, precision = #tpu.contract_precision<fp32>} : vector<8x16xf32>, vector<16x48xf32>, vector<8x48xf32> -> vector<8x48xf32>
    %830 = vector.broadcast %2 : vector<1x48xf32> to vector<8x48xf32>
    %831 = arith.addf %829, %830 : vector<8x48xf32>
    %cst_221 = arith.constant 0.000000e+00 : f32
    %832 = vector.broadcast %cst_221 : f32 to vector<8x48xf32>
    %833 = arith.maximumf %831, %832 : vector<8x48xf32>
    %cst_222 = arith.constant 0.000000e+00 : f32
    %834 = vector.broadcast %cst_222 : f32 to vector<8x48xf32>
    %835 = arith.subf %834, %833 : vector<8x48xf32>
    %836 = math.exp %835 : vector<8x48xf32>
    %837 = vector.extract_strided_slice %836 {offsets = [0, 0], sizes = [8, 32], strides = [1, 1]} : vector<8x48xf32> to vector<8x32xf32>
    %838 = vector.extract_strided_slice %836 {offsets = [0, 32], sizes = [8, 16], strides = [1, 1]} : vector<8x48xf32> to vector<8x16xf32>
    %839 = arith.mulf %812, %837 : vector<8x32xf32>
    %cst_223 = arith.constant dense<0.000000e+00> : vector<8x144xf32>
    %840 = tpu.matmul %839, %3, %cst_223 {dimension_numbers = #tpu.dot_dimension_numbers<[1], [0], [0], [1], [0, 0, 1, 1], [], []>, precision = #tpu.contract_precision<fp32>} : vector<8x32xf32>, vector<32x144xf32>, vector<8x144xf32> -> vector<8x144xf32>
    %841 = vector.extract_strided_slice %840 {offsets = [0, 0], sizes = [8, 128], strides = [1, 1]} : vector<8x144xf32> to vector<8x128xf32>
    %842 = vector.extract_strided_slice %840 {offsets = [0, 128], sizes = [8, 16], strides = [1, 1]} : vector<8x144xf32> to vector<8x16xf32>
    %843 = vector.broadcast %4 : vector<1x16xf32> to vector<8x16xf32>
    %844 = arith.addf %842, %843 : vector<8x16xf32>
    %845 = arith.mulf %844, %0 : vector<8x16xf32>
    %846 = arith.subf %845, %822 : vector<8x16xf32>
    %847 = math.absf %846 : vector<8x16xf32>
    %848 = arith.mulf %847, %818 : vector<8x16xf32>
    %849 = vector.shape_cast %848 : vector<8x16xf32> to vector<1x8x16xf32>
    %cst_224 = arith.constant dense<0.000000e+00> : vector<1xf32>
    %850 = vector.multi_reduction <add>, %849, %cst_224 [1, 2] : vector<1x8x16xf32> to vector<1xf32>
    %851 = vector.shape_cast %850 : vector<1xf32> to vector<1x1x1xf32>
    %852 = vector.extract %851[0, 0, 0] : f32 from vector<1x1x1xf32>
    %853 = arith.mulf %852, %828 : f32
    %854 = vector.broadcast %853 : f32 to vector<1x1xf32>
    %855 = arith.addf %769, %854 : vector<1x1xf32>
    %856 = arith.mulf %818, %815 : vector<8x16xf32>
    %cst_225 = arith.constant 1.000000e+00 : f32
    %857 = vector.broadcast %cst_225 : f32 to vector<8x16xf32>
    %858 = arith.subf %857, %818 : vector<8x16xf32>
    %859 = arith.mulf %858, %844 : vector<8x16xf32>
    %860 = arith.addf %856, %859 : vector<8x16xf32>
    %cst_226 = arith.constant dense<0.000000e+00> : vector<8x16xf32>
    %861 = tpu.matmul %860, %5, %cst_226 {dimension_numbers = #tpu.dot_dimension_numbers<[1], [0], [0], [1], [0, 0, 1, 1], [], []>, precision = #tpu.contract_precision<fp32>} : vector<8x16xf32>, vector<16x16xf32>, vector<8x16xf32> -> vector<8x16xf32>
    %862 = vector.broadcast %6 : vector<1x16xf32> to vector<8x16xf32>
    %863 = arith.addf %861, %862 : vector<8x16xf32>
    %864 = arith.mulf %863, %0 : vector<8x16xf32>
    %865 = arith.subf %864, %822 : vector<8x16xf32>
    %866 = math.absf %865 : vector<8x16xf32>
    %867 = arith.mulf %866, %818 : vector<8x16xf32>
    %868 = vector.shape_cast %867 : vector<8x16xf32> to vector<1x8x16xf32>
    %cst_227 = arith.constant dense<0.000000e+00> : vector<1xf32>
    %869 = vector.multi_reduction <add>, %868, %cst_227 [1, 2] : vector<1x8x16xf32> to vector<1xf32>
    %870 = vector.shape_cast %869 : vector<1xf32> to vector<1x1x1xf32>
    %871 = vector.extract %870[0, 0, 0] : f32 from vector<1x1x1xf32>
    %872 = arith.mulf %871, %828 : f32
    %873 = vector.broadcast %872 : f32 to vector<1x1xf32>
    %874 = arith.addf %855, %873 : vector<1x1xf32>
    %cst_228 = arith.constant dense<0.000000e+00> : vector<8x144xf32>
    %875 = tpu.matmul %818, %9, %cst_228 {dimension_numbers = #tpu.dot_dimension_numbers<[1], [0], [0], [1], [0, 0, 1, 1], [], []>, precision = #tpu.contract_precision<fp32>} : vector<8x16xf32>, vector<16x144xf32>, vector<8x144xf32> -> vector<8x144xf32>
    %876 = vector.extract_strided_slice %875 {offsets = [0, 0], sizes = [8, 128], strides = [1, 1]} : vector<8x144xf32> to vector<8x128xf32>
    %877 = vector.extract_strided_slice %875 {offsets = [0, 128], sizes = [8, 16], strides = [1, 1]} : vector<8x144xf32> to vector<8x16xf32>
    %cst_229 = arith.constant dense<0.000000e+00> : vector<8x16xf32>
    %878 = tpu.matmul %838, %7, %cst_229 {dimension_numbers = #tpu.dot_dimension_numbers<[1], [0], [0], [1], [0, 0, 1, 1], [], []>, precision = #tpu.contract_precision<fp32>} : vector<8x16xf32>, vector<16x16xf32>, vector<8x16xf32> -> vector<8x16xf32>
    %879 = arith.addf %878, %877 : vector<8x16xf32>
    %880 = vector.broadcast %8 : vector<1x16xf32> to vector<8x16xf32>
    %881 = arith.addf %879, %880 : vector<8x16xf32>
    %882 = arith.negf %881 : vector<8x16xf32>
    %883 = math.exp %882 : vector<8x16xf32>
    %cst_230 = arith.constant 1.000000e+00 : f32
    %884 = vector.broadcast %cst_230 : f32 to vector<8x16xf32>
    %885 = arith.addf %884, %883 : vector<8x16xf32>
    %886 = arith.divf %884, %885 : vector<8x16xf32>
    %887 = arith.mulf %886, %863 : vector<8x16xf32>
    %cst_231 = arith.constant 1.000000e+00 : f32
    %888 = vector.broadcast %cst_231 : f32 to vector<8x16xf32>
    %889 = arith.subf %888, %886 : vector<8x16xf32>
    %890 = arith.mulf %889, %844 : vector<8x16xf32>
    %891 = arith.addf %887, %890 : vector<8x16xf32>
    %892 = arith.mulf %891, %0 : vector<8x16xf32>
    %893 = arith.subf %892, %822 : vector<8x16xf32>
    %894 = math.absf %893 : vector<8x16xf32>
    %895 = arith.mulf %894, %818 : vector<8x16xf32>
    %896 = vector.shape_cast %895 : vector<8x16xf32> to vector<1x8x16xf32>
    %cst_232 = arith.constant dense<0.000000e+00> : vector<1xf32>
    %897 = vector.multi_reduction <add>, %896, %cst_232 [1, 2] : vector<1x8x16xf32> to vector<1xf32>
    %898 = vector.shape_cast %897 : vector<1xf32> to vector<1x1x1xf32>
    %899 = vector.extract %898[0, 0, 0] : f32 from vector<1x1x1xf32>
    %900 = arith.mulf %899, %828 : f32
    %901 = vector.broadcast %900 : f32 to vector<1x1xf32>
    %902 = arith.addf %874, %901 : vector<1x1xf32>
    %903 = arith.mulf %818, %815 : vector<8x16xf32>
    %cst_233 = arith.constant 1.000000e+00 : f32
    %904 = vector.broadcast %cst_233 : f32 to vector<8x16xf32>
    %905 = arith.subf %904, %818 : vector<8x16xf32>
    %906 = arith.mulf %905, %891 : vector<8x16xf32>
    %907 = arith.addf %903, %906 : vector<8x16xf32>
    %908 = arith.index_cast %c6_i32 : i32 to index
    %c0_234 = arith.constant 0 : index
    %c0_235 = arith.constant 0 : index
    %909 = vector.load %arg16[%908, %c0_234, %c0_235] : memref<8x8x16xf32, #tpu.memory_space<vmem>>, vector<1x8x16xf32>
    %910 = vector.shape_cast %909 : vector<1x8x16xf32> to vector<8x16xf32>
    %911 = vector.shape_cast %891 : vector<8x16xf32> to vector<1x8x16xf32>
    tpu.vector_store %arg16[%908, %c0_234, %c0_235], %911 {strides = array<i32>} : memref<8x8x16xf32, #tpu.memory_space<vmem>>, vector<1x8x16xf32>,
    %912 = arith.index_cast %c6_i32 : i32 to index
    %c0_236 = arith.constant 0 : index
    %c0_237 = arith.constant 0 : index
    %913 = vector.load %arg17[%912, %c0_236, %c0_237] : memref<8x8x16xf32, #tpu.memory_space<vmem>>, vector<1x8x16xf32>
    %914 = vector.shape_cast %913 : vector<1x8x16xf32> to vector<8x16xf32>
    %915 = vector.shape_cast %907 : vector<8x16xf32> to vector<1x8x16xf32>
    tpu.vector_store %arg17[%912, %c0_236, %c0_237], %915 {strides = array<i32>} : memref<8x8x16xf32, #tpu.memory_space<vmem>>, vector<1x8x16xf32>,
    %cst_238 = arith.constant dense<0.000000e+00> : vector<8x128xf32>
    %916 = tpu.matmul %907, %10, %cst_238 {dimension_numbers = #tpu.dot_dimension_numbers<[1], [0], [0], [1], [0, 0, 1, 1], [], []>, precision = #tpu.contract_precision<fp32>} : vector<8x16xf32>, vector<16x128xf32>, vector<8x128xf32> -> vector<8x128xf32>
    %917 = arith.addf %916, %876 : vector<8x128xf32>
    %918 = arith.addf %917, %841 : vector<8x128xf32>
    %919 = vector.broadcast %11 : vector<1x128xf32> to vector<8x128xf32>
    %920 = arith.addf %918, %919 : vector<8x128xf32>
    %921 = vector.extract_strided_slice %920 {offsets = [0, 0], sizes = [8, 32], strides = [1, 1]} : vector<8x128xf32> to vector<8x32xf32>
    %922 = arith.negf %921 : vector<8x32xf32>
    %923 = math.exp %922 : vector<8x32xf32>
    %cst_239 = arith.constant 1.000000e+00 : f32
    %924 = vector.broadcast %cst_239 : f32 to vector<8x32xf32>
    %925 = arith.addf %924, %923 : vector<8x32xf32>
    %926 = arith.divf %924, %925 : vector<8x32xf32>
    %927 = vector.extract_strided_slice %920 {offsets = [0, 32], sizes = [8, 32], strides = [1, 1]} : vector<8x128xf32> to vector<8x32xf32>
    %928 = arith.negf %927 : vector<8x32xf32>
    %929 = math.exp %928 : vector<8x32xf32>
    %cst_240 = arith.constant 1.000000e+00 : f32
    %930 = vector.broadcast %cst_240 : f32 to vector<8x32xf32>
    %931 = arith.addf %930, %929 : vector<8x32xf32>
    %932 = arith.divf %930, %931 : vector<8x32xf32>
    %933 = vector.extract_strided_slice %920 {offsets = [0, 64], sizes = [8, 32], strides = [1, 1]} : vector<8x128xf32> to vector<8x32xf32>
    %934 = math.tanh %933 : vector<8x32xf32>
    %935 = vector.extract_strided_slice %920 {offsets = [0, 96], sizes = [8, 32], strides = [1, 1]} : vector<8x128xf32> to vector<8x32xf32>
    %936 = arith.negf %935 : vector<8x32xf32>
    %937 = math.exp %936 : vector<8x32xf32>
    %cst_241 = arith.constant 1.000000e+00 : f32
    %938 = vector.broadcast %cst_241 : f32 to vector<8x32xf32>
    %939 = arith.addf %938, %937 : vector<8x32xf32>
    %940 = arith.divf %938, %939 : vector<8x32xf32>
    %941 = arith.mulf %932, %810 : vector<8x32xf32>
    %942 = arith.mulf %926, %934 : vector<8x32xf32>
    %943 = arith.addf %941, %942 : vector<8x32xf32>
    %944 = math.tanh %943 : vector<8x32xf32>
    %945 = arith.mulf %940, %944 : vector<8x32xf32>
    %c7_i32 = arith.constant 7 : i32
    %946 = arith.index_cast %c7_i32 : i32 to index
    %c0_242 = arith.constant 0 : index
    %c0_243 = arith.constant 0 : index
    %947 = vector.load %arg1[%946, %c0_242, %c0_243] : memref<8x8x16xf32, #tpu.memory_space<vmem>>, vector<1x8x16xf32>
    %948 = vector.shape_cast %947 : vector<1x8x16xf32> to vector<8x16xf32>
    %949 = arith.index_cast %c7_i32 : i32 to index
    %c0_244 = arith.constant 0 : index
    %c0_245 = arith.constant 0 : index
    %950 = vector.load %arg2[%949, %c0_244, %c0_245] : memref<8x8x16xf32, #tpu.memory_space<vmem>>, vector<1x8x16xf32>
    %951 = vector.shape_cast %950 : vector<1x8x16xf32> to vector<8x16xf32>
    %952 = arith.index_cast %c7_i32 : i32 to index
    %c0_246 = arith.constant 0 : index
    %c0_247 = arith.constant 0 : index
    %953 = vector.load %arg3[%952, %c0_246, %c0_247] : memref<8x8x16xf32, #tpu.memory_space<vmem>>, vector<1x8x16xf32>
    %954 = vector.shape_cast %953 : vector<1x8x16xf32> to vector<8x16xf32>
    %955 = arith.mulf %948, %0 : vector<8x16xf32>
    %956 = vector.shape_cast %951 : vector<8x16xf32> to vector<1x8x16xf32>
    %cst_248 = arith.constant dense<0.000000e+00> : vector<1xf32>
    %957 = vector.multi_reduction <add>, %956, %cst_248 [1, 2] : vector<1x8x16xf32> to vector<1xf32>
    %958 = vector.shape_cast %957 : vector<1xf32> to vector<1x1x1xf32>
    %959 = vector.extract %958[0, 0, 0] : f32 from vector<1x1x1xf32>
    %cst_249 = arith.constant 9.99999996E-13 : f32
    %960 = arith.addf %959, %cst_249 : f32
    %cst_250 = arith.constant 1.000000e+00 : f32
    %961 = arith.divf %cst_250, %960 : f32
    %cst_251 = arith.constant dense<0.000000e+00> : vector<8x48xf32>
    %962 = tpu.matmul %954, %1, %cst_251 {dimension_numbers = #tpu.dot_dimension_numbers<[1], [0], [0], [1], [0, 0, 1, 1], [], []>, precision = #tpu.contract_precision<fp32>} : vector<8x16xf32>, vector<16x48xf32>, vector<8x48xf32> -> vector<8x48xf32>
    %963 = vector.broadcast %2 : vector<1x48xf32> to vector<8x48xf32>
    %964 = arith.addf %962, %963 : vector<8x48xf32>
    %cst_252 = arith.constant 0.000000e+00 : f32
    %965 = vector.broadcast %cst_252 : f32 to vector<8x48xf32>
    %966 = arith.maximumf %964, %965 : vector<8x48xf32>
    %cst_253 = arith.constant 0.000000e+00 : f32
    %967 = vector.broadcast %cst_253 : f32 to vector<8x48xf32>
    %968 = arith.subf %967, %966 : vector<8x48xf32>
    %969 = math.exp %968 : vector<8x48xf32>
    %970 = vector.extract_strided_slice %969 {offsets = [0, 0], sizes = [8, 32], strides = [1, 1]} : vector<8x48xf32> to vector<8x32xf32>
    %971 = vector.extract_strided_slice %969 {offsets = [0, 32], sizes = [8, 16], strides = [1, 1]} : vector<8x48xf32> to vector<8x16xf32>
    %972 = arith.mulf %945, %970 : vector<8x32xf32>
    %cst_254 = arith.constant dense<0.000000e+00> : vector<8x144xf32>
    %973 = tpu.matmul %972, %3, %cst_254 {dimension_numbers = #tpu.dot_dimension_numbers<[1], [0], [0], [1], [0, 0, 1, 1], [], []>, precision = #tpu.contract_precision<fp32>} : vector<8x32xf32>, vector<32x144xf32>, vector<8x144xf32> -> vector<8x144xf32>
    %974 = vector.extract_strided_slice %973 {offsets = [0, 0], sizes = [8, 128], strides = [1, 1]} : vector<8x144xf32> to vector<8x128xf32>
    %975 = vector.extract_strided_slice %973 {offsets = [0, 128], sizes = [8, 16], strides = [1, 1]} : vector<8x144xf32> to vector<8x16xf32>
    %976 = vector.broadcast %4 : vector<1x16xf32> to vector<8x16xf32>
    %977 = arith.addf %975, %976 : vector<8x16xf32>
    %978 = arith.mulf %977, %0 : vector<8x16xf32>
    %979 = arith.subf %978, %955 : vector<8x16xf32>
    %980 = math.absf %979 : vector<8x16xf32>
    %981 = arith.mulf %980, %951 : vector<8x16xf32>
    %982 = vector.shape_cast %981 : vector<8x16xf32> to vector<1x8x16xf32>
    %cst_255 = arith.constant dense<0.000000e+00> : vector<1xf32>
    %983 = vector.multi_reduction <add>, %982, %cst_255 [1, 2] : vector<1x8x16xf32> to vector<1xf32>
    %984 = vector.shape_cast %983 : vector<1xf32> to vector<1x1x1xf32>
    %985 = vector.extract %984[0, 0, 0] : f32 from vector<1x1x1xf32>
    %986 = arith.mulf %985, %961 : f32
    %987 = vector.broadcast %986 : f32 to vector<1x1xf32>
    %988 = arith.addf %902, %987 : vector<1x1xf32>
    %989 = arith.mulf %951, %948 : vector<8x16xf32>
    %cst_256 = arith.constant 1.000000e+00 : f32
    %990 = vector.broadcast %cst_256 : f32 to vector<8x16xf32>
    %991 = arith.subf %990, %951 : vector<8x16xf32>
    %992 = arith.mulf %991, %977 : vector<8x16xf32>
    %993 = arith.addf %989, %992 : vector<8x16xf32>
    %cst_257 = arith.constant dense<0.000000e+00> : vector<8x16xf32>
    %994 = tpu.matmul %993, %5, %cst_257 {dimension_numbers = #tpu.dot_dimension_numbers<[1], [0], [0], [1], [0, 0, 1, 1], [], []>, precision = #tpu.contract_precision<fp32>} : vector<8x16xf32>, vector<16x16xf32>, vector<8x16xf32> -> vector<8x16xf32>
    %995 = vector.broadcast %6 : vector<1x16xf32> to vector<8x16xf32>
    %996 = arith.addf %994, %995 : vector<8x16xf32>
    %997 = arith.mulf %996, %0 : vector<8x16xf32>
    %998 = arith.subf %997, %955 : vector<8x16xf32>
    %999 = math.absf %998 : vector<8x16xf32>
    %1000 = arith.mulf %999, %951 : vector<8x16xf32>
    %1001 = vector.shape_cast %1000 : vector<8x16xf32> to vector<1x8x16xf32>
    %cst_258 = arith.constant dense<0.000000e+00> : vector<1xf32>
    %1002 = vector.multi_reduction <add>, %1001, %cst_258 [1, 2] : vector<1x8x16xf32> to vector<1xf32>
    %1003 = vector.shape_cast %1002 : vector<1xf32> to vector<1x1x1xf32>
    %1004 = vector.extract %1003[0, 0, 0] : f32 from vector<1x1x1xf32>
    %1005 = arith.mulf %1004, %961 : f32
    %1006 = vector.broadcast %1005 : f32 to vector<1x1xf32>
    %1007 = arith.addf %988, %1006 : vector<1x1xf32>
    %cst_259 = arith.constant dense<0.000000e+00> : vector<8x144xf32>
    %1008 = tpu.matmul %951, %9, %cst_259 {dimension_numbers = #tpu.dot_dimension_numbers<[1], [0], [0], [1], [0, 0, 1, 1], [], []>, precision = #tpu.contract_precision<fp32>} : vector<8x16xf32>, vector<16x144xf32>, vector<8x144xf32> -> vector<8x144xf32>
    %1009 = vector.extract_strided_slice %1008 {offsets = [0, 0], sizes = [8, 128], strides = [1, 1]} : vector<8x144xf32> to vector<8x128xf32>
    %1010 = vector.extract_strided_slice %1008 {offsets = [0, 128], sizes = [8, 16], strides = [1, 1]} : vector<8x144xf32> to vector<8x16xf32>
    %cst_260 = arith.constant dense<0.000000e+00> : vector<8x16xf32>
    %1011 = tpu.matmul %971, %7, %cst_260 {dimension_numbers = #tpu.dot_dimension_numbers<[1], [0], [0], [1], [0, 0, 1, 1], [], []>, precision = #tpu.contract_precision<fp32>} : vector<8x16xf32>, vector<16x16xf32>, vector<8x16xf32> -> vector<8x16xf32>
    %1012 = arith.addf %1011, %1010 : vector<8x16xf32>
    %1013 = vector.broadcast %8 : vector<1x16xf32> to vector<8x16xf32>
    %1014 = arith.addf %1012, %1013 : vector<8x16xf32>
    %1015 = arith.negf %1014 : vector<8x16xf32>
    %1016 = math.exp %1015 : vector<8x16xf32>
    %cst_261 = arith.constant 1.000000e+00 : f32
    %1017 = vector.broadcast %cst_261 : f32 to vector<8x16xf32>
    %1018 = arith.addf %1017, %1016 : vector<8x16xf32>
    %1019 = arith.divf %1017, %1018 : vector<8x16xf32>
    %1020 = arith.mulf %1019, %996 : vector<8x16xf32>
    %cst_262 = arith.constant 1.000000e+00 : f32
    %1021 = vector.broadcast %cst_262 : f32 to vector<8x16xf32>
    %1022 = arith.subf %1021, %1019 : vector<8x16xf32>
    %1023 = arith.mulf %1022, %977 : vector<8x16xf32>
    %1024 = arith.addf %1020, %1023 : vector<8x16xf32>
    %1025 = arith.mulf %1024, %0 : vector<8x16xf32>
    %1026 = arith.subf %1025, %955 : vector<8x16xf32>
    %1027 = math.absf %1026 : vector<8x16xf32>
    %1028 = arith.mulf %1027, %951 : vector<8x16xf32>
    %1029 = vector.shape_cast %1028 : vector<8x16xf32> to vector<1x8x16xf32>
    %cst_263 = arith.constant dense<0.000000e+00> : vector<1xf32>
    %1030 = vector.multi_reduction <add>, %1029, %cst_263 [1, 2] : vector<1x8x16xf32> to vector<1xf32>
    %1031 = vector.shape_cast %1030 : vector<1xf32> to vector<1x1x1xf32>
    %1032 = vector.extract %1031[0, 0, 0] : f32 from vector<1x1x1xf32>
    %1033 = arith.mulf %1032, %961 : f32
    %1034 = vector.broadcast %1033 : f32 to vector<1x1xf32>
    %1035 = arith.addf %1007, %1034 : vector<1x1xf32>
    %1036 = arith.mulf %951, %948 : vector<8x16xf32>
    %cst_264 = arith.constant 1.000000e+00 : f32
    %1037 = vector.broadcast %cst_264 : f32 to vector<8x16xf32>
    %1038 = arith.subf %1037, %951 : vector<8x16xf32>
    %1039 = arith.mulf %1038, %1024 : vector<8x16xf32>
    %1040 = arith.addf %1036, %1039 : vector<8x16xf32>
    %1041 = arith.index_cast %c7_i32 : i32 to index
    %c0_265 = arith.constant 0 : index
    %c0_266 = arith.constant 0 : index
    %1042 = vector.load %arg16[%1041, %c0_265, %c0_266] : memref<8x8x16xf32, #tpu.memory_space<vmem>>, vector<1x8x16xf32>
    %1043 = vector.shape_cast %1042 : vector<1x8x16xf32> to vector<8x16xf32>
    %1044 = vector.shape_cast %1024 : vector<8x16xf32> to vector<1x8x16xf32>
    tpu.vector_store %arg16[%1041, %c0_265, %c0_266], %1044 {strides = array<i32>} : memref<8x8x16xf32, #tpu.memory_space<vmem>>, vector<1x8x16xf32>,
    %1045 = arith.index_cast %c7_i32 : i32 to index
    %c0_267 = arith.constant 0 : index
    %c0_268 = arith.constant 0 : index
    %1046 = vector.load %arg17[%1045, %c0_267, %c0_268] : memref<8x8x16xf32, #tpu.memory_space<vmem>>, vector<1x8x16xf32>
    %1047 = vector.shape_cast %1046 : vector<1x8x16xf32> to vector<8x16xf32>
    %1048 = vector.shape_cast %1040 : vector<8x16xf32> to vector<1x8x16xf32>
    tpu.vector_store %arg17[%1045, %c0_267, %c0_268], %1048 {strides = array<i32>} : memref<8x8x16xf32, #tpu.memory_space<vmem>>, vector<1x8x16xf32>,
    %cst_269 = arith.constant dense<0.000000e+00> : vector<8x128xf32>
    %1049 = tpu.matmul %1040, %10, %cst_269 {dimension_numbers = #tpu.dot_dimension_numbers<[1], [0], [0], [1], [0, 0, 1, 1], [], []>, precision = #tpu.contract_precision<fp32>} : vector<8x16xf32>, vector<16x128xf32>, vector<8x128xf32> -> vector<8x128xf32>
    %1050 = arith.addf %1049, %1009 : vector<8x128xf32>
    %1051 = arith.addf %1050, %974 : vector<8x128xf32>
    %1052 = vector.broadcast %11 : vector<1x128xf32> to vector<8x128xf32>
    %1053 = arith.addf %1051, %1052 : vector<8x128xf32>
    %1054 = vector.extract_strided_slice %1053 {offsets = [0, 0], sizes = [8, 32], strides = [1, 1]} : vector<8x128xf32> to vector<8x32xf32>
    %1055 = arith.negf %1054 : vector<8x32xf32>
    %1056 = math.exp %1055 : vector<8x32xf32>
    %cst_270 = arith.constant 1.000000e+00 : f32
    %1057 = vector.broadcast %cst_270 : f32 to vector<8x32xf32>
    %1058 = arith.addf %1057, %1056 : vector<8x32xf32>
    %1059 = arith.divf %1057, %1058 : vector<8x32xf32>
    %1060 = vector.extract_strided_slice %1053 {offsets = [0, 32], sizes = [8, 32], strides = [1, 1]} : vector<8x128xf32> to vector<8x32xf32>
    %1061 = arith.negf %1060 : vector<8x32xf32>
    %1062 = math.exp %1061 : vector<8x32xf32>
    %cst_271 = arith.constant 1.000000e+00 : f32
    %1063 = vector.broadcast %cst_271 : f32 to vector<8x32xf32>
    %1064 = arith.addf %1063, %1062 : vector<8x32xf32>
    %1065 = arith.divf %1063, %1064 : vector<8x32xf32>
    %1066 = vector.extract_strided_slice %1053 {offsets = [0, 64], sizes = [8, 32], strides = [1, 1]} : vector<8x128xf32> to vector<8x32xf32>
    %1067 = math.tanh %1066 : vector<8x32xf32>
    %1068 = vector.extract_strided_slice %1053 {offsets = [0, 96], sizes = [8, 32], strides = [1, 1]} : vector<8x128xf32> to vector<8x32xf32>
    %1069 = arith.negf %1068 : vector<8x32xf32>
    %1070 = math.exp %1069 : vector<8x32xf32>
    %cst_272 = arith.constant 1.000000e+00 : f32
    %1071 = vector.broadcast %cst_272 : f32 to vector<8x32xf32>
    %1072 = arith.addf %1071, %1070 : vector<8x32xf32>
    %1073 = arith.divf %1071, %1072 : vector<8x32xf32>
    %1074 = arith.mulf %1065, %943 : vector<8x32xf32>
    %1075 = arith.mulf %1059, %1067 : vector<8x32xf32>
    %1076 = arith.addf %1074, %1075 : vector<8x32xf32>
    %1077 = math.tanh %1076 : vector<8x32xf32>
    %1078 = arith.mulf %1073, %1077 : vector<8x32xf32>
    %c8_i32 = arith.constant 8 : i32
    %c0_273 = arith.constant 0 : index
    %c0_274 = arith.constant 0 : index
    %1079 = vector.load %arg18[%c0_273, %c0_274] : memref<8x32xf32, #tpu.memory_space<vmem>>, vector<8x32xf32>
    tpu.vector_store %arg18[%c0_273, %c0_274], %1078 {strides = array<i32>} : memref<8x32xf32, #tpu.memory_space<vmem>>, vector<8x32xf32>,
    %cst_275 = arith.constant 2.400000e+01 : f32
    %1080 = vector.broadcast %cst_275 : f32 to vector<1x1xf32>
    %1081 = arith.divf %1035, %1080 : vector<1x1xf32>
    %c0_276 = arith.constant 0 : index
    %c0_277 = arith.constant 0 : index
    %1082 = vector.load %arg19[%c0_276, %c0_277] : memref<1x1xf32, #tpu.memory_space<vmem>>, vector<1x1xf32>
    tpu.vector_store %arg19[%c0_276, %c0_277], %1081 {strides = array<i32>} : memref<1x1xf32, #tpu.memory_space<vmem>>, vector<1x1xf32>,
    return
  }
  func.func @transform_0(%arg0: i32) -> (i32, i32, i32) {
    %c0_i32 = arith.constant 0 : i32
    %c0_i32_0 = arith.constant 0 : i32
    %c0_i32_1 = arith.constant 0 : i32
    %c0_i32_2 = arith.constant 0 : i32
    return %c0_i32, %c0_i32_0, %c0_i32_1 : i32, i32, i32
  }
  func.func @transform_1(%arg0: i32) -> (i32, i32, i32) {
    %c0_i32 = arith.constant 0 : i32
    %c0_i32_0 = arith.constant 0 : i32
    %c0_i32_1 = arith.constant 0 : i32
    %c0_i32_2 = arith.constant 0 : i32
    return %c0_i32, %c0_i32_0, %c0_i32_1 : i32, i32, i32
  }
  func.func @transform_2(%arg0: i32) -> (i32, i32, i32) {
    %c0_i32 = arith.constant 0 : i32
    %c0_i32_0 = arith.constant 0 : i32
    %c0_i32_1 = arith.constant 0 : i32
    %c0_i32_2 = arith.constant 0 : i32
    return %c0_i32, %c0_i32_0, %c0_i32_1 : i32, i32, i32
  }
  func.func @transform_3(%arg0: i32) -> (i32, i32) {
    %c0_i32 = arith.constant 0 : i32
    %c0_i32_0 = arith.constant 0 : i32
    %c0_i32_1 = arith.constant 0 : i32
    return %c0_i32, %c0_i32_0 : i32, i32
  }
  func.func @transform_4(%arg0: i32) -> (i32, i32) {
    %c0_i32 = arith.constant 0 : i32
    %c0_i32_0 = arith.constant 0 : i32
    %c0_i32_1 = arith.constant 0 : i32
    return %c0_i32, %c0_i32_0 : i32, i32
  }
  func.func @transform_5(%arg0: i32) -> (i32, i32) {
    %c0_i32 = arith.constant 0 : i32
    %c0_i32_0 = arith.constant 0 : i32
    %c0_i32_1 = arith.constant 0 : i32
    return %c0_i32, %c0_i32_0 : i32, i32
  }
  func.func @transform_6(%arg0: i32) -> (i32, i32) {
    %c0_i32 = arith.constant 0 : i32
    %c0_i32_0 = arith.constant 0 : i32
    %c0_i32_1 = arith.constant 0 : i32
    return %c0_i32, %c0_i32_0 : i32, i32
  }
  func.func @transform_7(%arg0: i32) -> (i32, i32) {
    %c0_i32 = arith.constant 0 : i32
    %c0_i32_0 = arith.constant 0 : i32
    %c0_i32_1 = arith.constant 0 : i32
    return %c0_i32, %c0_i32_0 : i32, i32
  }
  func.func @transform_8(%arg0: i32) -> (i32, i32) {
    %c0_i32 = arith.constant 0 : i32
    %c0_i32_0 = arith.constant 0 : i32
    %c0_i32_1 = arith.constant 0 : i32
    return %c0_i32, %c0_i32_0 : i32, i32
  }
  func.func @transform_9(%arg0: i32) -> (i32, i32) {
    %c0_i32 = arith.constant 0 : i32
    %c0_i32_0 = arith.constant 0 : i32
    %c0_i32_1 = arith.constant 0 : i32
    return %c0_i32, %c0_i32_0 : i32, i32
  }
  func.func @transform_10(%arg0: i32) -> (i32, i32) {
    %c0_i32 = arith.constant 0 : i32
    %c0_i32_0 = arith.constant 0 : i32
    %c0_i32_1 = arith.constant 0 : i32
    return %c0_i32, %c0_i32_0 : i32, i32
  }
  func.func @transform_11(%arg0: i32) -> (i32, i32) {
    %c0_i32 = arith.constant 0 : i32
    %c0_i32_0 = arith.constant 0 : i32
    %c0_i32_1 = arith.constant 0 : i32
    return %c0_i32, %c0_i32_0 : i32, i32
  }
  func.func @transform_12(%arg0: i32) -> (i32, i32) {
    %c0_i32 = arith.constant 0 : i32
    %c0_i32_0 = arith.constant 0 : i32
    %c0_i32_1 = arith.constant 0 : i32
    return %c0_i32, %c0_i32_0 : i32, i32
  }
  func.func @transform_13(%arg0: i32) -> (i32, i32) {
    %c0_i32 = arith.constant 0 : i32
    %c0_i32_0 = arith.constant 0 : i32
    %c0_i32_1 = arith.constant 0 : i32
    return %c0_i32, %c0_i32_0 : i32, i32
  }
  func.func @transform_14(%arg0: i32) -> (i32, i32) {
    %c0_i32 = arith.constant 0 : i32
    %c0_i32_0 = arith.constant 0 : i32
    %c0_i32_1 = arith.constant 0 : i32
    return %c0_i32, %c0_i32_0 : i32, i32
  }
  func.func @transform_15(%arg0: i32) -> (i32, i32, i32) {
    %c0_i32 = arith.constant 0 : i32
    %c0_i32_0 = arith.constant 0 : i32
    %c0_i32_1 = arith.constant 0 : i32
    %c0_i32_2 = arith.constant 0 : i32
    return %c0_i32, %c0_i32_0, %c0_i32_1 : i32, i32, i32
  }
  func.func @transform_16(%arg0: i32) -> (i32, i32, i32) {
    %c0_i32 = arith.constant 0 : i32
    %c0_i32_0 = arith.constant 0 : i32
    %c0_i32_1 = arith.constant 0 : i32
    %c0_i32_2 = arith.constant 0 : i32
    return %c0_i32, %c0_i32_0, %c0_i32_1 : i32, i32, i32
  }
  func.func @transform_17(%arg0: i32) -> (i32, i32) {
    %c0_i32 = arith.constant 0 : i32
    %c0_i32_0 = arith.constant 0 : i32
    %c0_i32_1 = arith.constant 0 : i32
    return %c0_i32, %c0_i32_0 : i32, i32
  }
  func.func @transform_18(%arg0: i32) -> (i32, i32) {
    %c0_i32 = arith.constant 0 : i32
    %c0_i32_0 = arith.constant 0 : i32
    %c0_i32_1 = arith.constant 0 : i32
    return %c0_i32, %c0_i32_0 : i32, i32
  }
}

</mosaic_0001>

<bundles_post_ra>
// kernel: tpu_custom_call.1
= control target key start
LH: loop header
LB: loop body
LE: loop exit
PB: predicated region body
PF: predicated region fallthrough
CT: control target
= control target key end

     0   :  { %s30018_s0 = inlined_call_operand.hbm [shape: f32[8,8,16], index: 0, kind: input, shape index: {}]   ;;  %s30019_s1 = inlined_call_operand.hbm [shape: f32[8,8,16], index: 1, kind: input, shape index: {}]   ;;  %s30020_s2 = inlined_call_operand.hbm [shape: f32[8,8,16], index: 2, kind: input, shape index: {}]   ;;  %s30021_s3 = inlined_call_operand.hbm [shape: f32[8,16], index: 3, kind: input, shape index: {}]   ;;  %s30022_s4 = inlined_call_operand.hbm [shape: f32[16,48], index: 4, kind: input, shape index: {}]   ;;  %s30023_s5 = inlined_call_operand.vmem [shape: f32[1,48], index: 5, kind: input, shape index: {}]   ;;  %s30024_s6 = inlined_call_operand.hbm [shape: f32[32,144], index: 6, kind: input, shape index: {}]   ;;  %s30025_s7 = inlined_call_operand.vmem [shape: f32[1,16], index: 7, kind: input, shape index: {}]   ;;  %s30026_s8 = inlined_call_operand.hbm [shape: f32[16,16], index: 8, kind: input, shape index: {}]   ;;  %s30027_s9 = inlined_call_operand.hbm [shape: f32[1,16], index: 9, kind: input, shape index: {}]   ;;  %s30028_s10 = inlined_call_operand.vmem [shape: f32[16,16], index: 10, kind: input, shape index: {}]   ;;  %s30029_s11 = inlined_call_operand.vmem [shape: f32[1,16], index: 11, kind: input, shape index: {}]   ;;  %s30030_s12 = inlined_call_operand.hbm [shape: f32[16,144], index: 12, kind: input, shape index: {}]   ;;  %s30031_s13 = inlined_call_operand.hbm [shape: f32[16,128], index: 13, kind: input, shape index: {}]   ;;  %s30032_s14 = inlined_call_operand.vmem [shape: f32[1,128], index: 14, kind: input, shape index: {}]   ;;  %s30033_s15 = inlined_call_operand.hbm [shape: f32[8,8,16], index: 15, kind: output, shape index: {0}]   ;;  %s30034_s16 = inlined_call_operand.hbm [shape: f32[8,8,16], index: 16, kind: output, shape index: {1}]   ;;  %s30035_s17 = inlined_call_operand.hbm [shape: f32[8,32], index: 17, kind: output, shape index: {2}]   ;;  %s30036_s18 = inlined_call_operand.hbm [shape: f32[1,1], index: 18, kind: output, shape index: {3}]  }
   0x1   :  { %30230 = sst [smem:[#allocation104_spill]] %s30018_s0 }
   0x2   :  { %30231 = sst [smem:[#allocation105_spill]] %s30019_s1 }
   0x3   :  { %30232 = sst [smem:[#allocation106_spill]] %s30020_s2 }
   0x4   :  { %24 = vsyncpa [#allocation3], 0 }
   0x5   :  { %25 = vsyncpa [#allocation6], 0 }
   0x6   :  { %26 = vsyncpa [#allocation9], 0 }
   0x7   :  { %27 = vsyncpa [#allocation12], 0 }
   0x8   :  { %28 = vsyncpa [#allocation15], 0 }
   0x9   :  { %29 = vsyncpa [#allocation18], 0 }
   0xa   :  { %30 = vsyncpa [#allocation4], 0 }
   0xb   :  { %31 = vsyncpa [#allocation21], 0 }
   0xc   :  { %32 = vsyncpa [#allocation24], 0  ;;  %s26960_s27 = smov [#allocation5]   ;;  %s26961_s29 = smov [#allocation8]  }
   0xd   :  { %s50_s28 = sshll.u32 %s26960_s27, 4  ;;  %s75_s30 = sshll.u32 %s26961_s29, 4  ;;  %s51_s28 = int_to_ptr.vmem [resolvable:$true] %s50_s28  ;;  %s76_s30 = int_to_ptr.vmem [resolvable:$true] %s75_s30 }
   0xe   :  { %s26670_s0 = scalar_lea.vmem %s51_s28, 1024  ;;  %p26675_p1 = scmp.lt.s32.totalorder %s51_s28, %s51_s28 }
   0xf   :  { %p26671_p0 = scmp.ne.s32.totalorder %s51_s28, %s26670_s0  ;;  %p26676_p2 = scmp.lt.s32.totalorder %s26670_s0, %s26670_s0 }
  0x11   :  { %p26677_p3 = por %p26676_p2, %p26675_p1 }
  0x13   :  { %p26678_p4 = pnand %p26677_p3, %p26671_p0 }
  0x15   :  { %26681 = shalt.err (!%p26678_p4)
}
  0x16   :  { %s26962_s19 = smov 128   ;;  %s26963_s1 = smov 8  }
  0x17   :  { %s30233_s22 = sld [smem:[#allocation105_spill]]  ;;  %s26690_s2 = scalar_lea.vmem %s76_s30, 128 }
  0x18   :  { %p26691_p5 = scmp.ne.s32.totalorder %s76_s30, %s26690_s2  ;;  %p26695_p6 = scmp.lt.s32.totalorder %s76_s30, %s76_s30 }
  0x19   :  { %p26696_p7 = scmp.lt.s32.totalorder %s26690_s2, %s26690_s2 }
  0x1b   :  { %p26697_p8 = por %p26696_p7, %p26695_p6 }
  0x1d   :  { %56 = dma.hbm_to_vmem [thread:$0]  %s30233_s22, 1024, %s51_s28, [#allocation6], %s26962_s19, %s26962_s19, %s26963_s1  }
  0x1e   :  { %p26698_p9 = pnand %p26697_p8, %p26691_p5 }
  0x20   :  { %26701 = shalt.err (!%p26698_p9)
}
  0x21   :  { %78 = dma.hbm_to_vmem [thread:$0]  %s30021_s3, 128, %s76_s30, [#allocation9]  }
  0x22   :  { %s26964_s25 = smov [#allocation11]  }
  0x23   :  { %s98_s26 = sshll.u32 %s26964_s25, 4  ;;  %s99_s26 = int_to_ptr.vmem [resolvable:$true] %s98_s26 }
  0x24   :  { %s26710_s27 = scalar_lea.vmem %s99_s26, 1024  ;;  %p26715_p11 = scmp.lt.s32.totalorder %s99_s26, %s99_s26 }
  0x25   :  { %p26711_p10 = scmp.ne.s32.totalorder %s99_s26, %s26710_s27  ;;  %p26716_p12 = scmp.lt.s32.totalorder %s26710_s27, %s26710_s27 }
  0x27   :  { %p26717_p13 = por %p26716_p12, %p26715_p11 }
  0x29   :  { %p26718_p0 = pnand %p26717_p13, %p26711_p10 }
  0x2b   :  { %26721 = shalt.err (!%p26718_p0)
}
  0x2c   :  { %s26965_s28 = smov 256   ;;  %s26966_s29 = smov 16  }
  0x2d   :  { %104 = dma.hbm_to_vmem [thread:$0]  %s30024_s6, 1024, %s99_s26, [#allocation12], %s26965_s28, %s26965_s28, %s26966_s29  }
  0x2e   :  { %s26967_s3 = smov [#allocation14]   ;;  %s26968_s21 = smov [#allocation2]  }
  0x2f   :  { %s125_s30 = sshll.u32 %s26967_s3, 4  ;;  %s38_s22 = sshll.u32 %s26968_s21, 4  ;;  %s126_s30 = int_to_ptr.vmem [resolvable:$true] %s125_s30  ;;  %s39_s22 = int_to_ptr.vmem [resolvable:$true] %s38_s22 }
  0x30   :  { %s26730_s2 = scalar_lea.vmem %s126_s30, 16  ;;  %s26734_s23 = scalar_lea.vmem %s126_s30, 32 }
  0x31   :  { %p26731_p1 = scmp.ne.s32.totalorder %s126_s30, %s26730_s2  ;;  %p26735_p2 = scmp.lt.s32.totalorder %s126_s30, %s126_s30 }
  0x32   :  { %p26736_p3 = scmp.lt.s32.totalorder %s26734_s23, %s26730_s2 }
  0x34   :  { %p26737_p4 = por %p26736_p3, %p26735_p2 }
  0x36   :  { %p26738_p5 = pnand %p26737_p4, %p26731_p1 }
  0x38   :  { %26741 = shalt.err (!%p26738_p5)
}
  0x39   :  { %128 = dma.hbm_to_vmem [thread:$0]  %s30027_s9, 16, %s126_s30, [#allocation15]  }
  0x3a   :  { %s26750_s27 = scalar_lea.vmem %s39_s22, 1024  ;;  %p26755_p7 = scmp.lt.s32.totalorder %s39_s22, %s39_s22 }
  0x3b   :  { %p26751_p6 = scmp.ne.s32.totalorder %s39_s22, %s26750_s27  ;;  %p26756_p8 = scmp.lt.s32.totalorder %s26750_s27, %s26750_s27 }
  0x3d   :  { %p26757_p9 = por %p26756_p8, %p26755_p7 }
  0x3f   :  { %p26758_p10 = pnand %p26757_p9, %p26751_p6 }
  0x41   :  { %26761 = shalt.err (!%p26758_p10)
}
  0x42   :  { %s30234_s0 = sld [smem:[#allocation104_spill]]  ;;  %s26969_s20 = smov [#allocation7]  }
  0x43   :  { %s62_s3 = sshll.u32 %s26969_s20, 4  ;;  %s26970_s21 = smov [#allocation10]   ;;  %s63_s3 = int_to_ptr.vmem [resolvable:$true] %s62_s3 }
  0x44   :  { %s84_s9 = sshll.u32 %s26970_s21, 4  ;;  %s26770_s30 = scalar_lea.vmem %s63_s3, 1024  ;;  %s85_s9 = int_to_ptr.vmem [resolvable:$true] %s84_s9 }
  0x45   :  { %p26771_p11 = scmp.ne.s32.totalorder %s63_s3, %s26770_s30  ;;  %p26775_p12 = scmp.lt.s32.totalorder %s63_s3, %s63_s3 }
  0x46   :  { %p26776_p13 = scmp.lt.s32.totalorder %s26770_s30, %s26770_s30 }
  0x48   :  { %44 = dma.hbm_to_vmem [thread:$0]  %s30234_s0, 1024, %s39_s22, [#allocation3], %s26962_s19, %s26962_s19, %s26963_s1  }
  0x49   :  { %p26777_p0 = por %p26776_p13, %p26775_p12 }
  0x4b   :  { %p26778_p1 = pnand %p26777_p0, %p26771_p11 }
  0x4d   :  { %26781 = shalt.err (!%p26778_p1)
}
  0x4e   :  { %s30235_s24 = sld [smem:[#allocation106_spill]]  ;;  %s26790_s22 = scalar_lea.vmem %s85_s9, 256 }
  0x4f   :  { %p26791_p2 = scmp.ne.s32.totalorder %s85_s9, %s26790_s22  ;;  %p26795_p3 = scmp.lt.s32.totalorder %s85_s9, %s85_s9 }
  0x50   :  { %p26796_p4 = scmp.lt.s32.totalorder %s26790_s22, %s26790_s22 }
  0x52   :  { %p26797_p5 = por %p26796_p4, %p26795_p3 }
  0x54   :  { %68 = dma.hbm_to_vmem [thread:$0]  %s30235_s24, 1024, %s63_s3, [#allocation6], %s26962_s19, %s26962_s19, %s26963_s1  }
  0x55   :  { %p26798_p6 = pnand %p26797_p5, %p26791_p2 }
  0x57   :  { %26801 = shalt.err (!%p26798_p6)
}
  0x58   :  { %90 = dma.hbm_to_vmem [thread:$0]  %s30022_s4, 256, %s85_s9, [#allocation9], %s26962_s19, %s26962_s19, %s26963_s1  }
  0x59   :  { %s26971_s6 = smov [#allocation13]   ;;  %s26972_s0 = smov [#allocation16]  }
  0x5a   :  { %s112_s26 = sshll.u32 %s26971_s6, 4  ;;  %s138_s20 = sshll.u32 %s26972_s0, 4  ;;  %s113_s26 = int_to_ptr.vmem [resolvable:$true] %s112_s26  ;;  %s139_s20 = int_to_ptr.vmem [resolvable:$true] %s138_s20 }
  0x5b   :  { %s26810_s3 = scalar_lea.vmem %s113_s26, 256  ;;  %p26815_p8 = scmp.lt.s32.totalorder %s113_s26, %s113_s26 }
  0x5c   :  { %p26811_p7 = scmp.ne.s32.totalorder %s113_s26, %s26810_s3  ;;  %p26816_p9 = scmp.lt.s32.totalorder %s26810_s3, %s26810_s3 }
  0x5e   :  { %p26817_p10 = por %p26816_p9, %p26815_p8 }
  0x60   :  { %p26818_p11 = pnand %p26817_p10, %p26811_p7 }
  0x62   :  { %26821 = shalt.err (!%p26818_p11)
}
  0x63   :  { %118 = dma.hbm_to_vmem [thread:$0]  %s30026_s8, 256, %s113_s26, [#allocation12], %s26962_s19, %s26962_s19, %s26963_s1  }
  0x64   :  { %s26830_s4 = scalar_lea.vmem %s139_s20, 512  ;;  %p26835_p13 = scmp.lt.s32.totalorder %s139_s20, %s139_s20 }
  0x65   :  { %p26831_p12 = scmp.ne.s32.totalorder %s139_s20, %s26830_s4  ;;  %p26836_p0 = scmp.lt.s32.totalorder %s26830_s4, %s26830_s4 }
  0x67   :  { %p26837_p1 = por %p26836_p0, %p26835_p13 }
  0x69   :  { %p26838_p2 = pnand %p26837_p1, %p26831_p12 }
  0x6b   :  { %26841 = shalt.err (!%p26838_p2)
}
  0x6c   :  { %144 = dma.hbm_to_vmem [thread:$0]  %s30030_s12, 512, %s139_s20, [#allocation15], %s26965_s28, %s26965_s28, %s26966_s29  }
  0x6d   :  { %s26973_s23 = smov [#allocation17]  }
  0x6e   :  { %s150_s24 = sshll.u32 %s26973_s23, 4  ;;  %s151_s24 = int_to_ptr.vmem [resolvable:$true] %s150_s24 }
  0x6f   :  { %s26850_s22 = scalar_lea.vmem %s151_s24, 256  ;;  %p26855_p4 = scmp.lt.s32.totalorder %s151_s24, %s151_s24 }
  0x70   :  { %p26851_p3 = scmp.ne.s32.totalorder %s151_s24, %s26850_s22  ;;  %p26856_p5 = scmp.lt.s32.totalorder %s26850_s22, %s26850_s22 }
  0x72   :  { %p26857_p6 = por %p26856_p5, %p26855_p4 }
  0x74   :  { %p26858_p7 = pnand %p26857_p6, %p26851_p3 }
  0x76   :  { %26861 = shalt.err (!%p26858_p7)
}
  0x77   :  { %156 = dma.hbm_to_vmem [thread:$0]  %s30031_s13, 256, %s151_s24, [#allocation18], %s26962_s19, %s26962_s19, %s26963_s1  }
  0x78   :  { %26942 = dma.done.wait [#allocation3], 1024  }
  0x79   :  { %26943 = vsyncadd [#allocation3], 4294966272 }
  0x7a   :  { %26944 = dma.done.wait [#allocation6], 2048  }
  0x7b   :  { %26945 = vsyncadd [#allocation6], 4294965248 }
  0x7c   :  { %26946 = dma.done.wait [#allocation9], 384  }
  0x7d   :  { %26947 = vsyncadd [#allocation9], 4294966912 }
  0x7e   :  { %26948 = dma.done.wait [#allocation12], 1280  }
  0x7f   :  { %26949 = vsyncadd [#allocation12], 4294966016 }
  0x80   :  { %26950 = dma.done.wait [#allocation15], 528  }
  0x81   :  { %26951 = vsyncadd [#allocation15], 4294966768 }
  0x82   :  { %26952 = dma.done.wait [#allocation18], 256  }
  0x83   :  { %26953 = vsyncadd [#allocation18], 4294967040  ;;  %v30045_v0 = vmov 0.0   ;;  %vm26975_vm0 = vmmov 0   ;;  %vm219_vm1 = vcmask 130048   ;;  %v191_v1 = vld [vmem:[#allocation10 + $0x8] sm:$0xff] }
  0x84   :  { %25054 = vmatprep.subr.mxu0 %v30045_v0  ;;  %25061 = vmatprep.subr.mxu1 %v30045_v0  ;;  %v190_v2 = vld [vmem:[#allocation10] sm:$0xff]  ;;  %v217_v3 = vld [vmem:[#allocation7] sm:$0xff]  ;;  %v27138_v4 = vand.u32 4294901760, %v191_v1  ;;  %v200_v20 = vld [vmem:[#allocation11 + $0x38] sm:$0xff]  ;;  %vm707_vm2 = vcmask 261120   ;;  %s26976_s28 = smov 96  }
  0x85   :  { %25058 = vmatprep.mubr.msk.f32.mxu0 %vm26975_vm0, %v30045_v0  ;;  %25065 = vmatprep.mubr.msk.f32.mxu1 %vm26975_vm0, %v30045_v0  ;;  %v27140_v5 = vand.u32 4294901760, %v190_v2  ;;  %v241_v6 = vsel %vm219_vm1, %v217_v3, 0  ;;  %v27195_v21 = vand.u32 4294901760, %v200_v20  ;;  %v199_v22 = vld [vmem:[#allocation11 + $0x30] sm:$0xff]  ;;  %v198_v23 = vld [vmem:[#allocation11 + $0x28] sm:$0xff]  ;;  %v197_v24 = vld [vmem:[#allocation11 + $0x20] sm:$0xff] }
  0x86   :  { %v310_v7 = vand.u32 4294901760, %v241_v6  ;;  %25055 = vmatpush3.msra.mxu0 %v27138_v4  ;;  %v27145_v8 = vsub.f32 %v191_v1, %v27138_v4  ;;  %v27197_v25 = vand.u32 4294901760, %v199_v22  ;;  %v27199_v26 = vand.u32 4294901760, %v198_v23  ;;  %v196_v28 = vld [vmem:[#allocation11 + $0x18] sm:$0xff]  ;;  %v195_v36 = vld [vmem:[#allocation11 + $0x10] sm:$0xff]  ;;  %v194_v41 = vld [vmem:[#allocation11 + $0x8] sm:$0xff] }
  0x87   :  { %v27148_v9 = vsub.f32 %v190_v2, %v27140_v5  ;;  %25056 = vmatprep.subr.mxu0 %v30045_v0  ;;  %v27201_v27 = vand.u32 4294901760, %v197_v24  ;;  %v27204_v29 = vsub.f32 %v200_v20, %v27195_v21  ;;  %v27206_v30 = vand.u32 4294901760, %v196_v28  ;;  %v193_v45 = vld [vmem:[#allocation11] sm:$0xff]  ;;  %s26977_s4 = smov 64   ;;  %s26978_s9 = smov 32  }
  0x88   :  { %v311_v10 = vsub.f32 %v241_v6, %v310_v7  ;;  %25057 = vmatpush3.msra.mxu0 %v27140_v5  ;;  %v27153_v11 = vand.u32 4294901760, %v27145_v8  ;;  %v27210_v31 = vsub.f32 %v199_v22, %v27197_v25  ;;  %v27213_v32 = vsub.f32 %v198_v23, %v27199_v26 }
  0x89   :  { %v27156_v12 = vand.u32 4294901760, %v27148_v9  ;;  %25068 = vmatprep.subr.mxu0 %v30045_v0  ;;  %v27216_v33 = vsub.f32 %v197_v24, %v27201_v27  ;;  %v27220_v34 = vand.u32 4294901760, %v27204_v29  ;;  %v27223_v35 = vsub.f32 %v196_v28, %v27206_v30 }
  0x8a   :  { %v312_v13 = vand.u32 4294901760, %v311_v10  ;;  %v352_v14 = vsub.f32 %v27145_v8, %v27153_v11  ;;  %30236 = vst [vmem:[#allocation34_spill] sm:$0xff] %v27210_v31  ;;  %30237 = vst [vmem:[#allocation35_spill] sm:$0xff] %v27213_v32  ;;  %v27227_v37 = vand.u32 4294901760, %v27210_v31  ;;  %v27230_v38 = vand.u32 4294901760, %v27213_v32 }
  0x8b   :  { %v359_v15 = vsub.f32 %v27148_v9, %v27156_v12  ;;  %30238 = vst [vmem:[#allocation36_spill] sm:$0xff] %v27216_v33  ;;  %30239 = vst [vmem:[#allocation37_spill] sm:$0xff] %v27220_v34  ;;  %v27233_v39 = vand.u32 4294901760, %v27216_v33  ;;  %v27235_v40 = vand.u32 4294901760, %v195_v36  ;;  %v822_v42 = vsub.f32 %v27204_v29, %v27220_v34 }
  0x8c   :  { %v313_v16 = vsub.f32 %v311_v10, %v312_v13  ;;  %v27163_v17 = vand.u32 4294901760, %v352_v14  ;;  %30240 = vst [vmem:[#allocation38_spill] sm:$0xff] %v27223_v35  ;;  %30241 = vst [vmem:[#allocation39_spill] sm:$0xff] %v27227_v37  ;;  %v27241_v43 = vand.u32 4294901760, %v27223_v35  ;;  %v27243_v44 = vand.u32 4294901760, %v194_v41 }
  0x8d   :  { %v27165_v18 = vand.u32 4294901760, %v359_v15  ;;  %30242 = vst [vmem:[#allocation40_spill] sm:$0xff] %v27230_v38  ;;  %30243 = vst [vmem:[#allocation41_spill] sm:$0xff] %v27233_v39  ;;  %v828_v46 = vsub.f32 %v27210_v31, %v27227_v37  ;;  %v834_v47 = vsub.f32 %v27213_v32, %v27230_v38  ;;  %v840_v48 = vsub.f32 %v27216_v33, %v27233_v39 }
  0x8e   :  { %v314_v19 = vand.u32 4294901760, %v313_v16  ;;  %25062 = vmatpush3.msra.mxu1 %v27163_v17  ;;  %30244 = vst [vmem:[#allocation42_spill] sm:$0xff] %v27241_v43  ;;  %v27253_v49 = vsub.f32 %v195_v36, %v27235_v40  ;;  %v27256_v50 = vand.u32 4294901760, %v822_v42  ;;  %v846_v51 = vsub.f32 %v27223_v35, %v27241_v43 }
  0x8f   :  { %25063 = vmatprep.subr.mxu1 %v30045_v0  ;;  %v27261_v52 = vsub.f32 %v194_v41, %v27243_v44  ;;  %v27263_v53 = vand.u32 4294901760, %v193_v45  ;;  %v27266_v54 = vand.u32 4294901760, %v828_v46  ;;  %v27268_v55 = vand.u32 4294901760, %v834_v47 }
  0x90   :  { %25059 = vmatmul.mubr.f32.vlgmr.msra.gmra.mxu0 %v314_v19  ;;  %25064 = vmatpush3.msra.mxu1 %v27165_v18  ;;  %30245 = vst [vmem:[#allocation43_spill] sm:$0xff] %v27253_v49  ;;  %v27270_v56 = vand.u32 4294901760, %v840_v48  ;;  %v27273_v57 = vand.u32 4294901760, %v27253_v49  ;;  %v27276_v58 = vand.u32 4294901760, %v846_v51  ;;  %vm24390_vm3 = vcmask 0  }
  0x91   :  { %25069 = vmatpush3.msra.mxu0 %v27145_v8  ;;  %25066 = vmatmul.mubr.f32.vlgmr.msra.gmra.mxu1 %v310_v7  ;;  %30246 = vst [vmem:[#allocation44_spill] sm:$0xff] %v27261_v52  ;;  %v27279_v59 = vand.u32 4294901760, %v27261_v52  ;;  %v27282_v60 = vsub.f32 %v193_v45, %v27263_v53 }
  0x92   :  { %25070 = vmatprep.subr.mxu0 %v30045_v0  ;;  %25075 = vmatprep.subr.mxu1 %v30045_v0  ;;  %30247 = vst [vmem:[#allocation45_spill] sm:$0xff] %v27273_v57  ;;  %v852_v61 = vsub.f32 %v27253_v49, %v27273_v57 }
  0x93   :  { %25071 = vmatpush3.msra.mxu0 %v27148_v9  ;;  %25072 = vmatprep.mubr.msk.f32.mxu0 %vm26975_vm0, %v30045_v0  ;;  %30248 = vst [vmem:[#allocation46_spill] sm:$0xff] %v27279_v59  ;;  %30249 = vst [vmem:[#allocation47_spill] sm:$0xff] %v27282_v60  ;;  %v858_v62 = vsub.f32 %v27261_v52, %v27279_v59  ;;  %v27293_v63 = vand.u32 4294901760, %v27282_v60 }
  0x94   :  { %25076 = vmatpush3.msra.mxu1 %v27138_v4  ;;  %25073 = vmatmul.mubr.f32.vlgmr.msra.gmra.mxu0 %v311_v10  ;;  %v27296_v1 = vand.u32 4294901760, %v852_v61 }
  0x95   :  { %25077 = vmatprep.subr.mxu1 %v30045_v0  ;;  %25082 = vmatprep.subr.mxu0 %v30045_v0  ;;  %30250 = vst [vmem:[#allocation48_spill] sm:$0xff] %v27293_v63  ;;  %v27299_v2 = vand.u32 4294901760, %v858_v62  ;;  %v864_v3 = vsub.f32 %v27282_v60, %v27293_v63 }
  0x96   :  { %25078 = vmatpush3.msra.mxu1 %v27140_v5  ;;  %25079 = vmatprep.mubr.msk.f32.mxu1 %vm26975_vm0, %v30045_v0 }
  0x97   :  { %25083 = vmatpush3.msra.mxu0 %v27153_v11  ;;  %25080 = vmatmul.mubr.f32.vlgmr.msra.gmra.mxu1 %v312_v13  ;;  %v27305_v6 = vand.u32 4294901760, %v864_v3 }
  0x98   :  { %25084 = vmatprep.subr.mxu0 %v30045_v0  ;;  %25089 = vmatprep.subr.mxu1 %v30045_v0 }
  0x99   :  { %25085 = vmatpush3.msra.mxu0 %v27156_v12  ;;  %25086 = vmatprep.mubr.msk.f32.mxu0 %vm26975_vm0, %v30045_v0 }
  0x9a   :  { %25090 = vmatpush3.msra.mxu1 %v27138_v4  ;;  %25087 = vmatmul.mubr.f32.vlgmr.msra.gmra.mxu0 %v310_v7 }
  0x9b   :  { %25091 = vmatprep.subr.mxu1 %v30045_v0  ;;  %25093 = vmatprep.mubr.msk.f32.mxu1 %vm26975_vm0, %v30045_v0 }
  0x9c   :  { %25092 = vmatpush3.msra.mxu1 %v27140_v5  ;;  %783 = vmatprep.mubr.f32.mxu0 %v30045_v0 }
  0x9d   :  { %25094 = vmatmul.mubr.f32.vlgmr.msra.gmra.mxu1 %v310_v7  ;;  %736 = vmatprep.subr.mxu0 %v27195_v21  ;;  %v27312_v7 = vld [vmem:[%s30023_s5] ss:$0 sm:$0xff] }
  0x9e   :  { %899 = vmatprep.mubr.f32.mxu1 %v30045_v0  ;;  %738 = vmatpush1.msra.mxu0 %v27197_v25  ;;  %30251 = vst [vmem:[#allocation49_spill] sm:$0xff] %v27312_v7 }
  0x9f   :  { %740 = vmatprep.subr.mxu0 %v27199_v26  ;;  %824 = vmatprep.subr.mxu1 %v27256_v50 }
  0xa0   :  { %742 = vmatpush1.msra.mxu0 %v27201_v27  ;;  %830 = vmatpush1.msra.mxu1 %v27266_v54 }
  0xa1   :  { %744 = vmatprep.subr.mxu0 %v27206_v30  ;;  %836 = vmatprep.subr.mxu1 %v27268_v55 }
  0xa2   :  { %746 = vmatpush1.msra.mxu0 %v27235_v40  ;;  %842 = vmatpush1.msra.mxu1 %v27270_v56 }
  0xa3   :  { %748 = vmatprep.subr.mxu0 %v27243_v44  ;;  %848 = vmatprep.subr.mxu1 %v27276_v58 }
  0xa4   :  { %750 = vmatpush1.msra.mxu0 %v27263_v53  ;;  %854 = vmatpush1.msra.mxu1 %v27296_v1 }
  0xa5   :  { %933 = vmatprep.subr.mxu0 %v27204_v29  ;;  %860 = vmatprep.subr.mxu1 %v27299_v2 }
  0xa6   :  { %866 = vmatpush1.msra.mxu1 %v27305_v6 }
  0xa7   :  { %1021 = vmatprep.subr.mxu1 %v27195_v21 }
 0x150   :  { %v316_v10 = vpop.f32.mrf.mxu0 }
 0x151   :  { %v317_v13 = vadd.f32 %v27312_v7, %v316_v10  ;;  %v397_v15 = vpop.f32.mrf.mxu1 }
 0x152   :  { %v25060_v14 = vpop.f32.mrf.mxu0 }
 0x153   :  { %v398_v16 = vadd.f32 %v397_v15, %v317_v13  ;;  %v25067_v19 = vpop.f32.mrf.mxu1 }
 0x154   :  { %v473_v20 = vpop.f32.mrf.mxu0 }
 0x155   :  { %v474_v22 = vadd.f32 %v473_v20, %v398_v16 }
 0x156   :  { %v25074_v23 = vpop.f32.mrf.mxu0 }
 0x157   :  { %v548_v24 = vpop.f32.mrf.mxu1 }
 0x158   :  { %v549_v28 = vadd.f32 %v548_v24, %v474_v22  ;;  %v203_v22 = vld [vmem:[#allocation13 + $0x8] sm:$0xff]  ;;  %v202_v24 = vld [vmem:[#allocation13] sm:$0xff] }
 0x159   :  { %v25081_v36 = vpop.f32.mrf.mxu1  ;;  %v27357_v23 = vand.u32 4294901760, %v203_v22 }
 0x15a   :  { %v625_v41 = vpop.f32.mrf.mxu0  ;;  %v27362_v36 = vand.u32 4294901760, %v202_v24 }
 0x15b   :  { %v626_v42 = vadd.f32 %v625_v41, %v549_v28  ;;  %30252 = vst [vmem:[#allocation50_spill] sm:$0xff] %v27357_v23  ;;  %v27360_v28 = vsub.f32 %v203_v22, %v27357_v23 }
 0x15c   :  { %v25088_v45 = vpop.f32.mrf.mxu0  ;;  %30254 = vst [vmem:[#allocation52_spill] sm:$0xff] %v27362_v36 }
 0x15d   :  { %v698_v46 = vpop.f32.mrf.mxu1  ;;  %30253 = vst [vmem:[#allocation51_spill] sm:$0xff] %v27360_v28  ;;  %v27367_v41 = vand.u32 4294901760, %v27360_v28 }
 0x15e   :  { %v699_v47 = vadd.f32 %v698_v46, %v626_v42  ;;  %v27370_v42 = vsub.f32 %v202_v24, %v27362_v36 }
 0x15f   :  { %v25095_v48 = vpop.f32.mrf.mxu1  ;;  %30255 = vst [vmem:[#allocation53_spill] sm:$0xff] %v27367_v41  ;;  %v1400_v45 = vsub.f32 %v27360_v28, %v27367_v41 }
 0x160   :  { %v702_v51 = vmax.f32 %v699_v47, 0.0  ;;  %30256 = vst [vmem:[#allocation54_spill] sm:$0xff] %v27370_v42  ;;  %v27377_v46 = vand.u32 4294901760, %v27370_v42 }
 0x161   :  { %v27379_v47 = vand.u32 4294901760, %v1400_v45 }
 0x162   :  { %v703_v61 = vsub.f32 0.0, %v702_v51  ;;  %30257 = vst [vmem:[#allocation55_spill] sm:$0xff] %v27377_v46  ;;  %v1407_v48 = vsub.f32 %v27370_v42, %v27377_v46 }
 0x163   :  { %30258 = vst [vmem:[#allocation56_spill] sm:$0xff] %v27379_v47 }
 0x164   :  { %v704_v62 = vmul.f32 1.442695, %v703_v61  ;;  %v27384_v51 = vand.u32 4294901760, %v1407_v48 }
 0x166   :  { %26501 = vpow2.f32 %v704_v62  ;;  %30259 = vst [vmem:[#allocation57_spill] sm:$0xff] %v27384_v51 }
 0x173   :  { %v26502_v3 = vpop.eup %26501 }
 0x174   :  { %2262 = vrot.lane.b32.xlu0 %v26502_v3, %s26976_s28  ;;  %v706_v10 = vmul.f32 0.0, %v26502_v3 }
 0x176   :  { %v709_v13 = vsel %vm707_vm2, %v706_v10, 0 }
 0x177   :  { %v784_v14 = vand.u32 4294901760, %v709_v13 }
 0x179   :  { %v785_v15 = vsub.f32 %v709_v13, %v784_v14  ;;  %901 = vmatmul.mubr.f32.vlgmr.msra.gmra.mxu1 %v784_v14 }
 0x17a   :  { %1023 = vmatpush1.msra.mxu1 %v27197_v25  ;;  %1068 = vmatprep.mubr.f32.mxu1 %v30045_v0 }
 0x17b   :  { %1025 = vmatprep.subr.mxu1 %v27199_v26  ;;  %v786_v16 = vand.u32 4294901760, %v785_v15 }
 0x17c   :  { %1027 = vmatpush1.msra.mxu1 %v27201_v27 }
 0x17d   :  { %1029 = vmatprep.subr.mxu1 %v27206_v30  ;;  %v787_v19 = vsub.f32 %v785_v15, %v786_v16 }
 0x17e   :  { %1031 = vmatpush1.msra.mxu1 %v27235_v40 }
 0x17f   :  { %1033 = vmatprep.subr.mxu1 %v27243_v44  ;;  %v788_v20 = vand.u32 4294901760, %v787_v19 }
 0x180   :  { %1035 = vmatpush1.msra.mxu1 %v27263_v53 }
 0x181   :  { %1072 = vmatmul.mubr.f32.vlgmr.msra.gmra.mxu1 %v786_v16  ;;  %1199 = vmatprep.subr.mxu1 %v27195_v21 }
 0x182   :  { %789 = vmatmul.mubr.f32.vlgmr.msra.gmra.mxu0 %v788_v20  ;;  %1201 = vmatpush1.msra.mxu1 %v27197_v25 }
 0x183   :  { %936 = vmatpush1.msra.mxu0 %v27210_v31  ;;  %1203 = vmatprep.subr.mxu1 %v27199_v26 }
 0x184   :  { %939 = vmatprep.subr.mxu0 %v27213_v32  ;;  %1205 = vmatpush1.msra.mxu1 %v27201_v27 }
 0x185   :  { %942 = vmatpush1.msra.mxu0 %v27216_v33  ;;  %1207 = vmatprep.subr.mxu1 %v27206_v30 }
 0x186   :  { %945 = vmatprep.subr.mxu0 %v27223_v35  ;;  %1209 = vmatpush1.msra.mxu1 %v27235_v40  ;;  %v206_v35 = vld [vmem:[%s30028_s10 + $0x8] sm:$0xff] }
 0x187   :  { %948 = vmatpush1.msra.mxu0 %v27253_v49  ;;  %1211 = vmatprep.subr.mxu1 %v27243_v44  ;;  %v27484_v31 = vand.u32 4294901760, %v206_v35 }
 0x188   :  { %951 = vmatprep.subr.mxu0 %v27261_v52  ;;  %987 = vmatprep.mubr.f32.mxu0 %v30045_v0 }
 0x189   :  { %954 = vmatpush1.msra.mxu0 %v27282_v60  ;;  %1213 = vmatpush1.msra.mxu1 %v27263_v53  ;;  %30279 = vst [vmem:[#allocation76_spill] sm:$0xff] %v27484_v31 }
 0x18a   :  { %1246 = vmatprep.mubr.f32.mxu1 %v30045_v0  ;;  %990 = vmatmul.mubr.f32.vlgmr.msra.gmra.mxu0 %v785_v15 }
 0x18b   :  { %1105 = vmatprep.subr.mxu0 %v27220_v34  ;;  %1248 = vmatmul.mubr.f32.vlgmr.msra.gmra.mxu1 %v784_v14 }
 0x18c   :  { %1109 = vmatpush1.msra.mxu0 %v27227_v37  ;;  %1166 = vmatprep.mubr.f32.mxu0 %v30045_v0 }
 0x18d   :  { %1113 = vmatprep.subr.mxu0 %v27230_v38  ;;  %25103 = vmatprep.subr.mxu1 %v30045_v0 }
 0x18e   :  { %1117 = vmatpush1.msra.mxu0 %v27233_v39  ;;  %25107 = vmatprep.mubr.msk.f32.mxu1 %vm26975_vm0, %v30045_v0 }
 0x18f   :  { %1121 = vmatprep.subr.mxu0 %v27241_v43  ;;  %25104 = vmatpush3.msra.mxu1 %v27379_v47  ;;  %v211_v43 = vld [vmem:[#allocation16 + $0x18] sm:$0xff] }
 0x190   :  { %1125 = vmatpush1.msra.mxu0 %v27273_v57  ;;  %25105 = vmatprep.subr.mxu1 %v30045_v0 }
 0x191   :  { %1129 = vmatprep.subr.mxu0 %v27279_v59  ;;  %25106 = vmatpush3.msra.mxu1 %v27384_v51  ;;  %v27389_v51 = vld [vmem:[#allocation5] sm:$0xff] }
 0x192   :  { %1133 = vmatpush1.msra.mxu0 %v27293_v63  ;;  %25117 = vmatprep.subr.mxu1 %v30045_v0 }
 0x193   :  { %1168 = vmatmul.mubr.f32.vlgmr.msra.gmra.mxu0 %v784_v14  ;;  %25096 = vmatprep.subr.mxu0 %v30045_v0 }
 0x194   :  { %25100 = vmatprep.mubr.msk.f32.mxu0 %vm26975_vm0, %v30045_v0  ;;  %25097 = vmatpush3.msra.mxu0 %v27357_v23 }
 0x195   :  { %25098 = vmatprep.subr.mxu0 %v30045_v0 }
 0x196   :  { %25099 = vmatpush3.msra.mxu0 %v27362_v36 }
 0x197   :  { %25110 = vmatprep.subr.mxu0 %v30045_v0 }
 0x239   :  { %v902_v61 = vpop.f32.mrf.mxu1 }
 0x23b   :  { %v904_v13 = vpop.f32.mrf.mxu1 }
 0x241   :  { %v1073_v16 = vpop.f32.mrf.mxu1 }
 0x242   :  { %v790_v62 = vpop.f32.mrf.mxu0 }
 0x243   :  { %v903_v3 = vadd.f32 %v902_v61, %v790_v62  ;;  %v1075_v45 = vpop.f32.mrf.mxu1  ;;  %v210_v62 = vld [vmem:[#allocation16 + $0x10] sm:$0xff] }
 0x244   :  { %v792_v10 = vpop.f32.mrf.mxu0 }
 0x245   :  { %v905_v22 = vadd.f32 %v904_v13, %v792_v10  ;;  %v215_v10 = vld [vmem:[#allocation2] sm:$0xff]  ;;  %v209_v13 = vld [vmem:[#allocation16 + $0x8] sm:$0xff] }
 0x24a   :  { %v991_v14 = vpop.f32.mrf.mxu0 }
 0x24b   :  { %v992_v15 = vadd.f32 %v991_v14, %v903_v3  ;;  %v1249_v48 = vpop.f32.mrf.mxu1  ;;  %v27396_v3 = vld [vmem:[%s30025_s7] ss:$0 sm:$0xff] }
 0x24c   :  { %v993_v19 = vpop.f32.mrf.mxu0  ;;  %30260 = vst [vmem:[#allocation58_spill] sm:$0xff] %v27396_v3 }
 0x24d   :  { %v1074_v20 = vadd.f32 %v1073_v16, %v992_v15  ;;  %v994_v24 = vadd.f32 %v993_v19, %v905_v22  ;;  %v1251_v39 = vpop.f32.mrf.mxu1  ;;  %v27399_v15 = vand.u32 4294901760, %v211_v43  ;;  %v208_v16 = vld [vmem:[#allocation16] sm:$0xff]  ;;  %v27401_v19 = vand.u32 4294901760, %v210_v62 }
 0x24f   :  { %v1076_v57 = vadd.f32 %v1075_v45, %v994_v24  ;;  %30261 = vst [vmem:[#allocation59_spill] sm:$0xff] %v27399_v15  ;;  %30262 = vst [vmem:[#allocation60_spill] sm:$0xff] %v27401_v19  ;;  %v27417_v22 = vsub.f32 %v211_v43, %v27399_v15  ;;  %v27420_v24 = vsub.f32 %v210_v62, %v27401_v19 }
 0x251   :  { %30266 = vst [vmem:[#allocation64_spill] sm:$0xff] %v27417_v22  ;;  %30267 = vst [vmem:[#allocation65_spill] sm:$0xff] %v27420_v24  ;;  %v27436_v43 = vand.u32 4294901760, %v27420_v24 }
 0x253   :  { %v1169_v63 = vpop.f32.mrf.mxu0  ;;  %30271 = vst [vmem:[#allocation69_spill] sm:$0xff] %v27436_v43  ;;  %v1887_v38 = vsub.f32 %v27420_v24, %v27436_v43 }
 0x254   :  { %v1170_v59 = vadd.f32 %v1169_v63, %v1074_v20  ;;  %v30053_v63 = vsub.f32 1.0, %v27389_v51  ;;  %v27411_v20 = vand.u32 4294901760, %v208_v16 }
 0x255   :  { %v1171_v0 = vpop.f32.mrf.mxu0 }
 0x256   :  { %v27391_v47 = vadd.f32 %v1249_v48, %v1170_v59  ;;  %v1172_v61 = vadd.f32 %v1171_v0, %v1076_v57  ;;  %v27407_v0 = vmul.f32 %v27389_v51, %v215_v10  ;;  %v27409_v57 = vand.u32 4294901760, %v209_v13  ;;  %30265 = vst [vmem:[#allocation63_spill] sm:$0xff] %v27411_v20 }
 0x258   :  { %v1252_v14 = vadd.f32 %v1251_v39, %v1172_v61  ;;  %30264 = vst [vmem:[#allocation62_spill] sm:$0xff] %v27409_v57  ;;  %v27424_v48 = vsub.f32 %v209_v13, %v27409_v57  ;;  %v27427_v61 = vsub.f32 %v208_v16, %v27411_v20  ;;  %v30274_v16 = vmov 0.0  }
 0x25a   :  { %v27404_v59 = vadd.f32 %v27396_v3, %v1252_v14  ;;  %30268 = vst [vmem:[#allocation66_spill] sm:$0xff] %v27424_v48  ;;  %30269 = vst [vmem:[#allocation67_spill] sm:$0xff] %v27427_v61  ;;  %v27431_v14 = vand.u32 4294901760, %v27417_v22  ;;  %v27439_v62 = vand.u32 4294901760, %v27424_v48  ;;  %v27444_v13 = vand.u32 4294901760, %v27427_v61 }
 0x25c   :  { %30263 = vst [vmem:[#allocation61_spill] sm:$0xff] %v27404_v59  ;;  %v1280_v39 = vmul.f32 %v30053_v63, %v27404_v59  ;;  %30270 = vst [vmem:[#allocation68_spill] sm:$0xff] %v27431_v14  ;;  %v1893_v37 = vsub.f32 %v27424_v48, %v27439_v62  ;;  %v1899_v60 = vsub.f32 %v27427_v61, %v27444_v13 }
 0x25d   :  { %30272 = vst [vmem:[#allocation70_spill] sm:$0xff] %v27439_v62  ;;  %30273 = vst [vmem:[#allocation71_spill] sm:$0xff] %v27444_v13 }
 0x25e   :  { %v1281_v45 = vadd.f32 %v1280_v39, %v27407_v0  ;;  %v27476_v32 = vand.u32 4294901760, %v1893_v37 }
 0x260   :  { %v1289_v10 = vsel %vm219_vm1, %v1281_v45, 0  ;;  %v1881_v45 = vsub.f32 %v27417_v22, %v27431_v14  ;;  %30277 = vst [vmem:[#allocation74_spill] sm:$0xff] %v27476_v32 }
 0x261   :  { %v27433_v63 = vand.u32 4294901760, %v1289_v10 }
 0x262   :  { %v27465_v52 = vand.u32 4294901760, %v1881_v45  ;;  %v205_v45 = vld [vmem:[%s30028_s10] sm:$0xff] }
 0x263   :  { %v1359_v39 = vsub.f32 %v1289_v10, %v27433_v63  ;;  %25108 = vmatmul.mubr.f32.vlgmr.msra.gmra.mxu1 %v27433_v63  ;;  %v1768_v10 = vsel %vm219_vm1, %v27389_v51, 0  ;;  %v27491_v37 = vand.u32 4294901760, %v205_v45 }
 0x264   :  { %25118 = vmatpush3.msra.mxu1 %v27357_v23  ;;  %25121 = vmatprep.mubr.msk.f32.mxu1 %vm26975_vm0, %v30274_v16  ;;  %30275 = vst [vmem:[#allocation72_spill] sm:$0xff] %v27465_v52  ;;  %v27467_v49 = vand.u32 4294901760, %v1768_v10 }
 0x265   :  { %25119 = vmatprep.subr.mxu1 %v30274_v16  ;;  %v1360_v3 = vand.u32 4294901760, %v1359_v39  ;;  %30280 = vst [vmem:[#allocation77_spill] sm:$0xff] %v27491_v37 }
 0x266   :  { %25120 = vmatpush3.msra.mxu1 %v27362_v36 }
 0x267   :  { %25122 = vmatmul.mubr.f32.vlgmr.msra.gmra.mxu1 %v1360_v3  ;;  %25131 = vmatprep.subr.mxu1 %v30274_v16  ;;  %v1361_v34 = vsub.f32 %v1359_v39, %v1360_v3  ;;  %v27473_v3 = vand.u32 4294901760, %v1887_v38 }
 0x268   :  { %25132 = vmatpush3.msra.mxu1 %v27357_v23  ;;  %25135 = vmatprep.mubr.msk.f32.mxu1 %vm26975_vm0, %v30274_v16  ;;  %v27482_v23 = vand.u32 4294901760, %v1899_v60  ;;  %v27505_v60 = vsub.f32 %v205_v45, %v27491_v37  ;;  %v2263_v45 = vpop.permute.xlu0 %2262 }
 0x269   :  { %25133 = vmatprep.subr.mxu1 %v30274_v16  ;;  %v1362_v33 = vand.u32 4294901760, %v1361_v34  ;;  %30276 = vst [vmem:[#allocation73_spill] sm:$0xff] %v27473_v3  ;;  %v1840_v34 = vsub.f32 %v1768_v10, %v27467_v49 }
 0x26a   :  { %25134 = vmatpush3.msra.mxu1 %v27362_v36  ;;  %30278 = vst [vmem:[#allocation75_spill] sm:$0xff] %v27482_v23  ;;  %30282 = vst [vmem:[#allocation79_spill] sm:$0xff] %v27505_v60  ;;  %v27520_v10 = vand.u32 4294901760, %v27505_v60 }
 0x26b   :  { %25101 = vmatmul.mubr.f32.vlgmr.msra.gmra.mxu0 %v1362_v33  ;;  %25136 = vmatmul.mubr.f32.vlgmr.msra.gmra.mxu1 %v27433_v63  ;;  %v27499_v33 = vsub.f32 %v206_v35, %v27484_v31  ;;  %v1841_v38 = vand.u32 4294901760, %v1840_v34 }
 0x26c   :  { %1883 = vmatprep.subr.mxu1 %v27465_v52  ;;  %25111 = vmatpush3.msra.mxu0 %v27360_v28  ;;  %30284 = vst [vmem:[#allocation81_spill] sm:$0xff] %v27520_v10 }
 0x26d   :  { %1889 = vmatpush1.msra.mxu1 %v27473_v3  ;;  %25112 = vmatprep.subr.mxu0 %v30274_v16  ;;  %30281 = vst [vmem:[#allocation78_spill] sm:$0xff] %v27499_v33  ;;  %v27512_v35 = vand.u32 4294901760, %v27499_v33 }
 0x26e   :  { %1895 = vmatprep.subr.mxu1 %v27476_v32  ;;  %25113 = vmatpush3.msra.mxu0 %v27370_v42 }
 0x26f   :  { %25114 = vmatprep.mubr.msk.f32.mxu0 %vm26975_vm0, %v30274_v16  ;;  %1901 = vmatpush1.msra.mxu1 %v27482_v23  ;;  %30283 = vst [vmem:[#allocation80_spill] sm:$0xff] %v27512_v35  ;;  %v2264_v23 = vsel %vm219_vm1, %v2263_v45, 0 }
 0x270   :  { %1934 = vmatprep.mubr.f32.mxu1 %v30274_v16  ;;  %25115 = vmatmul.mubr.f32.vlgmr.msra.gmra.mxu0 %v1359_v39  ;;  %v1842_v39 = vsub.f32 %v1840_v34, %v1841_v38 }
 0x271   :  { %25124 = vmatprep.subr.mxu0 %v30274_v16  ;;  %1936 = vmatmul.mubr.f32.vlgmr.msra.gmra.mxu1 %v27467_v49 }
 0x272   :  { %2052 = vmatprep.subr.mxu1 %v27399_v15  ;;  %25125 = vmatpush3.msra.mxu0 %v27367_v41  ;;  %v1843_v41 = vand.u32 4294901760, %v1842_v39  ;;  %v2333_v39 = vand.u32 4294901760, %v2264_v23 }
 0x273   :  { %2054 = vmatpush1.msra.mxu1 %v27401_v19  ;;  %25126 = vmatprep.subr.mxu0 %v30274_v16 }
 0x274   :  { %2056 = vmatprep.subr.mxu1 %v27409_v57  ;;  %25127 = vmatpush3.msra.mxu0 %v27377_v46  ;;  %v2375_v46 = vsub.f32 %v27499_v33, %v27512_v35 }
 0x275   :  { %25128 = vmatprep.mubr.msk.f32.mxu0 %vm26975_vm0, %v30274_v16  ;;  %2058 = vmatpush1.msra.mxu1 %v27411_v20 }
 0x276   :  { %2091 = vmatprep.mubr.f32.mxu1 %v30274_v16  ;;  %25129 = vmatmul.mubr.f32.vlgmr.msra.gmra.mxu0 %v27433_v63  ;;  %v2382_v63 = vsub.f32 %v27505_v60, %v27520_v10 }
 0x277   :  { %1799 = vmatprep.subr.mxu0 %v27399_v15  ;;  %2095 = vmatmul.mubr.f32.vlgmr.msra.gmra.mxu1 %v1841_v38  ;;  %v27538_v38 = vand.u32 4294901760, %v2375_v46  ;;  %v2334_v46 = vsub.f32 %v2264_v23, %v2333_v39 }
 0x278   :  { %2214 = vmatprep.subr.mxu1 %v27399_v15  ;;  %1801 = vmatpush1.msra.mxu0 %v27401_v19  ;;  %v27543_v45 = vand.u32 4294901760, %v2382_v63  ;;  %v212_v63 = vld [vmem:[#allocation17] sm:$0xff] }
 0x279   :  { %2216 = vmatpush1.msra.mxu1 %v27401_v19  ;;  %1803 = vmatprep.subr.mxu0 %v27409_v57  ;;  %30285 = vst [vmem:[#allocation82_spill] sm:$0xff] %v27538_v38 }
 0x27a   :  { %2218 = vmatprep.subr.mxu1 %v27409_v57  ;;  %1805 = vmatpush1.msra.mxu0 %v27411_v20  ;;  %30286 = vst [vmem:[#allocation83_spill] sm:$0xff] %v27543_v45 }
 0x27b   :  { %1838 = vmatprep.mubr.f32.mxu0 %v30274_v16  ;;  %2220 = vmatpush1.msra.mxu1 %v27411_v20 }
 0x27c   :  { %2253 = vmatprep.mubr.f32.mxu1 %v30274_v16  ;;  %1844 = vmatmul.mubr.f32.vlgmr.msra.gmra.mxu0 %v1843_v41  ;;  %v2335_v41 = vand.u32 4294901760, %v2334_v46 }
 0x27d   :  { %1972 = vmatprep.subr.mxu0 %v27417_v22  ;;  %2255 = vmatmul.mubr.f32.vlgmr.msra.gmra.mxu1 %v27467_v49 }
 0x27e   :  { %25145 = vmatprep.subr.mxu1 %v30274_v16  ;;  %1975 = vmatpush1.msra.mxu0 %v27420_v24  ;;  %v2336_v23 = vsub.f32 %v2334_v46, %v2335_v41 }
 0x27f   :  { %25146 = vmatpush3.msra.mxu1 %v27538_v38  ;;  %1978 = vmatprep.subr.mxu0 %v27424_v48 }
 0x280   :  { %25147 = vmatprep.subr.mxu1 %v30274_v16  ;;  %1981 = vmatpush1.msra.mxu0 %v27427_v61 }
 0x281   :  { %2014 = vmatprep.mubr.f32.mxu0 %v30274_v16  ;;  %25148 = vmatpush3.msra.mxu1 %v27543_v45 }
 0x282   :  { %25149 = vmatprep.mubr.msk.f32.mxu1 %vm26975_vm0, %v30274_v16  ;;  %2017 = vmatmul.mubr.f32.vlgmr.msra.gmra.mxu0 %v1840_v34  ;;  %v2337_v34 = vand.u32 4294901760, %v2336_v23 }
 0x283   :  { %2132 = vmatprep.subr.mxu0 %v27431_v14  ;;  %25150 = vmatmul.mubr.f32.vlgmr.msra.gmra.mxu1 %v2333_v39 }
 0x284   :  { %25159 = vmatprep.subr.mxu1 %v30274_v16  ;;  %2136 = vmatpush1.msra.mxu0 %v27436_v43 }
 0x285   :  { %25160 = vmatpush3.msra.mxu1 %v27484_v31  ;;  %2140 = vmatprep.subr.mxu0 %v27439_v62 }
 0x286   :  { %25161 = vmatprep.subr.mxu1 %v30274_v16  ;;  %2144 = vmatpush1.msra.mxu0 %v27444_v13 }
 0x287   :  { %2177 = vmatprep.mubr.f32.mxu0 %v30274_v16  ;;  %25162 = vmatpush3.msra.mxu1 %v27491_v37 }
 0x288   :  { %25163 = vmatprep.mubr.msk.f32.mxu1 %vm26975_vm0, %v30274_v16  ;;  %2179 = vmatmul.mubr.f32.vlgmr.msra.gmra.mxu0 %v27467_v49  ;;  %v213_v49 = vld [vmem:[#allocation17 + $0x8] sm:$0xff] }
 0x289   :  { %25138 = vmatprep.subr.mxu0 %v30274_v16  ;;  %25164 = vmatmul.mubr.f32.vlgmr.msra.gmra.mxu1 %v2335_v41  ;;  %v27599_v41 = vand.u32 4294901760, %v212_v63 }
 0x28a   :  { %25173 = vmatprep.subr.mxu1 %v30274_v16  ;;  %25139 = vmatpush3.msra.mxu0 %v27484_v31 }
 0x28b   :  { %25174 = vmatpush3.msra.mxu1 %v27484_v31  ;;  %25140 = vmatprep.subr.mxu0 %v30274_v16  ;;  %v27629_v31 = vld [vmem:[#allocation14] ss:$0 sm:$0xff] }
 0x28c   :  { %25175 = vmatprep.subr.mxu1 %v30274_v16  ;;  %25141 = vmatpush3.msra.mxu0 %v27491_v37  ;;  %30289 = vst [vmem:[#allocation86_spill] sm:$0xff] %v27629_v31 }
 0x28d   :  { %25142 = vmatprep.mubr.msk.f32.mxu0 %vm26975_vm0, %v30274_v16  ;;  %25176 = vmatpush3.msra.mxu1 %v27491_v37 }
 0x28e   :  { %25177 = vmatprep.mubr.msk.f32.mxu1 %vm26975_vm0, %v30274_v16  ;;  %25143 = vmatmul.mubr.f32.vlgmr.msra.gmra.mxu0 %v2337_v34  ;;  %v27605_v34 = vsub.f32 %v212_v63, %v27599_v41 }
 0x28f   :  { %25152 = vmatprep.subr.mxu0 %v30274_v16  ;;  %25178 = vmatmul.mubr.f32.vlgmr.msra.gmra.mxu1 %v2333_v39 }
 0x290   :  { %25153 = vmatpush3.msra.mxu0 %v27499_v33  ;;  %25156 = vmatprep.mubr.msk.f32.mxu0 %vm26975_vm0, %v30274_v16 }
 0x291   :  { %25154 = vmatprep.subr.mxu0 %v30274_v16  ;;  %25187 = vmatprep.subr.mxu1 %v30274_v16 }
 0x292   :  { %25155 = vmatpush3.msra.mxu0 %v27505_v60  ;;  %25191 = vmatprep.mubr.msk.f32.mxu1 %vm26975_vm0, %v30274_v16 }
 0x293   :  { %25157 = vmatmul.mubr.f32.vlgmr.msra.gmra.mxu0 %v2334_v46  ;;  %25166 = vmatprep.subr.mxu0 %v30274_v16  ;;  %v27597_v46 = vand.u32 4294901760, %v213_v49 }
 0x294   :  { %25167 = vmatpush3.msra.mxu0 %v27512_v35  ;;  %25170 = vmatprep.mubr.msk.f32.mxu0 %vm26975_vm0, %v30274_v16 }
 0x295   :  { %25168 = vmatprep.subr.mxu0 %v30274_v16  ;;  %v27602_v23 = vsub.f32 %v213_v49, %v27597_v46 }
 0x296   :  { %25169 = vmatpush3.msra.mxu0 %v27520_v10  ;;  %v27613_v10 = vand.u32 4294901760, %v27605_v34 }
 0x297   :  { %25171 = vmatmul.mubr.f32.vlgmr.msra.gmra.mxu0 %v2333_v39  ;;  %25180 = vmatprep.subr.mxu0 %v30274_v16  ;;  %v27610_v39 = vand.u32 4294901760, %v27602_v23 }
 0x298   :  { %25184 = vmatprep.mubr.msk.f32.mxu0 %vm26975_vm0, %v30274_v16  ;;  %25181 = vmatpush3.msra.mxu0 %v27597_v46  ;;  %v2882_v63 = vsub.f32 %v27605_v34, %v27613_v10 }
 0x299   :  { %25182 = vmatprep.subr.mxu0 %v30274_v16  ;;  %v2875_v49 = vsub.f32 %v27602_v23, %v27610_v39 }
 0x29a   :  { %25183 = vmatpush3.msra.mxu0 %v27599_v41  ;;  %v27623_v60 = vand.u32 4294901760, %v2882_v63 }
 0x29b   :  { %25194 = vmatprep.subr.mxu0 %v30274_v16  ;;  %v27621_v35 = vand.u32 4294901760, %v2875_v49 }
 0x29c   :  { %30288 = vst [vmem:[#allocation85_spill] sm:$0xff] %v27623_v60 }
 0x29d   :  { %30287 = vst [vmem:[#allocation84_spill] sm:$0xff] %v27621_v35  ;;  %25188 = vmatpush3.msra.mxu1 %v27621_v35 }
 0x29e   :  { %25189 = vmatprep.subr.mxu1 %v30274_v16 }
 0x29f   :  { %25190 = vmatpush3.msra.mxu1 %v27623_v60 }
 0x2a0   :  { %25201 = vmatprep.subr.mxu1 %v30274_v16 }
 0x323   :  { %v1445_v33 = vpop.f32.mrf.mxu1 }
 0x325   :  { %v25109_v37 = vpop.f32.mrf.mxu1 }
 0x327   :  { %v1596_v13 = vpop.f32.mrf.mxu1 }
 0x329   :  { %v25123_v62 = vpop.f32.mrf.mxu1 }
 0x32b   :  { %v1364_v43 = vpop.f32.mrf.mxu0  ;;  %v1746_v14 = vpop.f32.mrf.mxu1 }
 0x32c   :  { %v1365_v49 = vadd.f32 %v27629_v31, %v1364_v43 }
 0x32d   :  { %v25102_v63 = vpop.f32.mrf.mxu0  ;;  %v25137_v45 = vpop.f32.mrf.mxu1 }
 0x32e   :  { %v1446_v61 = vadd.f32 %v1445_v33, %v1365_v49 }
 0x330   :  { %v1521_v35 = vpop.f32.mrf.mxu0 }
 0x331   :  { %v1522_v48 = vadd.f32 %v1521_v35, %v1446_v61  ;;  %v1937_v38 = vpop.f32.mrf.mxu1 }
 0x332   :  { %v25116_v24 = vpop.f32.mrf.mxu0 }
 0x333   :  { %v1939_v60 = vpop.f32.mrf.mxu1  ;;  %v1597_v22 = vadd.f32 %v1596_v13, %v1522_v48 }
 0x336   :  { %v1673_v20 = vpop.f32.mrf.mxu0 }
 0x337   :  { %v1674_v57 = vadd.f32 %v1673_v20, %v1597_v22  ;;  %v2096_v37 = vpop.f32.mrf.mxu1 }
 0x338   :  { %v25130_v19 = vpop.f32.mrf.mxu0 }
 0x339   :  { %v27632_v62 = vadd.f32 %v1746_v14, %v1674_v57  ;;  %v2098_v15 = vpop.f32.mrf.mxu1 }
 0x33b   :  { %30290 = vst [vmem:[#allocation87_spill] sm:$0xff] %v27632_v62 }
 0x33c   :  { %v1845_v42 = vpop.f32.mrf.mxu0 }
 0x33d   :  { %v1938_v32 = vadd.f32 %v1937_v38, %v1845_v42  ;;  %v2256_v3 = vpop.f32.mrf.mxu1 }
 0x33e   :  { %v1847_v43 = vpop.f32.mrf.mxu0 }
 0x33f   :  { %v2258_v63 = vpop.f32.mrf.mxu1  ;;  %v1940_v33 = vadd.f32 %v1939_v60, %v1847_v43 }
 0x342   :  { %v2018_v45 = vpop.f32.mrf.mxu0 }
 0x343   :  { %v2019_v49 = vadd.f32 %v2018_v45, %v1938_v32  ;;  %v2420_v61 = vpop.f32.mrf.mxu1 }
 0x344   :  { %v2020_v35 = vpop.f32.mrf.mxu0 }
 0x345   :  { %v2021_v24 = vadd.f32 %v2020_v35, %v1940_v33  ;;  %v25151_v31 = vpop.f32.mrf.mxu1  ;;  %v2097_v48 = vadd.f32 %v2096_v37, %v2019_v49  ;;  %v27639_v35 = vld [vmem:[%s30029_s11] ss:$0 sm:$0xff] }
 0x347   :  { %v2099_v13 = vadd.f32 %v2098_v15, %v2021_v24 }
 0x348   :  { %v2180_v20 = vpop.f32.mrf.mxu0 }
 0x349   :  { %v2181_v22 = vadd.f32 %v2180_v20, %v2097_v48  ;;  %v2571_v19 = vpop.f32.mrf.mxu1 }
 0x34a   :  { %v2182_v57 = vpop.f32.mrf.mxu0 }
 0x34b   :  { %v2183_v14 = vadd.f32 %v2182_v57, %v2099_v13  ;;  %v25165_v28 = vpop.f32.mrf.mxu1  ;;  %v27634_v52 = vadd.f32 %v2256_v3, %v2181_v22  ;;  %v30292_v57 = vsub.f32 1.0, %v27389_v51 }
 0x34d   :  { %v2259_v42 = vadd.f32 %v2258_v63, %v2183_v14 }
 0x34e   :  { %v2339_v38 = vpop.f32.mrf.mxu0 }
 0x34f   :  { %v2340_v36 = vadd.f32 %v2339_v38, %v2259_v42  ;;  %v2721_v7 = vpop.f32.mrf.mxu1 }
 0x350   :  { %v25144_v60 = vpop.f32.mrf.mxu0 }
 0x351   :  { %v25179_v32 = vpop.f32.mrf.mxu1  ;;  %v2421_v43 = vadd.f32 %v2420_v61, %v2340_v36 }
 0x353   :  { %v2496_v45 = vpop.f32.mrf.mxu0 }
 0x354   :  { %v2497_v33 = vadd.f32 %v2496_v45, %v2421_v43  ;;  %v3262_v43 = vld [vmem:[#allocation7 + $0x8] sm:$0xff] }
 0x355   :  { %v25158_v31 = vpop.f32.mrf.mxu0  ;;  %v3279_v45 = vsel %vm219_vm1, %v3262_v43, 0 }
 0x356   :  { %v2572_v37 = vadd.f32 %v2571_v19, %v2497_v33  ;;  %v3348_v33 = vand.u32 4294901760, %v3279_v45 }
 0x357   :  { %v2648_v15 = vpop.f32.mrf.mxu0 }
 0x358   :  { %v2649_v49 = vadd.f32 %v2648_v15, %v2572_v37  ;;  %v3349_v31 = vsub.f32 %v3279_v45, %v3348_v33 }
 0x359   :  { %v25172_v28 = vpop.f32.mrf.mxu0 }
 0x35a   :  { %v2722_v3 = vadd.f32 %v2721_v7, %v2649_v49  ;;  %v3350_v37 = vand.u32 4294901760, %v3349_v31 }
 0x35c   :  { %v2731_v63 = vadd.f32 %v27639_v35, %v2722_v3  ;;  %v3351_v15 = vsub.f32 %v3349_v31, %v3350_v37 }
 0x35e   :  { %v24461_v24 = vmul.f32 -1.442695, %v2731_v63  ;;  %v3352_v49 = vand.u32 4294901760, %v3351_v15 }
 0x360   :  { %26503 = vpow2.f32 %v24461_v24 }
 0x36d   :  { %v26504_v48 = vpop.eup %26503 }
 0x36e   :  { %v2735_v13 = vadd.f32 1.0, %v26504_v48 }
 0x370   :  { %26505 = vrcp.f32 %v2735_v13 }
 0x37d   :  { %v26506_v36 = vpop.eup %26505 }
 0x37e   :  { %v2739_v61 = vsub.f32 1.0, %v26506_v36  ;;  %v2738_v20 = vmul.f32 %v26506_v36, %v27632_v62 }
 0x380   :  { %v2740_v22 = vmul.f32 %v2739_v61, %v27404_v59 }
 0x382   :  { %v27644_v19 = vadd.f32 %v2740_v22, %v2738_v20 }
 0x384   :  { %30291 = vst [vmem:[#allocation88_spill] sm:$0xff] %v27644_v19  ;;  %v2759_v14 = vmul.f32 %v27644_v19, %v30292_v57  ;;  %2761 = vst.msk [vmem:[#allocation19] sm:$0xff] %vm219_vm1, %v27644_v19 }
 0x386   :  { %v2760_v7 = vadd.f32 %v2759_v14, %v27407_v0 }
 0x388   :  { %2762 = vst.msk [vmem:[#allocation20] sm:$0xff] %vm219_vm1, %v2760_v7  ;;  %v2764_v42 = vsel %vm219_vm1, %v2760_v7, 0 }
 0x389   :  { %v2833_v38 = vand.u32 4294901760, %v2764_v42 }
 0x38b   :  { %v2834_v60 = vsub.f32 %v2764_v42, %v2833_v38  ;;  %25192 = vmatmul.mubr.f32.vlgmr.msra.gmra.mxu1 %v2833_v38 }
 0x38c   :  { %25202 = vmatpush3.msra.mxu1 %v27597_v46  ;;  %25205 = vmatprep.mubr.msk.f32.mxu1 %vm26975_vm0, %v30274_v16 }
 0x38d   :  { %25203 = vmatprep.subr.mxu1 %v30274_v16  ;;  %v2835_v51 = vand.u32 4294901760, %v2834_v60 }
 0x38e   :  { %25204 = vmatpush3.msra.mxu1 %v27599_v41 }
 0x38f   :  { %25206 = vmatmul.mubr.f32.vlgmr.msra.gmra.mxu1 %v2835_v51  ;;  %25215 = vmatprep.subr.mxu1 %v30274_v16  ;;  %v2836_v0 = vsub.f32 %v2834_v60, %v2835_v51 }
 0x390   :  { %25216 = vmatpush3.msra.mxu1 %v27597_v46  ;;  %25219 = vmatprep.mubr.msk.f32.mxu1 %vm26975_vm0, %v30274_v16 }
 0x391   :  { %25217 = vmatprep.subr.mxu1 %v30274_v16  ;;  %v2837_v32 = vand.u32 4294901760, %v2836_v0 }
 0x392   :  { %25218 = vmatpush3.msra.mxu1 %v27599_v41 }
 0x393   :  { %25185 = vmatmul.mubr.f32.vlgmr.msra.gmra.mxu0 %v2837_v32  ;;  %25220 = vmatmul.mubr.f32.vlgmr.msra.gmra.mxu1 %v2833_v38  ;;  %v27737_v32 = vld [vmem:[%s30032_s14] ss:$0 sm:$0xff] }
 0x394   :  { %25195 = vmatpush3.msra.mxu0 %v27602_v23  ;;  %25198 = vmatprep.mubr.msk.f32.mxu0 %vm26975_vm0, %v30274_v16  ;;  %30293 = vst [vmem:[#allocation89_spill] sm:$0xff] %v27737_v32 }
 0x395   :  { %25196 = vmatprep.subr.mxu0 %v30274_v16  ;;  %25229 = vmatprep.subr.mxu1 %v30274_v16 }
 0x396   :  { %25197 = vmatpush3.msra.mxu0 %v27605_v34  ;;  %25230 = vmatpush3.msra.mxu1 %v27163_v17 }
 0x397   :  { %25199 = vmatmul.mubr.f32.vlgmr.msra.gmra.mxu0 %v2834_v60  ;;  %25208 = vmatprep.subr.mxu0 %v30274_v16 }
 0x398   :  { %25209 = vmatpush3.msra.mxu0 %v27610_v39  ;;  %25212 = vmatprep.mubr.msk.f32.mxu0 %vm26975_vm0, %v30274_v16 }
 0x399   :  { %25210 = vmatprep.subr.mxu0 %v30274_v16  ;;  %25231 = vmatprep.subr.mxu1 %v30274_v16 }
 0x39a   :  { %25211 = vmatpush3.msra.mxu0 %v27613_v10  ;;  %25232 = vmatpush3.msra.mxu1 %v27165_v18 }
 0x39b   :  { %25213 = vmatmul.mubr.f32.vlgmr.msra.gmra.mxu0 %v2833_v38  ;;  %25222 = vmatprep.subr.mxu0 %v30274_v16 }
 0x39c   :  { %25223 = vmatpush3.msra.mxu0 %v27138_v4  ;;  %25226 = vmatprep.mubr.msk.f32.mxu0 %vm26975_vm0, %v30274_v16 }
 0x39d   :  { %25224 = vmatprep.subr.mxu0 %v30274_v16  ;;  %25233 = vmatprep.mubr.msk.f32.mxu1 %vm26975_vm0, %v30274_v16 }
 0x39e   :  { %25225 = vmatpush3.msra.mxu0 %v27140_v5  ;;  %25243 = vmatprep.subr.mxu1 %v30274_v16 }
 0x39f   :  { %25236 = vmatprep.subr.mxu0 %v30274_v16  ;;  %25234 = vmatmul.mubr.f32.vlgmr.msra.gmra.mxu1 %v3348_v33 }
 0x3a0   :  { %25244 = vmatpush3.msra.mxu1 %v27138_v4  ;;  %25247 = vmatprep.mubr.msk.f32.mxu1 %vm26975_vm0, %v30274_v16 }
 0x3a1   :  { %25245 = vmatprep.subr.mxu1 %v30274_v16  ;;  %25227 = vmatmul.mubr.f32.vlgmr.msra.gmra.mxu0 %v3352_v49 }
 0x3a2   :  { %25246 = vmatpush3.msra.mxu1 %v27140_v5  ;;  %25237 = vmatpush3.msra.mxu0 %v27145_v8 }
 0x3a3   :  { %25248 = vmatmul.mubr.f32.vlgmr.msra.gmra.mxu1 %v3350_v37  ;;  %25257 = vmatprep.subr.mxu1 %v30274_v16 }
 0x3a4   :  { %25258 = vmatpush3.msra.mxu1 %v27138_v4  ;;  %25261 = vmatprep.mubr.msk.f32.mxu1 %vm26975_vm0, %v30274_v16 }
 0x3a5   :  { %25259 = vmatprep.subr.mxu1 %v30274_v16  ;;  %25240 = vmatprep.mubr.msk.f32.mxu0 %vm26975_vm0, %v30274_v16 }
 0x3a6   :  { %25260 = vmatpush3.msra.mxu1 %v27140_v5  ;;  %25238 = vmatprep.subr.mxu0 %v30274_v16 }
 0x3a7   :  { %25262 = vmatmul.mubr.f32.vlgmr.msra.gmra.mxu1 %v3348_v33  ;;  %3867 = vmatprep.subr.mxu1 %v27256_v50 }
 0x3a8   :  { %25239 = vmatpush3.msra.mxu0 %v27148_v9  ;;  %3873 = vmatpush1.msra.mxu1 %v27266_v54 }
 0x3a9   :  { %25241 = vmatmul.mubr.f32.vlgmr.msra.gmra.mxu0 %v3349_v31  ;;  %25250 = vmatprep.subr.mxu0 %v30274_v16 }
 0x3aa   :  { %25251 = vmatpush3.msra.mxu0 %v27153_v11  ;;  %25254 = vmatprep.mubr.msk.f32.mxu0 %vm26975_vm0, %v30274_v16 }
 0x3ab   :  { %25252 = vmatprep.subr.mxu0 %v30274_v16  ;;  %3879 = vmatprep.subr.mxu1 %v27268_v55 }
 0x3ac   :  { %25253 = vmatpush3.msra.mxu0 %v27156_v12  ;;  %3885 = vmatpush1.msra.mxu1 %v27270_v56 }
 0x3ad   :  { %25255 = vmatmul.mubr.f32.vlgmr.msra.gmra.mxu0 %v3348_v33  ;;  %3891 = vmatprep.subr.mxu1 %v27276_v58 }
 0x3ae   :  { %3897 = vmatpush1.msra.mxu1 %v27296_v1  ;;  %3779 = vmatprep.subr.mxu0 %v27195_v21 }
 0x3af   :  { %3903 = vmatprep.subr.mxu1 %v27299_v2  ;;  %3942 = vmatprep.mubr.f32.mxu1 %v30274_v16 }
 0x3b0   :  { %3909 = vmatpush1.msra.mxu1 %v27305_v6  ;;  %3781 = vmatpush1.msra.mxu0 %v27197_v25 }
 0x3b1   :  { %4064 = vmatprep.subr.mxu1 %v27195_v21  ;;  %3783 = vmatprep.subr.mxu0 %v27199_v26 }
 0x3b2   :  { %3785 = vmatpush1.msra.mxu0 %v27201_v27  ;;  %3826 = vmatprep.mubr.f32.mxu0 %v30274_v16 }
 0x3b3   :  { %3787 = vmatprep.subr.mxu0 %v27206_v30 }
 0x3b4   :  { %3789 = vmatpush1.msra.mxu0 %v27235_v40 }
 0x3b5   :  { %3791 = vmatprep.subr.mxu0 %v27243_v44 }
 0x3b6   :  { %3793 = vmatpush1.msra.mxu0 %v27263_v53 }
 0x3b7   :  { %3976 = vmatprep.subr.mxu0 %v27204_v29 }
 0x44b   :  { %v2920_v28 = vpop.f32.mrf.mxu1 }
 0x44d   :  { %v25193_v3 = vpop.f32.mrf.mxu1 }
 0x44f   :  { %v3071_v63 = vpop.f32.mrf.mxu1 }
 0x451   :  { %v25207_v24 = vpop.f32.mrf.mxu1 }
 0x453   :  { %v2839_v48 = vpop.f32.mrf.mxu0  ;;  %v3221_v13 = vpop.f32.mrf.mxu1 }
 0x454   :  { %v2840_v36 = vadd.f32 %v2839_v48, %v27634_v52 }
 0x455   :  { %v25186_v61 = vpop.f32.mrf.mxu0  ;;  %v25221_v20 = vpop.f32.mrf.mxu1 }
 0x456   :  { %v2921_v22 = vadd.f32 %v2920_v28, %v2840_v36 }
 0x457   :  { %v2996_v57 = vpop.f32.mrf.mxu0 }
 0x458   :  { %v2997_v14 = vadd.f32 %v2996_v57, %v2921_v22 }
 0x459   :  { %v25200_v7 = vpop.f32.mrf.mxu0 }
 0x45a   :  { %v3072_v42 = vadd.f32 %v3071_v63, %v2997_v14  ;;  %v30294_v63 = vld [vmem:[#allocation49_spill] sm:$0xff] }
 0x45b   :  { %v3148_v38 = vpop.f32.mrf.mxu0 }
 0x45c   :  { %v3149_v60 = vadd.f32 %v3148_v38, %v3072_v42 }
 0x45d   :  { %v25214_v51 = vpop.f32.mrf.mxu0 }
 0x45e   :  { %v3222_v0 = vadd.f32 %v3221_v13, %v3149_v60 }
 0x45f   :  { %v3435_v33 = vpop.f32.mrf.mxu1 }
 0x460   :  { %v3225_v43 = vadd.f32 %v3222_v0, %v27391_v47 }
 0x461   :  { %v25235_v31 = vpop.f32.mrf.mxu1  ;;  %v3354_v28 = vpop.f32.mrf.mxu0 }
 0x462   :  { %v3232_v52 = vadd.f32 %v27737_v32, %v3225_v43  ;;  %v3355_v24 = vadd.f32 %v30294_v63, %v3354_v28 }
 0x463   :  { %v3586_v37 = vpop.f32.mrf.mxu1  ;;  %v25228_v48 = vpop.f32.mrf.mxu0 }
 0x464   :  { %26507 = vtanh.f32 %v3232_v52  ;;  %v24463_v15 = vmul.f32 -1.442695, %v3232_v52  ;;  %v3436_v47 = vadd.f32 %v3435_v33, %v3355_v24 }
 0x465   :  { %v25249_v49 = vpop.f32.mrf.mxu1 }
 0x466   :  { %26509 = vpow2.f32 %v24463_v15 }
 0x467   :  { %v3736_v3 = vpop.f32.mrf.mxu1 }
 0x469   :  { %v25263_v13 = vpop.f32.mrf.mxu1  ;;  %v3511_v36 = vpop.f32.mrf.mxu0 }
 0x46a   :  { %v3512_v61 = vadd.f32 %v3511_v36, %v3436_v47 }
 0x46b   :  { %v25242_v20 = vpop.f32.mrf.mxu0 }
 0x46c   :  { %v3587_v22 = vadd.f32 %v3586_v37, %v3512_v61 }
 0x46d   :  { %v3663_v57 = vpop.f32.mrf.mxu0 }
 0x46e   :  { %v3664_v14 = vadd.f32 %v3663_v57, %v3587_v22 }
 0x46f   :  { %v25256_v7 = vpop.f32.mrf.mxu0 }
 0x470   :  { %v3737_v42 = vadd.f32 %v3736_v3, %v3664_v14  ;;  %v30296_v14 = vld [vmem:[#allocation34_spill] sm:$0xff]  ;;  %v30297_v7 = vld [vmem:[#allocation35_spill] sm:$0xff] }
 0x471   :  { %v26508_v45 = vpop.eup %26507 }
 0x472   :  { %3242 = vrot.lane.b32.xlu0 %v26508_v45, %s26977_s4  ;;  %v3740_v38 = vmax.f32 %v3737_v42, 0.0  ;;  %v30298_v42 = vld [vmem:[#allocation36_spill] sm:$0xff] }
 0x473   :  { %v26510_v60 = vpop.eup %26509 }
 0x474   :  { %v3741_v51 = vsub.f32 0.0, %v3740_v38  ;;  %v3236_v0 = vadd.f32 1.0, %v26510_v60  ;;  %v30299_v38 = vld [vmem:[#allocation38_spill] sm:$0xff]  ;;  %v30300_v60 = vld [vmem:[#allocation43_spill] sm:$0xff] }
 0x476   :  { %v3742_v43 = vmul.f32 1.442695, %v3741_v51  ;;  %v30301_v51 = vld [vmem:[#allocation44_spill] sm:$0xff] }
 0x478   :  { %26511 = vpow2.f32 %v3742_v43  ;;  %v30303_v43 = vld [vmem:[#allocation37_spill] sm:$0xff] }
 0x479   :  { %26513 = vrcp.f32 %v3236_v0  ;;  %v30302_v0 = vld [vmem:[#allocation47_spill] sm:$0xff] }
 0x485   :  { %v26512_v52 = vpop.eup %26511 }
 0x486   :  { %3745 = vrot.lane.b32.xlu0 %v26512_v52, %s26976_s28  ;;  %v26514_v45 = vpop.eup %26513  ;;  %v30304_v52 = vld [vmem:[#allocation39_spill] sm:$0xff] }
 0x487   :  { %v3240_v37 = vmul.f32 0.0, %v26514_v45 }
 0x4e4   :  { %v3243_v33 = vpop.permute.xlu0 %3242 }
 0x4e5   :  { %v3245_v31 = vmul.f32 %v26514_v45, %v3243_v33  ;;  %v30306_v33 = vld [vmem:[#allocation41_spill] sm:$0xff] }
 0x4e7   :  { %3247 = vrot.lane.b32.xlu1 %v3245_v31, %s26978_s9  ;;  %v30307_v31 = vld [vmem:[#allocation56_spill] sm:$0xff] }
 0x4f8   :  { %v27749_v24 = vpop.permute.xlu0 %3745 }
 0x559   :  { %v3248_v15 = vpop.permute.xlu1 %3247 }
 0x55a   :  { %v27745_v49 = vadd.f32 %v3248_v15, %v3240_v37  ;;  %v30308_v37 = vld [vmem:[#allocation42_spill] sm:$0xff]  ;;  %v30309_v15 = vld [vmem:[#allocation45_spill] sm:$0xff] }
 0x55c   :  { %30295 = vst [vmem:[#allocation49_spill] sm:$0xff] %v27745_v49  ;;  %26515 = vtanh.f32 %v27745_v49 }
 0x569   :  { %v26516_v28 = vpop.eup %26515 }
 0x56a   :  { %3253 = vrot.lane.b32.xlu1 %v26516_v28, %s26977_s4  ;;  %v30310_v28 = vld [vmem:[#allocation57_spill] sm:$0xff] }
 0x5dc   :  { %v3254_v3 = vpop.permute.xlu1 %3253 }
 0x5dd   :  { %v3256_v63 = vmul.f32 %v26514_v45, %v3254_v3  ;;  %v30305_v45 = vld [vmem:[#allocation40_spill] sm:$0xff]  ;;  %v30311_v3 = vld [vmem:[#allocation46_spill] sm:$0xff] }
 0x5df   :  { %v3748_v48 = vmul.f32 %v27749_v24, %v3256_v63  ;;  %v30312_v63 = vld [vmem:[#allocation48_spill] sm:$0xff] }
 0x5e1   :  { %3750 = vrot.lane.b32.xlu1 %v3748_v48, %s26978_s9  ;;  %v30313_v48 = vld [vmem:[#allocation50_spill] sm:$0xff] }
 0x653   :  { %v3751_v13 = vpop.permute.xlu1 %3750 }
 0x654   :  { %v3752_v47 = vsel %vm707_vm2, %v3751_v13, 0  ;;  %v30314_v13 = vld [vmem:[#allocation52_spill] sm:$0xff] }
 0x655   :  { %v3827_v36 = vand.u32 4294901760, %v3752_v47 }
 0x657   :  { %v3828_v61 = vsub.f32 %v3752_v47, %v3827_v36  ;;  %3944 = vmatmul.mubr.f32.vlgmr.msra.gmra.mxu1 %v3827_v36 }
 0x658   :  { %4066 = vmatpush1.msra.mxu1 %v27197_v25  ;;  %4111 = vmatprep.mubr.f32.mxu1 %v30274_v16 }
 0x659   :  { %v3829_v20 = vand.u32 4294901760, %v3828_v61  ;;  %4068 = vmatprep.subr.mxu1 %v27199_v26 }
 0x65a   :  { %4070 = vmatpush1.msra.mxu1 %v27201_v27 }
 0x65b   :  { %v3830_v22 = vsub.f32 %v3828_v61, %v3829_v20  ;;  %4072 = vmatprep.subr.mxu1 %v27206_v30 }
 0x65c   :  { %4074 = vmatpush1.msra.mxu1 %v27235_v40 }
 0x65d   :  { %v3831_v57 = vand.u32 4294901760, %v3830_v22  ;;  %4076 = vmatprep.subr.mxu1 %v27243_v44 }
 0x65e   :  { %4078 = vmatpush1.msra.mxu1 %v27263_v53 }
 0x65f   :  { %4115 = vmatmul.mubr.f32.vlgmr.msra.gmra.mxu1 %v3829_v20  ;;  %4242 = vmatprep.subr.mxu1 %v27195_v21 }
 0x660   :  { %3832 = vmatmul.mubr.f32.vlgmr.msra.gmra.mxu0 %v3831_v57  ;;  %4244 = vmatpush1.msra.mxu1 %v27197_v25 }
 0x661   :  { %3979 = vmatpush1.msra.mxu0 %v30296_v14  ;;  %4246 = vmatprep.subr.mxu1 %v27199_v26 }
 0x662   :  { %3982 = vmatprep.subr.mxu0 %v30297_v7  ;;  %4248 = vmatpush1.msra.mxu1 %v27201_v27 }
 0x663   :  { %3985 = vmatpush1.msra.mxu0 %v30298_v42  ;;  %4250 = vmatprep.subr.mxu1 %v27206_v30 }
 0x664   :  { %3988 = vmatprep.subr.mxu0 %v30299_v38  ;;  %4252 = vmatpush1.msra.mxu1 %v27235_v40 }
 0x665   :  { %3991 = vmatpush1.msra.mxu0 %v30300_v60  ;;  %4254 = vmatprep.subr.mxu1 %v27243_v44 }
 0x666   :  { %3994 = vmatprep.subr.mxu0 %v30301_v51  ;;  %4030 = vmatprep.mubr.f32.mxu0 %v30274_v16  ;;  %v3258_v51 = vld [vmem:[#allocation2 + $0x8] sm:$0xff] }
 0x667   :  { %3997 = vmatpush1.msra.mxu0 %v30302_v0  ;;  %4256 = vmatpush1.msra.mxu1 %v27263_v53 }
 0x668   :  { %4289 = vmatprep.mubr.f32.mxu1 %v30274_v16  ;;  %4033 = vmatmul.mubr.f32.vlgmr.msra.gmra.mxu0 %v3828_v61 }
 0x669   :  { %4148 = vmatprep.subr.mxu0 %v30303_v43  ;;  %4291 = vmatmul.mubr.f32.vlgmr.msra.gmra.mxu1 %v3827_v36 }
 0x66a   :  { %4152 = vmatpush1.msra.mxu0 %v30304_v52  ;;  %4209 = vmatprep.mubr.f32.mxu0 %v30274_v16  ;;  %v27802_v52 = vld [vmem:[#allocation5 + $0x8] sm:$0xff] }
 0x66b   :  { %4156 = vmatprep.subr.mxu0 %v30305_v45  ;;  %25271 = vmatprep.subr.mxu1 %v30274_v16 }
 0x66c   :  { %4160 = vmatpush1.msra.mxu0 %v30306_v33  ;;  %25272 = vmatpush3.msra.mxu1 %v30307_v31 }
 0x66d   :  { %4164 = vmatprep.subr.mxu0 %v30308_v37  ;;  %25273 = vmatprep.subr.mxu1 %v30274_v16 }
 0x66e   :  { %4168 = vmatpush1.msra.mxu0 %v30309_v15  ;;  %25274 = vmatpush3.msra.mxu1 %v30310_v28 }
 0x66f   :  { %4172 = vmatprep.subr.mxu0 %v30311_v3  ;;  %25275 = vmatprep.mubr.msk.f32.mxu1 %vm26975_vm0, %v30274_v16 }
 0x670   :  { %4176 = vmatpush1.msra.mxu0 %v30312_v63  ;;  %25285 = vmatprep.subr.mxu1 %v30274_v16 }
 0x671   :  { %4211 = vmatmul.mubr.f32.vlgmr.msra.gmra.mxu0 %v3827_v36  ;;  %25264 = vmatprep.subr.mxu0 %v30274_v16 }
 0x672   :  { %25265 = vmatpush3.msra.mxu0 %v30313_v48  ;;  %25268 = vmatprep.mubr.msk.f32.mxu0 %vm26975_vm0, %v30274_v16 }
 0x673   :  { %25266 = vmatprep.subr.mxu0 %v30274_v16 }
 0x674   :  { %25267 = vmatpush3.msra.mxu0 %v30314_v13 }
 0x675   :  { %25278 = vmatprep.subr.mxu0 %v30274_v16 }
 0x717   :  { %v3945_v47 = vpop.f32.mrf.mxu1 }
 0x719   :  { %v3947_v57 = vpop.f32.mrf.mxu1 }
 0x71f   :  { %v4116_v19 = vpop.f32.mrf.mxu1 }
 0x720   :  { %v3833_v61 = vpop.f32.mrf.mxu0 }
 0x721   :  { %v3946_v20 = vadd.f32 %v3945_v47, %v3833_v61  ;;  %v4118_v15 = vpop.f32.mrf.mxu1 }
 0x722   :  { %v3835_v22 = vpop.f32.mrf.mxu0 }
 0x723   :  { %v3948_v3 = vadd.f32 %v3947_v57, %v3835_v22  ;;  %v30319_v22 = vld [vmem:[#allocation51_spill] sm:$0xff] }
 0x728   :  { %v4034_v59 = vpop.f32.mrf.mxu0 }
 0x729   :  { %v4035_v36 = vadd.f32 %v4034_v59, %v3946_v20  ;;  %v4292_v37 = vpop.f32.mrf.mxu1  ;;  %v30144_v59 = vsub.f32 1.0, %v27802_v52  ;;  %v30316_v20 = vld [vmem:[#allocation58_spill] sm:$0xff] }
 0x72a   :  { %v4036_v62 = vpop.f32.mrf.mxu0 }
 0x72b   :  { %v4117_v63 = vadd.f32 %v4116_v19, %v4035_v36  ;;  %v4037_v28 = vadd.f32 %v4036_v62, %v3948_v3  ;;  %v4294_v61 = vpop.f32.mrf.mxu1  ;;  %v27811_v62 = vmul.f32 %v27802_v52, %v3258_v51  ;;  %v4799_v51 = vsel %vm219_vm1, %v27802_v52, 0  ;;  %v30320_v36 = vld [vmem:[#allocation73_spill] sm:$0xff] }
 0x72d   :  { %v4119_v45 = vadd.f32 %v4118_v15, %v4037_v28  ;;  %v27829_v28 = vand.u32 4294901760, %v4799_v51 }
 0x72f   :  { %v4871_v57 = vsub.f32 %v4799_v51, %v27829_v28  ;;  %v30327_v51 = vld [vmem:[#allocation62_spill] sm:$0xff] }
 0x731   :  { %v4212_v31 = vpop.f32.mrf.mxu0 }
 0x732   :  { %v4213_v33 = vadd.f32 %v4212_v31, %v4117_v63  ;;  %v30318_v63 = vld [vmem:[#allocation72_spill] sm:$0xff] }
 0x733   :  { %v4214_v43 = vpop.f32.mrf.mxu0 }
 0x734   :  { %v27804_v0 = vadd.f32 %v4292_v37, %v4213_v33  ;;  %v4215_v47 = vadd.f32 %v4214_v43, %v4119_v45 }
 0x736   :  { %30315 = vst [vmem:[#allocation90_spill] sm:$0xff] %v27804_v0  ;;  %v4295_v60 = vadd.f32 %v4294_v61, %v4215_v47  ;;  %v30321_v47 = vld [vmem:[#allocation74_spill] sm:$0xff] }
 0x737   :  { %v30322_v61 = vld [vmem:[#allocation54_spill] sm:$0xff] }
 0x738   :  { %v27808_v19 = vadd.f32 %v30316_v20, %v4295_v60  ;;  %v30323_v20 = vld [vmem:[#allocation75_spill] sm:$0xff] }
 0x73a   :  { %30317 = vst [vmem:[#allocation58_spill] sm:$0xff] %v27808_v19  ;;  %v4317_v31 = vmul.f32 %v30144_v59, %v27808_v19 }
 0x73c   :  { %v4318_v15 = vadd.f32 %v4317_v31, %v27811_v62  ;;  %v4872_v31 = vand.u32 4294901760, %v4871_v57 }
 0x73e   :  { %v4320_v33 = vsel %vm219_vm1, %v4318_v15, 0  ;;  %v30324_v15 = vld [vmem:[#allocation59_spill] sm:$0xff] }
 0x73f   :  { %v4389_v43 = vand.u32 4294901760, %v4320_v33 }
 0x741   :  { %v4390_v45 = vsub.f32 %v4320_v33, %v4389_v43  ;;  %25276 = vmatmul.mubr.f32.vlgmr.msra.gmra.mxu1 %v4389_v43  ;;  %v30325_v33 = vld [vmem:[#allocation53_spill] sm:$0xff] }
 0x742   :  { %25286 = vmatpush3.msra.mxu1 %v30313_v48  ;;  %25289 = vmatprep.mubr.msk.f32.mxu1 %vm26975_vm0, %v30274_v16 }
 0x743   :  { %25287 = vmatprep.subr.mxu1 %v30274_v16  ;;  %v4391_v60 = vand.u32 4294901760, %v4390_v45 }
 0x744   :  { %25288 = vmatpush3.msra.mxu1 %v30314_v13 }
 0x745   :  { %25290 = vmatmul.mubr.f32.vlgmr.msra.gmra.mxu1 %v4391_v60  ;;  %25299 = vmatprep.subr.mxu1 %v30274_v16  ;;  %v4392_v37 = vsub.f32 %v4390_v45, %v4391_v60  ;;  %v30326_v60 = vld [vmem:[#allocation60_spill] sm:$0xff] }
 0x746   :  { %25300 = vmatpush3.msra.mxu1 %v30313_v48  ;;  %25303 = vmatprep.mubr.msk.f32.mxu1 %vm26975_vm0, %v30274_v16 }
 0x747   :  { %25301 = vmatprep.subr.mxu1 %v30274_v16  ;;  %v4393_v3 = vand.u32 4294901760, %v4392_v37  ;;  %v30328_v37 = vld [vmem:[#allocation55_spill] sm:$0xff] }
 0x748   :  { %25302 = vmatpush3.msra.mxu1 %v30314_v13 }
 0x749   :  { %25269 = vmatmul.mubr.f32.vlgmr.msra.gmra.mxu0 %v4393_v3  ;;  %25304 = vmatmul.mubr.f32.vlgmr.msra.gmra.mxu1 %v4389_v43  ;;  %v4873_v3 = vsub.f32 %v4871_v57, %v4872_v31 }
 0x74a   :  { %4914 = vmatprep.subr.mxu1 %v30318_v63  ;;  %25279 = vmatpush3.msra.mxu0 %v30319_v22 }
 0x74b   :  { %4920 = vmatpush1.msra.mxu1 %v30320_v36  ;;  %25280 = vmatprep.subr.mxu0 %v30274_v16  ;;  %v4874_v59 = vand.u32 4294901760, %v4873_v3  ;;  %v30332_v3 = vld [vmem:[#allocation82_spill] sm:$0xff] }
 0x74c   :  { %4926 = vmatprep.subr.mxu1 %v30321_v47  ;;  %25281 = vmatpush3.msra.mxu0 %v30322_v61 }
 0x74d   :  { %25282 = vmatprep.mubr.msk.f32.mxu0 %vm26975_vm0, %v30274_v16  ;;  %4932 = vmatpush1.msra.mxu1 %v30323_v20 }
 0x74e   :  { %4965 = vmatprep.mubr.f32.mxu1 %v30274_v16  ;;  %25283 = vmatmul.mubr.f32.vlgmr.msra.gmra.mxu0 %v4390_v45  ;;  %v30329_v45 = vld [vmem:[#allocation63_spill] sm:$0xff] }
 0x74f   :  { %25292 = vmatprep.subr.mxu0 %v30274_v16  ;;  %4967 = vmatmul.mubr.f32.vlgmr.msra.gmra.mxu1 %v27829_v28 }
 0x750   :  { %5083 = vmatprep.subr.mxu1 %v30324_v15  ;;  %25293 = vmatpush3.msra.mxu0 %v30325_v33 }
 0x751   :  { %5085 = vmatpush1.msra.mxu1 %v30326_v60  ;;  %25294 = vmatprep.subr.mxu0 %v30274_v16 }
 0x752   :  { %5087 = vmatprep.subr.mxu1 %v30327_v51  ;;  %25295 = vmatpush3.msra.mxu0 %v30328_v37  ;;  %v5292_v37 = vsel %vm219_vm1, %v27749_v24, 0  ;;  %v30331_v24 = vld [vmem:[#allocation65_spill] sm:$0xff] }
 0x753   :  { %25296 = vmatprep.mubr.msk.f32.mxu0 %vm26975_vm0, %v30274_v16  ;;  %5089 = vmatpush1.msra.mxu1 %v30329_v45 }
 0x754   :  { %5122 = vmatprep.mubr.f32.mxu1 %v30274_v16  ;;  %25297 = vmatmul.mubr.f32.vlgmr.msra.gmra.mxu0 %v4389_v43  ;;  %v5361_v43 = vand.u32 4294901760, %v5292_v37 }
 0x755   :  { %4830 = vmatprep.subr.mxu0 %v30324_v15  ;;  %5126 = vmatmul.mubr.f32.vlgmr.msra.gmra.mxu1 %v4872_v31  ;;  %v30330_v31 = vld [vmem:[#allocation64_spill] sm:$0xff] }
 0x756   :  { %5245 = vmatprep.subr.mxu1 %v30324_v15  ;;  %4832 = vmatpush1.msra.mxu0 %v30326_v60 }
 0x757   :  { %5247 = vmatpush1.msra.mxu1 %v30326_v60  ;;  %4834 = vmatprep.subr.mxu0 %v30327_v51  ;;  %v5362_v60 = vsub.f32 %v5292_v37, %v5361_v43  ;;  %v30338_v37 = vld [vmem:[#allocation76_spill] sm:$0xff] }
 0x758   :  { %5249 = vmatprep.subr.mxu1 %v30327_v51  ;;  %4836 = vmatpush1.msra.mxu0 %v30329_v45  ;;  %v30333_v51 = vld [vmem:[#allocation66_spill] sm:$0xff] }
 0x759   :  { %4869 = vmatprep.mubr.f32.mxu0 %v30274_v16  ;;  %5251 = vmatpush1.msra.mxu1 %v30329_v45  ;;  %v30334_v45 = vld [vmem:[#allocation67_spill] sm:$0xff] }
 0x75a   :  { %5284 = vmatprep.mubr.f32.mxu1 %v30274_v16  ;;  %4875 = vmatmul.mubr.f32.vlgmr.msra.gmra.mxu0 %v4874_v59  ;;  %v30335_v59 = vld [vmem:[#allocation83_spill] sm:$0xff] }
 0x75b   :  { %5003 = vmatprep.subr.mxu0 %v30330_v31  ;;  %5286 = vmatmul.mubr.f32.vlgmr.msra.gmra.mxu1 %v27829_v28  ;;  %v30336_v31 = vld [vmem:[#allocation68_spill] sm:$0xff] }
 0x75c   :  { %25313 = vmatprep.subr.mxu1 %v30274_v16  ;;  %5006 = vmatpush1.msra.mxu0 %v30331_v24  ;;  %v5363_v24 = vand.u32 4294901760, %v5362_v60 }
 0x75d   :  { %25314 = vmatpush3.msra.mxu1 %v30332_v3  ;;  %5009 = vmatprep.subr.mxu0 %v30333_v51  ;;  %v30337_v51 = vld [vmem:[#allocation69_spill] sm:$0xff]  ;;  %v30339_v3 = vld [vmem:[#allocation70_spill] sm:$0xff] }
 0x75e   :  { %25315 = vmatprep.subr.mxu1 %v30274_v16  ;;  %5012 = vmatpush1.msra.mxu0 %v30334_v45  ;;  %v30340_v45 = vld [vmem:[#allocation71_spill] sm:$0xff] }
 0x75f   :  { %5045 = vmatprep.mubr.f32.mxu0 %v30274_v16  ;;  %25316 = vmatpush3.msra.mxu1 %v30335_v59  ;;  %v30341_v59 = vld [vmem:[#allocation77_spill] sm:$0xff] }
 0x760   :  { %25317 = vmatprep.mubr.msk.f32.mxu1 %vm26975_vm0, %v30274_v16  ;;  %5048 = vmatmul.mubr.f32.vlgmr.msra.gmra.mxu0 %v4871_v57  ;;  %v5364_v57 = vsub.f32 %v5362_v60, %v5363_v24 }
 0x761   :  { %5163 = vmatprep.subr.mxu0 %v30336_v31  ;;  %25318 = vmatmul.mubr.f32.vlgmr.msra.gmra.mxu1 %v5361_v43 }
 0x762   :  { %25327 = vmatprep.subr.mxu1 %v30274_v16  ;;  %5167 = vmatpush1.msra.mxu0 %v30337_v51 }
 0x763   :  { %25328 = vmatpush3.msra.mxu1 %v30338_v37  ;;  %5171 = vmatprep.subr.mxu0 %v30339_v3 }
 0x764   :  { %25329 = vmatprep.subr.mxu1 %v30274_v16  ;;  %5175 = vmatpush1.msra.mxu0 %v30340_v45  ;;  %v5365_v45 = vand.u32 4294901760, %v5364_v57  ;;  %v30344_v57 = vld [vmem:[#allocation84_spill] sm:$0xff] }
 0x765   :  { %5208 = vmatprep.mubr.f32.mxu0 %v30274_v16  ;;  %25330 = vmatpush3.msra.mxu1 %v30341_v59 }
 0x766   :  { %25331 = vmatprep.mubr.msk.f32.mxu1 %vm26975_vm0, %v30274_v16  ;;  %5210 = vmatmul.mubr.f32.vlgmr.msra.gmra.mxu0 %v27829_v28  ;;  %v30342_v28 = vld [vmem:[#allocation78_spill] sm:$0xff] }
 0x767   :  { %25306 = vmatprep.subr.mxu0 %v30274_v16  ;;  %25332 = vmatmul.mubr.f32.vlgmr.msra.gmra.mxu1 %v5363_v24  ;;  %v30343_v24 = vld [vmem:[#allocation79_spill] sm:$0xff] }
 0x768   :  { %25341 = vmatprep.subr.mxu1 %v30274_v16  ;;  %25307 = vmatpush3.msra.mxu0 %v30338_v37 }
 0x769   :  { %25342 = vmatpush3.msra.mxu1 %v30338_v37  ;;  %25308 = vmatprep.subr.mxu0 %v30274_v16 }
 0x76a   :  { %25343 = vmatprep.subr.mxu1 %v30274_v16  ;;  %25309 = vmatpush3.msra.mxu0 %v30341_v59 }
 0x76b   :  { %25310 = vmatprep.mubr.msk.f32.mxu0 %vm26975_vm0, %v30274_v16  ;;  %25344 = vmatpush3.msra.mxu1 %v30341_v59  ;;  %v30347_v59 = vld [vmem:[#allocation85_spill] sm:$0xff] }
 0x76c   :  { %25345 = vmatprep.mubr.msk.f32.mxu1 %vm26975_vm0, %v30274_v16  ;;  %25311 = vmatmul.mubr.f32.vlgmr.msra.gmra.mxu0 %v5365_v45  ;;  %v30345_v45 = vld [vmem:[#allocation80_spill] sm:$0xff] }
 0x76d   :  { %25320 = vmatprep.subr.mxu0 %v30274_v16  ;;  %25346 = vmatmul.mubr.f32.vlgmr.msra.gmra.mxu1 %v5361_v43 }
 0x76e   :  { %25321 = vmatpush3.msra.mxu0 %v30342_v28  ;;  %25324 = vmatprep.mubr.msk.f32.mxu0 %vm26975_vm0, %v30274_v16  ;;  %v30346_v28 = vld [vmem:[#allocation81_spill] sm:$0xff] }
 0x76f   :  { %25322 = vmatprep.subr.mxu0 %v30274_v16  ;;  %25355 = vmatprep.subr.mxu1 %v30274_v16 }
 0x770   :  { %25323 = vmatpush3.msra.mxu0 %v30343_v24  ;;  %25356 = vmatpush3.msra.mxu1 %v30344_v57  ;;  %v30348_v24 = vld [vmem:[#allocation86_spill] sm:$0xff] }
 0x771   :  { %25325 = vmatmul.mubr.f32.vlgmr.msra.gmra.mxu0 %v5362_v60  ;;  %25334 = vmatprep.subr.mxu0 %v30274_v16 }
 0x772   :  { %25335 = vmatpush3.msra.mxu0 %v30345_v45  ;;  %25338 = vmatprep.mubr.msk.f32.mxu0 %vm26975_vm0, %v30274_v16 }
 0x773   :  { %25336 = vmatprep.subr.mxu0 %v30274_v16  ;;  %25357 = vmatprep.subr.mxu1 %v30274_v16 }
 0x774   :  { %25337 = vmatpush3.msra.mxu0 %v30346_v28  ;;  %25358 = vmatpush3.msra.mxu1 %v30347_v59 }
 0x775   :  { %25339 = vmatmul.mubr.f32.vlgmr.msra.gmra.mxu0 %v5361_v43  ;;  %25359 = vmatprep.mubr.msk.f32.mxu1 %vm26975_vm0, %v30274_v16 }
 0x776   :  { %25369 = vmatprep.subr.mxu1 %v30274_v16  ;;  %25348 = vmatprep.subr.mxu0 %v30274_v16 }
 0x777   :  { %25349 = vmatpush3.msra.mxu0 %v27597_v46  ;;  %25352 = vmatprep.mubr.msk.f32.mxu0 %vm26975_vm0, %v30274_v16 }
 0x778   :  { %25350 = vmatprep.subr.mxu0 %v30274_v16 }
 0x779   :  { %25351 = vmatpush3.msra.mxu0 %v27599_v41 }
 0x77a   :  { %25362 = vmatprep.subr.mxu0 %v30274_v16 }
 0x801   :  { %v4476_v60 = vpop.f32.mrf.mxu1 }
 0x803   :  { %v25277_v43 = vpop.f32.mrf.mxu1 }
 0x805   :  { %v4627_v59 = vpop.f32.mrf.mxu1 }
 0x807   :  { %v25291_v28 = vpop.f32.mrf.mxu1 }
 0x809   :  { %v4395_v45 = vpop.f32.mrf.mxu0  ;;  %v4777_v57 = vpop.f32.mrf.mxu1 }
 0x80a   :  { %v4396_v3 = vadd.f32 %v30348_v24, %v4395_v45 }
 0x80b   :  { %v25270_v37 = vpop.f32.mrf.mxu0  ;;  %v25305_v51 = vpop.f32.mrf.mxu1 }
 0x80c   :  { %v4477_v31 = vadd.f32 %v4476_v60, %v4396_v3 }
 0x80e   :  { %v4552_v33 = vpop.f32.mrf.mxu0 }
 0x80f   :  { %v4553_v15 = vadd.f32 %v4552_v33, %v4477_v31  ;;  %v4968_v20 = vpop.f32.mrf.mxu1 }
 0x810   :  { %v25284_v61 = vpop.f32.mrf.mxu0 }
 0x811   :  { %v4970_v47 = vpop.f32.mrf.mxu1  ;;  %v4628_v36 = vadd.f32 %v4627_v59, %v4553_v15 }
 0x814   :  { %v4704_v22 = vpop.f32.mrf.mxu0 }
 0x815   :  { %v4705_v63 = vadd.f32 %v4704_v22, %v4628_v36  ;;  %v5127_v13 = vpop.f32.mrf.mxu1 }
 0x816   :  { %v25298_v48 = vpop.f32.mrf.mxu0 }
 0x817   :  { %v27931_v43 = vadd.f32 %v4777_v57, %v4705_v63  ;;  %v5129_v28 = vpop.f32.mrf.mxu1 }
 0x819   :  { %30349 = vst [vmem:[#allocation86_spill] sm:$0xff] %v27931_v43 }
 0x81a   :  { %v4876_v38 = vpop.f32.mrf.mxu0 }
 0x81b   :  { %v4969_v42 = vadd.f32 %v4968_v20, %v4876_v38  ;;  %v5287_v7 = vpop.f32.mrf.mxu1 }
 0x81c   :  { %v4878_v24 = vpop.f32.mrf.mxu0 }
 0x81d   :  { %v5289_v37 = vpop.f32.mrf.mxu1  ;;  %v4971_v3 = vadd.f32 %v4970_v47, %v4878_v24 }
 0x820   :  { %v5049_v51 = vpop.f32.mrf.mxu0 }
 0x821   :  { %v5050_v45 = vadd.f32 %v5049_v51, %v4969_v42  ;;  %v5448_v33 = vpop.f32.mrf.mxu1 }
 0x822   :  { %v5051_v31 = vpop.f32.mrf.mxu0 }
 0x823   :  { %v5052_v61 = vadd.f32 %v5051_v31, %v4971_v3  ;;  %v25319_v60 = vpop.f32.mrf.mxu1  ;;  %v5128_v15 = vadd.f32 %v5127_v13, %v5050_v45 }
 0x825   :  { %v5130_v59 = vadd.f32 %v5129_v28, %v5052_v61 }
 0x826   :  { %v5211_v22 = vpop.f32.mrf.mxu0 }
 0x827   :  { %v5212_v36 = vadd.f32 %v5211_v22, %v5128_v15  ;;  %v5599_v48 = vpop.f32.mrf.mxu1 }
 0x828   :  { %v5213_v63 = vpop.f32.mrf.mxu0 }
 0x829   :  { %v5214_v57 = vadd.f32 %v5213_v63, %v5130_v59  ;;  %v25333_v14 = vpop.f32.mrf.mxu1  ;;  %v27933_v49 = vadd.f32 %v5287_v7, %v5212_v36 }
 0x82b   :  { %v5290_v38 = vadd.f32 %v5289_v37, %v5214_v57 }
 0x82c   :  { %v5367_v20 = vpop.f32.mrf.mxu0 }
 0x82d   :  { %v5368_v32 = vadd.f32 %v5367_v20, %v5290_v38  ;;  %v5749_v0 = vpop.f32.mrf.mxu1 }
 0x82e   :  { %v25312_v47 = vpop.f32.mrf.mxu0 }
 0x82f   :  { %v25347_v42 = vpop.f32.mrf.mxu1  ;;  %v5449_v24 = vadd.f32 %v5448_v33, %v5368_v32  ;;  %v6280_v47 = vld [vmem:[#allocation7 + $0x10] sm:$0xff] }
 0x830   :  { %v6297_v42 = vsel %vm219_vm1, %v6280_v47, 0 }
 0x831   :  { %v5524_v51 = vpop.f32.mrf.mxu0 }
 0x832   :  { %v5525_v3 = vadd.f32 %v5524_v51, %v5449_v24  ;;  %v6366_v24 = vand.u32 4294901760, %v6297_v42 }
 0x833   :  { %v25326_v31 = vpop.f32.mrf.mxu0 }
 0x834   :  { %v5600_v13 = vadd.f32 %v5599_v48, %v5525_v3  ;;  %v30351_v48 = vsub.f32 1.0, %v27802_v52  ;;  %v6367_v51 = vsub.f32 %v6297_v42, %v6366_v24 }
 0x835   :  { %v5676_v28 = vpop.f32.mrf.mxu0 }
 0x836   :  { %v5677_v45 = vadd.f32 %v5676_v28, %v5600_v13  ;;  %v6368_v3 = vand.u32 4294901760, %v6367_v51 }
 0x837   :  { %v25340_v61 = vpop.f32.mrf.mxu0 }
 0x838   :  { %v5750_v60 = vadd.f32 %v5749_v0, %v5677_v45  ;;  %v6369_v31 = vsub.f32 %v6367_v51, %v6368_v3 }
 0x83a   :  { %v5753_v15 = vadd.f32 %v27639_v35, %v5750_v60  ;;  %v6370_v13 = vand.u32 4294901760, %v6369_v31 }
 0x83c   :  { %v24464_v14 = vmul.f32 -1.442695, %v5753_v15 }
 0x83e   :  { %26517 = vpow2.f32 %v24464_v14 }
 0x84b   :  { %v26518_v7 = vpop.eup %26517 }
 0x84c   :  { %v5757_v37 = vadd.f32 1.0, %v26518_v7 }
 0x84e   :  { %26519 = vrcp.f32 %v5757_v37 }
 0x85b   :  { %v26520_v59 = vpop.eup %26519 }
 0x85c   :  { %v5761_v22 = vsub.f32 1.0, %v26520_v59  ;;  %v5760_v36 = vmul.f32 %v26520_v59, %v27931_v43 }
 0x85e   :  { %v5762_v32 = vmul.f32 %v5761_v22, %v27808_v19 }
 0x860   :  { %v27938_v33 = vadd.f32 %v5762_v32, %v5760_v36 }
 0x862   :  { %30350 = vst [vmem:[#allocation91_spill] sm:$0xff] %v27938_v33  ;;  %v5781_v63 = vmul.f32 %v27938_v33, %v30351_v48  ;;  %5784 = vst.msk [vmem:[#allocation19 + $0x8] sm:$0xff] %vm219_vm1, %v27938_v33 }
 0x864   :  { %v5782_v35 = vadd.f32 %v5781_v63, %v27811_v62 }
 0x866   :  { %5786 = vst.msk [vmem:[#allocation20 + $0x8] sm:$0xff] %vm219_vm1, %v5782_v35  ;;  %v5788_v0 = vsel %vm219_vm1, %v5782_v35, 0 }
 0x867   :  { %v5857_v57 = vand.u32 4294901760, %v5788_v0 }
 0x869   :  { %v5858_v38 = vsub.f32 %v5788_v0, %v5857_v57  ;;  %25360 = vmatmul.mubr.f32.vlgmr.msra.gmra.mxu1 %v5857_v57 }
 0x86a   :  { %25370 = vmatpush3.msra.mxu1 %v27597_v46  ;;  %25373 = vmatprep.mubr.msk.f32.mxu1 %vm26975_vm0, %v30274_v16 }
 0x86b   :  { %25371 = vmatprep.subr.mxu1 %v30274_v16  ;;  %v5859_v52 = vand.u32 4294901760, %v5858_v38 }
 0x86c   :  { %25372 = vmatpush3.msra.mxu1 %v27599_v41 }
 0x86d   :  { %25374 = vmatmul.mubr.f32.vlgmr.msra.gmra.mxu1 %v5859_v52  ;;  %25383 = vmatprep.subr.mxu1 %v30274_v16  ;;  %v5860_v62 = vsub.f32 %v5858_v38, %v5859_v52  ;;  %v30352_v52 = vld [vmem:[#allocation90_spill] sm:$0xff] }
 0x86e   :  { %25384 = vmatpush3.msra.mxu1 %v27597_v46  ;;  %25387 = vmatprep.mubr.msk.f32.mxu1 %vm26975_vm0, %v30274_v16 }
 0x86f   :  { %25385 = vmatprep.subr.mxu1 %v30274_v16  ;;  %v5861_v20 = vand.u32 4294901760, %v5860_v62 }
 0x870   :  { %25386 = vmatpush3.msra.mxu1 %v27599_v41 }
 0x871   :  { %25353 = vmatmul.mubr.f32.vlgmr.msra.gmra.mxu0 %v5861_v20  ;;  %25388 = vmatmul.mubr.f32.vlgmr.msra.gmra.mxu1 %v5857_v57  ;;  %v30353_v20 = vld [vmem:[#allocation89_spill] sm:$0xff] }
 0x872   :  { %25363 = vmatpush3.msra.mxu0 %v27602_v23  ;;  %25366 = vmatprep.mubr.msk.f32.mxu0 %vm26975_vm0, %v30274_v16 }
 0x873   :  { %25364 = vmatprep.subr.mxu0 %v30274_v16  ;;  %25397 = vmatprep.subr.mxu1 %v30274_v16 }
 0x874   :  { %25365 = vmatpush3.msra.mxu0 %v27605_v34  ;;  %25398 = vmatpush3.msra.mxu1 %v27163_v17 }
 0x875   :  { %25367 = vmatmul.mubr.f32.vlgmr.msra.gmra.mxu0 %v5858_v38  ;;  %25376 = vmatprep.subr.mxu0 %v30274_v16 }
 0x876   :  { %25377 = vmatpush3.msra.mxu0 %v27610_v39  ;;  %25380 = vmatprep.mubr.msk.f32.mxu0 %vm26975_vm0, %v30274_v16 }
 0x877   :  { %25378 = vmatprep.subr.mxu0 %v30274_v16  ;;  %25399 = vmatprep.subr.mxu1 %v30274_v16 }
 0x878   :  { %25379 = vmatpush3.msra.mxu0 %v27613_v10  ;;  %25400 = vmatpush3.msra.mxu1 %v27165_v18 }
 0x879   :  { %25381 = vmatmul.mubr.f32.vlgmr.msra.gmra.mxu0 %v5857_v57  ;;  %25390 = vmatprep.subr.mxu0 %v30274_v16 }
 0x87a   :  { %25391 = vmatpush3.msra.mxu0 %v27138_v4  ;;  %25394 = vmatprep.mubr.msk.f32.mxu0 %vm26975_vm0, %v30274_v16 }
 0x87b   :  { %25392 = vmatprep.subr.mxu0 %v30274_v16  ;;  %25401 = vmatprep.mubr.msk.f32.mxu1 %vm26975_vm0, %v30274_v16 }
 0x87c   :  { %25393 = vmatpush3.msra.mxu0 %v27140_v5  ;;  %25411 = vmatprep.subr.mxu1 %v30274_v16 }
 0x87d   :  { %25404 = vmatprep.subr.mxu0 %v30274_v16  ;;  %25402 = vmatmul.mubr.f32.vlgmr.msra.gmra.mxu1 %v6366_v24 }
 0x87e   :  { %25412 = vmatpush3.msra.mxu1 %v27138_v4  ;;  %25415 = vmatprep.mubr.msk.f32.mxu1 %vm26975_vm0, %v30274_v16 }
 0x87f   :  { %25413 = vmatprep.subr.mxu1 %v30274_v16  ;;  %25395 = vmatmul.mubr.f32.vlgmr.msra.gmra.mxu0 %v6370_v13 }
 0x880   :  { %25414 = vmatpush3.msra.mxu1 %v27140_v5  ;;  %25405 = vmatpush3.msra.mxu0 %v27145_v8 }
 0x881   :  { %25416 = vmatmul.mubr.f32.vlgmr.msra.gmra.mxu1 %v6368_v3  ;;  %25425 = vmatprep.subr.mxu1 %v30274_v16 }
 0x882   :  { %25426 = vmatpush3.msra.mxu1 %v27138_v4  ;;  %25429 = vmatprep.mubr.msk.f32.mxu1 %vm26975_vm0, %v30274_v16 }
 0x883   :  { %25427 = vmatprep.subr.mxu1 %v30274_v16  ;;  %25408 = vmatprep.mubr.msk.f32.mxu0 %vm26975_vm0, %v30274_v16 }
 0x884   :  { %25428 = vmatpush3.msra.mxu1 %v27140_v5  ;;  %25406 = vmatprep.subr.mxu0 %v30274_v16 }
 0x885   :  { %25430 = vmatmul.mubr.f32.vlgmr.msra.gmra.mxu1 %v6366_v24  ;;  %6885 = vmatprep.subr.mxu1 %v27256_v50 }
 0x886   :  { %25407 = vmatpush3.msra.mxu0 %v27148_v9  ;;  %6891 = vmatpush1.msra.mxu1 %v27266_v54 }
 0x887   :  { %25409 = vmatmul.mubr.f32.vlgmr.msra.gmra.mxu0 %v6367_v51  ;;  %25418 = vmatprep.subr.mxu0 %v30274_v16 }
 0x888   :  { %25419 = vmatpush3.msra.mxu0 %v27153_v11  ;;  %25422 = vmatprep.mubr.msk.f32.mxu0 %vm26975_vm0, %v30274_v16 }
 0x889   :  { %25420 = vmatprep.subr.mxu0 %v30274_v16  ;;  %6897 = vmatprep.subr.mxu1 %v27268_v55 }
 0x88a   :  { %25421 = vmatpush3.msra.mxu0 %v27156_v12  ;;  %6903 = vmatpush1.msra.mxu1 %v27270_v56 }
 0x88b   :  { %25423 = vmatmul.mubr.f32.vlgmr.msra.gmra.mxu0 %v6366_v24  ;;  %6909 = vmatprep.subr.mxu1 %v27276_v58 }
 0x88c   :  { %6915 = vmatpush1.msra.mxu1 %v27296_v1  ;;  %6797 = vmatprep.subr.mxu0 %v27195_v21 }
 0x88d   :  { %6921 = vmatprep.subr.mxu1 %v27299_v2  ;;  %6960 = vmatprep.mubr.f32.mxu1 %v30274_v16 }
 0x88e   :  { %6927 = vmatpush1.msra.mxu1 %v27305_v6  ;;  %6799 = vmatpush1.msra.mxu0 %v27197_v25 }
 0x88f   :  { %7082 = vmatprep.subr.mxu1 %v27195_v21  ;;  %6801 = vmatprep.subr.mxu0 %v27199_v26 }
 0x890   :  { %6803 = vmatpush1.msra.mxu0 %v27201_v27  ;;  %6844 = vmatprep.mubr.f32.mxu0 %v30274_v16 }
 0x891   :  { %6805 = vmatprep.subr.mxu0 %v27206_v30 }
 0x892   :  { %6807 = vmatpush1.msra.mxu0 %v27235_v40 }
 0x893   :  { %6809 = vmatprep.subr.mxu0 %v27243_v44 }
 0x894   :  { %6811 = vmatpush1.msra.mxu0 %v27263_v53 }
 0x895   :  { %6994 = vmatprep.subr.mxu0 %v27204_v29 }
 0x929   :  { %v5944_v28 = vpop.f32.mrf.mxu1 }
 0x92b   :  { %v25361_v45 = vpop.f32.mrf.mxu1 }
 0x92c   :  { %v28034_v45 = vld [vmem:[%s30023_s5] ss:$0 sm:$0xff] }
 0x92d   :  { %v6095_v61 = vpop.f32.mrf.mxu1  ;;  %30354 = vst [vmem:[#allocation90_spill] sm:$0xff] %v28034_v45 }
 0x92f   :  { %v25375_v60 = vpop.f32.mrf.mxu1 }
 0x931   :  { %v5863_v15 = vpop.f32.mrf.mxu0  ;;  %v6245_v14 = vpop.f32.mrf.mxu1 }
 0x932   :  { %v5864_v7 = vadd.f32 %v5863_v15, %v27933_v49 }
 0x933   :  { %v25354_v37 = vpop.f32.mrf.mxu0  ;;  %v25389_v59 = vpop.f32.mrf.mxu1 }
 0x934   :  { %v5945_v22 = vadd.f32 %v5944_v28, %v5864_v7 }
 0x935   :  { %v6020_v36 = vpop.f32.mrf.mxu0 }
 0x936   :  { %v6021_v32 = vadd.f32 %v6020_v36, %v5945_v22 }
 0x937   :  { %v25368_v48 = vpop.f32.mrf.mxu0 }
 0x938   :  { %v6096_v63 = vadd.f32 %v6095_v61, %v6021_v32 }
 0x939   :  { %v6172_v35 = vpop.f32.mrf.mxu0 }
 0x93a   :  { %v6173_v0 = vadd.f32 %v6172_v35, %v6096_v63 }
 0x93b   :  { %v25382_v57 = vpop.f32.mrf.mxu0 }
 0x93c   :  { %v6246_v38 = vadd.f32 %v6245_v14, %v6173_v0 }
 0x93d   :  { %v6453_v49 = vpop.f32.mrf.mxu1 }
 0x93e   :  { %v6249_v62 = vadd.f32 %v6246_v38, %v30352_v52 }
 0x93f   :  { %v25403_v24 = vpop.f32.mrf.mxu1  ;;  %v6372_v13 = vpop.f32.mrf.mxu0 }
 0x940   :  { %v6250_v47 = vadd.f32 %v30353_v20, %v6249_v62  ;;  %v6373_v61 = vadd.f32 %v28034_v45, %v6372_v13 }
 0x941   :  { %v6604_v51 = vpop.f32.mrf.mxu1  ;;  %v25396_v60 = vpop.f32.mrf.mxu0 }
 0x942   :  { %26521 = vtanh.f32 %v6250_v47  ;;  %v24465_v3 = vmul.f32 -1.442695, %v6250_v47  ;;  %v6454_v14 = vadd.f32 %v6453_v49, %v6373_v61  ;;  %v30355_v49 = vld [vmem:[#allocation49_spill] sm:$0xff] }
 0x943   :  { %v25417_v31 = vpop.f32.mrf.mxu1 }
 0x944   :  { %26523 = vpow2.f32 %v24465_v3 }
 0x945   :  { %v6754_v28 = vpop.f32.mrf.mxu1 }
 0x947   :  { %v25431_v15 = vpop.f32.mrf.mxu1  ;;  %v6529_v7 = vpop.f32.mrf.mxu0 }
 0x948   :  { %v6530_v37 = vadd.f32 %v6529_v7, %v6454_v14 }
 0x949   :  { %v25410_v59 = vpop.f32.mrf.mxu0 }
 0x94a   :  { %v6605_v22 = vadd.f32 %v6604_v51, %v6530_v37 }
 0x94b   :  { %v6681_v36 = vpop.f32.mrf.mxu0 }
 0x94c   :  { %v6682_v32 = vadd.f32 %v6681_v36, %v6605_v22 }
 0x94d   :  { %v25424_v48 = vpop.f32.mrf.mxu0 }
 0x94e   :  { %v6755_v63 = vadd.f32 %v6754_v28, %v6682_v32  ;;  %v30357_v32 = vld [vmem:[#allocation34_spill] sm:$0xff]  ;;  %v30358_v48 = vld [vmem:[#allocation35_spill] sm:$0xff] }
 0x94f   :  { %v26522_v42 = vpop.eup %26521 }
 0x950   :  { %6260 = vrot.lane.b32.xlu0 %v26522_v42, %s26977_s4  ;;  %v6758_v35 = vmax.f32 %v6755_v63, 0.0  ;;  %v30359_v63 = vld [vmem:[#allocation36_spill] sm:$0xff] }
 0x951   :  { %v26524_v0 = vpop.eup %26523 }
 0x952   :  { %v6254_v57 = vadd.f32 1.0, %v26524_v0  ;;  %v6759_v38 = vsub.f32 0.0, %v6758_v35  ;;  %v30360_v35 = vld [vmem:[#allocation38_spill] sm:$0xff]  ;;  %v30361_v0 = vld [vmem:[#allocation43_spill] sm:$0xff] }
 0x954   :  { %26525 = vrcp.f32 %v6254_v57  ;;  %v6760_v52 = vmul.f32 1.442695, %v6759_v38  ;;  %v30362_v57 = vld [vmem:[#allocation44_spill] sm:$0xff]  ;;  %v30363_v38 = vld [vmem:[#allocation47_spill] sm:$0xff] }
 0x956   :  { %26527 = vpow2.f32 %v6760_v52  ;;  %v30364_v52 = vld [vmem:[#allocation37_spill] sm:$0xff] }
 0x961   :  { %v26526_v62 = vpop.eup %26525 }
 0x962   :  { %v6258_v24 = vmul.f32 %v26526_v62, %v30355_v49  ;;  %v30369_v49 = vld [vmem:[#allocation42_spill] sm:$0xff] }
 0x963   :  { %v26528_v42 = vpop.eup %26527 }
 0x9c2   :  { %v6261_v20 = vpop.permute.xlu0 %6260 }
 0x9c3   :  { %v6263_v47 = vmul.f32 %v26526_v62, %v6261_v20  ;;  %v30366_v20 = vld [vmem:[#allocation40_spill] sm:$0xff] }
 0x9c5   :  { %6265 = vrot.lane.b32.xlu1 %v6263_v47, %s26978_s9  ;;  %v30367_v47 = vld [vmem:[#allocation41_spill] sm:$0xff] }
 0x9c9   :  { %6763 = vrot.lane.b32.xlu1 %v26528_v42, %s26976_s28  ;;  %v30368_v42 = vld [vmem:[#allocation56_spill] sm:$0xff] }
 0xa37   :  { %v6266_v51 = vpop.permute.xlu1 %6265 }
 0xa38   :  { %v28040_v3 = vadd.f32 %v6266_v51, %v6258_v24  ;;  %v30370_v24 = vld [vmem:[#allocation45_spill] sm:$0xff] }
 0xa39   :  { %v30371_v51 = vld [vmem:[#allocation57_spill] sm:$0xff] }
 0xa3a   :  { %30356 = vst [vmem:[#allocation89_spill] sm:$0xff] %v28040_v3  ;;  %26529 = vtanh.f32 %v28040_v3 }
 0xa3b   :  { %v28044_v61 = vpop.permute.xlu1 %6763 }
 0xa47   :  { %v26530_v31 = vpop.eup %26529 }
 0xa48   :  { %6271 = vrot.lane.b32.xlu0 %v26530_v31, %s26977_s4  ;;  %v30372_v31 = vld [vmem:[#allocation46_spill] sm:$0xff] }
 0xaba   :  { %v6272_v13 = vpop.permute.xlu0 %6271 }
 0xabb   :  { %v6274_v28 = vmul.f32 %v26526_v62, %v6272_v13  ;;  %v30365_v62 = vld [vmem:[#allocation39_spill] sm:$0xff]  ;;  %v30373_v13 = vld [vmem:[#allocation48_spill] sm:$0xff] }
 0xabd   :  { %v6766_v60 = vmul.f32 %v28044_v61, %v6274_v28  ;;  %v30374_v28 = vld [vmem:[#allocation50_spill] sm:$0xff] }
 0xabf   :  { %6768 = vrot.lane.b32.xlu0 %v6766_v60, %s26978_s9  ;;  %v30375_v60 = vld [vmem:[#allocation52_spill] sm:$0xff] }
 0xb31   :  { %v6769_v15 = vpop.permute.xlu0 %6768 }
 0xb32   :  { %v6770_v14 = vsel %vm707_vm2, %v6769_v15, 0 }
 0xb33   :  { %v6845_v7 = vand.u32 4294901760, %v6770_v14 }
 0xb35   :  { %v6846_v37 = vsub.f32 %v6770_v14, %v6845_v7  ;;  %6962 = vmatmul.mubr.f32.vlgmr.msra.gmra.mxu1 %v6845_v7 }
 0xb36   :  { %7084 = vmatpush1.msra.mxu1 %v27197_v25  ;;  %7129 = vmatprep.mubr.f32.mxu1 %v30274_v16 }
 0xb37   :  { %v6847_v59 = vand.u32 4294901760, %v6846_v37  ;;  %7086 = vmatprep.subr.mxu1 %v27199_v26 }
 0xb38   :  { %7088 = vmatpush1.msra.mxu1 %v27201_v27 }
 0xb39   :  { %v6848_v22 = vsub.f32 %v6846_v37, %v6847_v59  ;;  %7090 = vmatprep.subr.mxu1 %v27206_v30 }
 0xb3a   :  { %7092 = vmatpush1.msra.mxu1 %v27235_v40 }
 0xb3b   :  { %v6849_v36 = vand.u32 4294901760, %v6848_v22  ;;  %7094 = vmatprep.subr.mxu1 %v27243_v44 }
 0xb3c   :  { %7096 = vmatpush1.msra.mxu1 %v27263_v53 }
 0xb3d   :  { %7133 = vmatmul.mubr.f32.vlgmr.msra.gmra.mxu1 %v6847_v59  ;;  %7260 = vmatprep.subr.mxu1 %v27195_v21 }
 0xb3e   :  { %6850 = vmatmul.mubr.f32.vlgmr.msra.gmra.mxu0 %v6849_v36  ;;  %7262 = vmatpush1.msra.mxu1 %v27197_v25 }
 0xb3f   :  { %6997 = vmatpush1.msra.mxu0 %v30357_v32  ;;  %7264 = vmatprep.subr.mxu1 %v27199_v26 }
 0xb40   :  { %7000 = vmatprep.subr.mxu0 %v30358_v48  ;;  %7266 = vmatpush1.msra.mxu1 %v27201_v27 }
 0xb41   :  { %7003 = vmatpush1.msra.mxu0 %v30359_v63  ;;  %7268 = vmatprep.subr.mxu1 %v27206_v30 }
 0xb42   :  { %7006 = vmatprep.subr.mxu0 %v30360_v35  ;;  %7270 = vmatpush1.msra.mxu1 %v27235_v40 }
 0xb43   :  { %7009 = vmatpush1.msra.mxu0 %v30361_v0  ;;  %7272 = vmatprep.subr.mxu1 %v27243_v44 }
 0xb44   :  { %7012 = vmatprep.subr.mxu0 %v30362_v57  ;;  %7048 = vmatprep.mubr.f32.mxu0 %v30274_v16 }
 0xb45   :  { %7015 = vmatpush1.msra.mxu0 %v30363_v38  ;;  %7274 = vmatpush1.msra.mxu1 %v27263_v53  ;;  %v6276_v38 = vld [vmem:[#allocation2 + $0x10] sm:$0xff] }
 0xb46   :  { %7307 = vmatprep.mubr.f32.mxu1 %v30274_v16  ;;  %7051 = vmatmul.mubr.f32.vlgmr.msra.gmra.mxu0 %v6846_v37 }
 0xb47   :  { %7166 = vmatprep.subr.mxu0 %v30364_v52  ;;  %7309 = vmatmul.mubr.f32.vlgmr.msra.gmra.mxu1 %v6845_v7 }
 0xb48   :  { %7170 = vmatpush1.msra.mxu0 %v30365_v62  ;;  %7227 = vmatprep.mubr.f32.mxu0 %v30274_v16 }
 0xb49   :  { %7174 = vmatprep.subr.mxu0 %v30366_v20  ;;  %25439 = vmatprep.subr.mxu1 %v30274_v16  ;;  %v28097_v20 = vld [vmem:[#allocation5 + $0x10] sm:$0xff] }
 0xb4a   :  { %7178 = vmatpush1.msra.mxu0 %v30367_v47  ;;  %25440 = vmatpush3.msra.mxu1 %v30368_v42 }
 0xb4b   :  { %7182 = vmatprep.subr.mxu0 %v30369_v49  ;;  %25441 = vmatprep.subr.mxu1 %v30274_v16 }
 0xb4c   :  { %7186 = vmatpush1.msra.mxu0 %v30370_v24  ;;  %25442 = vmatpush3.msra.mxu1 %v30371_v51 }
 0xb4d   :  { %7190 = vmatprep.subr.mxu0 %v30372_v31  ;;  %25443 = vmatprep.mubr.msk.f32.mxu1 %vm26975_vm0, %v30274_v16 }
 0xb4e   :  { %7194 = vmatpush1.msra.mxu0 %v30373_v13  ;;  %25453 = vmatprep.subr.mxu1 %v30274_v16 }
 0xb4f   :  { %7229 = vmatmul.mubr.f32.vlgmr.msra.gmra.mxu0 %v6845_v7  ;;  %25432 = vmatprep.subr.mxu0 %v30274_v16 }
 0xb50   :  { %25433 = vmatpush3.msra.mxu0 %v30374_v28  ;;  %25436 = vmatprep.mubr.msk.f32.mxu0 %vm26975_vm0, %v30274_v16 }
 0xb51   :  { %25434 = vmatprep.subr.mxu0 %v30274_v16 }
 0xb52   :  { %25435 = vmatpush3.msra.mxu0 %v30375_v60 }
 0xb53   :  { %25446 = vmatprep.subr.mxu0 %v30274_v16 }
 0xbf5   :  { %v6963_v15 = vpop.f32.mrf.mxu1 }
 0xbf7   :  { %v6965_v22 = vpop.f32.mrf.mxu1 }
 0xbfd   :  { %v7134_v43 = vpop.f32.mrf.mxu1 }
 0xbfe   :  { %v6851_v14 = vpop.f32.mrf.mxu0 }
 0xbff   :  { %v6964_v37 = vadd.f32 %v6963_v15, %v6851_v14  ;;  %v7136_v51 = vpop.f32.mrf.mxu1 }
 0xc00   :  { %v6853_v59 = vpop.f32.mrf.mxu0 }
 0xc01   :  { %v6966_v13 = vadd.f32 %v6965_v22, %v6853_v59  ;;  %v30378_v59 = vld [vmem:[#allocation72_spill] sm:$0xff]  ;;  %v30379_v22 = vld [vmem:[#allocation51_spill] sm:$0xff] }
 0xc06   :  { %v7052_v36 = vpop.f32.mrf.mxu0 }
 0xc07   :  { %v7053_v7 = vadd.f32 %v7052_v36, %v6964_v37  ;;  %v7310_v24 = vpop.f32.mrf.mxu1  ;;  %v30158_v37 = vsub.f32 1.0, %v28097_v20 }
 0xc08   :  { %v7054_v33 = vpop.f32.mrf.mxu0 }
 0xc09   :  { %v7135_v19 = vadd.f32 %v7134_v43, %v7053_v7  ;;  %v7055_v31 = vadd.f32 %v7054_v33, %v6966_v13  ;;  %v7312_v14 = vpop.f32.mrf.mxu1  ;;  %v28105_v43 = vld [vmem:[%s30025_s7] ss:$0 sm:$0xff] }
 0xc0a   :  { %30376 = vst [vmem:[#allocation49_spill] sm:$0xff] %v28105_v43  ;;  %v30380_v7 = vld [vmem:[#allocation73_spill] sm:$0xff] }
 0xc0b   :  { %v7137_v47 = vadd.f32 %v7136_v51, %v7055_v31 }
 0xc0f   :  { %v7230_v49 = vpop.f32.mrf.mxu0 }
 0xc10   :  { %v7231_v42 = vadd.f32 %v7230_v49, %v7135_v19  ;;  %v28111_v19 = vmul.f32 %v28097_v20, %v6276_v38  ;;  %v7817_v38 = vsel %vm219_vm1, %v28097_v20, 0 }
 0xc11   :  { %v7232_v62 = vpop.f32.mrf.mxu0  ;;  %v28129_v31 = vand.u32 4294901760, %v7817_v38 }
 0xc12   :  { %v28099_v52 = vadd.f32 %v7310_v24, %v7231_v42  ;;  %v7233_v15 = vadd.f32 %v7232_v62, %v7137_v47 }
 0xc13   :  { %v7889_v36 = vsub.f32 %v7817_v38, %v28129_v31  ;;  %v30386_v38 = vld [vmem:[#allocation60_spill] sm:$0xff] }
 0xc14   :  { %v7313_v57 = vadd.f32 %v7312_v14, %v7233_v15  ;;  %v30381_v15 = vld [vmem:[#allocation74_spill] sm:$0xff] }
 0xc15   :  { %v30382_v14 = vld [vmem:[#allocation54_spill] sm:$0xff] }
 0xc16   :  { %v28108_v33 = vadd.f32 %v28105_v43, %v7313_v57 }
 0xc18   :  { %30377 = vst [vmem:[#allocation92_spill] sm:$0xff] %v28108_v33  ;;  %v7335_v62 = vmul.f32 %v30158_v37, %v28108_v33 }
 0xc1a   :  { %v7336_v47 = vadd.f32 %v7335_v62, %v28111_v19  ;;  %v30383_v62 = vld [vmem:[#allocation75_spill] sm:$0xff] }
 0xc1c   :  { %v7338_v42 = vsel %vm219_vm1, %v7336_v47, 0  ;;  %v7890_v47 = vand.u32 4294901760, %v7889_v36 }
 0xc1d   :  { %v7407_v49 = vand.u32 4294901760, %v7338_v42 }
 0xc1e   :  { %v7891_v37 = vsub.f32 %v7889_v36, %v7890_v47 }
 0xc1f   :  { %v7408_v24 = vsub.f32 %v7338_v42, %v7407_v49  ;;  %25444 = vmatmul.mubr.f32.vlgmr.msra.gmra.mxu1 %v7407_v49  ;;  %v30384_v42 = vld [vmem:[#allocation59_spill] sm:$0xff] }
 0xc20   :  { %25454 = vmatpush3.msra.mxu1 %v30374_v28  ;;  %25457 = vmatprep.mubr.msk.f32.mxu1 %vm26975_vm0, %v30274_v16 }
 0xc21   :  { %25455 = vmatprep.subr.mxu1 %v30274_v16  ;;  %v7409_v57 = vand.u32 4294901760, %v7408_v24 }
 0xc22   :  { %25456 = vmatpush3.msra.mxu1 %v30375_v60 }
 0xc23   :  { %25458 = vmatmul.mubr.f32.vlgmr.msra.gmra.mxu1 %v7409_v57  ;;  %25467 = vmatprep.subr.mxu1 %v30274_v16  ;;  %v7410_v51 = vsub.f32 %v7408_v24, %v7409_v57  ;;  %v30385_v57 = vld [vmem:[#allocation53_spill] sm:$0xff] }
 0xc24   :  { %25468 = vmatpush3.msra.mxu1 %v30374_v28  ;;  %25471 = vmatprep.mubr.msk.f32.mxu1 %vm26975_vm0, %v30274_v16 }
 0xc25   :  { %25469 = vmatprep.subr.mxu1 %v30274_v16  ;;  %v7411_v13 = vand.u32 4294901760, %v7410_v51  ;;  %v30387_v51 = vld [vmem:[#allocation62_spill] sm:$0xff] }
 0xc26   :  { %25470 = vmatpush3.msra.mxu1 %v30375_v60 }
 0xc27   :  { %25437 = vmatmul.mubr.f32.vlgmr.msra.gmra.mxu0 %v7411_v13  ;;  %25472 = vmatmul.mubr.f32.vlgmr.msra.gmra.mxu1 %v7407_v49  ;;  %v30388_v13 = vld [vmem:[#allocation55_spill] sm:$0xff] }
 0xc28   :  { %7932 = vmatprep.subr.mxu1 %v30378_v59  ;;  %25447 = vmatpush3.msra.mxu0 %v30379_v22 }
 0xc29   :  { %7938 = vmatpush1.msra.mxu1 %v30380_v7  ;;  %25448 = vmatprep.subr.mxu0 %v30274_v16 }
 0xc2a   :  { %7944 = vmatprep.subr.mxu1 %v30381_v15  ;;  %25449 = vmatpush3.msra.mxu0 %v30382_v14 }
 0xc2b   :  { %25450 = vmatprep.mubr.msk.f32.mxu0 %vm26975_vm0, %v30274_v16  ;;  %7950 = vmatpush1.msra.mxu1 %v30383_v62 }
 0xc2c   :  { %7983 = vmatprep.mubr.f32.mxu1 %v30274_v16  ;;  %25451 = vmatmul.mubr.f32.vlgmr.msra.gmra.mxu0 %v7408_v24  ;;  %v30389_v24 = vld [vmem:[#allocation63_spill] sm:$0xff] }
 0xc2d   :  { %25460 = vmatprep.subr.mxu0 %v30274_v16  ;;  %7985 = vmatmul.mubr.f32.vlgmr.msra.gmra.mxu1 %v28129_v31 }
 0xc2e   :  { %8101 = vmatprep.subr.mxu1 %v30384_v42  ;;  %25461 = vmatpush3.msra.mxu0 %v30385_v57  ;;  %v7892_v57 = vand.u32 4294901760, %v7891_v37  ;;  %v30390_v37 = vld [vmem:[#allocation64_spill] sm:$0xff] }
 0xc2f   :  { %8103 = vmatpush1.msra.mxu1 %v30386_v38  ;;  %25462 = vmatprep.subr.mxu0 %v30274_v16 }
 0xc30   :  { %8105 = vmatprep.subr.mxu1 %v30387_v51  ;;  %25463 = vmatpush3.msra.mxu0 %v30388_v13  ;;  %v8310_v13 = vsel %vm219_vm1, %v28044_v61, 0  ;;  %v30391_v61 = vld [vmem:[#allocation65_spill] sm:$0xff] }
 0xc31   :  { %25464 = vmatprep.mubr.msk.f32.mxu0 %vm26975_vm0, %v30274_v16  ;;  %8107 = vmatpush1.msra.mxu1 %v30389_v24 }
 0xc32   :  { %8140 = vmatprep.mubr.f32.mxu1 %v30274_v16  ;;  %25465 = vmatmul.mubr.f32.vlgmr.msra.gmra.mxu0 %v7407_v49  ;;  %v8379_v49 = vand.u32 4294901760, %v8310_v13 }
 0xc33   :  { %7848 = vmatprep.subr.mxu0 %v30384_v42  ;;  %8144 = vmatmul.mubr.f32.vlgmr.msra.gmra.mxu1 %v7890_v47  ;;  %v30392_v47 = vld [vmem:[#allocation82_spill] sm:$0xff] }
 0xc34   :  { %8263 = vmatprep.subr.mxu1 %v30384_v42  ;;  %7850 = vmatpush1.msra.mxu0 %v30386_v38 }
 0xc35   :  { %8265 = vmatpush1.msra.mxu1 %v30386_v38  ;;  %7852 = vmatprep.subr.mxu0 %v30387_v51  ;;  %v8380_v38 = vsub.f32 %v8310_v13, %v8379_v49  ;;  %v30398_v13 = vld [vmem:[#allocation76_spill] sm:$0xff] }
 0xc36   :  { %8267 = vmatprep.subr.mxu1 %v30387_v51  ;;  %7854 = vmatpush1.msra.mxu0 %v30389_v24  ;;  %v30393_v51 = vld [vmem:[#allocation66_spill] sm:$0xff] }
 0xc37   :  { %7887 = vmatprep.mubr.f32.mxu0 %v30274_v16  ;;  %8269 = vmatpush1.msra.mxu1 %v30389_v24  ;;  %v30394_v24 = vld [vmem:[#allocation67_spill] sm:$0xff] }
 0xc38   :  { %8302 = vmatprep.mubr.f32.mxu1 %v30274_v16  ;;  %7893 = vmatmul.mubr.f32.vlgmr.msra.gmra.mxu0 %v7892_v57  ;;  %v30395_v57 = vld [vmem:[#allocation83_spill] sm:$0xff] }
 0xc39   :  { %8021 = vmatprep.subr.mxu0 %v30390_v37  ;;  %8304 = vmatmul.mubr.f32.vlgmr.msra.gmra.mxu1 %v28129_v31  ;;  %v30396_v37 = vld [vmem:[#allocation68_spill] sm:$0xff] }
 0xc3a   :  { %25481 = vmatprep.subr.mxu1 %v30274_v16  ;;  %8024 = vmatpush1.msra.mxu0 %v30391_v61  ;;  %v8381_v61 = vand.u32 4294901760, %v8380_v38 }
 0xc3b   :  { %25482 = vmatpush3.msra.mxu1 %v30392_v47  ;;  %8027 = vmatprep.subr.mxu0 %v30393_v51  ;;  %v30397_v51 = vld [vmem:[#allocation69_spill] sm:$0xff]  ;;  %v30399_v47 = vld [vmem:[#allocation70_spill] sm:$0xff] }
 0xc3c   :  { %25483 = vmatprep.subr.mxu1 %v30274_v16  ;;  %8030 = vmatpush1.msra.mxu0 %v30394_v24  ;;  %v30400_v24 = vld [vmem:[#allocation71_spill] sm:$0xff] }
 0xc3d   :  { %8063 = vmatprep.mubr.f32.mxu0 %v30274_v16  ;;  %25484 = vmatpush3.msra.mxu1 %v30395_v57  ;;  %v30401_v57 = vld [vmem:[#allocation77_spill] sm:$0xff] }
 0xc3e   :  { %25485 = vmatprep.mubr.msk.f32.mxu1 %vm26975_vm0, %v30274_v16  ;;  %8066 = vmatmul.mubr.f32.vlgmr.msra.gmra.mxu0 %v7889_v36  ;;  %v8382_v36 = vsub.f32 %v8380_v38, %v8381_v61 }
 0xc3f   :  { %8181 = vmatprep.subr.mxu0 %v30396_v37  ;;  %25486 = vmatmul.mubr.f32.vlgmr.msra.gmra.mxu1 %v8379_v49 }
 0xc40   :  { %25495 = vmatprep.subr.mxu1 %v30274_v16  ;;  %8185 = vmatpush1.msra.mxu0 %v30397_v51 }
 0xc41   :  { %25496 = vmatpush3.msra.mxu1 %v30398_v13  ;;  %8189 = vmatprep.subr.mxu0 %v30399_v47 }
 0xc42   :  { %25497 = vmatprep.subr.mxu1 %v30274_v16  ;;  %8193 = vmatpush1.msra.mxu0 %v30400_v24  ;;  %v8383_v24 = vand.u32 4294901760, %v8382_v36  ;;  %v30404_v36 = vld [vmem:[#allocation84_spill] sm:$0xff] }
 0xc43   :  { %8226 = vmatprep.mubr.f32.mxu0 %v30274_v16  ;;  %25498 = vmatpush3.msra.mxu1 %v30401_v57 }
 0xc44   :  { %25499 = vmatprep.mubr.msk.f32.mxu1 %vm26975_vm0, %v30274_v16  ;;  %8228 = vmatmul.mubr.f32.vlgmr.msra.gmra.mxu0 %v28129_v31  ;;  %v30402_v31 = vld [vmem:[#allocation78_spill] sm:$0xff] }
 0xc45   :  { %25474 = vmatprep.subr.mxu0 %v30274_v16  ;;  %25500 = vmatmul.mubr.f32.vlgmr.msra.gmra.mxu1 %v8381_v61  ;;  %v30403_v61 = vld [vmem:[#allocation79_spill] sm:$0xff] }
 0xc46   :  { %25509 = vmatprep.subr.mxu1 %v30274_v16  ;;  %25475 = vmatpush3.msra.mxu0 %v30398_v13 }
 0xc47   :  { %25510 = vmatpush3.msra.mxu1 %v30398_v13  ;;  %25476 = vmatprep.subr.mxu0 %v30274_v16 }
 0xc48   :  { %25511 = vmatprep.subr.mxu1 %v30274_v16  ;;  %25477 = vmatpush3.msra.mxu0 %v30401_v57 }
 0xc49   :  { %25478 = vmatprep.mubr.msk.f32.mxu0 %vm26975_vm0, %v30274_v16  ;;  %25512 = vmatpush3.msra.mxu1 %v30401_v57  ;;  %v30407_v57 = vld [vmem:[#allocation85_spill] sm:$0xff] }
 0xc4a   :  { %25513 = vmatprep.mubr.msk.f32.mxu1 %vm26975_vm0, %v30274_v16  ;;  %25479 = vmatmul.mubr.f32.vlgmr.msra.gmra.mxu0 %v8383_v24  ;;  %v30405_v24 = vld [vmem:[#allocation80_spill] sm:$0xff] }
 0xc4b   :  { %25488 = vmatprep.subr.mxu0 %v30274_v16  ;;  %25514 = vmatmul.mubr.f32.vlgmr.msra.gmra.mxu1 %v8379_v49 }
 0xc4c   :  { %25489 = vmatpush3.msra.mxu0 %v30402_v31  ;;  %25492 = vmatprep.mubr.msk.f32.mxu0 %vm26975_vm0, %v30274_v16  ;;  %v30406_v31 = vld [vmem:[#allocation81_spill] sm:$0xff] }
 0xc4d   :  { %25490 = vmatprep.subr.mxu0 %v30274_v16  ;;  %25523 = vmatprep.subr.mxu1 %v30274_v16 }
 0xc4e   :  { %25491 = vmatpush3.msra.mxu0 %v30403_v61  ;;  %25524 = vmatpush3.msra.mxu1 %v30404_v36  ;;  %v28230_v61 = vld [vmem:[#allocation14] ss:$0 sm:$0xff] }
 0xc4f   :  { %25493 = vmatmul.mubr.f32.vlgmr.msra.gmra.mxu0 %v8380_v38  ;;  %25502 = vmatprep.subr.mxu0 %v30274_v16  ;;  %30408 = vst [vmem:[#allocation93_spill] sm:$0xff] %v28230_v61 }
 0xc50   :  { %25503 = vmatpush3.msra.mxu0 %v30405_v24  ;;  %25506 = vmatprep.mubr.msk.f32.mxu0 %vm26975_vm0, %v30274_v16 }
 0xc51   :  { %25504 = vmatprep.subr.mxu0 %v30274_v16  ;;  %25525 = vmatprep.subr.mxu1 %v30274_v16 }
 0xc52   :  { %25505 = vmatpush3.msra.mxu0 %v30406_v31  ;;  %25526 = vmatpush3.msra.mxu1 %v30407_v57 }
 0xc53   :  { %25507 = vmatmul.mubr.f32.vlgmr.msra.gmra.mxu0 %v8379_v49  ;;  %25527 = vmatprep.mubr.msk.f32.mxu1 %vm26975_vm0, %v30274_v16 }
 0xc54   :  { %25537 = vmatprep.subr.mxu1 %v30274_v16  ;;  %25516 = vmatprep.subr.mxu0 %v30274_v16 }
 0xc55   :  { %25517 = vmatpush3.msra.mxu0 %v27597_v46  ;;  %25520 = vmatprep.mubr.msk.f32.mxu0 %vm26975_vm0, %v30274_v16 }
 0xc56   :  { %25518 = vmatprep.subr.mxu0 %v30274_v16 }
 0xc57   :  { %25519 = vmatpush3.msra.mxu0 %v27599_v41 }
 0xc58   :  { %25530 = vmatprep.subr.mxu0 %v30274_v16 }
 0xcdf   :  { %v7494_v38 = vpop.f32.mrf.mxu1 }
 0xce1   :  { %v25445_v49 = vpop.f32.mrf.mxu1 }
 0xce3   :  { %v7645_v57 = vpop.f32.mrf.mxu1 }
 0xce5   :  { %v25459_v31 = vpop.f32.mrf.mxu1 }
 0xce7   :  { %v7413_v24 = vpop.f32.mrf.mxu0  ;;  %v7795_v36 = vpop.f32.mrf.mxu1 }
 0xce8   :  { %v7414_v47 = vadd.f32 %v28230_v61, %v7413_v24 }
 0xce9   :  { %v25438_v13 = vpop.f32.mrf.mxu0  ;;  %v25473_v51 = vpop.f32.mrf.mxu1 }
 0xcea   :  { %v7495_v37 = vadd.f32 %v7494_v38, %v7414_v47 }
 0xcec   :  { %v7570_v42 = vpop.f32.mrf.mxu0 }
 0xced   :  { %v7571_v62 = vadd.f32 %v7570_v42, %v7495_v37  ;;  %v7986_v14 = vpop.f32.mrf.mxu1 }
 0xcee   :  { %v25452_v15 = vpop.f32.mrf.mxu0 }
 0xcef   :  { %v7988_v7 = vpop.f32.mrf.mxu1  ;;  %v7646_v22 = vadd.f32 %v7645_v57, %v7571_v62 }
 0xcf2   :  { %v7722_v59 = vpop.f32.mrf.mxu0 }
 0xcf3   :  { %v7723_v43 = vadd.f32 %v7722_v59, %v7646_v22  ;;  %v8145_v49 = vpop.f32.mrf.mxu1 }
 0xcf4   :  { %v25466_v60 = vpop.f32.mrf.mxu0 }
 0xcf5   :  { %v28233_v31 = vadd.f32 %v7795_v36, %v7723_v43  ;;  %v8147_v28 = vpop.f32.mrf.mxu1 }
 0xcf7   :  { %30409 = vst [vmem:[#allocation94_spill] sm:$0xff] %v28233_v31 }
 0xcf8   :  { %v7894_v0 = vpop.f32.mrf.mxu0 }
 0xcf9   :  { %v7987_v35 = vadd.f32 %v7986_v14, %v7894_v0  ;;  %v8305_v63 = vpop.f32.mrf.mxu1 }
 0xcfa   :  { %v7896_v24 = vpop.f32.mrf.mxu0 }
 0xcfb   :  { %v8307_v13 = vpop.f32.mrf.mxu1  ;;  %v7989_v47 = vadd.f32 %v7988_v7, %v7896_v24 }
 0xcfe   :  { %v8067_v51 = vpop.f32.mrf.mxu0 }
 0xcff   :  { %v8068_v38 = vadd.f32 %v8067_v51, %v7987_v35  ;;  %v8466_v42 = vpop.f32.mrf.mxu1 }
 0xd00   :  { %v8069_v37 = vpop.f32.mrf.mxu0 }
 0xd01   :  { %v8070_v15 = vadd.f32 %v8069_v37, %v7989_v47  ;;  %v25487_v61 = vpop.f32.mrf.mxu1  ;;  %v8146_v62 = vadd.f32 %v8145_v49, %v8068_v38 }
 0xd03   :  { %v8148_v57 = vadd.f32 %v8147_v28, %v8070_v15 }
 0xd04   :  { %v8229_v59 = vpop.f32.mrf.mxu0 }
 0xd05   :  { %v8230_v22 = vadd.f32 %v8229_v59, %v8146_v62  ;;  %v8617_v60 = vpop.f32.mrf.mxu1 }
 0xd06   :  { %v8231_v43 = vpop.f32.mrf.mxu0 }
 0xd07   :  { %v8232_v36 = vadd.f32 %v8231_v43, %v8148_v57  ;;  %v25501_v48 = vpop.f32.mrf.mxu1  ;;  %v28235_v32 = vadd.f32 %v8305_v63, %v8230_v22 }
 0xd08   :  { %v28240_v48 = vld [vmem:[%s30029_s11] ss:$0 sm:$0xff] }
 0xd09   :  { %v8308_v0 = vadd.f32 %v8307_v13, %v8232_v36 }
 0xd0a   :  { %v8385_v14 = vpop.f32.mrf.mxu0 }
 0xd0b   :  { %v8386_v3 = vadd.f32 %v8385_v14, %v8308_v0  ;;  %v8767_v45 = vpop.f32.mrf.mxu1 }
 0xd0c   :  { %v25480_v7 = vpop.f32.mrf.mxu0 }
 0xd0d   :  { %v25515_v35 = vpop.f32.mrf.mxu1  ;;  %v8467_v24 = vadd.f32 %v8466_v42, %v8386_v3 }
 0xd0f   :  { %v8542_v51 = vpop.f32.mrf.mxu0 }
 0xd10   :  { %v8543_v47 = vadd.f32 %v8542_v51, %v8467_v24  ;;  %v9298_v24 = vld [vmem:[#allocation7 + $0x18] sm:$0xff] }
 0xd11   :  { %v25494_v61 = vpop.f32.mrf.mxu0  ;;  %v9315_v51 = vsel %vm219_vm1, %v9298_v24, 0  ;;  %v28339_v24 = vld [vmem:[%s30032_s14] ss:$0 sm:$0xff] }
 0xd12   :  { %v8618_v49 = vadd.f32 %v8617_v60, %v8543_v47  ;;  %v9384_v47 = vand.u32 4294901760, %v9315_v51  ;;  %30412 = vst [vmem:[#allocation96_spill] sm:$0xff] %v28339_v24 }
 0xd13   :  { %v8694_v28 = vpop.f32.mrf.mxu0 }
 0xd14   :  { %v8695_v38 = vadd.f32 %v8694_v28, %v8618_v49  ;;  %v9385_v61 = vsub.f32 %v9315_v51, %v9384_v47 }
 0xd15   :  { %v25508_v37 = vpop.f32.mrf.mxu0 }
 0xd16   :  { %v8768_v15 = vadd.f32 %v8767_v45, %v8695_v38  ;;  %v30411_v45 = vsub.f32 1.0, %v28097_v20  ;;  %v9386_v49 = vand.u32 4294901760, %v9385_v61 }
 0xd18   :  { %v8771_v63 = vadd.f32 %v28240_v48, %v8768_v15  ;;  %v9387_v28 = vsub.f32 %v9385_v61, %v9386_v49 }
 0xd1a   :  { %v24466_v13 = vmul.f32 -1.442695, %v8771_v63  ;;  %v9388_v38 = vand.u32 4294901760, %v9387_v28 }
 0xd1c   :  { %26531 = vpow2.f32 %v24466_v13 }
 0xd29   :  { %v26532_v62 = vpop.eup %26531 }
 0xd2a   :  { %v8775_v57 = vadd.f32 1.0, %v26532_v62 }
 0xd2c   :  { %26533 = vrcp.f32 %v8775_v57 }
 0xd39   :  { %v26534_v3 = vpop.eup %26533 }
 0xd3a   :  { %v8779_v42 = vsub.f32 1.0, %v26534_v3  ;;  %v8778_v59 = vmul.f32 %v26534_v3, %v28233_v31 }
 0xd3c   :  { %v8780_v22 = vmul.f32 %v8779_v42, %v28108_v33 }
 0xd3e   :  { %v28245_v60 = vadd.f32 %v8780_v22, %v8778_v59 }
 0xd40   :  { %30410 = vst [vmem:[#allocation95_spill] sm:$0xff] %v28245_v60  ;;  %v8799_v43 = vmul.f32 %v28245_v60, %v30411_v45  ;;  %8802 = vst.msk [vmem:[#allocation19 + $0x10] sm:$0xff] %vm219_vm1, %v28245_v60 }
 0xd42   :  { %v8800_v36 = vadd.f32 %v8799_v43, %v28111_v19 }
 0xd44   :  { %8804 = vst.msk [vmem:[#allocation20 + $0x10] sm:$0xff] %vm219_vm1, %v8800_v36  ;;  %v8806_v0 = vsel %vm219_vm1, %v8800_v36, 0 }
 0xd45   :  { %v8875_v14 = vand.u32 4294901760, %v8806_v0 }
 0xd47   :  { %v8876_v7 = vsub.f32 %v8806_v0, %v8875_v14  ;;  %25528 = vmatmul.mubr.f32.vlgmr.msra.gmra.mxu1 %v8875_v14 }
 0xd48   :  { %25538 = vmatpush3.msra.mxu1 %v27597_v46  ;;  %25541 = vmatprep.mubr.msk.f32.mxu1 %vm26975_vm0, %v30274_v16 }
 0xd49   :  { %25539 = vmatprep.subr.mxu1 %v30274_v16  ;;  %v8877_v20 = vand.u32 4294901760, %v8876_v7 }
 0xd4a   :  { %25540 = vmatpush3.msra.mxu1 %v27599_v41 }
 0xd4b   :  { %25542 = vmatmul.mubr.f32.vlgmr.msra.gmra.mxu1 %v8877_v20  ;;  %25551 = vmatprep.subr.mxu1 %v30274_v16  ;;  %v8878_v19 = vsub.f32 %v8876_v7, %v8877_v20 }
 0xd4c   :  { %25552 = vmatpush3.msra.mxu1 %v27597_v46  ;;  %25555 = vmatprep.mubr.msk.f32.mxu1 %vm26975_vm0, %v30274_v16 }
 0xd4d   :  { %25553 = vmatprep.subr.mxu1 %v30274_v16  ;;  %v8879_v35 = vand.u32 4294901760, %v8878_v19 }
 0xd4e   :  { %25554 = vmatpush3.msra.mxu1 %v27599_v41 }
 0xd4f   :  { %25521 = vmatmul.mubr.f32.vlgmr.msra.gmra.mxu0 %v8879_v35  ;;  %25556 = vmatmul.mubr.f32.vlgmr.msra.gmra.mxu1 %v8875_v14 }
 0xd50   :  { %25531 = vmatpush3.msra.mxu0 %v27602_v23  ;;  %25534 = vmatprep.mubr.msk.f32.mxu0 %vm26975_vm0, %v30274_v16 }
 0xd51   :  { %25532 = vmatprep.subr.mxu0 %v30274_v16  ;;  %25565 = vmatprep.subr.mxu1 %v30274_v16 }
 0xd52   :  { %25533 = vmatpush3.msra.mxu0 %v27605_v34  ;;  %25566 = vmatpush3.msra.mxu1 %v27163_v17 }
 0xd53   :  { %25535 = vmatmul.mubr.f32.vlgmr.msra.gmra.mxu0 %v8876_v7  ;;  %25544 = vmatprep.subr.mxu0 %v30274_v16 }
 0xd54   :  { %25545 = vmatpush3.msra.mxu0 %v27610_v39  ;;  %25548 = vmatprep.mubr.msk.f32.mxu0 %vm26975_vm0, %v30274_v16 }
 0xd55   :  { %25546 = vmatprep.subr.mxu0 %v30274_v16  ;;  %25567 = vmatprep.subr.mxu1 %v30274_v16 }
 0xd56   :  { %25547 = vmatpush3.msra.mxu0 %v27613_v10  ;;  %25568 = vmatpush3.msra.mxu1 %v27165_v18 }
 0xd57   :  { %25549 = vmatmul.mubr.f32.vlgmr.msra.gmra.mxu0 %v8875_v14  ;;  %25558 = vmatprep.subr.mxu0 %v30274_v16 }
 0xd58   :  { %25559 = vmatpush3.msra.mxu0 %v27138_v4  ;;  %25562 = vmatprep.mubr.msk.f32.mxu0 %vm26975_vm0, %v30274_v16 }
 0xd59   :  { %25560 = vmatprep.subr.mxu0 %v30274_v16  ;;  %25569 = vmatprep.mubr.msk.f32.mxu1 %vm26975_vm0, %v30274_v16 }
 0xd5a   :  { %25561 = vmatpush3.msra.mxu0 %v27140_v5  ;;  %25579 = vmatprep.subr.mxu1 %v30274_v16 }
 0xd5b   :  { %25572 = vmatprep.subr.mxu0 %v30274_v16  ;;  %25570 = vmatmul.mubr.f32.vlgmr.msra.gmra.mxu1 %v9384_v47 }
 0xd5c   :  { %25580 = vmatpush3.msra.mxu1 %v27138_v4  ;;  %25583 = vmatprep.mubr.msk.f32.mxu1 %vm26975_vm0, %v30274_v16 }
 0xd5d   :  { %25581 = vmatprep.subr.mxu1 %v30274_v16  ;;  %25563 = vmatmul.mubr.f32.vlgmr.msra.gmra.mxu0 %v9388_v38 }
 0xd5e   :  { %25582 = vmatpush3.msra.mxu1 %v27140_v5  ;;  %25573 = vmatpush3.msra.mxu0 %v27145_v8 }
 0xd5f   :  { %25584 = vmatmul.mubr.f32.vlgmr.msra.gmra.mxu1 %v9386_v49  ;;  %25593 = vmatprep.subr.mxu1 %v30274_v16 }
 0xd60   :  { %25594 = vmatpush3.msra.mxu1 %v27138_v4  ;;  %25597 = vmatprep.mubr.msk.f32.mxu1 %vm26975_vm0, %v30274_v16 }
 0xd61   :  { %25595 = vmatprep.subr.mxu1 %v30274_v16  ;;  %25576 = vmatprep.mubr.msk.f32.mxu0 %vm26975_vm0, %v30274_v16 }
 0xd62   :  { %25596 = vmatpush3.msra.mxu1 %v27140_v5  ;;  %25574 = vmatprep.subr.mxu0 %v30274_v16 }
 0xd63   :  { %25598 = vmatmul.mubr.f32.vlgmr.msra.gmra.mxu1 %v9384_v47  ;;  %9903 = vmatprep.subr.mxu1 %v27256_v50 }
 0xd64   :  { %25575 = vmatpush3.msra.mxu0 %v27148_v9  ;;  %9909 = vmatpush1.msra.mxu1 %v27266_v54 }
 0xd65   :  { %25577 = vmatmul.mubr.f32.vlgmr.msra.gmra.mxu0 %v9385_v61  ;;  %25586 = vmatprep.subr.mxu0 %v30274_v16 }
 0xd66   :  { %25587 = vmatpush3.msra.mxu0 %v27153_v11  ;;  %25590 = vmatprep.mubr.msk.f32.mxu0 %vm26975_vm0, %v30274_v16 }
 0xd67   :  { %25588 = vmatprep.subr.mxu0 %v30274_v16  ;;  %9915 = vmatprep.subr.mxu1 %v27268_v55 }
 0xd68   :  { %25589 = vmatpush3.msra.mxu0 %v27156_v12  ;;  %9921 = vmatpush1.msra.mxu1 %v27270_v56 }
 0xd69   :  { %25591 = vmatmul.mubr.f32.vlgmr.msra.gmra.mxu0 %v9384_v47  ;;  %9927 = vmatprep.subr.mxu1 %v27276_v58 }
 0xd6a   :  { %9933 = vmatpush1.msra.mxu1 %v27296_v1  ;;  %9815 = vmatprep.subr.mxu0 %v27195_v21 }
 0xd6b   :  { %9939 = vmatprep.subr.mxu1 %v27299_v2  ;;  %9978 = vmatprep.mubr.f32.mxu1 %v30274_v16 }
 0xd6c   :  { %9945 = vmatpush1.msra.mxu1 %v27305_v6  ;;  %9817 = vmatpush1.msra.mxu0 %v27197_v25 }
 0xd6d   :  { %10100 = vmatprep.subr.mxu1 %v27195_v21  ;;  %9819 = vmatprep.subr.mxu0 %v27199_v26 }
 0xd6e   :  { %9821 = vmatpush1.msra.mxu0 %v27201_v27  ;;  %9862 = vmatprep.mubr.f32.mxu0 %v30274_v16 }
 0xd6f   :  { %9823 = vmatprep.subr.mxu0 %v27206_v30 }
 0xd70   :  { %9825 = vmatpush1.msra.mxu0 %v27235_v40 }
 0xd71   :  { %9827 = vmatprep.subr.mxu0 %v27243_v44 }
 0xd72   :  { %9829 = vmatpush1.msra.mxu0 %v27263_v53 }
 0xd73   :  { %10012 = vmatprep.subr.mxu0 %v27204_v29 }
 0xe07   :  { %v8962_v37 = vpop.f32.mrf.mxu1 }
 0xe09   :  { %v25529_v15 = vpop.f32.mrf.mxu1 }
 0xe0b   :  { %v9113_v63 = vpop.f32.mrf.mxu1 }
 0xe0d   :  { %v25543_v13 = vpop.f32.mrf.mxu1 }
 0xe0f   :  { %v8881_v62 = vpop.f32.mrf.mxu0  ;;  %v9263_v57 = vpop.f32.mrf.mxu1 }
 0xe10   :  { %v8882_v3 = vadd.f32 %v8881_v62, %v28235_v32 }
 0xe11   :  { %v25522_v42 = vpop.f32.mrf.mxu0  ;;  %v25557_v59 = vpop.f32.mrf.mxu1 }
 0xe12   :  { %v8963_v22 = vadd.f32 %v8962_v37, %v8882_v3 }
 0xe13   :  { %v9038_v45 = vpop.f32.mrf.mxu0 }
 0xe14   :  { %v9039_v43 = vadd.f32 %v9038_v45, %v8963_v22 }
 0xe15   :  { %v25536_v36 = vpop.f32.mrf.mxu0 }
 0xe16   :  { %v9114_v0 = vadd.f32 %v9113_v63, %v9039_v43 }
 0xe17   :  { %v9190_v14 = vpop.f32.mrf.mxu0 }
 0xe18   :  { %v9191_v7 = vadd.f32 %v9190_v14, %v9114_v0 }
 0xe19   :  { %v25550_v20 = vpop.f32.mrf.mxu0 }
 0xe1a   :  { %v9264_v19 = vadd.f32 %v9263_v57, %v9191_v7 }
 0xe1b   :  { %v9471_v47 = vpop.f32.mrf.mxu1 }
 0xe1c   :  { %v9267_v35 = vadd.f32 %v9264_v19, %v28099_v52  ;;  %v30413_v52 = vld [vmem:[#allocation90_spill] sm:$0xff] }
 0xe1d   :  { %v25571_v61 = vpop.f32.mrf.mxu1  ;;  %v9390_v37 = vpop.f32.mrf.mxu0 }
 0xe1e   :  { %v9268_v32 = vadd.f32 %v28339_v24, %v9267_v35  ;;  %v9391_v63 = vadd.f32 %v30413_v52, %v9390_v37 }
 0xe1f   :  { %v9622_v49 = vpop.f32.mrf.mxu1  ;;  %v25564_v13 = vpop.f32.mrf.mxu0 }
 0xe20   :  { %26535 = vtanh.f32 %v9268_v32  ;;  %v24467_v28 = vmul.f32 -1.442695, %v9268_v32  ;;  %v9472_v57 = vadd.f32 %v9471_v47, %v9391_v63 }
 0xe21   :  { %v25585_v38 = vpop.f32.mrf.mxu1 }
 0xe22   :  { %26537 = vpow2.f32 %v24467_v28 }
 0xe23   :  { %v9772_v15 = vpop.f32.mrf.mxu1 }
 0xe25   :  { %v25599_v62 = vpop.f32.mrf.mxu1  ;;  %v9547_v3 = vpop.f32.mrf.mxu0 }
 0xe26   :  { %v9548_v42 = vadd.f32 %v9547_v3, %v9472_v57 }
 0xe27   :  { %v25578_v59 = vpop.f32.mrf.mxu0 }
 0xe28   :  { %v9623_v22 = vadd.f32 %v9622_v49, %v9548_v42  ;;  %v30414_v49 = vld [vmem:[#allocation89_spill] sm:$0xff] }
 0xe29   :  { %v9699_v45 = vpop.f32.mrf.mxu0 }
 0xe2a   :  { %v9700_v43 = vadd.f32 %v9699_v45, %v9623_v22 }
 0xe2b   :  { %v25592_v36 = vpop.f32.mrf.mxu0 }
 0xe2c   :  { %v9773_v0 = vadd.f32 %v9772_v15, %v9700_v43  ;;  %v30416_v36 = vld [vmem:[#allocation34_spill] sm:$0xff] }
 0xe2d   :  { %v26536_v51 = vpop.eup %26535 }
 0xe2e   :  { %9278 = vrot.lane.b32.xlu1 %v26536_v51, %s26977_s4  ;;  %v9776_v14 = vmax.f32 %v9773_v0, 0.0  ;;  %v30417_v0 = vld [vmem:[#allocation35_spill] sm:$0xff] }
 0xe2f   :  { %v26538_v7 = vpop.eup %26537 }
 0xe30   :  { %v9272_v20 = vadd.f32 1.0, %v26538_v7  ;;  %v9777_v19 = vsub.f32 0.0, %v9776_v14  ;;  %v30418_v14 = vld [vmem:[#allocation36_spill] sm:$0xff]  ;;  %v30419_v7 = vld [vmem:[#allocation38_spill] sm:$0xff] }
 0xe32   :  { %26539 = vrcp.f32 %v9272_v20  ;;  %v9778_v35 = vmul.f32 1.442695, %v9777_v19  ;;  %v30420_v20 = vld [vmem:[#allocation43_spill] sm:$0xff]  ;;  %v30421_v19 = vld [vmem:[#allocation44_spill] sm:$0xff] }
 0xe34   :  { %26541 = vpow2.f32 %v9778_v35  ;;  %v30422_v35 = vld [vmem:[#allocation47_spill] sm:$0xff] }
 0xe3f   :  { %v26540_v32 = vpop.eup %26539 }
 0xe40   :  { %v9276_v28 = vmul.f32 %v26540_v32, %v30414_v49  ;;  %v30427_v49 = vld [vmem:[#allocation56_spill] sm:$0xff] }
 0xe41   :  { %v26542_v47 = vpop.eup %26541 }
 0xea0   :  { %v9279_v51 = vpop.permute.xlu1 %9278 }
 0xea1   :  { %v9281_v61 = vmul.f32 %v26540_v32, %v9279_v51  ;;  %v30424_v51 = vld [vmem:[#allocation39_spill] sm:$0xff] }
 0xea3   :  { %9283 = vrot.lane.b32.xlu0 %v9281_v61, %s26978_s9  ;;  %v30425_v61 = vld [vmem:[#allocation40_spill] sm:$0xff] }
 0xea7   :  { %9781 = vrot.lane.b32.xlu0 %v26542_v47, %s26976_s28  ;;  %v30426_v47 = vld [vmem:[#allocation41_spill] sm:$0xff] }
 0xf15   :  { %v9284_v38 = vpop.permute.xlu0 %9283 }
 0xf16   :  { %v28347_v37 = vadd.f32 %v9284_v38, %v9276_v28  ;;  %v30428_v28 = vld [vmem:[#allocation42_spill] sm:$0xff]  ;;  %v30429_v38 = vld [vmem:[#allocation45_spill] sm:$0xff] }
 0xf18   :  { %30415 = vst [vmem:[#allocation90_spill] sm:$0xff] %v28347_v37  ;;  %26543 = vtanh.f32 %v28347_v37 }
 0xf19   :  { %v28351_v13 = vpop.permute.xlu0 %9781 }
 0xf25   :  { %v26544_v15 = vpop.eup %26543 }
 0xf26   :  { %9289 = vrot.lane.b32.xlu1 %v26544_v15, %s26977_s4  ;;  %v30430_v15 = vld [vmem:[#allocation57_spill] sm:$0xff] }
 0xf98   :  { %v9290_v52 = vpop.permute.xlu1 %9289 }
 0xf99   :  { %v9292_v63 = vmul.f32 %v26540_v32, %v9290_v52  ;;  %v30423_v32 = vld [vmem:[#allocation37_spill] sm:$0xff]  ;;  %v30431_v52 = vld [vmem:[#allocation46_spill] sm:$0xff] }
 0xf9b   :  { %v9784_v62 = vmul.f32 %v28351_v13, %v9292_v63  ;;  %v30432_v63 = vld [vmem:[#allocation48_spill] sm:$0xff] }
 0xf9d   :  { %9786 = vrot.lane.b32.xlu1 %v9784_v62, %s26978_s9  ;;  %v30433_v62 = vld [vmem:[#allocation50_spill] sm:$0xff] }
0x100f   :  { %v9787_v57 = vpop.permute.xlu1 %9786 }
0x1010   :  { %v9788_v3 = vsel %vm707_vm2, %v9787_v57, 0  ;;  %v30434_v57 = vld [vmem:[#allocation52_spill] sm:$0xff] }
0x1011   :  { %v9863_v42 = vand.u32 4294901760, %v9788_v3 }
0x1013   :  { %v9864_v59 = vsub.f32 %v9788_v3, %v9863_v42  ;;  %9980 = vmatmul.mubr.f32.vlgmr.msra.gmra.mxu1 %v9863_v42 }
0x1014   :  { %10102 = vmatpush1.msra.mxu1 %v27197_v25  ;;  %10147 = vmatprep.mubr.f32.mxu1 %v30274_v16 }
0x1015   :  { %v9865_v22 = vand.u32 4294901760, %v9864_v59  ;;  %10104 = vmatprep.subr.mxu1 %v27199_v26 }
0x1016   :  { %10106 = vmatpush1.msra.mxu1 %v27201_v27 }
0x1017   :  { %v9866_v45 = vsub.f32 %v9864_v59, %v9865_v22  ;;  %10108 = vmatprep.subr.mxu1 %v27206_v30 }
0x1018   :  { %10110 = vmatpush1.msra.mxu1 %v27235_v40 }
0x1019   :  { %v9867_v43 = vand.u32 4294901760, %v9866_v45  ;;  %10112 = vmatprep.subr.mxu1 %v27243_v44 }
0x101a   :  { %10114 = vmatpush1.msra.mxu1 %v27263_v53 }
0x101b   :  { %10151 = vmatmul.mubr.f32.vlgmr.msra.gmra.mxu1 %v9865_v22  ;;  %10278 = vmatprep.subr.mxu1 %v27195_v21 }
0x101c   :  { %9868 = vmatmul.mubr.f32.vlgmr.msra.gmra.mxu0 %v9867_v43  ;;  %10280 = vmatpush1.msra.mxu1 %v27197_v25 }
0x101d   :  { %10015 = vmatpush1.msra.mxu0 %v30416_v36  ;;  %10282 = vmatprep.subr.mxu1 %v27199_v26 }
0x101e   :  { %10018 = vmatprep.subr.mxu0 %v30417_v0  ;;  %10284 = vmatpush1.msra.mxu1 %v27201_v27 }
0x101f   :  { %10021 = vmatpush1.msra.mxu0 %v30418_v14  ;;  %10286 = vmatprep.subr.mxu1 %v27206_v30 }
0x1020   :  { %10024 = vmatprep.subr.mxu0 %v30419_v7  ;;  %10288 = vmatpush1.msra.mxu1 %v27235_v40 }
0x1021   :  { %10027 = vmatpush1.msra.mxu0 %v30420_v20  ;;  %10290 = vmatprep.subr.mxu1 %v27243_v44 }
0x1022   :  { %10030 = vmatprep.subr.mxu0 %v30421_v19  ;;  %10066 = vmatprep.mubr.f32.mxu0 %v30274_v16  ;;  %v9294_v19 = vld [vmem:[#allocation2 + $0x18] sm:$0xff] }
0x1023   :  { %10033 = vmatpush1.msra.mxu0 %v30422_v35  ;;  %10292 = vmatpush1.msra.mxu1 %v27263_v53 }
0x1024   :  { %10325 = vmatprep.mubr.f32.mxu1 %v30274_v16  ;;  %10069 = vmatmul.mubr.f32.vlgmr.msra.gmra.mxu0 %v9864_v59 }
0x1025   :  { %10184 = vmatprep.subr.mxu0 %v30423_v32  ;;  %10327 = vmatmul.mubr.f32.vlgmr.msra.gmra.mxu1 %v9863_v42 }
0x1026   :  { %10188 = vmatpush1.msra.mxu0 %v30424_v51  ;;  %10245 = vmatprep.mubr.f32.mxu0 %v30274_v16  ;;  %v28404_v51 = vld [vmem:[#allocation5 + $0x18] sm:$0xff] }
0x1027   :  { %10192 = vmatprep.subr.mxu0 %v30425_v61  ;;  %25607 = vmatprep.subr.mxu1 %v30274_v16 }
0x1028   :  { %10196 = vmatpush1.msra.mxu0 %v30426_v47  ;;  %25608 = vmatpush3.msra.mxu1 %v30427_v49 }
0x1029   :  { %10200 = vmatprep.subr.mxu0 %v30428_v28  ;;  %25609 = vmatprep.subr.mxu1 %v30274_v16 }
0x102a   :  { %10204 = vmatpush1.msra.mxu0 %v30429_v38  ;;  %25610 = vmatpush3.msra.mxu1 %v30430_v15 }
0x102b   :  { %10208 = vmatprep.subr.mxu0 %v30431_v52  ;;  %25611 = vmatprep.mubr.msk.f32.mxu1 %vm26975_vm0, %v30274_v16 }
0x102c   :  { %10212 = vmatpush1.msra.mxu0 %v30432_v63  ;;  %25621 = vmatprep.subr.mxu1 %v30274_v16 }
0x102d   :  { %10247 = vmatmul.mubr.f32.vlgmr.msra.gmra.mxu0 %v9863_v42  ;;  %25600 = vmatprep.subr.mxu0 %v30274_v16 }
0x102e   :  { %25601 = vmatpush3.msra.mxu0 %v30433_v62  ;;  %25604 = vmatprep.mubr.msk.f32.mxu0 %vm26975_vm0, %v30274_v16 }
0x102f   :  { %25602 = vmatprep.subr.mxu0 %v30274_v16 }
0x1030   :  { %25603 = vmatpush3.msra.mxu0 %v30434_v57 }
0x1031   :  { %25614 = vmatprep.subr.mxu0 %v30274_v16 }
0x10d3   :  { %v9981_v3 = vpop.f32.mrf.mxu1 }
0x10d5   :  { %v9983_v43 = vpop.f32.mrf.mxu1 }
0x10db   :  { %v10152_v60 = vpop.f32.mrf.mxu1 }
0x10dc   :  { %v9869_v59 = vpop.f32.mrf.mxu0 }
0x10dd   :  { %v9982_v22 = vadd.f32 %v9981_v3, %v9869_v59  ;;  %v10154_v38 = vpop.f32.mrf.mxu1 }
0x10de   :  { %v9871_v45 = vpop.f32.mrf.mxu0 }
0x10df   :  { %v9984_v52 = vadd.f32 %v9983_v43, %v9871_v45  ;;  %v30439_v45 = vld [vmem:[#allocation51_spill] sm:$0xff] }
0x10e4   :  { %v10070_v31 = vpop.f32.mrf.mxu0 }
0x10e5   :  { %v10071_v42 = vadd.f32 %v10070_v31, %v9982_v22  ;;  %v10328_v28 = vpop.f32.mrf.mxu1  ;;  %v30174_v31 = vsub.f32 1.0, %v28404_v51  ;;  %v30436_v22 = vld [vmem:[#allocation49_spill] sm:$0xff] }
0x10e6   :  { %v10072_v33 = vpop.f32.mrf.mxu0 }
0x10e7   :  { %v10153_v63 = vadd.f32 %v10152_v60, %v10071_v42  ;;  %v10073_v15 = vadd.f32 %v10072_v33, %v9984_v52  ;;  %v10330_v59 = vpop.f32.mrf.mxu1  ;;  %v28413_v33 = vmul.f32 %v28404_v51, %v9294_v19  ;;  %v10835_v19 = vsel %vm219_vm1, %v28404_v51, 0  ;;  %v30440_v42 = vld [vmem:[#allocation73_spill] sm:$0xff] }
0x10e9   :  { %v10155_v61 = vadd.f32 %v10154_v38, %v10073_v15  ;;  %v28431_v15 = vand.u32 4294901760, %v10835_v19 }
0x10eb   :  { %v10907_v43 = vsub.f32 %v10835_v19, %v28431_v15  ;;  %v30447_v19 = vld [vmem:[#allocation62_spill] sm:$0xff] }
0x10ed   :  { %v10248_v49 = vpop.f32.mrf.mxu0 }
0x10ee   :  { %v10249_v47 = vadd.f32 %v10248_v49, %v10153_v63  ;;  %v30438_v63 = vld [vmem:[#allocation72_spill] sm:$0xff] }
0x10ef   :  { %v10250_v32 = vpop.f32.mrf.mxu0 }
0x10f0   :  { %v28406_v35 = vadd.f32 %v10328_v28, %v10249_v47  ;;  %v10251_v3 = vadd.f32 %v10250_v32, %v10155_v61 }
0x10f2   :  { %30435 = vst [vmem:[#allocation89_spill] sm:$0xff] %v28406_v35  ;;  %v10331_v20 = vadd.f32 %v10330_v59, %v10251_v3  ;;  %v30441_v3 = vld [vmem:[#allocation74_spill] sm:$0xff] }
0x10f3   :  { %v30442_v59 = vld [vmem:[#allocation54_spill] sm:$0xff] }
0x10f4   :  { %v28410_v60 = vadd.f32 %v30436_v22, %v10331_v20  ;;  %v30443_v22 = vld [vmem:[#allocation75_spill] sm:$0xff] }
0x10f6   :  { %30437 = vst [vmem:[#allocation49_spill] sm:$0xff] %v28410_v60  ;;  %v10353_v49 = vmul.f32 %v30174_v31, %v28410_v60 }
0x10f8   :  { %v10354_v38 = vadd.f32 %v10353_v49, %v28413_v33  ;;  %v10908_v49 = vand.u32 4294901760, %v10907_v43 }
0x10fa   :  { %v10356_v47 = vsel %vm219_vm1, %v10354_v38, 0  ;;  %v30444_v38 = vld [vmem:[#allocation59_spill] sm:$0xff] }
0x10fb   :  { %v10425_v32 = vand.u32 4294901760, %v10356_v47 }
0x10fd   :  { %v10426_v61 = vsub.f32 %v10356_v47, %v10425_v32  ;;  %25612 = vmatmul.mubr.f32.vlgmr.msra.gmra.mxu1 %v10425_v32  ;;  %v30445_v47 = vld [vmem:[#allocation53_spill] sm:$0xff] }
0x10fe   :  { %25622 = vmatpush3.msra.mxu1 %v30433_v62  ;;  %25625 = vmatprep.mubr.msk.f32.mxu1 %vm26975_vm0, %v30274_v16 }
0x10ff   :  { %25623 = vmatprep.subr.mxu1 %v30274_v16  ;;  %v10427_v20 = vand.u32 4294901760, %v10426_v61 }
0x1100   :  { %25624 = vmatpush3.msra.mxu1 %v30434_v57 }
0x1101   :  { %25626 = vmatmul.mubr.f32.vlgmr.msra.gmra.mxu1 %v10427_v20  ;;  %25635 = vmatprep.subr.mxu1 %v30274_v16  ;;  %v10428_v28 = vsub.f32 %v10426_v61, %v10427_v20  ;;  %v30446_v20 = vld [vmem:[#allocation60_spill] sm:$0xff] }
0x1102   :  { %25636 = vmatpush3.msra.mxu1 %v30433_v62  ;;  %25639 = vmatprep.mubr.msk.f32.mxu1 %vm26975_vm0, %v30274_v16 }
0x1103   :  { %25637 = vmatprep.subr.mxu1 %v30274_v16  ;;  %v10429_v52 = vand.u32 4294901760, %v10428_v28  ;;  %v30448_v28 = vld [vmem:[#allocation55_spill] sm:$0xff] }
0x1104   :  { %25638 = vmatpush3.msra.mxu1 %v30434_v57 }
0x1105   :  { %25605 = vmatmul.mubr.f32.vlgmr.msra.gmra.mxu0 %v10429_v52  ;;  %25640 = vmatmul.mubr.f32.vlgmr.msra.gmra.mxu1 %v10425_v32  ;;  %v10909_v52 = vsub.f32 %v10907_v43, %v10908_v49 }
0x1106   :  { %10950 = vmatprep.subr.mxu1 %v30438_v63  ;;  %25615 = vmatpush3.msra.mxu0 %v30439_v45 }
0x1107   :  { %10956 = vmatpush1.msra.mxu1 %v30440_v42  ;;  %25616 = vmatprep.subr.mxu0 %v30274_v16  ;;  %v10910_v31 = vand.u32 4294901760, %v10909_v52  ;;  %v30452_v52 = vld [vmem:[#allocation82_spill] sm:$0xff] }
0x1108   :  { %10962 = vmatprep.subr.mxu1 %v30441_v3  ;;  %25617 = vmatpush3.msra.mxu0 %v30442_v59 }
0x1109   :  { %25618 = vmatprep.mubr.msk.f32.mxu0 %vm26975_vm0, %v30274_v16  ;;  %10968 = vmatpush1.msra.mxu1 %v30443_v22 }
0x110a   :  { %11001 = vmatprep.mubr.f32.mxu1 %v30274_v16  ;;  %25619 = vmatmul.mubr.f32.vlgmr.msra.gmra.mxu0 %v10426_v61  ;;  %v30449_v61 = vld [vmem:[#allocation63_spill] sm:$0xff] }
0x110b   :  { %25628 = vmatprep.subr.mxu0 %v30274_v16  ;;  %11003 = vmatmul.mubr.f32.vlgmr.msra.gmra.mxu1 %v28431_v15 }
0x110c   :  { %11119 = vmatprep.subr.mxu1 %v30444_v38  ;;  %25629 = vmatpush3.msra.mxu0 %v30445_v47 }
0x110d   :  { %11121 = vmatpush1.msra.mxu1 %v30446_v20  ;;  %25630 = vmatprep.subr.mxu0 %v30274_v16 }
0x110e   :  { %11123 = vmatprep.subr.mxu1 %v30447_v19  ;;  %25631 = vmatpush3.msra.mxu0 %v30448_v28  ;;  %v11328_v28 = vsel %vm219_vm1, %v28351_v13, 0  ;;  %v30451_v13 = vld [vmem:[#allocation65_spill] sm:$0xff] }
0x110f   :  { %25632 = vmatprep.mubr.msk.f32.mxu0 %vm26975_vm0, %v30274_v16  ;;  %11125 = vmatpush1.msra.mxu1 %v30449_v61 }
0x1110   :  { %11158 = vmatprep.mubr.f32.mxu1 %v30274_v16  ;;  %25633 = vmatmul.mubr.f32.vlgmr.msra.gmra.mxu0 %v10425_v32  ;;  %v11397_v32 = vand.u32 4294901760, %v11328_v28 }
0x1111   :  { %10866 = vmatprep.subr.mxu0 %v30444_v38  ;;  %11162 = vmatmul.mubr.f32.vlgmr.msra.gmra.mxu1 %v10908_v49  ;;  %v30450_v49 = vld [vmem:[#allocation64_spill] sm:$0xff] }
0x1112   :  { %11281 = vmatprep.subr.mxu1 %v30444_v38  ;;  %10868 = vmatpush1.msra.mxu0 %v30446_v20 }
0x1113   :  { %11283 = vmatpush1.msra.mxu1 %v30446_v20  ;;  %10870 = vmatprep.subr.mxu0 %v30447_v19  ;;  %v11398_v20 = vsub.f32 %v11328_v28, %v11397_v32  ;;  %v30458_v28 = vld [vmem:[#allocation76_spill] sm:$0xff] }
0x1114   :  { %11285 = vmatprep.subr.mxu1 %v30447_v19  ;;  %10872 = vmatpush1.msra.mxu0 %v30449_v61  ;;  %v30453_v19 = vld [vmem:[#allocation66_spill] sm:$0xff] }
0x1115   :  { %10905 = vmatprep.mubr.f32.mxu0 %v30274_v16  ;;  %11287 = vmatpush1.msra.mxu1 %v30449_v61  ;;  %v30454_v61 = vld [vmem:[#allocation67_spill] sm:$0xff] }
0x1116   :  { %11320 = vmatprep.mubr.f32.mxu1 %v30274_v16  ;;  %10911 = vmatmul.mubr.f32.vlgmr.msra.gmra.mxu0 %v10910_v31  ;;  %v30455_v31 = vld [vmem:[#allocation83_spill] sm:$0xff] }
0x1117   :  { %11039 = vmatprep.subr.mxu0 %v30450_v49  ;;  %11322 = vmatmul.mubr.f32.vlgmr.msra.gmra.mxu1 %v28431_v15  ;;  %v30456_v49 = vld [vmem:[#allocation68_spill] sm:$0xff] }
0x1118   :  { %25649 = vmatprep.subr.mxu1 %v30274_v16  ;;  %11042 = vmatpush1.msra.mxu0 %v30451_v13  ;;  %v11399_v13 = vand.u32 4294901760, %v11398_v20 }
0x1119   :  { %25650 = vmatpush3.msra.mxu1 %v30452_v52  ;;  %11045 = vmatprep.subr.mxu0 %v30453_v19  ;;  %v30457_v19 = vld [vmem:[#allocation69_spill] sm:$0xff]  ;;  %v30459_v52 = vld [vmem:[#allocation70_spill] sm:$0xff] }
0x111a   :  { %25651 = vmatprep.subr.mxu1 %v30274_v16  ;;  %11048 = vmatpush1.msra.mxu0 %v30454_v61  ;;  %v30460_v61 = vld [vmem:[#allocation71_spill] sm:$0xff] }
0x111b   :  { %11081 = vmatprep.mubr.f32.mxu0 %v30274_v16  ;;  %25652 = vmatpush3.msra.mxu1 %v30455_v31  ;;  %v30461_v31 = vld [vmem:[#allocation77_spill] sm:$0xff] }
0x111c   :  { %25653 = vmatprep.mubr.msk.f32.mxu1 %vm26975_vm0, %v30274_v16  ;;  %11084 = vmatmul.mubr.f32.vlgmr.msra.gmra.mxu0 %v10907_v43  ;;  %v11400_v43 = vsub.f32 %v11398_v20, %v11399_v13 }
0x111d   :  { %11199 = vmatprep.subr.mxu0 %v30456_v49  ;;  %25654 = vmatmul.mubr.f32.vlgmr.msra.gmra.mxu1 %v11397_v32 }
0x111e   :  { %25663 = vmatprep.subr.mxu1 %v30274_v16  ;;  %11203 = vmatpush1.msra.mxu0 %v30457_v19 }
0x111f   :  { %25664 = vmatpush3.msra.mxu1 %v30458_v28  ;;  %11207 = vmatprep.subr.mxu0 %v30459_v52 }
0x1120   :  { %25665 = vmatprep.subr.mxu1 %v30274_v16  ;;  %11211 = vmatpush1.msra.mxu0 %v30460_v61  ;;  %v11401_v61 = vand.u32 4294901760, %v11400_v43  ;;  %v30464_v43 = vld [vmem:[#allocation84_spill] sm:$0xff] }
0x1121   :  { %11244 = vmatprep.mubr.f32.mxu0 %v30274_v16  ;;  %25666 = vmatpush3.msra.mxu1 %v30461_v31 }
0x1122   :  { %25667 = vmatprep.mubr.msk.f32.mxu1 %vm26975_vm0, %v30274_v16  ;;  %11246 = vmatmul.mubr.f32.vlgmr.msra.gmra.mxu0 %v28431_v15  ;;  %v30462_v15 = vld [vmem:[#allocation78_spill] sm:$0xff] }
0x1123   :  { %25642 = vmatprep.subr.mxu0 %v30274_v16  ;;  %25668 = vmatmul.mubr.f32.vlgmr.msra.gmra.mxu1 %v11399_v13  ;;  %v30463_v13 = vld [vmem:[#allocation79_spill] sm:$0xff] }
0x1124   :  { %25677 = vmatprep.subr.mxu1 %v30274_v16  ;;  %25643 = vmatpush3.msra.mxu0 %v30458_v28 }
0x1125   :  { %25678 = vmatpush3.msra.mxu1 %v30458_v28  ;;  %25644 = vmatprep.subr.mxu0 %v30274_v16 }
0x1126   :  { %25679 = vmatprep.subr.mxu1 %v30274_v16  ;;  %25645 = vmatpush3.msra.mxu0 %v30461_v31 }
0x1127   :  { %25646 = vmatprep.mubr.msk.f32.mxu0 %vm26975_vm0, %v30274_v16  ;;  %25680 = vmatpush3.msra.mxu1 %v30461_v31  ;;  %v30467_v31 = vld [vmem:[#allocation85_spill] sm:$0xff] }
0x1128   :  { %25681 = vmatprep.mubr.msk.f32.mxu1 %vm26975_vm0, %v30274_v16  ;;  %25647 = vmatmul.mubr.f32.vlgmr.msra.gmra.mxu0 %v11401_v61  ;;  %v30465_v61 = vld [vmem:[#allocation80_spill] sm:$0xff] }
0x1129   :  { %25656 = vmatprep.subr.mxu0 %v30274_v16  ;;  %25682 = vmatmul.mubr.f32.vlgmr.msra.gmra.mxu1 %v11397_v32 }
0x112a   :  { %25657 = vmatpush3.msra.mxu0 %v30462_v15  ;;  %25660 = vmatprep.mubr.msk.f32.mxu0 %vm26975_vm0, %v30274_v16  ;;  %v30466_v15 = vld [vmem:[#allocation81_spill] sm:$0xff] }
0x112b   :  { %25658 = vmatprep.subr.mxu0 %v30274_v16  ;;  %25691 = vmatprep.subr.mxu1 %v30274_v16 }
0x112c   :  { %25659 = vmatpush3.msra.mxu0 %v30463_v13  ;;  %25692 = vmatpush3.msra.mxu1 %v30464_v43  ;;  %v30468_v13 = vld [vmem:[#allocation93_spill] sm:$0xff] }
0x112d   :  { %25661 = vmatmul.mubr.f32.vlgmr.msra.gmra.mxu0 %v11398_v20  ;;  %25670 = vmatprep.subr.mxu0 %v30274_v16 }
0x112e   :  { %25671 = vmatpush3.msra.mxu0 %v30465_v61  ;;  %25674 = vmatprep.mubr.msk.f32.mxu0 %vm26975_vm0, %v30274_v16 }
0x112f   :  { %25672 = vmatprep.subr.mxu0 %v30274_v16  ;;  %25693 = vmatprep.subr.mxu1 %v30274_v16 }
0x1130   :  { %25673 = vmatpush3.msra.mxu0 %v30466_v15  ;;  %25694 = vmatpush3.msra.mxu1 %v30467_v31 }
0x1131   :  { %25675 = vmatmul.mubr.f32.vlgmr.msra.gmra.mxu0 %v11397_v32  ;;  %25695 = vmatprep.mubr.msk.f32.mxu1 %vm26975_vm0, %v30274_v16 }
0x1132   :  { %25705 = vmatprep.subr.mxu1 %v30274_v16  ;;  %25684 = vmatprep.subr.mxu0 %v30274_v16 }
0x1133   :  { %25685 = vmatpush3.msra.mxu0 %v27597_v46  ;;  %25688 = vmatprep.mubr.msk.f32.mxu0 %vm26975_vm0, %v30274_v16 }
0x1134   :  { %25686 = vmatprep.subr.mxu0 %v30274_v16 }
0x1135   :  { %25687 = vmatpush3.msra.mxu0 %v27599_v41 }
0x1136   :  { %25698 = vmatprep.subr.mxu0 %v30274_v16 }
0x11bd   :  { %v10512_v20 = vpop.f32.mrf.mxu1 }
0x11bf   :  { %v25613_v32 = vpop.f32.mrf.mxu1 }
0x11c1   :  { %v10663_v31 = vpop.f32.mrf.mxu1 }
0x11c3   :  { %v25627_v15 = vpop.f32.mrf.mxu1 }
0x11c5   :  { %v10431_v61 = vpop.f32.mrf.mxu0  ;;  %v10813_v43 = vpop.f32.mrf.mxu1 }
0x11c6   :  { %v10432_v52 = vadd.f32 %v30468_v13, %v10431_v61 }
0x11c7   :  { %v25606_v28 = vpop.f32.mrf.mxu0  ;;  %v25641_v19 = vpop.f32.mrf.mxu1 }
0x11c8   :  { %v10513_v49 = vadd.f32 %v10512_v20, %v10432_v52 }
0x11ca   :  { %v10588_v47 = vpop.f32.mrf.mxu0 }
0x11cb   :  { %v10589_v38 = vadd.f32 %v10588_v47, %v10513_v49  ;;  %v11004_v22 = vpop.f32.mrf.mxu1 }
0x11cc   :  { %v25620_v59 = vpop.f32.mrf.mxu0 }
0x11cd   :  { %v11006_v3 = vpop.f32.mrf.mxu1  ;;  %v10664_v42 = vadd.f32 %v10663_v31, %v10589_v38 }
0x11d0   :  { %v10740_v45 = vpop.f32.mrf.mxu0 }
0x11d1   :  { %v10741_v63 = vadd.f32 %v10740_v45, %v10664_v42  ;;  %v11163_v57 = vpop.f32.mrf.mxu1 }
0x11d2   :  { %v25634_v62 = vpop.f32.mrf.mxu0 }
0x11d3   :  { %v28533_v32 = vadd.f32 %v10813_v43, %v10741_v63  ;;  %v11165_v15 = vpop.f32.mrf.mxu1 }
0x11d5   :  { %30469 = vst [vmem:[#allocation93_spill] sm:$0xff] %v28533_v32 }
0x11d6   :  { %v10912_v7 = vpop.f32.mrf.mxu0 }
0x11d7   :  { %v11005_v14 = vadd.f32 %v11004_v22, %v10912_v7  ;;  %v11323_v0 = vpop.f32.mrf.mxu1 }
0x11d8   :  { %v10914_v13 = vpop.f32.mrf.mxu0 }
0x11d9   :  { %v11325_v28 = vpop.f32.mrf.mxu1  ;;  %v11007_v52 = vadd.f32 %v11006_v3, %v10914_v13 }
0x11dc   :  { %v11085_v19 = vpop.f32.mrf.mxu0 }
0x11dd   :  { %v11086_v61 = vadd.f32 %v11085_v19, %v11005_v14  ;;  %v11484_v47 = vpop.f32.mrf.mxu1 }
0x11de   :  { %v11087_v49 = vpop.f32.mrf.mxu0 }
0x11df   :  { %v11088_v59 = vadd.f32 %v11087_v49, %v11007_v52  ;;  %v25655_v20 = vpop.f32.mrf.mxu1  ;;  %v11164_v38 = vadd.f32 %v11163_v57, %v11086_v61 }
0x11e1   :  { %v11166_v31 = vadd.f32 %v11165_v15, %v11088_v59 }
0x11e2   :  { %v11247_v45 = vpop.f32.mrf.mxu0 }
0x11e3   :  { %v11248_v42 = vadd.f32 %v11247_v45, %v11164_v38  ;;  %v11635_v62 = vpop.f32.mrf.mxu1 }
0x11e4   :  { %v11249_v63 = vpop.f32.mrf.mxu0 }
0x11e5   :  { %v11250_v43 = vadd.f32 %v11249_v63, %v11166_v31  ;;  %v25669_v36 = vpop.f32.mrf.mxu1  ;;  %v28535_v37 = vadd.f32 %v11323_v0, %v11248_v42 }
0x11e7   :  { %v11326_v7 = vadd.f32 %v11325_v28, %v11250_v43 }
0x11e8   :  { %v11403_v22 = vpop.f32.mrf.mxu0 }
0x11e9   :  { %v11404_v24 = vadd.f32 %v11403_v22, %v11326_v7  ;;  %v11785_v35 = vpop.f32.mrf.mxu1 }
0x11ea   :  { %v25648_v3 = vpop.f32.mrf.mxu0 }
0x11eb   :  { %v25683_v14 = vpop.f32.mrf.mxu1  ;;  %v11485_v13 = vadd.f32 %v11484_v47, %v11404_v24  ;;  %v12316_v3 = vld [vmem:[#allocation7 + $0x20] sm:$0xff] }
0x11ec   :  { %v12333_v14 = vsel %vm219_vm1, %v12316_v3, 0 }
0x11ed   :  { %v11560_v19 = vpop.f32.mrf.mxu0 }
0x11ee   :  { %v11561_v52 = vadd.f32 %v11560_v19, %v11485_v13  ;;  %v12402_v13 = vand.u32 4294901760, %v12333_v14 }
0x11ef   :  { %v25662_v49 = vpop.f32.mrf.mxu0 }
0x11f0   :  { %v11636_v57 = vadd.f32 %v11635_v62, %v11561_v52  ;;  %v30471_v62 = vsub.f32 1.0, %v28404_v51  ;;  %v12403_v19 = vsub.f32 %v12333_v14, %v12402_v13 }
0x11f1   :  { %v11712_v15 = vpop.f32.mrf.mxu0 }
0x11f2   :  { %v11713_v61 = vadd.f32 %v11712_v15, %v11636_v57  ;;  %v12404_v52 = vand.u32 4294901760, %v12403_v19 }
0x11f3   :  { %v25676_v59 = vpop.f32.mrf.mxu0 }
0x11f4   :  { %v11786_v20 = vadd.f32 %v11785_v35, %v11713_v61  ;;  %v12405_v49 = vsub.f32 %v12403_v19, %v12404_v52 }
0x11f6   :  { %v11789_v38 = vadd.f32 %v28240_v48, %v11786_v20  ;;  %v12406_v57 = vand.u32 4294901760, %v12405_v49 }
0x11f8   :  { %v24468_v36 = vmul.f32 -1.442695, %v11789_v38 }
0x11fa   :  { %26545 = vpow2.f32 %v24468_v36 }
0x1207   :  { %v26546_v0 = vpop.eup %26545 }
0x1208   :  { %v11793_v28 = vadd.f32 1.0, %v26546_v0 }
0x120a   :  { %26547 = vrcp.f32 %v11793_v28 }
0x1217   :  { %v26548_v31 = vpop.eup %26547 }
0x1218   :  { %v11797_v45 = vsub.f32 1.0, %v26548_v31  ;;  %v11796_v42 = vmul.f32 %v26548_v31, %v28533_v32 }
0x121a   :  { %v11798_v24 = vmul.f32 %v11797_v45, %v28410_v60 }
0x121c   :  { %v28540_v47 = vadd.f32 %v11798_v24, %v11796_v42 }
0x121e   :  { %30470 = vst [vmem:[#allocation97_spill] sm:$0xff] %v28540_v47  ;;  %v11817_v63 = vmul.f32 %v28540_v47, %v30471_v62  ;;  %11820 = vst.msk [vmem:[#allocation19 + $0x18] sm:$0xff] %vm219_vm1, %v28540_v47 }
0x1220   :  { %v11818_v48 = vadd.f32 %v11817_v63, %v28413_v33 }
0x1222   :  { %11822 = vst.msk [vmem:[#allocation20 + $0x18] sm:$0xff] %vm219_vm1, %v11818_v48  ;;  %v11824_v35 = vsel %vm219_vm1, %v11818_v48, 0 }
0x1223   :  { %v11893_v43 = vand.u32 4294901760, %v11824_v35 }
0x1225   :  { %v11894_v7 = vsub.f32 %v11824_v35, %v11893_v43  ;;  %25696 = vmatmul.mubr.f32.vlgmr.msra.gmra.mxu1 %v11893_v43 }
0x1226   :  { %25706 = vmatpush3.msra.mxu1 %v27597_v46  ;;  %25709 = vmatprep.mubr.msk.f32.mxu1 %vm26975_vm0, %v30274_v16 }
0x1227   :  { %25707 = vmatprep.subr.mxu1 %v30274_v16  ;;  %v11895_v51 = vand.u32 4294901760, %v11894_v7 }
0x1228   :  { %25708 = vmatpush3.msra.mxu1 %v27599_v41 }
0x1229   :  { %25710 = vmatmul.mubr.f32.vlgmr.msra.gmra.mxu1 %v11895_v51  ;;  %25719 = vmatprep.subr.mxu1 %v30274_v16  ;;  %v11896_v33 = vsub.f32 %v11894_v7, %v11895_v51  ;;  %v30472_v51 = vld [vmem:[#allocation89_spill] sm:$0xff] }
0x122a   :  { %25720 = vmatpush3.msra.mxu1 %v27597_v46  ;;  %25723 = vmatprep.mubr.msk.f32.mxu1 %vm26975_vm0, %v30274_v16 }
0x122b   :  { %25721 = vmatprep.subr.mxu1 %v30274_v16  ;;  %v11897_v22 = vand.u32 4294901760, %v11896_v33 }
0x122c   :  { %25722 = vmatpush3.msra.mxu1 %v27599_v41 }
0x122d   :  { %25689 = vmatmul.mubr.f32.vlgmr.msra.gmra.mxu0 %v11897_v22  ;;  %25724 = vmatmul.mubr.f32.vlgmr.msra.gmra.mxu1 %v11893_v43  ;;  %v30473_v22 = vld [vmem:[#allocation96_spill] sm:$0xff] }
0x122e   :  { %25699 = vmatpush3.msra.mxu0 %v27602_v23  ;;  %25702 = vmatprep.mubr.msk.f32.mxu0 %vm26975_vm0, %v30274_v16 }
0x122f   :  { %25700 = vmatprep.subr.mxu0 %v30274_v16  ;;  %25733 = vmatprep.subr.mxu1 %v30274_v16 }
0x1230   :  { %25701 = vmatpush3.msra.mxu0 %v27605_v34  ;;  %25734 = vmatpush3.msra.mxu1 %v27163_v17 }
0x1231   :  { %25703 = vmatmul.mubr.f32.vlgmr.msra.gmra.mxu0 %v11894_v7  ;;  %25712 = vmatprep.subr.mxu0 %v30274_v16 }
0x1232   :  { %25713 = vmatpush3.msra.mxu0 %v27610_v39  ;;  %25716 = vmatprep.mubr.msk.f32.mxu0 %vm26975_vm0, %v30274_v16 }
0x1233   :  { %25714 = vmatprep.subr.mxu0 %v30274_v16  ;;  %25735 = vmatprep.subr.mxu1 %v30274_v16 }
0x1234   :  { %25715 = vmatpush3.msra.mxu0 %v27613_v10  ;;  %25736 = vmatpush3.msra.mxu1 %v27165_v18 }
0x1235   :  { %25717 = vmatmul.mubr.f32.vlgmr.msra.gmra.mxu0 %v11893_v43  ;;  %25726 = vmatprep.subr.mxu0 %v30274_v16 }
0x1236   :  { %25727 = vmatpush3.msra.mxu0 %v27138_v4  ;;  %25730 = vmatprep.mubr.msk.f32.mxu0 %vm26975_vm0, %v30274_v16 }
0x1237   :  { %25728 = vmatprep.subr.mxu0 %v30274_v16  ;;  %25737 = vmatprep.mubr.msk.f32.mxu1 %vm26975_vm0, %v30274_v16 }
0x1238   :  { %25729 = vmatpush3.msra.mxu0 %v27140_v5  ;;  %25747 = vmatprep.subr.mxu1 %v30274_v16 }
0x1239   :  { %25740 = vmatprep.subr.mxu0 %v30274_v16  ;;  %25738 = vmatmul.mubr.f32.vlgmr.msra.gmra.mxu1 %v12402_v13 }
0x123a   :  { %25748 = vmatpush3.msra.mxu1 %v27138_v4  ;;  %25751 = vmatprep.mubr.msk.f32.mxu1 %vm26975_vm0, %v30274_v16 }
0x123b   :  { %25749 = vmatprep.subr.mxu1 %v30274_v16  ;;  %25731 = vmatmul.mubr.f32.vlgmr.msra.gmra.mxu0 %v12406_v57 }
0x123c   :  { %25750 = vmatpush3.msra.mxu1 %v27140_v5  ;;  %25741 = vmatpush3.msra.mxu0 %v27145_v8 }
0x123d   :  { %25752 = vmatmul.mubr.f32.vlgmr.msra.gmra.mxu1 %v12404_v52  ;;  %25761 = vmatprep.subr.mxu1 %v30274_v16 }
0x123e   :  { %25762 = vmatpush3.msra.mxu1 %v27138_v4  ;;  %25765 = vmatprep.mubr.msk.f32.mxu1 %vm26975_vm0, %v30274_v16 }
0x123f   :  { %25763 = vmatprep.subr.mxu1 %v30274_v16  ;;  %25744 = vmatprep.mubr.msk.f32.mxu0 %vm26975_vm0, %v30274_v16 }
0x1240   :  { %25764 = vmatpush3.msra.mxu1 %v27140_v5  ;;  %25742 = vmatprep.subr.mxu0 %v30274_v16 }
0x1241   :  { %25766 = vmatmul.mubr.f32.vlgmr.msra.gmra.mxu1 %v12402_v13  ;;  %12921 = vmatprep.subr.mxu1 %v27256_v50 }
0x1242   :  { %25743 = vmatpush3.msra.mxu0 %v27148_v9  ;;  %12927 = vmatpush1.msra.mxu1 %v27266_v54 }
0x1243   :  { %25745 = vmatmul.mubr.f32.vlgmr.msra.gmra.mxu0 %v12403_v19  ;;  %25754 = vmatprep.subr.mxu0 %v30274_v16 }
0x1244   :  { %25755 = vmatpush3.msra.mxu0 %v27153_v11  ;;  %25758 = vmatprep.mubr.msk.f32.mxu0 %vm26975_vm0, %v30274_v16 }
0x1245   :  { %25756 = vmatprep.subr.mxu0 %v30274_v16  ;;  %12933 = vmatprep.subr.mxu1 %v27268_v55 }
0x1246   :  { %25757 = vmatpush3.msra.mxu0 %v27156_v12  ;;  %12939 = vmatpush1.msra.mxu1 %v27270_v56 }
0x1247   :  { %25759 = vmatmul.mubr.f32.vlgmr.msra.gmra.mxu0 %v12402_v13  ;;  %12945 = vmatprep.subr.mxu1 %v27276_v58 }
0x1248   :  { %12951 = vmatpush1.msra.mxu1 %v27296_v1  ;;  %12833 = vmatprep.subr.mxu0 %v27195_v21 }
0x1249   :  { %12957 = vmatprep.subr.mxu1 %v27299_v2  ;;  %12996 = vmatprep.mubr.f32.mxu1 %v30274_v16 }
0x124a   :  { %12963 = vmatpush1.msra.mxu1 %v27305_v6  ;;  %12835 = vmatpush1.msra.mxu0 %v27197_v25 }
0x124b   :  { %13118 = vmatprep.subr.mxu1 %v27195_v21  ;;  %12837 = vmatprep.subr.mxu0 %v27199_v26 }
0x124c   :  { %12839 = vmatpush1.msra.mxu0 %v27201_v27  ;;  %12880 = vmatprep.mubr.f32.mxu0 %v30274_v16 }
0x124d   :  { %12841 = vmatprep.subr.mxu0 %v27206_v30 }
0x124e   :  { %12843 = vmatpush1.msra.mxu0 %v27235_v40 }
0x124f   :  { %12845 = vmatprep.subr.mxu0 %v27243_v44 }
0x1250   :  { %12847 = vmatpush1.msra.mxu0 %v27263_v53 }
0x1251   :  { %13030 = vmatprep.subr.mxu0 %v27204_v29 }
0x12e5   :  { %v11980_v15 = vpop.f32.mrf.mxu1 }
0x12e7   :  { %v25697_v61 = vpop.f32.mrf.mxu1 }
0x12e8   :  { %v28636_v61 = vld [vmem:[%s30023_s5] ss:$0 sm:$0xff] }
0x12e9   :  { %v12131_v59 = vpop.f32.mrf.mxu1  ;;  %30474 = vst [vmem:[#allocation89_spill] sm:$0xff] %v28636_v61 }
0x12eb   :  { %v25711_v20 = vpop.f32.mrf.mxu1 }
0x12ed   :  { %v11899_v38 = vpop.f32.mrf.mxu0  ;;  %v12281_v36 = vpop.f32.mrf.mxu1 }
0x12ee   :  { %v11900_v0 = vadd.f32 %v11899_v38, %v28535_v37 }
0x12ef   :  { %v25690_v28 = vpop.f32.mrf.mxu0  ;;  %v25725_v31 = vpop.f32.mrf.mxu1 }
0x12f0   :  { %v11981_v45 = vadd.f32 %v11980_v15, %v11900_v0 }
0x12f1   :  { %v12056_v42 = vpop.f32.mrf.mxu0 }
0x12f2   :  { %v12057_v24 = vadd.f32 %v12056_v42, %v11981_v45 }
0x12f3   :  { %v25704_v62 = vpop.f32.mrf.mxu0 }
0x12f4   :  { %v12132_v63 = vadd.f32 %v12131_v59, %v12057_v24 }
0x12f5   :  { %v12208_v48 = vpop.f32.mrf.mxu0 }
0x12f6   :  { %v12209_v35 = vadd.f32 %v12208_v48, %v12132_v63 }
0x12f7   :  { %v25718_v43 = vpop.f32.mrf.mxu0 }
0x12f8   :  { %v12282_v7 = vadd.f32 %v12281_v36, %v12209_v35 }
0x12f9   :  { %v12489_v37 = vpop.f32.mrf.mxu1 }
0x12fa   :  { %v12285_v33 = vadd.f32 %v12282_v7, %v30472_v51 }
0x12fb   :  { %v25739_v13 = vpop.f32.mrf.mxu1  ;;  %v12408_v57 = vpop.f32.mrf.mxu0 }
0x12fc   :  { %v12286_v3 = vadd.f32 %v30473_v22, %v12285_v33  ;;  %v12409_v59 = vadd.f32 %v28636_v61, %v12408_v57 }
0x12fd   :  { %v12640_v19 = vpop.f32.mrf.mxu1  ;;  %v25732_v20 = vpop.f32.mrf.mxu0 }
0x12fe   :  { %26549 = vtanh.f32 %v12286_v3  ;;  %v24469_v52 = vmul.f32 -1.442695, %v12286_v3  ;;  %v12490_v36 = vadd.f32 %v12489_v37, %v12409_v59  ;;  %v30475_v37 = vld [vmem:[#allocation90_spill] sm:$0xff] }
0x12ff   :  { %v25753_v49 = vpop.f32.mrf.mxu1 }
0x1300   :  { %26551 = vpow2.f32 %v24469_v52 }
0x1301   :  { %v12790_v15 = vpop.f32.mrf.mxu1 }
0x1303   :  { %v25767_v38 = vpop.f32.mrf.mxu1  ;;  %v12565_v0 = vpop.f32.mrf.mxu0 }
0x1304   :  { %v12566_v28 = vadd.f32 %v12565_v0, %v12490_v36 }
0x1305   :  { %v25746_v31 = vpop.f32.mrf.mxu0 }
0x1306   :  { %v12641_v45 = vadd.f32 %v12640_v19, %v12566_v28 }
0x1307   :  { %v12717_v42 = vpop.f32.mrf.mxu0 }
0x1308   :  { %v12718_v24 = vadd.f32 %v12717_v42, %v12641_v45 }
0x1309   :  { %v25760_v62 = vpop.f32.mrf.mxu0 }
0x130a   :  { %v12791_v63 = vadd.f32 %v12790_v15, %v12718_v24  ;;  %v30477_v24 = vld [vmem:[#allocation34_spill] sm:$0xff]  ;;  %v30478_v62 = vld [vmem:[#allocation35_spill] sm:$0xff] }
0x130b   :  { %v26550_v14 = vpop.eup %26549 }
0x130c   :  { %12296 = vrot.lane.b32.xlu0 %v26550_v14, %s26977_s4  ;;  %v12794_v48 = vmax.f32 %v12791_v63, 0.0  ;;  %v30479_v63 = vld [vmem:[#allocation36_spill] sm:$0xff] }
0x130d   :  { %v26552_v35 = vpop.eup %26551 }
0x130e   :  { %v12290_v43 = vadd.f32 1.0, %v26552_v35  ;;  %v12795_v7 = vsub.f32 0.0, %v12794_v48  ;;  %v30480_v48 = vld [vmem:[#allocation38_spill] sm:$0xff]  ;;  %v30481_v35 = vld [vmem:[#allocation43_spill] sm:$0xff] }
0x1310   :  { %26553 = vrcp.f32 %v12290_v43  ;;  %v12796_v51 = vmul.f32 1.442695, %v12795_v7  ;;  %v30482_v43 = vld [vmem:[#allocation44_spill] sm:$0xff]  ;;  %v30483_v7 = vld [vmem:[#allocation47_spill] sm:$0xff] }
0x1312   :  { %26555 = vpow2.f32 %v12796_v51  ;;  %v30484_v51 = vld [vmem:[#allocation37_spill] sm:$0xff] }
0x131d   :  { %v26554_v33 = vpop.eup %26553 }
0x131e   :  { %v12294_v13 = vmul.f32 %v26554_v33, %v30475_v37  ;;  %v30489_v37 = vld [vmem:[#allocation42_spill] sm:$0xff] }
0x131f   :  { %v26556_v14 = vpop.eup %26555 }
0x137e   :  { %v12297_v22 = vpop.permute.xlu0 %12296 }
0x137f   :  { %v12299_v3 = vmul.f32 %v26554_v33, %v12297_v22  ;;  %v30486_v22 = vld [vmem:[#allocation40_spill] sm:$0xff] }
0x1381   :  { %12301 = vrot.lane.b32.xlu1 %v12299_v3, %s26978_s9  ;;  %v30487_v3 = vld [vmem:[#allocation41_spill] sm:$0xff] }
0x1385   :  { %12799 = vrot.lane.b32.xlu1 %v26556_v14, %s26976_s28  ;;  %v30488_v14 = vld [vmem:[#allocation56_spill] sm:$0xff] }
0x13f3   :  { %v12302_v19 = vpop.permute.xlu1 %12301 }
0x13f4   :  { %v28642_v52 = vadd.f32 %v12302_v19, %v12294_v13  ;;  %v30490_v13 = vld [vmem:[#allocation45_spill] sm:$0xff] }
0x13f5   :  { %v30491_v19 = vld [vmem:[#allocation57_spill] sm:$0xff] }
0x13f6   :  { %30476 = vst [vmem:[#allocation96_spill] sm:$0xff] %v28642_v52  ;;  %26557 = vtanh.f32 %v28642_v52 }
0x13f7   :  { %v28646_v59 = vpop.permute.xlu1 %12799 }
0x1403   :  { %v26558_v49 = vpop.eup %26557 }
0x1404   :  { %12307 = vrot.lane.b32.xlu0 %v26558_v49, %s26977_s4  ;;  %v30492_v49 = vld [vmem:[#allocation46_spill] sm:$0xff] }
0x1476   :  { %v12308_v57 = vpop.permute.xlu0 %12307 }
0x1477   :  { %v12310_v15 = vmul.f32 %v26554_v33, %v12308_v57  ;;  %v30485_v33 = vld [vmem:[#allocation39_spill] sm:$0xff]  ;;  %v30493_v57 = vld [vmem:[#allocation48_spill] sm:$0xff] }
0x1479   :  { %v12802_v20 = vmul.f32 %v28646_v59, %v12310_v15  ;;  %v30494_v15 = vld [vmem:[#allocation50_spill] sm:$0xff] }
0x147b   :  { %12804 = vrot.lane.b32.xlu0 %v12802_v20, %s26978_s9  ;;  %v30495_v20 = vld [vmem:[#allocation52_spill] sm:$0xff] }
0x14ed   :  { %v12805_v38 = vpop.permute.xlu0 %12804 }
0x14ee   :  { %v12806_v36 = vsel %vm707_vm2, %v12805_v38, 0 }
0x14ef   :  { %v12881_v0 = vand.u32 4294901760, %v12806_v36 }
0x14f1   :  { %v12882_v28 = vsub.f32 %v12806_v36, %v12881_v0  ;;  %12998 = vmatmul.mubr.f32.vlgmr.msra.gmra.mxu1 %v12881_v0 }
0x14f2   :  { %13120 = vmatpush1.msra.mxu1 %v27197_v25  ;;  %13165 = vmatprep.mubr.f32.mxu1 %v30274_v16 }
0x14f3   :  { %v12883_v31 = vand.u32 4294901760, %v12882_v28  ;;  %13122 = vmatprep.subr.mxu1 %v27199_v26 }
0x14f4   :  { %13124 = vmatpush1.msra.mxu1 %v27201_v27 }
0x14f5   :  { %v12884_v45 = vsub.f32 %v12882_v28, %v12883_v31  ;;  %13126 = vmatprep.subr.mxu1 %v27206_v30 }
0x14f6   :  { %13128 = vmatpush1.msra.mxu1 %v27235_v40 }
0x14f7   :  { %v12885_v42 = vand.u32 4294901760, %v12884_v45  ;;  %13130 = vmatprep.subr.mxu1 %v27243_v44 }
0x14f8   :  { %13132 = vmatpush1.msra.mxu1 %v27263_v53 }
0x14f9   :  { %13169 = vmatmul.mubr.f32.vlgmr.msra.gmra.mxu1 %v12883_v31  ;;  %13296 = vmatprep.subr.mxu1 %v27195_v21 }
0x14fa   :  { %12886 = vmatmul.mubr.f32.vlgmr.msra.gmra.mxu0 %v12885_v42  ;;  %13298 = vmatpush1.msra.mxu1 %v27197_v25 }
0x14fb   :  { %13033 = vmatpush1.msra.mxu0 %v30477_v24  ;;  %13300 = vmatprep.subr.mxu1 %v27199_v26 }
0x14fc   :  { %13036 = vmatprep.subr.mxu0 %v30478_v62  ;;  %13302 = vmatpush1.msra.mxu1 %v27201_v27 }
0x14fd   :  { %13039 = vmatpush1.msra.mxu0 %v30479_v63  ;;  %13304 = vmatprep.subr.mxu1 %v27206_v30 }
0x14fe   :  { %13042 = vmatprep.subr.mxu0 %v30480_v48  ;;  %13306 = vmatpush1.msra.mxu1 %v27235_v40 }
0x14ff   :  { %13045 = vmatpush1.msra.mxu0 %v30481_v35  ;;  %13308 = vmatprep.subr.mxu1 %v27243_v44 }
0x1500   :  { %13048 = vmatprep.subr.mxu0 %v30482_v43  ;;  %13084 = vmatprep.mubr.f32.mxu0 %v30274_v16 }
0x1501   :  { %13051 = vmatpush1.msra.mxu0 %v30483_v7  ;;  %13310 = vmatpush1.msra.mxu1 %v27263_v53  ;;  %v12312_v7 = vld [vmem:[#allocation2 + $0x20] sm:$0xff] }
0x1502   :  { %13343 = vmatprep.mubr.f32.mxu1 %v30274_v16  ;;  %13087 = vmatmul.mubr.f32.vlgmr.msra.gmra.mxu0 %v12882_v28 }
0x1503   :  { %13202 = vmatprep.subr.mxu0 %v30484_v51  ;;  %13345 = vmatmul.mubr.f32.vlgmr.msra.gmra.mxu1 %v12881_v0 }
0x1504   :  { %13206 = vmatpush1.msra.mxu0 %v30485_v33  ;;  %13263 = vmatprep.mubr.f32.mxu0 %v30274_v16 }
0x1505   :  { %13210 = vmatprep.subr.mxu0 %v30486_v22  ;;  %25775 = vmatprep.subr.mxu1 %v30274_v16  ;;  %v28699_v22 = vld [vmem:[#allocation5 + $0x20] sm:$0xff] }
0x1506   :  { %13214 = vmatpush1.msra.mxu0 %v30487_v3  ;;  %25776 = vmatpush3.msra.mxu1 %v30488_v14 }
0x1507   :  { %13218 = vmatprep.subr.mxu0 %v30489_v37  ;;  %25777 = vmatprep.subr.mxu1 %v30274_v16 }
0x1508   :  { %13222 = vmatpush1.msra.mxu0 %v30490_v13  ;;  %25778 = vmatpush3.msra.mxu1 %v30491_v19 }
0x1509   :  { %13226 = vmatprep.subr.mxu0 %v30492_v49  ;;  %25779 = vmatprep.mubr.msk.f32.mxu1 %vm26975_vm0, %v30274_v16 }
0x150a   :  { %13230 = vmatpush1.msra.mxu0 %v30493_v57  ;;  %25789 = vmatprep.subr.mxu1 %v30274_v16 }
0x150b   :  { %13265 = vmatmul.mubr.f32.vlgmr.msra.gmra.mxu0 %v12881_v0  ;;  %25768 = vmatprep.subr.mxu0 %v30274_v16 }
0x150c   :  { %25769 = vmatpush3.msra.mxu0 %v30494_v15  ;;  %25772 = vmatprep.mubr.msk.f32.mxu0 %vm26975_vm0, %v30274_v16 }
0x150d   :  { %25770 = vmatprep.subr.mxu0 %v30274_v16 }
0x150e   :  { %25771 = vmatpush3.msra.mxu0 %v30495_v20 }
0x150f   :  { %25782 = vmatprep.subr.mxu0 %v30274_v16 }
0x15b1   :  { %v12999_v38 = vpop.f32.mrf.mxu1 }
0x15b3   :  { %v13001_v45 = vpop.f32.mrf.mxu1 }
0x15b9   :  { %v13170_v32 = vpop.f32.mrf.mxu1 }
0x15ba   :  { %v12887_v36 = vpop.f32.mrf.mxu0 }
0x15bb   :  { %v13000_v28 = vadd.f32 %v12999_v38, %v12887_v36  ;;  %v13172_v19 = vpop.f32.mrf.mxu1 }
0x15bc   :  { %v12889_v31 = vpop.f32.mrf.mxu0 }
0x15bd   :  { %v13002_v57 = vadd.f32 %v13001_v45, %v12889_v31  ;;  %v30498_v31 = vld [vmem:[#allocation72_spill] sm:$0xff]  ;;  %v30499_v45 = vld [vmem:[#allocation51_spill] sm:$0xff] }
0x15c2   :  { %v13088_v42 = vpop.f32.mrf.mxu0 }
0x15c3   :  { %v13089_v0 = vadd.f32 %v13088_v42, %v13000_v28  ;;  %v13346_v13 = vpop.f32.mrf.mxu1  ;;  %v30188_v28 = vsub.f32 1.0, %v28699_v22 }
0x15c4   :  { %v13090_v47 = vpop.f32.mrf.mxu0 }
0x15c5   :  { %v13171_v60 = vadd.f32 %v13170_v32, %v13089_v0  ;;  %v13091_v49 = vadd.f32 %v13090_v47, %v13002_v57  ;;  %v13348_v36 = vpop.f32.mrf.mxu1  ;;  %v28707_v32 = vld [vmem:[%s30025_s7] ss:$0 sm:$0xff] }
0x15c6   :  { %30496 = vst [vmem:[#allocation90_spill] sm:$0xff] %v28707_v32  ;;  %v30500_v0 = vld [vmem:[#allocation73_spill] sm:$0xff] }
0x15c7   :  { %v13173_v3 = vadd.f32 %v13172_v19, %v13091_v49 }
0x15cb   :  { %v13266_v37 = vpop.f32.mrf.mxu0 }
0x15cc   :  { %v13267_v14 = vadd.f32 %v13266_v37, %v13171_v60  ;;  %v28713_v60 = vmul.f32 %v28699_v22, %v12312_v7  ;;  %v13853_v7 = vsel %vm219_vm1, %v28699_v22, 0 }
0x15cd   :  { %v13268_v33 = vpop.f32.mrf.mxu0  ;;  %v28731_v49 = vand.u32 4294901760, %v13853_v7 }
0x15ce   :  { %v28701_v51 = vadd.f32 %v13346_v13, %v13267_v14  ;;  %v13269_v38 = vadd.f32 %v13268_v33, %v13173_v3 }
0x15cf   :  { %v13925_v42 = vsub.f32 %v13853_v7, %v28731_v49  ;;  %v30506_v7 = vld [vmem:[#allocation60_spill] sm:$0xff] }
0x15d0   :  { %v13349_v43 = vadd.f32 %v13348_v36, %v13269_v38  ;;  %v30501_v38 = vld [vmem:[#allocation74_spill] sm:$0xff] }
0x15d1   :  { %v30502_v36 = vld [vmem:[#allocation54_spill] sm:$0xff] }
0x15d2   :  { %v28710_v47 = vadd.f32 %v28707_v32, %v13349_v43 }
0x15d4   :  { %30497 = vst [vmem:[#allocation98_spill] sm:$0xff] %v28710_v47  ;;  %v13371_v33 = vmul.f32 %v30188_v28, %v28710_v47 }
0x15d6   :  { %v13372_v3 = vadd.f32 %v13371_v33, %v28713_v60  ;;  %v30503_v33 = vld [vmem:[#allocation75_spill] sm:$0xff] }
0x15d8   :  { %v13374_v14 = vsel %vm219_vm1, %v13372_v3, 0  ;;  %v13926_v3 = vand.u32 4294901760, %v13925_v42 }
0x15d9   :  { %v13443_v37 = vand.u32 4294901760, %v13374_v14 }
0x15da   :  { %v13927_v28 = vsub.f32 %v13925_v42, %v13926_v3 }
0x15db   :  { %v13444_v13 = vsub.f32 %v13374_v14, %v13443_v37  ;;  %25780 = vmatmul.mubr.f32.vlgmr.msra.gmra.mxu1 %v13443_v37  ;;  %v30504_v14 = vld [vmem:[#allocation59_spill] sm:$0xff] }
0x15dc   :  { %25790 = vmatpush3.msra.mxu1 %v30494_v15  ;;  %25793 = vmatprep.mubr.msk.f32.mxu1 %vm26975_vm0, %v30274_v16 }
0x15dd   :  { %25791 = vmatprep.subr.mxu1 %v30274_v16  ;;  %v13445_v43 = vand.u32 4294901760, %v13444_v13 }
0x15de   :  { %25792 = vmatpush3.msra.mxu1 %v30495_v20 }
0x15df   :  { %25794 = vmatmul.mubr.f32.vlgmr.msra.gmra.mxu1 %v13445_v43  ;;  %25803 = vmatprep.subr.mxu1 %v30274_v16  ;;  %v13446_v19 = vsub.f32 %v13444_v13, %v13445_v43  ;;  %v30505_v43 = vld [vmem:[#allocation53_spill] sm:$0xff] }
0x15e0   :  { %25804 = vmatpush3.msra.mxu1 %v30494_v15  ;;  %25807 = vmatprep.mubr.msk.f32.mxu1 %vm26975_vm0, %v30274_v16 }
0x15e1   :  { %25805 = vmatprep.subr.mxu1 %v30274_v16  ;;  %v13447_v57 = vand.u32 4294901760, %v13446_v19  ;;  %v30507_v19 = vld [vmem:[#allocation62_spill] sm:$0xff] }
0x15e2   :  { %25806 = vmatpush3.msra.mxu1 %v30495_v20 }
0x15e3   :  { %25773 = vmatmul.mubr.f32.vlgmr.msra.gmra.mxu0 %v13447_v57  ;;  %25808 = vmatmul.mubr.f32.vlgmr.msra.gmra.mxu1 %v13443_v37  ;;  %v30508_v57 = vld [vmem:[#allocation55_spill] sm:$0xff] }
0x15e4   :  { %13968 = vmatprep.subr.mxu1 %v30498_v31  ;;  %25783 = vmatpush3.msra.mxu0 %v30499_v45 }
0x15e5   :  { %13974 = vmatpush1.msra.mxu1 %v30500_v0  ;;  %25784 = vmatprep.subr.mxu0 %v30274_v16 }
0x15e6   :  { %13980 = vmatprep.subr.mxu1 %v30501_v38  ;;  %25785 = vmatpush3.msra.mxu0 %v30502_v36 }
0x15e7   :  { %25786 = vmatprep.mubr.msk.f32.mxu0 %vm26975_vm0, %v30274_v16  ;;  %13986 = vmatpush1.msra.mxu1 %v30503_v33 }
0x15e8   :  { %14019 = vmatprep.mubr.f32.mxu1 %v30274_v16  ;;  %25787 = vmatmul.mubr.f32.vlgmr.msra.gmra.mxu0 %v13444_v13  ;;  %v30509_v13 = vld [vmem:[#allocation63_spill] sm:$0xff] }
0x15e9   :  { %25796 = vmatprep.subr.mxu0 %v30274_v16  ;;  %14021 = vmatmul.mubr.f32.vlgmr.msra.gmra.mxu1 %v28731_v49 }
0x15ea   :  { %14137 = vmatprep.subr.mxu1 %v30504_v14  ;;  %25797 = vmatpush3.msra.mxu0 %v30505_v43  ;;  %v13928_v43 = vand.u32 4294901760, %v13927_v28  ;;  %v30510_v28 = vld [vmem:[#allocation64_spill] sm:$0xff] }
0x15eb   :  { %14139 = vmatpush1.msra.mxu1 %v30506_v7  ;;  %25798 = vmatprep.subr.mxu0 %v30274_v16 }
0x15ec   :  { %14141 = vmatprep.subr.mxu1 %v30507_v19  ;;  %25799 = vmatpush3.msra.mxu0 %v30508_v57  ;;  %v14346_v57 = vsel %vm219_vm1, %v28646_v59, 0  ;;  %v30511_v59 = vld [vmem:[#allocation65_spill] sm:$0xff] }
0x15ed   :  { %25800 = vmatprep.mubr.msk.f32.mxu0 %vm26975_vm0, %v30274_v16  ;;  %14143 = vmatpush1.msra.mxu1 %v30509_v13 }
0x15ee   :  { %14176 = vmatprep.mubr.f32.mxu1 %v30274_v16  ;;  %25801 = vmatmul.mubr.f32.vlgmr.msra.gmra.mxu0 %v13443_v37  ;;  %v14415_v37 = vand.u32 4294901760, %v14346_v57 }
0x15ef   :  { %13884 = vmatprep.subr.mxu0 %v30504_v14  ;;  %14180 = vmatmul.mubr.f32.vlgmr.msra.gmra.mxu1 %v13926_v3  ;;  %v30512_v3 = vld [vmem:[#allocation82_spill] sm:$0xff] }
0x15f0   :  { %14299 = vmatprep.subr.mxu1 %v30504_v14  ;;  %13886 = vmatpush1.msra.mxu0 %v30506_v7 }
0x15f1   :  { %14301 = vmatpush1.msra.mxu1 %v30506_v7  ;;  %13888 = vmatprep.subr.mxu0 %v30507_v19  ;;  %v14416_v7 = vsub.f32 %v14346_v57, %v14415_v37  ;;  %v30518_v57 = vld [vmem:[#allocation76_spill] sm:$0xff] }
0x15f2   :  { %14303 = vmatprep.subr.mxu1 %v30507_v19  ;;  %13890 = vmatpush1.msra.mxu0 %v30509_v13  ;;  %v30513_v19 = vld [vmem:[#allocation66_spill] sm:$0xff] }
0x15f3   :  { %13923 = vmatprep.mubr.f32.mxu0 %v30274_v16  ;;  %14305 = vmatpush1.msra.mxu1 %v30509_v13  ;;  %v30514_v13 = vld [vmem:[#allocation67_spill] sm:$0xff] }
0x15f4   :  { %14338 = vmatprep.mubr.f32.mxu1 %v30274_v16  ;;  %13929 = vmatmul.mubr.f32.vlgmr.msra.gmra.mxu0 %v13928_v43  ;;  %v30515_v43 = vld [vmem:[#allocation83_spill] sm:$0xff] }
0x15f5   :  { %14057 = vmatprep.subr.mxu0 %v30510_v28  ;;  %14340 = vmatmul.mubr.f32.vlgmr.msra.gmra.mxu1 %v28731_v49  ;;  %v30516_v28 = vld [vmem:[#allocation68_spill] sm:$0xff] }
0x15f6   :  { %25817 = vmatprep.subr.mxu1 %v30274_v16  ;;  %14060 = vmatpush1.msra.mxu0 %v30511_v59  ;;  %v14417_v59 = vand.u32 4294901760, %v14416_v7 }
0x15f7   :  { %25818 = vmatpush3.msra.mxu1 %v30512_v3  ;;  %14063 = vmatprep.subr.mxu0 %v30513_v19  ;;  %v30517_v19 = vld [vmem:[#allocation69_spill] sm:$0xff]  ;;  %v30519_v3 = vld [vmem:[#allocation70_spill] sm:$0xff] }
0x15f8   :  { %25819 = vmatprep.subr.mxu1 %v30274_v16  ;;  %14066 = vmatpush1.msra.mxu0 %v30514_v13  ;;  %v30520_v13 = vld [vmem:[#allocation71_spill] sm:$0xff] }
0x15f9   :  { %14099 = vmatprep.mubr.f32.mxu0 %v30274_v16  ;;  %25820 = vmatpush3.msra.mxu1 %v30515_v43  ;;  %v30521_v43 = vld [vmem:[#allocation77_spill] sm:$0xff] }
0x15fa   :  { %25821 = vmatprep.mubr.msk.f32.mxu1 %vm26975_vm0, %v30274_v16  ;;  %14102 = vmatmul.mubr.f32.vlgmr.msra.gmra.mxu0 %v13925_v42  ;;  %v14418_v42 = vsub.f32 %v14416_v7, %v14417_v59 }
0x15fb   :  { %14217 = vmatprep.subr.mxu0 %v30516_v28  ;;  %25822 = vmatmul.mubr.f32.vlgmr.msra.gmra.mxu1 %v14415_v37 }
0x15fc   :  { %25831 = vmatprep.subr.mxu1 %v30274_v16  ;;  %14221 = vmatpush1.msra.mxu0 %v30517_v19 }
0x15fd   :  { %25832 = vmatpush3.msra.mxu1 %v30518_v57  ;;  %14225 = vmatprep.subr.mxu0 %v30519_v3 }
0x15fe   :  { %25833 = vmatprep.subr.mxu1 %v30274_v16  ;;  %14229 = vmatpush1.msra.mxu0 %v30520_v13  ;;  %v14419_v13 = vand.u32 4294901760, %v14418_v42  ;;  %v30524_v42 = vld [vmem:[#allocation84_spill] sm:$0xff] }
0x15ff   :  { %14262 = vmatprep.mubr.f32.mxu0 %v30274_v16  ;;  %25834 = vmatpush3.msra.mxu1 %v30521_v43 }
0x1600   :  { %25835 = vmatprep.mubr.msk.f32.mxu1 %vm26975_vm0, %v30274_v16  ;;  %14264 = vmatmul.mubr.f32.vlgmr.msra.gmra.mxu0 %v28731_v49  ;;  %v30522_v49 = vld [vmem:[#allocation78_spill] sm:$0xff] }
0x1601   :  { %25810 = vmatprep.subr.mxu0 %v30274_v16  ;;  %25836 = vmatmul.mubr.f32.vlgmr.msra.gmra.mxu1 %v14417_v59  ;;  %v30523_v59 = vld [vmem:[#allocation79_spill] sm:$0xff] }
0x1602   :  { %25845 = vmatprep.subr.mxu1 %v30274_v16  ;;  %25811 = vmatpush3.msra.mxu0 %v30518_v57 }
0x1603   :  { %25846 = vmatpush3.msra.mxu1 %v30518_v57  ;;  %25812 = vmatprep.subr.mxu0 %v30274_v16 }
0x1604   :  { %25847 = vmatprep.subr.mxu1 %v30274_v16  ;;  %25813 = vmatpush3.msra.mxu0 %v30521_v43 }
0x1605   :  { %25814 = vmatprep.mubr.msk.f32.mxu0 %vm26975_vm0, %v30274_v16  ;;  %25848 = vmatpush3.msra.mxu1 %v30521_v43  ;;  %v30527_v43 = vld [vmem:[#allocation85_spill] sm:$0xff] }
0x1606   :  { %25849 = vmatprep.mubr.msk.f32.mxu1 %vm26975_vm0, %v30274_v16  ;;  %25815 = vmatmul.mubr.f32.vlgmr.msra.gmra.mxu0 %v14419_v13  ;;  %v30525_v13 = vld [vmem:[#allocation80_spill] sm:$0xff] }
0x1607   :  { %25824 = vmatprep.subr.mxu0 %v30274_v16  ;;  %25850 = vmatmul.mubr.f32.vlgmr.msra.gmra.mxu1 %v14415_v37 }
0x1608   :  { %25825 = vmatpush3.msra.mxu0 %v30522_v49  ;;  %25828 = vmatprep.mubr.msk.f32.mxu0 %vm26975_vm0, %v30274_v16  ;;  %v30526_v49 = vld [vmem:[#allocation81_spill] sm:$0xff] }
0x1609   :  { %25826 = vmatprep.subr.mxu0 %v30274_v16  ;;  %25859 = vmatprep.subr.mxu1 %v30274_v16 }
0x160a   :  { %25827 = vmatpush3.msra.mxu0 %v30523_v59  ;;  %25860 = vmatpush3.msra.mxu1 %v30524_v42  ;;  %v28832_v59 = vld [vmem:[#allocation14] ss:$0 sm:$0xff] }
0x160b   :  { %25829 = vmatmul.mubr.f32.vlgmr.msra.gmra.mxu0 %v14416_v7  ;;  %25838 = vmatprep.subr.mxu0 %v30274_v16  ;;  %30528 = vst [vmem:[#allocation99_spill] sm:$0xff] %v28832_v59 }
0x160c   :  { %25839 = vmatpush3.msra.mxu0 %v30525_v13  ;;  %25842 = vmatprep.mubr.msk.f32.mxu0 %vm26975_vm0, %v30274_v16 }
0x160d   :  { %25840 = vmatprep.subr.mxu0 %v30274_v16  ;;  %25861 = vmatprep.subr.mxu1 %v30274_v16 }
0x160e   :  { %25841 = vmatpush3.msra.mxu0 %v30526_v49  ;;  %25862 = vmatpush3.msra.mxu1 %v30527_v43 }
0x160f   :  { %25843 = vmatmul.mubr.f32.vlgmr.msra.gmra.mxu0 %v14415_v37  ;;  %25863 = vmatprep.mubr.msk.f32.mxu1 %vm26975_vm0, %v30274_v16 }
0x1610   :  { %25873 = vmatprep.subr.mxu1 %v30274_v16  ;;  %25852 = vmatprep.subr.mxu0 %v30274_v16 }
0x1611   :  { %25853 = vmatpush3.msra.mxu0 %v27597_v46  ;;  %25856 = vmatprep.mubr.msk.f32.mxu0 %vm26975_vm0, %v30274_v16 }
0x1612   :  { %25854 = vmatprep.subr.mxu0 %v30274_v16 }
0x1613   :  { %25855 = vmatpush3.msra.mxu0 %v27599_v41 }
0x1614   :  { %25866 = vmatprep.subr.mxu0 %v30274_v16 }
0x169b   :  { %v13530_v7 = vpop.f32.mrf.mxu1 }
0x169d   :  { %v25781_v37 = vpop.f32.mrf.mxu1 }
0x169f   :  { %v13681_v43 = vpop.f32.mrf.mxu1 }
0x16a1   :  { %v25795_v49 = vpop.f32.mrf.mxu1 }
0x16a3   :  { %v13449_v13 = vpop.f32.mrf.mxu0  ;;  %v13831_v42 = vpop.f32.mrf.mxu1 }
0x16a4   :  { %v13450_v3 = vadd.f32 %v28832_v59, %v13449_v13 }
0x16a5   :  { %v25774_v57 = vpop.f32.mrf.mxu0  ;;  %v25809_v19 = vpop.f32.mrf.mxu1 }
0x16a6   :  { %v13531_v28 = vadd.f32 %v13530_v7, %v13450_v3 }
0x16a8   :  { %v13606_v14 = vpop.f32.mrf.mxu0 }
0x16a9   :  { %v13607_v33 = vadd.f32 %v13606_v14, %v13531_v28  ;;  %v14022_v36 = vpop.f32.mrf.mxu1 }
0x16aa   :  { %v25788_v38 = vpop.f32.mrf.mxu0 }
0x16ab   :  { %v14024_v0 = vpop.f32.mrf.mxu1  ;;  %v13682_v45 = vadd.f32 %v13681_v43, %v13607_v33 }
0x16ae   :  { %v13758_v31 = vpop.f32.mrf.mxu0 }
0x16af   :  { %v13759_v32 = vadd.f32 %v13758_v31, %v13682_v45  ;;  %v14181_v37 = vpop.f32.mrf.mxu1 }
0x16b0   :  { %v25802_v20 = vpop.f32.mrf.mxu0 }
0x16b1   :  { %v28835_v49 = vadd.f32 %v13831_v42, %v13759_v32  ;;  %v14183_v15 = vpop.f32.mrf.mxu1 }
0x16b3   :  { %30529 = vst [vmem:[#allocation100_spill] sm:$0xff] %v28835_v49 }
0x16b4   :  { %v13930_v35 = vpop.f32.mrf.mxu0 }
0x16b5   :  { %v14023_v48 = vadd.f32 %v14022_v36, %v13930_v35  ;;  %v14341_v63 = vpop.f32.mrf.mxu1 }
0x16b6   :  { %v13932_v13 = vpop.f32.mrf.mxu0 }
0x16b7   :  { %v14343_v57 = vpop.f32.mrf.mxu1  ;;  %v14025_v3 = vadd.f32 %v14024_v0, %v13932_v13 }
0x16ba   :  { %v14103_v19 = vpop.f32.mrf.mxu0 }
0x16bb   :  { %v14104_v7 = vadd.f32 %v14103_v19, %v14023_v48  ;;  %v14502_v14 = vpop.f32.mrf.mxu1 }
0x16bc   :  { %v14105_v28 = vpop.f32.mrf.mxu0 }
0x16bd   :  { %v14106_v38 = vadd.f32 %v14105_v28, %v14025_v3  ;;  %v25823_v59 = vpop.f32.mrf.mxu1  ;;  %v14182_v33 = vadd.f32 %v14181_v37, %v14104_v7 }
0x16bf   :  { %v14184_v43 = vadd.f32 %v14183_v15, %v14106_v38 }
0x16c0   :  { %v14265_v31 = vpop.f32.mrf.mxu0 }
0x16c1   :  { %v14266_v45 = vadd.f32 %v14265_v31, %v14182_v33  ;;  %v14653_v20 = vpop.f32.mrf.mxu1 }
0x16c2   :  { %v14267_v32 = vpop.f32.mrf.mxu0 }
0x16c3   :  { %v14268_v42 = vadd.f32 %v14267_v32, %v14184_v43  ;;  %v25837_v62 = vpop.f32.mrf.mxu1  ;;  %v28837_v24 = vadd.f32 %v14341_v63, %v14266_v45 }
0x16c4   :  { %v28842_v62 = vld [vmem:[%s30029_s11] ss:$0 sm:$0xff] }
0x16c5   :  { %v14344_v35 = vadd.f32 %v14343_v57, %v14268_v42 }
0x16c6   :  { %v14421_v36 = vpop.f32.mrf.mxu0 }
0x16c7   :  { %v14422_v52 = vadd.f32 %v14421_v36, %v14344_v35  ;;  %v14803_v61 = vpop.f32.mrf.mxu1 }
0x16c8   :  { %v25816_v0 = vpop.f32.mrf.mxu0 }
0x16c9   :  { %v25851_v48 = vpop.f32.mrf.mxu1  ;;  %v14503_v13 = vadd.f32 %v14502_v14, %v14422_v52 }
0x16cb   :  { %v14578_v19 = vpop.f32.mrf.mxu0 }
0x16cc   :  { %v14579_v3 = vadd.f32 %v14578_v19, %v14503_v13  ;;  %v15334_v13 = vld [vmem:[#allocation7 + $0x28] sm:$0xff] }
0x16cd   :  { %v25830_v59 = vpop.f32.mrf.mxu0  ;;  %v15351_v19 = vsel %vm219_vm1, %v15334_v13, 0  ;;  %v28941_v13 = vld [vmem:[%s30032_s14] ss:$0 sm:$0xff] }
0x16ce   :  { %v14654_v37 = vadd.f32 %v14653_v20, %v14579_v3  ;;  %v15420_v3 = vand.u32 4294901760, %v15351_v19  ;;  %30532 = vst [vmem:[#allocation102_spill] sm:$0xff] %v28941_v13 }
0x16cf   :  { %v14730_v15 = vpop.f32.mrf.mxu0 }
0x16d0   :  { %v14731_v7 = vadd.f32 %v14730_v15, %v14654_v37  ;;  %v15421_v59 = vsub.f32 %v15351_v19, %v15420_v3 }
0x16d1   :  { %v25844_v28 = vpop.f32.mrf.mxu0 }
0x16d2   :  { %v14804_v38 = vadd.f32 %v14803_v61, %v14731_v7  ;;  %v30531_v61 = vsub.f32 1.0, %v28699_v22  ;;  %v15422_v37 = vand.u32 4294901760, %v15421_v59 }
0x16d4   :  { %v14807_v63 = vadd.f32 %v28842_v62, %v14804_v38  ;;  %v15423_v15 = vsub.f32 %v15421_v59, %v15422_v37 }
0x16d6   :  { %v24470_v57 = vmul.f32 -1.442695, %v14807_v63  ;;  %v15424_v7 = vand.u32 4294901760, %v15423_v15 }
0x16d8   :  { %26559 = vpow2.f32 %v24470_v57 }
0x16e5   :  { %v26560_v33 = vpop.eup %26559 }
0x16e6   :  { %v14811_v43 = vadd.f32 1.0, %v26560_v33 }
0x16e8   :  { %26561 = vrcp.f32 %v14811_v43 }
0x16f5   :  { %v26562_v52 = vpop.eup %26561 }
0x16f6   :  { %v14815_v14 = vsub.f32 1.0, %v26562_v52  ;;  %v14814_v31 = vmul.f32 %v26562_v52, %v28835_v49 }
0x16f8   :  { %v14816_v45 = vmul.f32 %v14815_v14, %v28710_v47 }
0x16fa   :  { %v28847_v20 = vadd.f32 %v14816_v45, %v14814_v31 }
0x16fc   :  { %30530 = vst [vmem:[#allocation101_spill] sm:$0xff] %v28847_v20  ;;  %v14835_v32 = vmul.f32 %v28847_v20, %v30531_v61  ;;  %14838 = vst.msk [vmem:[#allocation19 + $0x20] sm:$0xff] %vm219_vm1, %v28847_v20 }
0x16fe   :  { %v14836_v42 = vadd.f32 %v14835_v32, %v28713_v60 }
0x1700   :  { %14840 = vst.msk [vmem:[#allocation20 + $0x20] sm:$0xff] %vm219_vm1, %v14836_v42  ;;  %v14842_v35 = vsel %vm219_vm1, %v14836_v42, 0 }
0x1701   :  { %v14911_v36 = vand.u32 4294901760, %v14842_v35 }
0x1703   :  { %v14912_v0 = vsub.f32 %v14842_v35, %v14911_v36  ;;  %25864 = vmatmul.mubr.f32.vlgmr.msra.gmra.mxu1 %v14911_v36 }
0x1704   :  { %25874 = vmatpush3.msra.mxu1 %v27597_v46  ;;  %25877 = vmatprep.mubr.msk.f32.mxu1 %vm26975_vm0, %v30274_v16 }
0x1705   :  { %25875 = vmatprep.subr.mxu1 %v30274_v16  ;;  %v14913_v22 = vand.u32 4294901760, %v14912_v0 }
0x1706   :  { %25876 = vmatpush3.msra.mxu1 %v27599_v41 }
0x1707   :  { %25878 = vmatmul.mubr.f32.vlgmr.msra.gmra.mxu1 %v14913_v22  ;;  %25887 = vmatprep.subr.mxu1 %v30274_v16  ;;  %v14914_v60 = vsub.f32 %v14912_v0, %v14913_v22 }
0x1708   :  { %25888 = vmatpush3.msra.mxu1 %v27597_v46  ;;  %25891 = vmatprep.mubr.msk.f32.mxu1 %vm26975_vm0, %v30274_v16 }
0x1709   :  { %25889 = vmatprep.subr.mxu1 %v30274_v16  ;;  %v14915_v48 = vand.u32 4294901760, %v14914_v60 }
0x170a   :  { %25890 = vmatpush3.msra.mxu1 %v27599_v41 }
0x170b   :  { %25857 = vmatmul.mubr.f32.vlgmr.msra.gmra.mxu0 %v14915_v48  ;;  %25892 = vmatmul.mubr.f32.vlgmr.msra.gmra.mxu1 %v14911_v36 }
0x170c   :  { %25867 = vmatpush3.msra.mxu0 %v27602_v23  ;;  %25870 = vmatprep.mubr.msk.f32.mxu0 %vm26975_vm0, %v30274_v16 }
0x170d   :  { %25868 = vmatprep.subr.mxu0 %v30274_v16  ;;  %25901 = vmatprep.subr.mxu1 %v30274_v16 }
0x170e   :  { %25869 = vmatpush3.msra.mxu0 %v27605_v34  ;;  %25902 = vmatpush3.msra.mxu1 %v27163_v17 }
0x170f   :  { %25871 = vmatmul.mubr.f32.vlgmr.msra.gmra.mxu0 %v14912_v0  ;;  %25880 = vmatprep.subr.mxu0 %v30274_v16 }
0x1710   :  { %25881 = vmatpush3.msra.mxu0 %v27610_v39  ;;  %25884 = vmatprep.mubr.msk.f32.mxu0 %vm26975_vm0, %v30274_v16 }
0x1711   :  { %25882 = vmatprep.subr.mxu0 %v30274_v16  ;;  %25903 = vmatprep.subr.mxu1 %v30274_v16 }
0x1712   :  { %25883 = vmatpush3.msra.mxu0 %v27613_v10  ;;  %25904 = vmatpush3.msra.mxu1 %v27165_v18 }
0x1713   :  { %25885 = vmatmul.mubr.f32.vlgmr.msra.gmra.mxu0 %v14911_v36  ;;  %25894 = vmatprep.subr.mxu0 %v30274_v16 }
0x1714   :  { %25895 = vmatpush3.msra.mxu0 %v27138_v4  ;;  %25898 = vmatprep.mubr.msk.f32.mxu0 %vm26975_vm0, %v30274_v16 }
0x1715   :  { %25896 = vmatprep.subr.mxu0 %v30274_v16  ;;  %25905 = vmatprep.mubr.msk.f32.mxu1 %vm26975_vm0, %v30274_v16 }
0x1716   :  { %25897 = vmatpush3.msra.mxu0 %v27140_v5  ;;  %25915 = vmatprep.subr.mxu1 %v30274_v16 }
0x1717   :  { %25908 = vmatprep.subr.mxu0 %v30274_v16  ;;  %25906 = vmatmul.mubr.f32.vlgmr.msra.gmra.mxu1 %v15420_v3 }
0x1718   :  { %25916 = vmatpush3.msra.mxu1 %v27138_v4  ;;  %25919 = vmatprep.mubr.msk.f32.mxu1 %vm26975_vm0, %v30274_v16 }
0x1719   :  { %25917 = vmatprep.subr.mxu1 %v30274_v16  ;;  %25899 = vmatmul.mubr.f32.vlgmr.msra.gmra.mxu0 %v15424_v7 }
0x171a   :  { %25918 = vmatpush3.msra.mxu1 %v27140_v5  ;;  %25909 = vmatpush3.msra.mxu0 %v27145_v8 }
0x171b   :  { %25920 = vmatmul.mubr.f32.vlgmr.msra.gmra.mxu1 %v15422_v37  ;;  %25929 = vmatprep.subr.mxu1 %v30274_v16 }
0x171c   :  { %25930 = vmatpush3.msra.mxu1 %v27138_v4  ;;  %25933 = vmatprep.mubr.msk.f32.mxu1 %vm26975_vm0, %v30274_v16 }
0x171d   :  { %25931 = vmatprep.subr.mxu1 %v30274_v16  ;;  %25912 = vmatprep.mubr.msk.f32.mxu0 %vm26975_vm0, %v30274_v16 }
0x171e   :  { %25932 = vmatpush3.msra.mxu1 %v27140_v5  ;;  %25910 = vmatprep.subr.mxu0 %v30274_v16 }
0x171f   :  { %25934 = vmatmul.mubr.f32.vlgmr.msra.gmra.mxu1 %v15420_v3  ;;  %15939 = vmatprep.subr.mxu1 %v27256_v50 }
0x1720   :  { %25911 = vmatpush3.msra.mxu0 %v27148_v9  ;;  %15945 = vmatpush1.msra.mxu1 %v27266_v54 }
0x1721   :  { %25913 = vmatmul.mubr.f32.vlgmr.msra.gmra.mxu0 %v15421_v59  ;;  %25922 = vmatprep.subr.mxu0 %v30274_v16 }
0x1722   :  { %25923 = vmatpush3.msra.mxu0 %v27153_v11  ;;  %25926 = vmatprep.mubr.msk.f32.mxu0 %vm26975_vm0, %v30274_v16 }
0x1723   :  { %25924 = vmatprep.subr.mxu0 %v30274_v16  ;;  %15951 = vmatprep.subr.mxu1 %v27268_v55 }
0x1724   :  { %25925 = vmatpush3.msra.mxu0 %v27156_v12  ;;  %15957 = vmatpush1.msra.mxu1 %v27270_v56 }
0x1725   :  { %25927 = vmatmul.mubr.f32.vlgmr.msra.gmra.mxu0 %v15420_v3  ;;  %15963 = vmatprep.subr.mxu1 %v27276_v58 }
0x1726   :  { %15969 = vmatpush1.msra.mxu1 %v27296_v1  ;;  %15851 = vmatprep.subr.mxu0 %v27195_v21 }
0x1727   :  { %15975 = vmatprep.subr.mxu1 %v27299_v2  ;;  %16014 = vmatprep.mubr.f32.mxu1 %v30274_v16 }
0x1728   :  { %15981 = vmatpush1.msra.mxu1 %v27305_v6  ;;  %15853 = vmatpush1.msra.mxu0 %v27197_v25 }
0x1729   :  { %16136 = vmatprep.subr.mxu1 %v27195_v21  ;;  %15855 = vmatprep.subr.mxu0 %v27199_v26 }
0x172a   :  { %15857 = vmatpush1.msra.mxu0 %v27201_v27  ;;  %15898 = vmatprep.mubr.f32.mxu0 %v30274_v16 }
0x172b   :  { %15859 = vmatprep.subr.mxu0 %v27206_v30 }
0x172c   :  { %15861 = vmatpush1.msra.mxu0 %v27235_v40 }
0x172d   :  { %15863 = vmatprep.subr.mxu0 %v27243_v44 }
0x172e   :  { %15865 = vmatpush1.msra.mxu0 %v27263_v53 }
0x172f   :  { %16048 = vmatprep.subr.mxu0 %v27204_v29 }
0x17c3   :  { %v14998_v28 = vpop.f32.mrf.mxu1 }
0x17c5   :  { %v25865_v38 = vpop.f32.mrf.mxu1 }
0x17c7   :  { %v15149_v63 = vpop.f32.mrf.mxu1 }
0x17c9   :  { %v25879_v57 = vpop.f32.mrf.mxu1 }
0x17cb   :  { %v14917_v33 = vpop.f32.mrf.mxu0  ;;  %v15299_v43 = vpop.f32.mrf.mxu1 }
0x17cc   :  { %v14918_v52 = vadd.f32 %v14917_v33, %v28837_v24 }
0x17cd   :  { %v25858_v14 = vpop.f32.mrf.mxu0  ;;  %v25893_v31 = vpop.f32.mrf.mxu1 }
0x17ce   :  { %v14999_v45 = vadd.f32 %v14998_v28, %v14918_v52 }
0x17cf   :  { %v15074_v61 = vpop.f32.mrf.mxu0 }
0x17d0   :  { %v15075_v32 = vadd.f32 %v15074_v61, %v14999_v45 }
0x17d1   :  { %v25872_v42 = vpop.f32.mrf.mxu0 }
0x17d2   :  { %v15150_v35 = vadd.f32 %v15149_v63, %v15075_v32 }
0x17d3   :  { %v15226_v36 = vpop.f32.mrf.mxu0 }
0x17d4   :  { %v15227_v0 = vadd.f32 %v15226_v36, %v15150_v35 }
0x17d5   :  { %v25886_v22 = vpop.f32.mrf.mxu0 }
0x17d6   :  { %v15300_v60 = vadd.f32 %v15299_v43, %v15227_v0 }
0x17d7   :  { %v15507_v3 = vpop.f32.mrf.mxu1 }
0x17d8   :  { %v15303_v48 = vadd.f32 %v15300_v60, %v28701_v51  ;;  %v30533_v51 = vld [vmem:[#allocation89_spill] sm:$0xff] }
0x17d9   :  { %v25907_v59 = vpop.f32.mrf.mxu1  ;;  %v15426_v28 = vpop.f32.mrf.mxu0 }
0x17da   :  { %v15304_v24 = vadd.f32 %v28941_v13, %v15303_v48  ;;  %v15427_v63 = vadd.f32 %v30533_v51, %v15426_v28 }
0x17db   :  { %v15658_v37 = vpop.f32.mrf.mxu1  ;;  %v25900_v57 = vpop.f32.mrf.mxu0 }
0x17dc   :  { %26563 = vtanh.f32 %v15304_v24  ;;  %v24471_v15 = vmul.f32 -1.442695, %v15304_v24  ;;  %v15508_v43 = vadd.f32 %v15507_v3, %v15427_v63 }
0x17dd   :  { %v25921_v7 = vpop.f32.mrf.mxu1 }
0x17de   :  { %26565 = vpow2.f32 %v24471_v15 }
0x17df   :  { %v15808_v38 = vpop.f32.mrf.mxu1 }
0x17e1   :  { %v25935_v33 = vpop.f32.mrf.mxu1  ;;  %v15583_v52 = vpop.f32.mrf.mxu0 }
0x17e2   :  { %v15584_v14 = vadd.f32 %v15583_v52, %v15508_v43 }
0x17e3   :  { %v25914_v31 = vpop.f32.mrf.mxu0 }
0x17e4   :  { %v15659_v45 = vadd.f32 %v15658_v37, %v15584_v14  ;;  %v30534_v37 = vld [vmem:[#allocation96_spill] sm:$0xff] }
0x17e5   :  { %v15735_v61 = vpop.f32.mrf.mxu0 }
0x17e6   :  { %v15736_v32 = vadd.f32 %v15735_v61, %v15659_v45 }
0x17e7   :  { %v25928_v42 = vpop.f32.mrf.mxu0 }
0x17e8   :  { %v15809_v35 = vadd.f32 %v15808_v38, %v15736_v32  ;;  %v30536_v42 = vld [vmem:[#allocation34_spill] sm:$0xff] }
0x17e9   :  { %v26564_v19 = vpop.eup %26563 }
0x17ea   :  { %15314 = vrot.lane.b32.xlu1 %v26564_v19, %s26977_s4  ;;  %v15812_v36 = vmax.f32 %v15809_v35, 0.0  ;;  %v30537_v35 = vld [vmem:[#allocation35_spill] sm:$0xff] }
0x17eb   :  { %v26566_v0 = vpop.eup %26565 }
0x17ec   :  { %v15308_v22 = vadd.f32 1.0, %v26566_v0  ;;  %v15813_v60 = vsub.f32 0.0, %v15812_v36  ;;  %v30538_v36 = vld [vmem:[#allocation36_spill] sm:$0xff]  ;;  %v30539_v0 = vld [vmem:[#allocation38_spill] sm:$0xff] }
0x17ee   :  { %26567 = vrcp.f32 %v15308_v22  ;;  %v15814_v48 = vmul.f32 1.442695, %v15813_v60  ;;  %v30540_v22 = vld [vmem:[#allocation43_spill] sm:$0xff]  ;;  %v30541_v60 = vld [vmem:[#allocation44_spill] sm:$0xff] }
0x17f0   :  { %26569 = vpow2.f32 %v15814_v48  ;;  %v30542_v48 = vld [vmem:[#allocation47_spill] sm:$0xff] }
0x17fb   :  { %v26568_v24 = vpop.eup %26567 }
0x17fc   :  { %v15312_v15 = vmul.f32 %v26568_v24, %v30534_v37  ;;  %v30547_v37 = vld [vmem:[#allocation56_spill] sm:$0xff] }
0x17fd   :  { %v26570_v3 = vpop.eup %26569 }
0x185c   :  { %v15315_v19 = vpop.permute.xlu1 %15314 }
0x185d   :  { %v15317_v59 = vmul.f32 %v26568_v24, %v15315_v19  ;;  %v30544_v19 = vld [vmem:[#allocation39_spill] sm:$0xff] }
0x185f   :  { %15319 = vrot.lane.b32.xlu0 %v15317_v59, %s26978_s9  ;;  %v30545_v59 = vld [vmem:[#allocation40_spill] sm:$0xff] }
0x1863   :  { %15817 = vrot.lane.b32.xlu0 %v26570_v3, %s26976_s28  ;;  %v30546_v3 = vld [vmem:[#allocation41_spill] sm:$0xff] }
0x18d1   :  { %v15320_v7 = vpop.permute.xlu0 %15319 }
0x18d2   :  { %v28949_v28 = vadd.f32 %v15320_v7, %v15312_v15  ;;  %v30548_v15 = vld [vmem:[#allocation42_spill] sm:$0xff]  ;;  %v30549_v7 = vld [vmem:[#allocation45_spill] sm:$0xff] }
0x18d4   :  { %30535 = vst [vmem:[#allocation89_spill] sm:$0xff] %v28949_v28  ;;  %26571 = vtanh.f32 %v28949_v28 }
0x18d5   :  { %v28953_v57 = vpop.permute.xlu0 %15817 }
0x18e1   :  { %v26572_v38 = vpop.eup %26571 }
0x18e2   :  { %15325 = vrot.lane.b32.xlu1 %v26572_v38, %s26977_s4  ;;  %v30550_v38 = vld [vmem:[#allocation57_spill] sm:$0xff] }
0x1954   :  { %v15326_v51 = vpop.permute.xlu1 %15325 }
0x1955   :  { %v15328_v63 = vmul.f32 %v26568_v24, %v15326_v51  ;;  %v30543_v24 = vld [vmem:[#allocation37_spill] sm:$0xff]  ;;  %v30551_v51 = vld [vmem:[#allocation46_spill] sm:$0xff] }
0x1957   :  { %v15820_v33 = vmul.f32 %v28953_v57, %v15328_v63  ;;  %v30552_v63 = vld [vmem:[#allocation48_spill] sm:$0xff] }
0x1959   :  { %15822 = vrot.lane.b32.xlu1 %v15820_v33, %s26978_s9  ;;  %v30553_v33 = vld [vmem:[#allocation50_spill] sm:$0xff] }
0x19cb   :  { %v15823_v43 = vpop.permute.xlu1 %15822 }
0x19cc   :  { %v15824_v52 = vsel %vm707_vm2, %v15823_v43, 0  ;;  %v30554_v43 = vld [vmem:[#allocation52_spill] sm:$0xff] }
0x19cd   :  { %v15899_v14 = vand.u32 4294901760, %v15824_v52 }
0x19cf   :  { %v15900_v31 = vsub.f32 %v15824_v52, %v15899_v14  ;;  %16016 = vmatmul.mubr.f32.vlgmr.msra.gmra.mxu1 %v15899_v14 }
0x19d0   :  { %16138 = vmatpush1.msra.mxu1 %v27197_v25  ;;  %16183 = vmatprep.mubr.f32.mxu1 %v30274_v16 }
0x19d1   :  { %v15901_v45 = vand.u32 4294901760, %v15900_v31  ;;  %16140 = vmatprep.subr.mxu1 %v27199_v26 }
0x19d2   :  { %16142 = vmatpush1.msra.mxu1 %v27201_v27 }
0x19d3   :  { %v15902_v61 = vsub.f32 %v15900_v31, %v15901_v45  ;;  %16144 = vmatprep.subr.mxu1 %v27206_v30 }
0x19d4   :  { %16146 = vmatpush1.msra.mxu1 %v27235_v40 }
0x19d5   :  { %v15903_v32 = vand.u32 4294901760, %v15902_v61  ;;  %16148 = vmatprep.subr.mxu1 %v27243_v44 }
0x19d6   :  { %16150 = vmatpush1.msra.mxu1 %v27263_v53 }
0x19d7   :  { %16187 = vmatmul.mubr.f32.vlgmr.msra.gmra.mxu1 %v15901_v45  ;;  %16314 = vmatprep.subr.mxu1 %v27195_v21 }
0x19d8   :  { %15904 = vmatmul.mubr.f32.vlgmr.msra.gmra.mxu0 %v15903_v32  ;;  %16316 = vmatpush1.msra.mxu1 %v27197_v25 }
0x19d9   :  { %16051 = vmatpush1.msra.mxu0 %v30536_v42  ;;  %16318 = vmatprep.subr.mxu1 %v27199_v26 }
0x19da   :  { %16054 = vmatprep.subr.mxu0 %v30537_v35  ;;  %16320 = vmatpush1.msra.mxu1 %v27201_v27 }
0x19db   :  { %16057 = vmatpush1.msra.mxu0 %v30538_v36  ;;  %16322 = vmatprep.subr.mxu1 %v27206_v30 }
0x19dc   :  { %16060 = vmatprep.subr.mxu0 %v30539_v0  ;;  %16324 = vmatpush1.msra.mxu1 %v27235_v40 }
0x19dd   :  { %16063 = vmatpush1.msra.mxu0 %v30540_v22  ;;  %16326 = vmatprep.subr.mxu1 %v27243_v44 }
0x19de   :  { %16066 = vmatprep.subr.mxu0 %v30541_v60  ;;  %16102 = vmatprep.mubr.f32.mxu0 %v30274_v16  ;;  %v15330_v60 = vld [vmem:[#allocation2 + $0x28] sm:$0xff] }
0x19df   :  { %16069 = vmatpush1.msra.mxu0 %v30542_v48  ;;  %16328 = vmatpush1.msra.mxu1 %v27263_v53 }
0x19e0   :  { %16361 = vmatprep.mubr.f32.mxu1 %v30274_v16  ;;  %16105 = vmatmul.mubr.f32.vlgmr.msra.gmra.mxu0 %v15900_v31 }
0x19e1   :  { %16220 = vmatprep.subr.mxu0 %v30543_v24  ;;  %16363 = vmatmul.mubr.f32.vlgmr.msra.gmra.mxu1 %v15899_v14 }
0x19e2   :  { %16224 = vmatpush1.msra.mxu0 %v30544_v19  ;;  %16281 = vmatprep.mubr.f32.mxu0 %v30274_v16  ;;  %v29006_v19 = vld [vmem:[#allocation5 + $0x28] sm:$0xff] }
0x19e3   :  { %16228 = vmatprep.subr.mxu0 %v30545_v59  ;;  %25943 = vmatprep.subr.mxu1 %v30274_v16 }
0x19e4   :  { %16232 = vmatpush1.msra.mxu0 %v30546_v3  ;;  %25944 = vmatpush3.msra.mxu1 %v30547_v37 }
0x19e5   :  { %16236 = vmatprep.subr.mxu0 %v30548_v15  ;;  %25945 = vmatprep.subr.mxu1 %v30274_v16 }
0x19e6   :  { %16240 = vmatpush1.msra.mxu0 %v30549_v7  ;;  %25946 = vmatpush3.msra.mxu1 %v30550_v38 }
0x19e7   :  { %16244 = vmatprep.subr.mxu0 %v30551_v51  ;;  %25947 = vmatprep.mubr.msk.f32.mxu1 %vm26975_vm0, %v30274_v16 }
0x19e8   :  { %16248 = vmatpush1.msra.mxu0 %v30552_v63  ;;  %25957 = vmatprep.subr.mxu1 %v30274_v16 }
0x19e9   :  { %16283 = vmatmul.mubr.f32.vlgmr.msra.gmra.mxu0 %v15899_v14  ;;  %25936 = vmatprep.subr.mxu0 %v30274_v16 }
0x19ea   :  { %25937 = vmatpush3.msra.mxu0 %v30553_v33  ;;  %25940 = vmatprep.mubr.msk.f32.mxu0 %vm26975_vm0, %v30274_v16 }
0x19eb   :  { %25938 = vmatprep.subr.mxu0 %v30274_v16 }
0x19ec   :  { %25939 = vmatpush3.msra.mxu0 %v30554_v43 }
0x19ed   :  { %25950 = vmatprep.subr.mxu0 %v30274_v16 }
0x1a8f   :  { %v16017_v52 = vpop.f32.mrf.mxu1 }
0x1a91   :  { %v16019_v32 = vpop.f32.mrf.mxu1 }
0x1a97   :  { %v16188_v20 = vpop.f32.mrf.mxu1 }
0x1a98   :  { %v15905_v31 = vpop.f32.mrf.mxu0 }
0x1a99   :  { %v16018_v45 = vadd.f32 %v16017_v52, %v15905_v31  ;;  %v16190_v7 = vpop.f32.mrf.mxu1 }
0x1a9a   :  { %v15907_v61 = vpop.f32.mrf.mxu0 }
0x1a9b   :  { %v16020_v51 = vadd.f32 %v16019_v32, %v15907_v61  ;;  %v30559_v61 = vld [vmem:[#allocation51_spill] sm:$0xff] }
0x1aa0   :  { %v16106_v49 = vpop.f32.mrf.mxu0 }
0x1aa1   :  { %v16107_v14 = vadd.f32 %v16106_v49, %v16018_v45  ;;  %v16364_v15 = vpop.f32.mrf.mxu1  ;;  %v30204_v49 = vsub.f32 1.0, %v29006_v19  ;;  %v30556_v45 = vld [vmem:[#allocation90_spill] sm:$0xff] }
0x1aa2   :  { %v16108_v47 = vpop.f32.mrf.mxu0 }
0x1aa3   :  { %v16189_v63 = vadd.f32 %v16188_v20, %v16107_v14  ;;  %v16109_v38 = vadd.f32 %v16108_v47, %v16020_v51  ;;  %v16366_v31 = vpop.f32.mrf.mxu1  ;;  %v29015_v47 = vmul.f32 %v29006_v19, %v15330_v60  ;;  %v16871_v60 = vsel %vm219_vm1, %v29006_v19, 0  ;;  %v30560_v14 = vld [vmem:[#allocation73_spill] sm:$0xff] }
0x1aa5   :  { %v16191_v59 = vadd.f32 %v16190_v7, %v16109_v38  ;;  %v29033_v38 = vand.u32 4294901760, %v16871_v60 }
0x1aa7   :  { %v16943_v32 = vsub.f32 %v16871_v60, %v29033_v38  ;;  %v30567_v60 = vld [vmem:[#allocation62_spill] sm:$0xff] }
0x1aa9   :  { %v16284_v37 = vpop.f32.mrf.mxu0 }
0x1aaa   :  { %v16285_v3 = vadd.f32 %v16284_v37, %v16189_v63  ;;  %v30558_v63 = vld [vmem:[#allocation72_spill] sm:$0xff] }
0x1aab   :  { %v16286_v24 = vpop.f32.mrf.mxu0 }
0x1aac   :  { %v29008_v48 = vadd.f32 %v16364_v15, %v16285_v3  ;;  %v16287_v52 = vadd.f32 %v16286_v24, %v16191_v59 }
0x1aae   :  { %30555 = vst [vmem:[#allocation96_spill] sm:$0xff] %v29008_v48  ;;  %v16367_v22 = vadd.f32 %v16366_v31, %v16287_v52  ;;  %v30561_v52 = vld [vmem:[#allocation74_spill] sm:$0xff] }
0x1aaf   :  { %v30562_v31 = vld [vmem:[#allocation54_spill] sm:$0xff] }
0x1ab0   :  { %v29012_v20 = vadd.f32 %v30556_v45, %v16367_v22  ;;  %v30563_v45 = vld [vmem:[#allocation75_spill] sm:$0xff] }
0x1ab2   :  { %30557 = vst [vmem:[#allocation90_spill] sm:$0xff] %v29012_v20  ;;  %v16389_v37 = vmul.f32 %v30204_v49, %v29012_v20 }
0x1ab4   :  { %v16390_v7 = vadd.f32 %v16389_v37, %v29015_v47  ;;  %v16944_v37 = vand.u32 4294901760, %v16943_v32 }
0x1ab6   :  { %v16392_v3 = vsel %vm219_vm1, %v16390_v7, 0  ;;  %v30564_v7 = vld [vmem:[#allocation59_spill] sm:$0xff] }
0x1ab7   :  { %v16461_v24 = vand.u32 4294901760, %v16392_v3 }
0x1ab9   :  { %v16462_v59 = vsub.f32 %v16392_v3, %v16461_v24  ;;  %25948 = vmatmul.mubr.f32.vlgmr.msra.gmra.mxu1 %v16461_v24  ;;  %v30565_v3 = vld [vmem:[#allocation53_spill] sm:$0xff] }
0x1aba   :  { %25958 = vmatpush3.msra.mxu1 %v30553_v33  ;;  %25961 = vmatprep.mubr.msk.f32.mxu1 %vm26975_vm0, %v30274_v16 }
0x1abb   :  { %25959 = vmatprep.subr.mxu1 %v30274_v16  ;;  %v16463_v22 = vand.u32 4294901760, %v16462_v59 }
0x1abc   :  { %25960 = vmatpush3.msra.mxu1 %v30554_v43 }
0x1abd   :  { %25962 = vmatmul.mubr.f32.vlgmr.msra.gmra.mxu1 %v16463_v22  ;;  %25971 = vmatprep.subr.mxu1 %v30274_v16  ;;  %v16464_v15 = vsub.f32 %v16462_v59, %v16463_v22  ;;  %v30566_v22 = vld [vmem:[#allocation60_spill] sm:$0xff] }
0x1abe   :  { %25972 = vmatpush3.msra.mxu1 %v30553_v33  ;;  %25975 = vmatprep.mubr.msk.f32.mxu1 %vm26975_vm0, %v30274_v16 }
0x1abf   :  { %25973 = vmatprep.subr.mxu1 %v30274_v16  ;;  %v16465_v51 = vand.u32 4294901760, %v16464_v15  ;;  %v30568_v15 = vld [vmem:[#allocation55_spill] sm:$0xff] }
0x1ac0   :  { %25974 = vmatpush3.msra.mxu1 %v30554_v43 }
0x1ac1   :  { %25941 = vmatmul.mubr.f32.vlgmr.msra.gmra.mxu0 %v16465_v51  ;;  %25976 = vmatmul.mubr.f32.vlgmr.msra.gmra.mxu1 %v16461_v24  ;;  %v16945_v51 = vsub.f32 %v16943_v32, %v16944_v37 }
0x1ac2   :  { %16986 = vmatprep.subr.mxu1 %v30558_v63  ;;  %25951 = vmatpush3.msra.mxu0 %v30559_v61 }
0x1ac3   :  { %16992 = vmatpush1.msra.mxu1 %v30560_v14  ;;  %25952 = vmatprep.subr.mxu0 %v30274_v16  ;;  %v16946_v49 = vand.u32 4294901760, %v16945_v51  ;;  %v30572_v51 = vld [vmem:[#allocation82_spill] sm:$0xff] }
0x1ac4   :  { %16998 = vmatprep.subr.mxu1 %v30561_v52  ;;  %25953 = vmatpush3.msra.mxu0 %v30562_v31 }
0x1ac5   :  { %25954 = vmatprep.mubr.msk.f32.mxu0 %vm26975_vm0, %v30274_v16  ;;  %17004 = vmatpush1.msra.mxu1 %v30563_v45 }
0x1ac6   :  { %17037 = vmatprep.mubr.f32.mxu1 %v30274_v16  ;;  %25955 = vmatmul.mubr.f32.vlgmr.msra.gmra.mxu0 %v16462_v59  ;;  %v30569_v59 = vld [vmem:[#allocation63_spill] sm:$0xff] }
0x1ac7   :  { %25964 = vmatprep.subr.mxu0 %v30274_v16  ;;  %17039 = vmatmul.mubr.f32.vlgmr.msra.gmra.mxu1 %v29033_v38 }
0x1ac8   :  { %17155 = vmatprep.subr.mxu1 %v30564_v7  ;;  %25965 = vmatpush3.msra.mxu0 %v30565_v3 }
0x1ac9   :  { %17157 = vmatpush1.msra.mxu1 %v30566_v22  ;;  %25966 = vmatprep.subr.mxu0 %v30274_v16 }
0x1aca   :  { %17159 = vmatprep.subr.mxu1 %v30567_v60  ;;  %25967 = vmatpush3.msra.mxu0 %v30568_v15  ;;  %v17364_v15 = vsel %vm219_vm1, %v28953_v57, 0  ;;  %v30571_v57 = vld [vmem:[#allocation65_spill] sm:$0xff] }
0x1acb   :  { %25968 = vmatprep.mubr.msk.f32.mxu0 %vm26975_vm0, %v30274_v16  ;;  %17161 = vmatpush1.msra.mxu1 %v30569_v59 }
0x1acc   :  { %17194 = vmatprep.mubr.f32.mxu1 %v30274_v16  ;;  %25969 = vmatmul.mubr.f32.vlgmr.msra.gmra.mxu0 %v16461_v24  ;;  %v17433_v24 = vand.u32 4294901760, %v17364_v15 }
0x1acd   :  { %16902 = vmatprep.subr.mxu0 %v30564_v7  ;;  %17198 = vmatmul.mubr.f32.vlgmr.msra.gmra.mxu1 %v16944_v37  ;;  %v30570_v37 = vld [vmem:[#allocation64_spill] sm:$0xff] }
0x1ace   :  { %17317 = vmatprep.subr.mxu1 %v30564_v7  ;;  %16904 = vmatpush1.msra.mxu0 %v30566_v22 }
0x1acf   :  { %17319 = vmatpush1.msra.mxu1 %v30566_v22  ;;  %16906 = vmatprep.subr.mxu0 %v30567_v60  ;;  %v17434_v22 = vsub.f32 %v17364_v15, %v17433_v24  ;;  %v30578_v15 = vld [vmem:[#allocation76_spill] sm:$0xff] }
0x1ad0   :  { %17321 = vmatprep.subr.mxu1 %v30567_v60  ;;  %16908 = vmatpush1.msra.mxu0 %v30569_v59  ;;  %v30573_v60 = vld [vmem:[#allocation66_spill] sm:$0xff] }
0x1ad1   :  { %16941 = vmatprep.mubr.f32.mxu0 %v30274_v16  ;;  %17323 = vmatpush1.msra.mxu1 %v30569_v59  ;;  %v30574_v59 = vld [vmem:[#allocation67_spill] sm:$0xff] }
0x1ad2   :  { %17356 = vmatprep.mubr.f32.mxu1 %v30274_v16  ;;  %16947 = vmatmul.mubr.f32.vlgmr.msra.gmra.mxu0 %v16946_v49  ;;  %v30575_v49 = vld [vmem:[#allocation83_spill] sm:$0xff] }
0x1ad3   :  { %17075 = vmatprep.subr.mxu0 %v30570_v37  ;;  %17358 = vmatmul.mubr.f32.vlgmr.msra.gmra.mxu1 %v29033_v38  ;;  %v30576_v37 = vld [vmem:[#allocation68_spill] sm:$0xff] }
0x1ad4   :  { %25985 = vmatprep.subr.mxu1 %v30274_v16  ;;  %17078 = vmatpush1.msra.mxu0 %v30571_v57  ;;  %v17435_v57 = vand.u32 4294901760, %v17434_v22 }
0x1ad5   :  { %25986 = vmatpush3.msra.mxu1 %v30572_v51  ;;  %17081 = vmatprep.subr.mxu0 %v30573_v60  ;;  %v30577_v60 = vld [vmem:[#allocation69_spill] sm:$0xff]  ;;  %v30579_v51 = vld [vmem:[#allocation70_spill] sm:$0xff] }
0x1ad6   :  { %25987 = vmatprep.subr.mxu1 %v30274_v16  ;;  %17084 = vmatpush1.msra.mxu0 %v30574_v59  ;;  %v30580_v59 = vld [vmem:[#allocation71_spill] sm:$0xff] }
0x1ad7   :  { %17117 = vmatprep.mubr.f32.mxu0 %v30274_v16  ;;  %25988 = vmatpush3.msra.mxu1 %v30575_v49  ;;  %v30581_v49 = vld [vmem:[#allocation77_spill] sm:$0xff] }
0x1ad8   :  { %25989 = vmatprep.mubr.msk.f32.mxu1 %vm26975_vm0, %v30274_v16  ;;  %17120 = vmatmul.mubr.f32.vlgmr.msra.gmra.mxu0 %v16943_v32  ;;  %v17436_v32 = vsub.f32 %v17434_v22, %v17435_v57 }
0x1ad9   :  { %17235 = vmatprep.subr.mxu0 %v30576_v37  ;;  %25990 = vmatmul.mubr.f32.vlgmr.msra.gmra.mxu1 %v17433_v24 }
0x1ada   :  { %25999 = vmatprep.subr.mxu1 %v30274_v16  ;;  %17239 = vmatpush1.msra.mxu0 %v30577_v60 }
0x1adb   :  { %26000 = vmatpush3.msra.mxu1 %v30578_v15  ;;  %17243 = vmatprep.subr.mxu0 %v30579_v51 }
0x1adc   :  { %26001 = vmatprep.subr.mxu1 %v30274_v16  ;;  %17247 = vmatpush1.msra.mxu0 %v30580_v59  ;;  %v17437_v59 = vand.u32 4294901760, %v17436_v32  ;;  %v30584_v32 = vld [vmem:[#allocation84_spill] sm:$0xff] }
0x1add   :  { %17280 = vmatprep.mubr.f32.mxu0 %v30274_v16  ;;  %26002 = vmatpush3.msra.mxu1 %v30581_v49 }
0x1ade   :  { %26003 = vmatprep.mubr.msk.f32.mxu1 %vm26975_vm0, %v30274_v16  ;;  %17282 = vmatmul.mubr.f32.vlgmr.msra.gmra.mxu0 %v29033_v38  ;;  %v30582_v38 = vld [vmem:[#allocation78_spill] sm:$0xff] }
0x1adf   :  { %25978 = vmatprep.subr.mxu0 %v30274_v16  ;;  %26004 = vmatmul.mubr.f32.vlgmr.msra.gmra.mxu1 %v17435_v57  ;;  %v30583_v57 = vld [vmem:[#allocation79_spill] sm:$0xff] }
0x1ae0   :  { %26013 = vmatprep.subr.mxu1 %v30274_v16  ;;  %25979 = vmatpush3.msra.mxu0 %v30578_v15 }
0x1ae1   :  { %26014 = vmatpush3.msra.mxu1 %v30578_v15  ;;  %25980 = vmatprep.subr.mxu0 %v30274_v16 }
0x1ae2   :  { %26015 = vmatprep.subr.mxu1 %v30274_v16  ;;  %25981 = vmatpush3.msra.mxu0 %v30581_v49 }
0x1ae3   :  { %25982 = vmatprep.mubr.msk.f32.mxu0 %vm26975_vm0, %v30274_v16  ;;  %26016 = vmatpush3.msra.mxu1 %v30581_v49  ;;  %v30587_v49 = vld [vmem:[#allocation85_spill] sm:$0xff] }
0x1ae4   :  { %26017 = vmatprep.mubr.msk.f32.mxu1 %vm26975_vm0, %v30274_v16  ;;  %25983 = vmatmul.mubr.f32.vlgmr.msra.gmra.mxu0 %v17437_v59  ;;  %v30585_v59 = vld [vmem:[#allocation80_spill] sm:$0xff] }
0x1ae5   :  { %25992 = vmatprep.subr.mxu0 %v30274_v16  ;;  %26018 = vmatmul.mubr.f32.vlgmr.msra.gmra.mxu1 %v17433_v24 }
0x1ae6   :  { %25993 = vmatpush3.msra.mxu0 %v30582_v38  ;;  %25996 = vmatprep.mubr.msk.f32.mxu0 %vm26975_vm0, %v30274_v16  ;;  %v30586_v38 = vld [vmem:[#allocation81_spill] sm:$0xff] }
0x1ae7   :  { %25994 = vmatprep.subr.mxu0 %v30274_v16  ;;  %26027 = vmatprep.subr.mxu1 %v30274_v16 }
0x1ae8   :  { %25995 = vmatpush3.msra.mxu0 %v30583_v57  ;;  %26028 = vmatpush3.msra.mxu1 %v30584_v32  ;;  %v30588_v57 = vld [vmem:[#allocation99_spill] sm:$0xff] }
0x1ae9   :  { %25997 = vmatmul.mubr.f32.vlgmr.msra.gmra.mxu0 %v17434_v22  ;;  %26006 = vmatprep.subr.mxu0 %v30274_v16 }
0x1aea   :  { %26007 = vmatpush3.msra.mxu0 %v30585_v59  ;;  %26010 = vmatprep.mubr.msk.f32.mxu0 %vm26975_vm0, %v30274_v16 }
0x1aeb   :  { %26008 = vmatprep.subr.mxu0 %v30274_v16  ;;  %26029 = vmatprep.subr.mxu1 %v30274_v16 }
0x1aec   :  { %26009 = vmatpush3.msra.mxu0 %v30586_v38  ;;  %26030 = vmatpush3.msra.mxu1 %v30587_v49 }
0x1aed   :  { %26011 = vmatmul.mubr.f32.vlgmr.msra.gmra.mxu0 %v17433_v24  ;;  %26031 = vmatprep.mubr.msk.f32.mxu1 %vm26975_vm0, %v30274_v16 }
0x1aee   :  { %26041 = vmatprep.subr.mxu1 %v30274_v16  ;;  %26020 = vmatprep.subr.mxu0 %v30274_v16 }
0x1aef   :  { %26021 = vmatpush3.msra.mxu0 %v27597_v46  ;;  %26024 = vmatprep.mubr.msk.f32.mxu0 %vm26975_vm0, %v30274_v16 }
0x1af0   :  { %26022 = vmatprep.subr.mxu0 %v30274_v16 }
0x1af1   :  { %26023 = vmatpush3.msra.mxu0 %v27599_v41 }
0x1af2   :  { %26034 = vmatprep.subr.mxu0 %v30274_v16 }
0x1b79   :  { %v16548_v22 = vpop.f32.mrf.mxu1 }
0x1b7b   :  { %v25949_v24 = vpop.f32.mrf.mxu1 }
0x1b7d   :  { %v16699_v49 = vpop.f32.mrf.mxu1 }
0x1b7f   :  { %v25963_v38 = vpop.f32.mrf.mxu1 }
0x1b81   :  { %v16467_v59 = vpop.f32.mrf.mxu0  ;;  %v16849_v32 = vpop.f32.mrf.mxu1 }
0x1b82   :  { %v16468_v51 = vadd.f32 %v30588_v57, %v16467_v59 }
0x1b83   :  { %v25942_v15 = vpop.f32.mrf.mxu0  ;;  %v25977_v60 = vpop.f32.mrf.mxu1 }
0x1b84   :  { %v16549_v37 = vadd.f32 %v16548_v22, %v16468_v51 }
0x1b86   :  { %v16624_v3 = vpop.f32.mrf.mxu0 }
0x1b87   :  { %v16625_v7 = vadd.f32 %v16624_v3, %v16549_v37  ;;  %v17040_v45 = vpop.f32.mrf.mxu1 }
0x1b88   :  { %v25956_v31 = vpop.f32.mrf.mxu0 }
0x1b89   :  { %v17042_v52 = vpop.f32.mrf.mxu1  ;;  %v16700_v14 = vadd.f32 %v16699_v49, %v16625_v7 }
0x1b8c   :  { %v16776_v61 = vpop.f32.mrf.mxu0 }
0x1b8d   :  { %v16777_v63 = vadd.f32 %v16776_v61, %v16700_v14  ;;  %v17199_v43 = vpop.f32.mrf.mxu1 }
0x1b8e   :  { %v25970_v33 = vpop.f32.mrf.mxu0 }
0x1b8f   :  { %v29135_v24 = vadd.f32 %v16849_v32, %v16777_v63  ;;  %v17201_v38 = vpop.f32.mrf.mxu1 }
0x1b91   :  { %30589 = vst [vmem:[#allocation99_spill] sm:$0xff] %v29135_v24 }
0x1b92   :  { %v16948_v0 = vpop.f32.mrf.mxu0 }
0x1b93   :  { %v17041_v36 = vadd.f32 %v17040_v45, %v16948_v0  ;;  %v17359_v35 = vpop.f32.mrf.mxu1 }
0x1b94   :  { %v16950_v57 = vpop.f32.mrf.mxu0 }
0x1b95   :  { %v17361_v15 = vpop.f32.mrf.mxu1  ;;  %v17043_v51 = vadd.f32 %v17042_v52, %v16950_v57 }
0x1b98   :  { %v17121_v60 = vpop.f32.mrf.mxu0 }
0x1b99   :  { %v17122_v59 = vadd.f32 %v17121_v60, %v17041_v36  ;;  %v17520_v3 = vpop.f32.mrf.mxu1 }
0x1b9a   :  { %v17123_v37 = vpop.f32.mrf.mxu0 }
0x1b9b   :  { %v17124_v31 = vadd.f32 %v17123_v37, %v17043_v51  ;;  %v25991_v22 = vpop.f32.mrf.mxu1  ;;  %v17200_v7 = vadd.f32 %v17199_v43, %v17122_v59 }
0x1b9d   :  { %v17202_v49 = vadd.f32 %v17201_v38, %v17124_v31 }
0x1b9e   :  { %v17283_v61 = vpop.f32.mrf.mxu0 }
0x1b9f   :  { %v17284_v14 = vadd.f32 %v17283_v61, %v17200_v7  ;;  %v17671_v33 = vpop.f32.mrf.mxu1 }
0x1ba0   :  { %v17285_v63 = vpop.f32.mrf.mxu0 }
0x1ba1   :  { %v17286_v32 = vadd.f32 %v17285_v63, %v17202_v49  ;;  %v26005_v42 = vpop.f32.mrf.mxu1  ;;  %v29137_v28 = vadd.f32 %v17359_v35, %v17284_v14 }
0x1ba3   :  { %v17362_v0 = vadd.f32 %v17361_v15, %v17286_v32 }
0x1ba4   :  { %v17439_v45 = vpop.f32.mrf.mxu0 }
0x1ba5   :  { %v17440_v13 = vadd.f32 %v17439_v45, %v17362_v0  ;;  %v17821_v48 = vpop.f32.mrf.mxu1 }
0x1ba6   :  { %v25984_v52 = vpop.f32.mrf.mxu0 }
0x1ba7   :  { %v26019_v36 = vpop.f32.mrf.mxu1  ;;  %v17521_v57 = vadd.f32 %v17520_v3, %v17440_v13  ;;  %v18352_v52 = vld [vmem:[#allocation7 + $0x30] sm:$0xff] }
0x1ba8   :  { %v18369_v36 = vsel %vm219_vm1, %v18352_v52, 0 }
0x1ba9   :  { %v17596_v60 = vpop.f32.mrf.mxu0 }
0x1baa   :  { %v17597_v51 = vadd.f32 %v17596_v60, %v17521_v57  ;;  %v18438_v57 = vand.u32 4294901760, %v18369_v36 }
0x1bab   :  { %v25998_v37 = vpop.f32.mrf.mxu0 }
0x1bac   :  { %v17672_v43 = vadd.f32 %v17671_v33, %v17597_v51  ;;  %v30591_v33 = vsub.f32 1.0, %v29006_v19  ;;  %v18439_v60 = vsub.f32 %v18369_v36, %v18438_v57 }
0x1bad   :  { %v17748_v38 = vpop.f32.mrf.mxu0 }
0x1bae   :  { %v17749_v59 = vadd.f32 %v17748_v38, %v17672_v43  ;;  %v18440_v51 = vand.u32 4294901760, %v18439_v60 }
0x1baf   :  { %v26012_v31 = vpop.f32.mrf.mxu0 }
0x1bb0   :  { %v17822_v22 = vadd.f32 %v17821_v48, %v17749_v59  ;;  %v18441_v37 = vsub.f32 %v18439_v60, %v18440_v51 }
0x1bb2   :  { %v17825_v7 = vadd.f32 %v28842_v62, %v17822_v22  ;;  %v18442_v43 = vand.u32 4294901760, %v18441_v37 }
0x1bb4   :  { %v24472_v42 = vmul.f32 -1.442695, %v17825_v7 }
0x1bb6   :  { %26573 = vpow2.f32 %v24472_v42 }
0x1bc3   :  { %v26574_v35 = vpop.eup %26573 }
0x1bc4   :  { %v17829_v15 = vadd.f32 1.0, %v26574_v35 }
0x1bc6   :  { %26575 = vrcp.f32 %v17829_v15 }
0x1bd3   :  { %v26576_v49 = vpop.eup %26575 }
0x1bd4   :  { %v17833_v61 = vsub.f32 1.0, %v26576_v49  ;;  %v17832_v14 = vmul.f32 %v26576_v49, %v29135_v24 }
0x1bd6   :  { %v17834_v13 = vmul.f32 %v17833_v61, %v29012_v20 }
0x1bd8   :  { %v29142_v3 = vadd.f32 %v17834_v13, %v17832_v14 }
0x1bda   :  { %30590 = vst [vmem:[#allocation103_spill] sm:$0xff] %v29142_v3  ;;  %v17853_v63 = vmul.f32 %v29142_v3, %v30591_v33  ;;  %17856 = vst.msk [vmem:[#allocation19 + $0x28] sm:$0xff] %vm219_vm1, %v29142_v3 }
0x1bdc   :  { %v17854_v62 = vadd.f32 %v17853_v63, %v29015_v47 }
0x1bde   :  { %17858 = vst.msk [vmem:[#allocation20 + $0x28] sm:$0xff] %vm219_vm1, %v17854_v62  ;;  %v17860_v48 = vsel %vm219_vm1, %v17854_v62, 0 }
0x1bdf   :  { %v17929_v32 = vand.u32 4294901760, %v17860_v48 }
0x1be1   :  { %v17930_v0 = vsub.f32 %v17860_v48, %v17929_v32  ;;  %26032 = vmatmul.mubr.f32.vlgmr.msra.gmra.mxu1 %v17929_v32 }
0x1be2   :  { %26042 = vmatpush3.msra.mxu1 %v27597_v46  ;;  %26045 = vmatprep.mubr.msk.f32.mxu1 %vm26975_vm0, %v30274_v16 }
0x1be3   :  { %26043 = vmatprep.subr.mxu1 %v30274_v16  ;;  %v17931_v19 = vand.u32 4294901760, %v17930_v0 }
0x1be4   :  { %26044 = vmatpush3.msra.mxu1 %v27599_v41 }
0x1be5   :  { %26046 = vmatmul.mubr.f32.vlgmr.msra.gmra.mxu1 %v17931_v19  ;;  %26055 = vmatprep.subr.mxu1 %v30274_v16  ;;  %v17932_v47 = vsub.f32 %v17930_v0, %v17931_v19  ;;  %v30592_v19 = vld [vmem:[#allocation96_spill] sm:$0xff] }
0x1be6   :  { %26056 = vmatpush3.msra.mxu1 %v27597_v46  ;;  %26059 = vmatprep.mubr.msk.f32.mxu1 %vm26975_vm0, %v30274_v16 }
0x1be7   :  { %26057 = vmatprep.subr.mxu1 %v30274_v16  ;;  %v17933_v45 = vand.u32 4294901760, %v17932_v47 }
0x1be8   :  { %26058 = vmatpush3.msra.mxu1 %v27599_v41 }
0x1be9   :  { %26025 = vmatmul.mubr.f32.vlgmr.msra.gmra.mxu0 %v17933_v45  ;;  %26060 = vmatmul.mubr.f32.vlgmr.msra.gmra.mxu1 %v17929_v32  ;;  %v30593_v45 = vld [vmem:[#allocation102_spill] sm:$0xff] }
0x1bea   :  { %26035 = vmatpush3.msra.mxu0 %v27602_v23  ;;  %26038 = vmatprep.mubr.msk.f32.mxu0 %vm26975_vm0, %v30274_v16 }
0x1beb   :  { %26036 = vmatprep.subr.mxu0 %v30274_v16  ;;  %26069 = vmatprep.subr.mxu1 %v30274_v16 }
0x1bec   :  { %26037 = vmatpush3.msra.mxu0 %v27605_v34  ;;  %26070 = vmatpush3.msra.mxu1 %v27163_v17 }
0x1bed   :  { %26039 = vmatmul.mubr.f32.vlgmr.msra.gmra.mxu0 %v17930_v0  ;;  %26048 = vmatprep.subr.mxu0 %v30274_v16 }
0x1bee   :  { %26049 = vmatpush3.msra.mxu0 %v27610_v39  ;;  %26052 = vmatprep.mubr.msk.f32.mxu0 %vm26975_vm0, %v30274_v16 }
0x1bef   :  { %26050 = vmatprep.subr.mxu0 %v30274_v16  ;;  %26071 = vmatprep.subr.mxu1 %v30274_v16 }
0x1bf0   :  { %26051 = vmatpush3.msra.mxu0 %v27613_v10  ;;  %26072 = vmatpush3.msra.mxu1 %v27165_v18 }
0x1bf1   :  { %26053 = vmatmul.mubr.f32.vlgmr.msra.gmra.mxu0 %v17929_v32  ;;  %26062 = vmatprep.subr.mxu0 %v30274_v16 }
0x1bf2   :  { %26063 = vmatpush3.msra.mxu0 %v27138_v4  ;;  %26066 = vmatprep.mubr.msk.f32.mxu0 %vm26975_vm0, %v30274_v16 }
0x1bf3   :  { %26064 = vmatprep.subr.mxu0 %v30274_v16  ;;  %26073 = vmatprep.mubr.msk.f32.mxu1 %vm26975_vm0, %v30274_v16 }
0x1bf4   :  { %26065 = vmatpush3.msra.mxu0 %v27140_v5  ;;  %26083 = vmatprep.subr.mxu1 %v30274_v16 }
0x1bf5   :  { %26076 = vmatprep.subr.mxu0 %v30274_v16  ;;  %26074 = vmatmul.mubr.f32.vlgmr.msra.gmra.mxu1 %v18438_v57 }
0x1bf6   :  { %26084 = vmatpush3.msra.mxu1 %v27138_v4  ;;  %26087 = vmatprep.mubr.msk.f32.mxu1 %vm26975_vm0, %v30274_v16 }
0x1bf7   :  { %26085 = vmatprep.subr.mxu1 %v30274_v16  ;;  %26067 = vmatmul.mubr.f32.vlgmr.msra.gmra.mxu0 %v18442_v43 }
0x1bf8   :  { %26086 = vmatpush3.msra.mxu1 %v27140_v5  ;;  %26077 = vmatpush3.msra.mxu0 %v27145_v8 }
0x1bf9   :  { %26088 = vmatmul.mubr.f32.vlgmr.msra.gmra.mxu1 %v18440_v51  ;;  %26097 = vmatprep.subr.mxu1 %v30274_v16 }
0x1bfa   :  { %26098 = vmatpush3.msra.mxu1 %v27138_v4  ;;  %26101 = vmatprep.mubr.msk.f32.mxu1 %vm26975_vm0, %v30274_v16 }
0x1bfb   :  { %26099 = vmatprep.subr.mxu1 %v30274_v16  ;;  %26080 = vmatprep.mubr.msk.f32.mxu0 %vm26975_vm0, %v30274_v16 }
0x1bfc   :  { %26100 = vmatpush3.msra.mxu1 %v27140_v5  ;;  %26078 = vmatprep.subr.mxu0 %v30274_v16 }
0x1bfd   :  { %26102 = vmatmul.mubr.f32.vlgmr.msra.gmra.mxu1 %v18438_v57  ;;  %18957 = vmatprep.subr.mxu1 %v27256_v50 }
0x1bfe   :  { %26079 = vmatpush3.msra.mxu0 %v27148_v9  ;;  %18963 = vmatpush1.msra.mxu1 %v27266_v54 }
0x1bff   :  { %26081 = vmatmul.mubr.f32.vlgmr.msra.gmra.mxu0 %v18439_v60  ;;  %26090 = vmatprep.subr.mxu0 %v30274_v16 }
0x1c00   :  { %26091 = vmatpush3.msra.mxu0 %v27153_v11  ;;  %26094 = vmatprep.mubr.msk.f32.mxu0 %vm26975_vm0, %v30274_v16 }
0x1c01   :  { %26092 = vmatprep.subr.mxu0 %v30274_v16  ;;  %18969 = vmatprep.subr.mxu1 %v27268_v55 }
0x1c02   :  { %26093 = vmatpush3.msra.mxu0 %v27156_v12  ;;  %18975 = vmatpush1.msra.mxu1 %v27270_v56 }
0x1c03   :  { %26095 = vmatmul.mubr.f32.vlgmr.msra.gmra.mxu0 %v18438_v57  ;;  %18981 = vmatprep.subr.mxu1 %v27276_v58 }
0x1c04   :  { %18987 = vmatpush1.msra.mxu1 %v27296_v1  ;;  %18869 = vmatprep.subr.mxu0 %v27195_v21 }
0x1c05   :  { %18993 = vmatprep.subr.mxu1 %v27299_v2  ;;  %19032 = vmatprep.mubr.f32.mxu1 %v30274_v16 }
0x1c06   :  { %18999 = vmatpush1.msra.mxu1 %v27305_v6  ;;  %18871 = vmatpush1.msra.mxu0 %v27197_v25 }
0x1c07   :  { %19154 = vmatprep.subr.mxu1 %v27195_v21  ;;  %18873 = vmatprep.subr.mxu0 %v27199_v26 }
0x1c08   :  { %18875 = vmatpush1.msra.mxu0 %v27201_v27  ;;  %18916 = vmatprep.mubr.f32.mxu0 %v30274_v16 }
0x1c09   :  { %18877 = vmatprep.subr.mxu0 %v27206_v30 }
0x1c0a   :  { %18879 = vmatpush1.msra.mxu0 %v27235_v40 }
0x1c0b   :  { %18881 = vmatprep.subr.mxu0 %v27243_v44 }
0x1c0c   :  { %18883 = vmatpush1.msra.mxu0 %v27263_v53 }
0x1c0d   :  { %19066 = vmatprep.subr.mxu0 %v27204_v29 }
0x1ca1   :  { %v18016_v38 = vpop.f32.mrf.mxu1 }
0x1ca3   :  { %v26033_v59 = vpop.f32.mrf.mxu1 }
0x1ca4   :  { %v29238_v59 = vld [vmem:[%s30023_s5] ss:$0 sm:$0xff] }
0x1ca5   :  { %v18167_v31 = vpop.f32.mrf.mxu1  ;;  %30594 = vst [vmem:[#allocation96_spill] sm:$0xff] %v29238_v59 }
0x1ca7   :  { %v26047_v22 = vpop.f32.mrf.mxu1 }
0x1ca9   :  { %v17935_v7 = vpop.f32.mrf.mxu0  ;;  %v18317_v42 = vpop.f32.mrf.mxu1 }
0x1caa   :  { %v17936_v35 = vadd.f32 %v17935_v7, %v29137_v28 }
0x1cab   :  { %v26026_v15 = vpop.f32.mrf.mxu0  ;;  %v26061_v49 = vpop.f32.mrf.mxu1 }
0x1cac   :  { %v18017_v61 = vadd.f32 %v18016_v38, %v17936_v35 }
0x1cad   :  { %v18092_v14 = vpop.f32.mrf.mxu0 }
0x1cae   :  { %v18093_v13 = vadd.f32 %v18092_v14, %v18017_v61 }
0x1caf   :  { %v26040_v33 = vpop.f32.mrf.mxu0 }
0x1cb0   :  { %v18168_v63 = vadd.f32 %v18167_v31, %v18093_v13 }
0x1cb1   :  { %v18244_v62 = vpop.f32.mrf.mxu0 }
0x1cb2   :  { %v18245_v48 = vadd.f32 %v18244_v62, %v18168_v63 }
0x1cb3   :  { %v26054_v32 = vpop.f32.mrf.mxu0 }
0x1cb4   :  { %v18318_v0 = vadd.f32 %v18317_v42, %v18245_v48 }
0x1cb5   :  { %v18525_v28 = vpop.f32.mrf.mxu1 }
0x1cb6   :  { %v18321_v47 = vadd.f32 %v18318_v0, %v30592_v19 }
0x1cb7   :  { %v26075_v57 = vpop.f32.mrf.mxu1  ;;  %v18444_v43 = vpop.f32.mrf.mxu0 }
0x1cb8   :  { %v18322_v52 = vadd.f32 %v30593_v45, %v18321_v47  ;;  %v18445_v31 = vadd.f32 %v29238_v59, %v18444_v43 }
0x1cb9   :  { %v18676_v60 = vpop.f32.mrf.mxu1  ;;  %v26068_v22 = vpop.f32.mrf.mxu0 }
0x1cba   :  { %26577 = vtanh.f32 %v18322_v52  ;;  %v24473_v51 = vmul.f32 -1.442695, %v18322_v52  ;;  %v18526_v42 = vadd.f32 %v18525_v28, %v18445_v31  ;;  %v30595_v28 = vld [vmem:[#allocation89_spill] sm:$0xff] }
0x1cbb   :  { %v26089_v37 = vpop.f32.mrf.mxu1 }
0x1cbc   :  { %26579 = vpow2.f32 %v24473_v51 }
0x1cbd   :  { %v18826_v38 = vpop.f32.mrf.mxu1 }
0x1cbf   :  { %v26103_v7 = vpop.f32.mrf.mxu1  ;;  %v18601_v35 = vpop.f32.mrf.mxu0 }
0x1cc0   :  { %v18602_v15 = vadd.f32 %v18601_v35, %v18526_v42 }
0x1cc1   :  { %v26082_v49 = vpop.f32.mrf.mxu0 }
0x1cc2   :  { %v18677_v61 = vadd.f32 %v18676_v60, %v18602_v15 }
0x1cc3   :  { %v18753_v14 = vpop.f32.mrf.mxu0 }
0x1cc4   :  { %v18754_v13 = vadd.f32 %v18753_v14, %v18677_v61 }
0x1cc5   :  { %v26096_v33 = vpop.f32.mrf.mxu0 }
0x1cc6   :  { %v18827_v63 = vadd.f32 %v18826_v38, %v18754_v13  ;;  %v30597_v13 = vld [vmem:[#allocation34_spill] sm:$0xff]  ;;  %v30598_v33 = vld [vmem:[#allocation35_spill] sm:$0xff] }
0x1cc7   :  { %v26578_v36 = vpop.eup %26577 }
0x1cc8   :  { %18332 = vrot.lane.b32.xlu0 %v26578_v36, %s26977_s4  ;;  %v18830_v62 = vmax.f32 %v18827_v63, 0.0  ;;  %v30599_v63 = vld [vmem:[#allocation36_spill] sm:$0xff] }
0x1cc9   :  { %v26580_v48 = vpop.eup %26579 }
0x1cca   :  { %v18326_v32 = vadd.f32 1.0, %v26580_v48  ;;  %v18831_v0 = vsub.f32 0.0, %v18830_v62  ;;  %v30600_v62 = vld [vmem:[#allocation38_spill] sm:$0xff]  ;;  %v30601_v48 = vld [vmem:[#allocation43_spill] sm:$0xff] }
0x1ccc   :  { %26581 = vrcp.f32 %v18326_v32  ;;  %v18832_v19 = vmul.f32 1.442695, %v18831_v0  ;;  %v30602_v32 = vld [vmem:[#allocation44_spill] sm:$0xff]  ;;  %v30603_v0 = vld [vmem:[#allocation47_spill] sm:$0xff] }
0x1cce   :  { %26583 = vpow2.f32 %v18832_v19  ;;  %v30604_v19 = vld [vmem:[#allocation37_spill] sm:$0xff] }
0x1cd9   :  { %v26582_v47 = vpop.eup %26581 }
0x1cda   :  { %v18330_v57 = vmul.f32 %v26582_v47, %v30595_v28  ;;  %v30609_v28 = vld [vmem:[#allocation42_spill] sm:$0xff] }
0x1cdb   :  { %v26584_v36 = vpop.eup %26583 }
0x1d3a   :  { %v18333_v45 = vpop.permute.xlu0 %18332 }
0x1d3b   :  { %v18335_v52 = vmul.f32 %v26582_v47, %v18333_v45  ;;  %v30606_v45 = vld [vmem:[#allocation40_spill] sm:$0xff] }
0x1d3d   :  { %18337 = vrot.lane.b32.xlu1 %v18335_v52, %s26978_s9  ;;  %v30607_v52 = vld [vmem:[#allocation41_spill] sm:$0xff] }
0x1d41   :  { %18835 = vrot.lane.b32.xlu1 %v26584_v36, %s26976_s28  ;;  %v30608_v36 = vld [vmem:[#allocation56_spill] sm:$0xff] }
0x1daf   :  { %v18338_v60 = vpop.permute.xlu1 %18337 }
0x1db0   :  { %v29244_v51 = vadd.f32 %v18338_v60, %v18330_v57  ;;  %v30610_v57 = vld [vmem:[#allocation45_spill] sm:$0xff] }
0x1db1   :  { %v30611_v60 = vld [vmem:[#allocation57_spill] sm:$0xff] }
0x1db2   :  { %30596 = vst [vmem:[#allocation102_spill] sm:$0xff] %v29244_v51  ;;  %26585 = vtanh.f32 %v29244_v51 }
0x1db3   :  { %v29248_v31 = vpop.permute.xlu1 %18835 }
0x1dbf   :  { %v26586_v37 = vpop.eup %26585 }
0x1dc0   :  { %18343 = vrot.lane.b32.xlu0 %v26586_v37, %s26977_s4  ;;  %v30612_v37 = vld [vmem:[#allocation46_spill] sm:$0xff] }
0x1e32   :  { %v18344_v43 = vpop.permute.xlu0 %18343 }
0x1e33   :  { %v18346_v38 = vmul.f32 %v26582_v47, %v18344_v43  ;;  %v30605_v47 = vld [vmem:[#allocation39_spill] sm:$0xff]  ;;  %v30613_v43 = vld [vmem:[#allocation48_spill] sm:$0xff] }
0x1e35   :  { %v18838_v22 = vmul.f32 %v29248_v31, %v18346_v38  ;;  %v30614_v38 = vld [vmem:[#allocation50_spill] sm:$0xff] }
0x1e37   :  { %18840 = vrot.lane.b32.xlu0 %v18838_v22, %s26978_s9  ;;  %v30615_v22 = vld [vmem:[#allocation52_spill] sm:$0xff] }
0x1ea9   :  { %v18841_v7 = vpop.permute.xlu0 %18840 }
0x1eaa   :  { %v18842_v42 = vsel %vm707_vm2, %v18841_v7, 0 }
0x1eab   :  { %v18917_v35 = vand.u32 4294901760, %v18842_v42 }
0x1ead   :  { %v18918_v15 = vsub.f32 %v18842_v42, %v18917_v35  ;;  %19034 = vmatmul.mubr.f32.vlgmr.msra.gmra.mxu1 %v18917_v35 }
0x1eae   :  { %19156 = vmatpush1.msra.mxu1 %v27197_v25  ;;  %19201 = vmatprep.mubr.f32.mxu1 %v30274_v16 }
0x1eaf   :  { %v18919_v49 = vand.u32 4294901760, %v18918_v15  ;;  %19158 = vmatprep.subr.mxu1 %v27199_v26 }
0x1eb0   :  { %19160 = vmatpush1.msra.mxu1 %v27201_v27 }
0x1eb1   :  { %v18920_v61 = vsub.f32 %v18918_v15, %v18919_v49  ;;  %19162 = vmatprep.subr.mxu1 %v27206_v30 }
0x1eb2   :  { %19164 = vmatpush1.msra.mxu1 %v27235_v40 }
0x1eb3   :  { %v18921_v14 = vand.u32 4294901760, %v18920_v61  ;;  %19166 = vmatprep.subr.mxu1 %v27243_v44 }
0x1eb4   :  { %19168 = vmatpush1.msra.mxu1 %v27263_v53 }
0x1eb5   :  { %19205 = vmatmul.mubr.f32.vlgmr.msra.gmra.mxu1 %v18919_v49  ;;  %19332 = vmatprep.subr.mxu1 %v27195_v21 }
0x1eb6   :  { %18922 = vmatmul.mubr.f32.vlgmr.msra.gmra.mxu0 %v18921_v14  ;;  %19334 = vmatpush1.msra.mxu1 %v27197_v25 }
0x1eb7   :  { %19069 = vmatpush1.msra.mxu0 %v30597_v13  ;;  %19336 = vmatprep.subr.mxu1 %v27199_v26 }
0x1eb8   :  { %19072 = vmatprep.subr.mxu0 %v30598_v33  ;;  %19338 = vmatpush1.msra.mxu1 %v27201_v27 }
0x1eb9   :  { %19075 = vmatpush1.msra.mxu0 %v30599_v63  ;;  %19340 = vmatprep.subr.mxu1 %v27206_v30 }
0x1eba   :  { %19078 = vmatprep.subr.mxu0 %v30600_v62  ;;  %19342 = vmatpush1.msra.mxu1 %v27235_v40  ;;  %v29305_v62 = vld [vmem:[#allocation2 + $0x30] sm:$0xff] }
0x1ebb   :  { %19081 = vmatpush1.msra.mxu0 %v30601_v48  ;;  %19344 = vmatprep.subr.mxu1 %v27243_v44  ;;  %30616 = vst [vmem:[#allocation89_spill] sm:$0xff] %v29305_v62 }
0x1ebc   :  { %19084 = vmatprep.subr.mxu0 %v30602_v32  ;;  %19120 = vmatprep.mubr.f32.mxu0 %v30274_v16 }
0x1ebd   :  { %19087 = vmatpush1.msra.mxu0 %v30603_v0  ;;  %19346 = vmatpush1.msra.mxu1 %v27263_v53  ;;  %v29301_v0 = vld [vmem:[#allocation5 + $0x30] sm:$0xff] }
0x1ebe   :  { %19379 = vmatprep.mubr.f32.mxu1 %v30274_v16  ;;  %19123 = vmatmul.mubr.f32.vlgmr.msra.gmra.mxu0 %v18918_v15 }
0x1ebf   :  { %19238 = vmatprep.subr.mxu0 %v30604_v19  ;;  %19381 = vmatmul.mubr.f32.vlgmr.msra.gmra.mxu1 %v18917_v35 }
0x1ec0   :  { %19242 = vmatpush1.msra.mxu0 %v30605_v47  ;;  %19299 = vmatprep.mubr.f32.mxu0 %v30274_v16 }
0x1ec1   :  { %19246 = vmatprep.subr.mxu0 %v30606_v45  ;;  %26111 = vmatprep.subr.mxu1 %v30274_v16 }
0x1ec2   :  { %19250 = vmatpush1.msra.mxu0 %v30607_v52  ;;  %26112 = vmatpush3.msra.mxu1 %v30608_v36 }
0x1ec3   :  { %19254 = vmatprep.subr.mxu0 %v30609_v28  ;;  %26113 = vmatprep.subr.mxu1 %v30274_v16 }
0x1ec4   :  { %19258 = vmatpush1.msra.mxu0 %v30610_v57  ;;  %26114 = vmatpush3.msra.mxu1 %v30611_v60 }
0x1ec5   :  { %19262 = vmatprep.subr.mxu0 %v30612_v37  ;;  %26115 = vmatprep.mubr.msk.f32.mxu1 %vm26975_vm0, %v30274_v16 }
0x1ec6   :  { %19266 = vmatpush1.msra.mxu0 %v30613_v43  ;;  %26125 = vmatprep.subr.mxu1 %v30274_v16 }
0x1ec7   :  { %19301 = vmatmul.mubr.f32.vlgmr.msra.gmra.mxu0 %v18917_v35  ;;  %26104 = vmatprep.subr.mxu0 %v30274_v16 }
0x1ec8   :  { %26105 = vmatpush3.msra.mxu0 %v30614_v38  ;;  %26108 = vmatprep.mubr.msk.f32.mxu0 %vm26975_vm0, %v30274_v16 }
0x1ec9   :  { %26106 = vmatprep.subr.mxu0 %v30274_v16 }
0x1eca   :  { %26107 = vmatpush3.msra.mxu0 %v30615_v22 }
0x1ecb   :  { %26118 = vmatprep.subr.mxu0 %v30274_v16 }
0x1f6d   :  { %v19035_v7 = vpop.f32.mrf.mxu1 }
0x1f6f   :  { %v19037_v61 = vpop.f32.mrf.mxu1 }
0x1f75   :  { %v19206_v43 = vpop.f32.mrf.mxu1 }
0x1f76   :  { %v18923_v42 = vpop.f32.mrf.mxu0 }
0x1f77   :  { %v19036_v15 = vadd.f32 %v19035_v7, %v18923_v42  ;;  %v19208_v36 = vpop.f32.mrf.mxu1 }
0x1f78   :  { %v18925_v49 = vpop.f32.mrf.mxu0 }
0x1f79   :  { %v19038_v57 = vadd.f32 %v19037_v61, %v18925_v49 }
0x1f7e   :  { %v19124_v14 = vpop.f32.mrf.mxu0 }
0x1f7f   :  { %v19125_v35 = vadd.f32 %v19124_v14, %v19036_v15  ;;  %v19382_v52 = vpop.f32.mrf.mxu1  ;;  %v30215_v14 = vsub.f32 1.0, %v29301_v0 }
0x1f80   :  { %v19126_v37 = vpop.f32.mrf.mxu0 }
0x1f81   :  { %v19207_v60 = vadd.f32 %v19206_v43, %v19125_v35  ;;  %v19127_v28 = vadd.f32 %v19126_v37, %v19038_v57  ;;  %v19384_v42 = vpop.f32.mrf.mxu1  ;;  %v26640_v57 = vld [vmem:[%s30025_s7] ss:$0 sm:$0xff]  ;;  %v30617_v35 = vld [vmem:[#allocation72_spill] sm:$0xff] }
0x1f83   :  { %v19209_v19 = vadd.f32 %v19208_v36, %v19127_v28 }
0x1f87   :  { %v19302_v45 = vpop.f32.mrf.mxu0 }
0x1f88   :  { %v19303_v47 = vadd.f32 %v19302_v45, %v19207_v60  ;;  %v29315_v45 = vmul.f32 %v29301_v0, %v29305_v62  ;;  %v19889_v60 = vsel %vm219_vm1, %v29301_v0, 0 }
0x1f89   :  { %v19304_v32 = vpop.f32.mrf.mxu0  ;;  %v29333_v49 = vand.u32 4294901760, %v19889_v60 }
0x1f8a   :  { %v29303_v48 = vadd.f32 %v19382_v52, %v19303_v47  ;;  %v19305_v7 = vadd.f32 %v19304_v32, %v19209_v19 }
0x1f8c   :  { %v19385_v15 = vadd.f32 %v19384_v42, %v19305_v7  ;;  %v30618_v7 = vld [vmem:[#allocation51_spill] sm:$0xff]  ;;  %v19961_v42 = vsub.f32 %v19889_v60, %v29333_v49  ;;  %v30624_v60 = vld [vmem:[#allocation53_spill] sm:$0xff] }
0x1f8e   :  { %v29311_v37 = vadd.f32 %v26640_v57, %v19385_v15  ;;  %v30619_v15 = vld [vmem:[#allocation73_spill] sm:$0xff]  ;;  %v30620_v57 = vld [vmem:[#allocation74_spill] sm:$0xff] }
0x1f90   :  { %v19407_v32 = vmul.f32 %v30215_v14, %v29311_v37  ;;  %v30627_v14 = vld [vmem:[#allocation55_spill] sm:$0xff] }
0x1f92   :  { %v19408_v19 = vadd.f32 %v19407_v32, %v29315_v45  ;;  %v30621_v32 = vld [vmem:[#allocation54_spill] sm:$0xff] }
0x1f94   :  { %v19410_v47 = vsel %vm219_vm1, %v19408_v19, 0  ;;  %v30622_v19 = vld [vmem:[#allocation75_spill] sm:$0xff] }
0x1f95   :  { %v19479_v52 = vand.u32 4294901760, %v19410_v47 }
0x1f97   :  { %v19480_v36 = vsub.f32 %v19410_v47, %v19479_v52  ;;  %26116 = vmatmul.mubr.f32.vlgmr.msra.gmra.mxu1 %v19479_v52  ;;  %v19962_v47 = vand.u32 4294901760, %v19961_v42 }
0x1f98   :  { %26126 = vmatpush3.msra.mxu1 %v30614_v38  ;;  %26129 = vmatprep.mubr.msk.f32.mxu1 %vm26975_vm0, %v30274_v16 }
0x1f99   :  { %26127 = vmatprep.subr.mxu1 %v30274_v16  ;;  %v19481_v28 = vand.u32 4294901760, %v19480_v36 }
0x1f9a   :  { %26128 = vmatpush3.msra.mxu1 %v30615_v22 }
0x1f9b   :  { %26130 = vmatmul.mubr.f32.vlgmr.msra.gmra.mxu1 %v19481_v28  ;;  %26139 = vmatprep.subr.mxu1 %v30274_v16  ;;  %v19482_v43 = vsub.f32 %v19480_v36, %v19481_v28  ;;  %v30623_v28 = vld [vmem:[#allocation59_spill] sm:$0xff] }
0x1f9c   :  { %26140 = vmatpush3.msra.mxu1 %v30614_v38  ;;  %26143 = vmatprep.mubr.msk.f32.mxu1 %vm26975_vm0, %v30274_v16 }
0x1f9d   :  { %26141 = vmatprep.subr.mxu1 %v30274_v16  ;;  %v19483_v61 = vand.u32 4294901760, %v19482_v43  ;;  %v30625_v43 = vld [vmem:[#allocation60_spill] sm:$0xff] }
0x1f9e   :  { %26142 = vmatpush3.msra.mxu1 %v30615_v22 }
0x1f9f   :  { %26109 = vmatmul.mubr.f32.vlgmr.msra.gmra.mxu0 %v19483_v61  ;;  %26144 = vmatmul.mubr.f32.vlgmr.msra.gmra.mxu1 %v19479_v52  ;;  %v30626_v61 = vld [vmem:[#allocation62_spill] sm:$0xff] }
0x1fa0   :  { %20004 = vmatprep.subr.mxu1 %v30617_v35  ;;  %26119 = vmatpush3.msra.mxu0 %v30618_v7 }
0x1fa1   :  { %20010 = vmatpush1.msra.mxu1 %v30619_v15  ;;  %26120 = vmatprep.subr.mxu0 %v30274_v16 }
0x1fa2   :  { %20016 = vmatprep.subr.mxu1 %v30620_v57  ;;  %26121 = vmatpush3.msra.mxu0 %v30621_v32 }
0x1fa3   :  { %26122 = vmatprep.mubr.msk.f32.mxu0 %vm26975_vm0, %v30274_v16  ;;  %20022 = vmatpush1.msra.mxu1 %v30622_v19  ;;  %v19963_v19 = vsub.f32 %v19961_v42, %v19962_v47 }
0x1fa4   :  { %20055 = vmatprep.mubr.f32.mxu1 %v30274_v16  ;;  %26123 = vmatmul.mubr.f32.vlgmr.msra.gmra.mxu0 %v19480_v36  ;;  %v30628_v36 = vld [vmem:[#allocation63_spill] sm:$0xff] }
0x1fa5   :  { %26132 = vmatprep.subr.mxu0 %v30274_v16  ;;  %20057 = vmatmul.mubr.f32.vlgmr.msra.gmra.mxu1 %v29333_v49 }
0x1fa6   :  { %20173 = vmatprep.subr.mxu1 %v30623_v28  ;;  %26133 = vmatpush3.msra.mxu0 %v30624_v60  ;;  %v19964_v60 = vand.u32 4294901760, %v19963_v19  ;;  %v30629_v19 = vld [vmem:[#allocation64_spill] sm:$0xff] }
0x1fa7   :  { %20175 = vmatpush1.msra.mxu1 %v30625_v43  ;;  %26134 = vmatprep.subr.mxu0 %v30274_v16 }
0x1fa8   :  { %20177 = vmatprep.subr.mxu1 %v30626_v61  ;;  %26135 = vmatpush3.msra.mxu0 %v30627_v14  ;;  %v20382_v14 = vsel %vm219_vm1, %v29248_v31, 0  ;;  %v30630_v31 = vld [vmem:[#allocation65_spill] sm:$0xff] }
0x1fa9   :  { %26136 = vmatprep.mubr.msk.f32.mxu0 %vm26975_vm0, %v30274_v16  ;;  %20179 = vmatpush1.msra.mxu1 %v30628_v36 }
0x1faa   :  { %20212 = vmatprep.mubr.f32.mxu1 %v30274_v16  ;;  %26137 = vmatmul.mubr.f32.vlgmr.msra.gmra.mxu0 %v19479_v52  ;;  %v20451_v52 = vand.u32 4294901760, %v20382_v14 }
0x1fab   :  { %19920 = vmatprep.subr.mxu0 %v30623_v28  ;;  %20216 = vmatmul.mubr.f32.vlgmr.msra.gmra.mxu1 %v19962_v47  ;;  %v30631_v47 = vld [vmem:[#allocation82_spill] sm:$0xff] }
0x1fac   :  { %20335 = vmatprep.subr.mxu1 %v30623_v28  ;;  %19922 = vmatpush1.msra.mxu0 %v30625_v43 }
0x1fad   :  { %20337 = vmatpush1.msra.mxu1 %v30625_v43  ;;  %19924 = vmatprep.subr.mxu0 %v30626_v61  ;;  %v20452_v43 = vsub.f32 %v20382_v14, %v20451_v52  ;;  %v30637_v14 = vld [vmem:[#allocation76_spill] sm:$0xff] }
0x1fae   :  { %20339 = vmatprep.subr.mxu1 %v30626_v61  ;;  %19926 = vmatpush1.msra.mxu0 %v30628_v36  ;;  %v30632_v61 = vld [vmem:[#allocation66_spill] sm:$0xff] }
0x1faf   :  { %19959 = vmatprep.mubr.f32.mxu0 %v30274_v16  ;;  %20341 = vmatpush1.msra.mxu1 %v30628_v36  ;;  %v30633_v36 = vld [vmem:[#allocation67_spill] sm:$0xff] }
0x1fb0   :  { %20374 = vmatprep.mubr.f32.mxu1 %v30274_v16  ;;  %19965 = vmatmul.mubr.f32.vlgmr.msra.gmra.mxu0 %v19964_v60  ;;  %v30634_v60 = vld [vmem:[#allocation83_spill] sm:$0xff] }
0x1fb1   :  { %20093 = vmatprep.subr.mxu0 %v30629_v19  ;;  %20376 = vmatmul.mubr.f32.vlgmr.msra.gmra.mxu1 %v29333_v49  ;;  %v30635_v19 = vld [vmem:[#allocation68_spill] sm:$0xff] }
0x1fb2   :  { %26153 = vmatprep.subr.mxu1 %v30274_v16  ;;  %20096 = vmatpush1.msra.mxu0 %v30630_v31  ;;  %v20453_v31 = vand.u32 4294901760, %v20452_v43 }
0x1fb3   :  { %26154 = vmatpush3.msra.mxu1 %v30631_v47  ;;  %20099 = vmatprep.subr.mxu0 %v30632_v61  ;;  %v30636_v61 = vld [vmem:[#allocation69_spill] sm:$0xff]  ;;  %v30638_v47 = vld [vmem:[#allocation70_spill] sm:$0xff] }
0x1fb4   :  { %26155 = vmatprep.subr.mxu1 %v30274_v16  ;;  %20102 = vmatpush1.msra.mxu0 %v30633_v36  ;;  %v30639_v36 = vld [vmem:[#allocation71_spill] sm:$0xff] }
0x1fb5   :  { %20135 = vmatprep.mubr.f32.mxu0 %v30274_v16  ;;  %26156 = vmatpush3.msra.mxu1 %v30634_v60  ;;  %v30640_v60 = vld [vmem:[#allocation77_spill] sm:$0xff] }
0x1fb6   :  { %26157 = vmatprep.mubr.msk.f32.mxu1 %vm26975_vm0, %v30274_v16  ;;  %20138 = vmatmul.mubr.f32.vlgmr.msra.gmra.mxu0 %v19961_v42  ;;  %v20454_v42 = vsub.f32 %v20452_v43, %v20453_v31 }
0x1fb7   :  { %20253 = vmatprep.subr.mxu0 %v30635_v19  ;;  %26158 = vmatmul.mubr.f32.vlgmr.msra.gmra.mxu1 %v20451_v52 }
0x1fb8   :  { %26167 = vmatprep.subr.mxu1 %v30274_v16  ;;  %20257 = vmatpush1.msra.mxu0 %v30636_v61 }
0x1fb9   :  { %26168 = vmatpush3.msra.mxu1 %v30637_v14  ;;  %20261 = vmatprep.subr.mxu0 %v30638_v47 }
0x1fba   :  { %26169 = vmatprep.subr.mxu1 %v30274_v16  ;;  %20265 = vmatpush1.msra.mxu0 %v30639_v36  ;;  %v20455_v36 = vand.u32 4294901760, %v20454_v42  ;;  %v30643_v42 = vld [vmem:[#allocation84_spill] sm:$0xff] }
0x1fbb   :  { %20298 = vmatprep.mubr.f32.mxu0 %v30274_v16  ;;  %26170 = vmatpush3.msra.mxu1 %v30640_v60 }
0x1fbc   :  { %26171 = vmatprep.mubr.msk.f32.mxu1 %vm26975_vm0, %v30274_v16  ;;  %20300 = vmatmul.mubr.f32.vlgmr.msra.gmra.mxu0 %v29333_v49  ;;  %v30641_v49 = vld [vmem:[#allocation78_spill] sm:$0xff] }
0x1fbd   :  { %26146 = vmatprep.subr.mxu0 %v30274_v16  ;;  %26172 = vmatmul.mubr.f32.vlgmr.msra.gmra.mxu1 %v20453_v31  ;;  %v30642_v31 = vld [vmem:[#allocation79_spill] sm:$0xff] }
0x1fbe   :  { %26181 = vmatprep.subr.mxu1 %v30274_v16  ;;  %26147 = vmatpush3.msra.mxu0 %v30637_v14 }
0x1fbf   :  { %26182 = vmatpush3.msra.mxu1 %v30637_v14  ;;  %26148 = vmatprep.subr.mxu0 %v30274_v16 }
0x1fc0   :  { %26183 = vmatprep.subr.mxu1 %v30274_v16  ;;  %26149 = vmatpush3.msra.mxu0 %v30640_v60 }
0x1fc1   :  { %26150 = vmatprep.mubr.msk.f32.mxu0 %vm26975_vm0, %v30274_v16  ;;  %26184 = vmatpush3.msra.mxu1 %v30640_v60  ;;  %v30646_v60 = vld [vmem:[#allocation85_spill] sm:$0xff] }
0x1fc2   :  { %26185 = vmatprep.mubr.msk.f32.mxu1 %vm26975_vm0, %v30274_v16  ;;  %26151 = vmatmul.mubr.f32.vlgmr.msra.gmra.mxu0 %v20455_v36  ;;  %v30644_v36 = vld [vmem:[#allocation80_spill] sm:$0xff] }
0x1fc3   :  { %26160 = vmatprep.subr.mxu0 %v30274_v16  ;;  %26186 = vmatmul.mubr.f32.vlgmr.msra.gmra.mxu1 %v20451_v52 }
0x1fc4   :  { %26161 = vmatpush3.msra.mxu0 %v30641_v49  ;;  %26164 = vmatprep.mubr.msk.f32.mxu0 %vm26975_vm0, %v30274_v16  ;;  %v30645_v49 = vld [vmem:[#allocation81_spill] sm:$0xff] }
0x1fc5   :  { %26162 = vmatprep.subr.mxu0 %v30274_v16  ;;  %26195 = vmatprep.subr.mxu1 %v30274_v16 }
0x1fc6   :  { %26163 = vmatpush3.msra.mxu0 %v30642_v31  ;;  %26196 = vmatpush3.msra.mxu1 %v30643_v42  ;;  %v26641_v31 = vld [vmem:[#allocation14] ss:$0 sm:$0xff] }
0x1fc7   :  { %26165 = vmatmul.mubr.f32.vlgmr.msra.gmra.mxu0 %v20452_v43  ;;  %26174 = vmatprep.subr.mxu0 %v30274_v16 }
0x1fc8   :  { %26175 = vmatpush3.msra.mxu0 %v30644_v36  ;;  %26178 = vmatprep.mubr.msk.f32.mxu0 %vm26975_vm0, %v30274_v16 }
0x1fc9   :  { %26176 = vmatprep.subr.mxu0 %v30274_v16  ;;  %26197 = vmatprep.subr.mxu1 %v30274_v16 }
0x1fca   :  { %26177 = vmatpush3.msra.mxu0 %v30645_v49  ;;  %26198 = vmatpush3.msra.mxu1 %v30646_v60 }
0x1fcb   :  { %26179 = vmatmul.mubr.f32.vlgmr.msra.gmra.mxu0 %v20451_v52  ;;  %26199 = vmatprep.mubr.msk.f32.mxu1 %vm26975_vm0, %v30274_v16 }
0x1fcc   :  { %26209 = vmatprep.subr.mxu1 %v30274_v16  ;;  %26188 = vmatprep.subr.mxu0 %v30274_v16 }
0x1fcd   :  { %26189 = vmatpush3.msra.mxu0 %v27597_v46  ;;  %26192 = vmatprep.mubr.msk.f32.mxu0 %vm26975_vm0, %v30274_v16 }
0x1fce   :  { %26190 = vmatprep.subr.mxu0 %v30274_v16 }
0x1fcf   :  { %26191 = vmatpush3.msra.mxu0 %v27599_v41 }
0x1fd0   :  { %26202 = vmatprep.subr.mxu0 %v30274_v16 }
0x2057   :  { %v19566_v43 = vpop.f32.mrf.mxu1 }
0x2059   :  { %v26117_v52 = vpop.f32.mrf.mxu1 }
0x205b   :  { %v19717_v60 = vpop.f32.mrf.mxu1 }
0x205d   :  { %v26131_v49 = vpop.f32.mrf.mxu1 }
0x205f   :  { %v19485_v36 = vpop.f32.mrf.mxu0  ;;  %v19867_v42 = vpop.f32.mrf.mxu1 }
0x2060   :  { %v19486_v47 = vadd.f32 %v26641_v31, %v19485_v36 }
0x2061   :  { %v26110_v14 = vpop.f32.mrf.mxu0  ;;  %v26145_v61 = vpop.f32.mrf.mxu1 }
0x2062   :  { %v19567_v19 = vadd.f32 %v19566_v43, %v19486_v47 }
0x2064   :  { %v19642_v28 = vpop.f32.mrf.mxu0 }
0x2065   :  { %v19643_v32 = vadd.f32 %v19642_v28, %v19567_v19  ;;  %v20058_v57 = vpop.f32.mrf.mxu1 }
0x2066   :  { %v26124_v15 = vpop.f32.mrf.mxu0 }
0x2067   :  { %v20060_v7 = vpop.f32.mrf.mxu1  ;;  %v19718_v35 = vadd.f32 %v19717_v60, %v19643_v32 }
0x206a   :  { %v19794_v22 = vpop.f32.mrf.mxu0 }
0x206b   :  { %v19795_v38 = vadd.f32 %v19794_v22, %v19718_v35  ;;  %v20217_v63 = vpop.f32.mrf.mxu1 }
0x206c   :  { %v26138_v33 = vpop.f32.mrf.mxu0 }
0x206d   :  { %v29434_v52 = vadd.f32 %v19867_v42, %v19795_v38  ;;  %v20219_v49 = vpop.f32.mrf.mxu1 }
0x2070   :  { %v19966_v13 = vpop.f32.mrf.mxu0 }
0x2071   :  { %v20059_v24 = vadd.f32 %v20058_v57, %v19966_v13  ;;  %v20377_v51 = vpop.f32.mrf.mxu1 }
0x2072   :  { %v19968_v31 = vpop.f32.mrf.mxu0 }
0x2073   :  { %v20379_v14 = vpop.f32.mrf.mxu1  ;;  %v20061_v47 = vadd.f32 %v20060_v7, %v19968_v31 }
0x2076   :  { %v20139_v61 = vpop.f32.mrf.mxu0 }
0x2077   :  { %v20140_v36 = vadd.f32 %v20139_v61, %v20059_v24  ;;  %v20538_v28 = vpop.f32.mrf.mxu1 }
0x2078   :  { %v20141_v19 = vpop.f32.mrf.mxu0 }
0x2079   :  { %v20142_v15 = vadd.f32 %v20141_v19, %v20061_v47  ;;  %v26159_v43 = vpop.f32.mrf.mxu1  ;;  %v20218_v32 = vadd.f32 %v20217_v63, %v20140_v36 }
0x207b   :  { %v20220_v60 = vadd.f32 %v20219_v49, %v20142_v15 }
0x207c   :  { %v20301_v22 = vpop.f32.mrf.mxu0 }
0x207d   :  { %v20302_v35 = vadd.f32 %v20301_v22, %v20218_v32  ;;  %v20689_v33 = vpop.f32.mrf.mxu1 }
0x207e   :  { %v20303_v38 = vpop.f32.mrf.mxu0 }
0x207f   :  { %v20304_v42 = vadd.f32 %v20303_v38, %v20220_v60  ;;  %v26173_v62 = vpop.f32.mrf.mxu1  ;;  %v29436_v3 = vadd.f32 %v20377_v51, %v20302_v35  ;;  %v26642_v51 = vld [vmem:[%s30029_s11] ss:$0 sm:$0xff] }
0x2081   :  { %v20380_v13 = vadd.f32 %v20379_v14, %v20304_v42  ;;  %v21370_v42 = vld [vmem:[#allocation7 + $0x38] sm:$0xff] }
0x2082   :  { %v20457_v57 = vpop.f32.mrf.mxu0 }
0x2083   :  { %v20458_v20 = vadd.f32 %v20457_v57, %v20380_v13  ;;  %v20839_v59 = vpop.f32.mrf.mxu1 }
0x2084   :  { %v26152_v7 = vpop.f32.mrf.mxu0 }
0x2085   :  { %v26187_v24 = vpop.f32.mrf.mxu1  ;;  %v20539_v31 = vadd.f32 %v20538_v28, %v20458_v20  ;;  %v21387_v7 = vsel %vm219_vm1, %v21370_v42, 0 }
0x2087   :  { %v20614_v61 = vpop.f32.mrf.mxu0 }
0x2088   :  { %v20615_v47 = vadd.f32 %v20614_v61, %v20539_v31  ;;  %v29454_v61 = vand.u32 4294901760, %v21387_v7 }
0x2089   :  { %v26166_v19 = vpop.f32.mrf.mxu0 }
0x208a   :  { %v20690_v63 = vadd.f32 %v20689_v33, %v20615_v47  ;;  %v21457_v19 = vsub.f32 %v21387_v7, %v29454_v61 }
0x208b   :  { %v20766_v49 = vpop.f32.mrf.mxu0 }
0x208c   :  { %v20767_v36 = vadd.f32 %v20766_v49, %v20690_v63  ;;  %v21458_v49 = vand.u32 4294901760, %v21457_v19 }
0x208d   :  { %v26180_v15 = vpop.f32.mrf.mxu0 }
0x208e   :  { %v20840_v43 = vadd.f32 %v20839_v59, %v20767_v36  ;;  %v30647_v59 = vsub.f32 1.0, %v29301_v0  ;;  %v21459_v36 = vsub.f32 %v21457_v19, %v21458_v49 }
0x2090   :  { %v20843_v62 = vadd.f32 %v26642_v51, %v20840_v43 }
0x2092   :  { %v24474_v14 = vmul.f32 -1.442695, %v20843_v62 }
0x2094   :  { %26587 = vpow2.f32 %v24474_v14 }
0x20a1   :  { %v26588_v32 = vpop.eup %26587 }
0x20a2   :  { %v20847_v60 = vadd.f32 1.0, %v26588_v32  ;;  %v30648_v32 = vld [vmem:[#allocation96_spill] sm:$0xff] }
0x20a4   :  { %26589 = vrcp.f32 %v20847_v60 }
0x20b1   :  { %v26590_v22 = vpop.eup %26589 }
0x20b2   :  { %v20851_v20 = vsub.f32 1.0, %v26590_v22  ;;  %v20850_v28 = vmul.f32 %v26590_v22, %v29434_v52 }
0x20b4   :  { %v20852_v35 = vmul.f32 %v20851_v20, %v29311_v37 }
0x20b6   :  { %v29443_v33 = vadd.f32 %v20852_v35, %v20850_v28 }
0x20b8   :  { %v20871_v38 = vmul.f32 %v29443_v33, %v30647_v59  ;;  %20874 = vst.msk [vmem:[#allocation19 + $0x30] sm:$0xff] %vm219_vm1, %v29443_v33 }
0x20ba   :  { %v20872_v13 = vadd.f32 %v20871_v38, %v29315_v45 }
0x20bc   :  { %20876 = vst.msk [vmem:[#allocation20 + $0x30] sm:$0xff] %vm219_vm1, %v20872_v13  ;;  %v20878_v57 = vsel %vm219_vm1, %v20872_v13, 0 }
0x20bd   :  { %v20947_v24 = vand.u32 4294901760, %v20878_v57 }
0x20bf   :  { %v20948_v31 = vsub.f32 %v20878_v57, %v20947_v24  ;;  %26200 = vmatmul.mubr.f32.vlgmr.msra.gmra.mxu1 %v20947_v24 }
0x20c0   :  { %26210 = vmatpush3.msra.mxu1 %v27597_v46  ;;  %26213 = vmatprep.mubr.msk.f32.mxu1 %vm26975_vm0, %v30274_v16 }
0x20c1   :  { %26211 = vmatprep.subr.mxu1 %v30274_v16  ;;  %v20949_v47 = vand.u32 4294901760, %v20948_v31 }
0x20c2   :  { %26212 = vmatpush3.msra.mxu1 %v27599_v41 }
0x20c3   :  { %26214 = vmatmul.mubr.f32.vlgmr.msra.gmra.mxu1 %v20949_v47  ;;  %26223 = vmatprep.subr.mxu1 %v30274_v16  ;;  %v20950_v45 = vsub.f32 %v20948_v31, %v20949_v47 }
0x20c4   :  { %26224 = vmatpush3.msra.mxu1 %v27597_v46  ;;  %26227 = vmatprep.mubr.msk.f32.mxu1 %vm26975_vm0, %v30274_v16 }
0x20c5   :  { %26225 = vmatprep.subr.mxu1 %v30274_v16  ;;  %v20951_v63 = vand.u32 4294901760, %v20950_v45 }
0x20c6   :  { %26226 = vmatpush3.msra.mxu1 %v27599_v41 }
0x20c7   :  { %26193 = vmatmul.mubr.f32.vlgmr.msra.gmra.mxu0 %v20951_v63  ;;  %26228 = vmatmul.mubr.f32.vlgmr.msra.gmra.mxu1 %v20947_v24 }
0x20c8   :  { %26203 = vmatpush3.msra.mxu0 %v27602_v23  ;;  %26206 = vmatprep.mubr.msk.f32.mxu0 %vm26975_vm0, %v30274_v16 }
0x20c9   :  { %26204 = vmatprep.subr.mxu0 %v30274_v16  ;;  %26237 = vmatprep.subr.mxu1 %v30274_v16 }
0x20ca   :  { %26205 = vmatpush3.msra.mxu0 %v27605_v34  ;;  %26238 = vmatpush3.msra.mxu1 %v27163_v17  ;;  %v21460_v17 = vand.u32 4294901760, %v21459_v36 }
0x20cb   :  { %26207 = vmatmul.mubr.f32.vlgmr.msra.gmra.mxu0 %v20948_v31  ;;  %26216 = vmatprep.subr.mxu0 %v30274_v16 }
0x20cc   :  { %26217 = vmatpush3.msra.mxu0 %v27610_v39  ;;  %26220 = vmatprep.mubr.msk.f32.mxu0 %vm26975_vm0, %v30274_v16 }
0x20cd   :  { %26218 = vmatprep.subr.mxu0 %v30274_v16  ;;  %26239 = vmatprep.subr.mxu1 %v30274_v16 }
0x20ce   :  { %26219 = vmatpush3.msra.mxu0 %v27613_v10  ;;  %26240 = vmatpush3.msra.mxu1 %v27165_v18 }
0x20cf   :  { %26221 = vmatmul.mubr.f32.vlgmr.msra.gmra.mxu0 %v20947_v24  ;;  %26230 = vmatprep.subr.mxu0 %v30274_v16 }
0x20d0   :  { %26231 = vmatpush3.msra.mxu0 %v27138_v4  ;;  %26234 = vmatprep.mubr.msk.f32.mxu0 %vm26975_vm0, %v30274_v16 }
0x20d1   :  { %26232 = vmatprep.subr.mxu0 %v30274_v16  ;;  %26241 = vmatprep.mubr.msk.f32.mxu1 %vm26975_vm0, %v30274_v16 }
0x20d2   :  { %26233 = vmatpush3.msra.mxu0 %v27140_v5  ;;  %26242 = vmatmul.mubr.f32.vlgmr.msra.gmra.mxu1 %v29454_v61 }
0x20d3   :  { %26235 = vmatmul.mubr.f32.vlgmr.msra.gmra.mxu0 %v21460_v17  ;;  %26244 = vmatprep.subr.mxu0 %v30274_v16 }
0x20d4   :  { %26245 = vmatpush3.msra.mxu0 %v27145_v8  ;;  %26251 = vmatprep.subr.mxu1 %v30274_v16 }
0x20d5   :  { %26246 = vmatprep.subr.mxu0 %v30274_v16  ;;  %26248 = vmatprep.mubr.msk.f32.mxu0 %vm26975_vm0, %v30274_v16 }
0x20d6   :  { %26247 = vmatpush3.msra.mxu0 %v27148_v9  ;;  %26252 = vmatpush3.msra.mxu1 %v27138_v4 }
0x20d7   :  { %26249 = vmatmul.mubr.f32.vlgmr.msra.gmra.mxu0 %v21457_v19  ;;  %26253 = vmatprep.subr.mxu1 %v30274_v16 }
0x20d8   :  { %26258 = vmatprep.subr.mxu0 %v30274_v16  ;;  %26254 = vmatpush3.msra.mxu1 %v27140_v5 }
0x20d9   :  { %26255 = vmatprep.mubr.msk.f32.mxu1 %vm26975_vm0, %v30274_v16  ;;  %26259 = vmatpush3.msra.mxu0 %v27153_v11 }
0x20da   :  { %26256 = vmatmul.mubr.f32.vlgmr.msra.gmra.mxu1 %v21458_v49  ;;  %26260 = vmatprep.subr.mxu0 %v30274_v16 }
0x20db   :  { %26265 = vmatprep.subr.mxu1 %v30274_v16  ;;  %26261 = vmatpush3.msra.mxu0 %v27156_v12 }
0x20dc   :  { %26262 = vmatprep.mubr.msk.f32.mxu0 %vm26975_vm0, %v30274_v16  ;;  %26266 = vmatpush3.msra.mxu1 %v27138_v4 }
0x20dd   :  { %26263 = vmatmul.mubr.f32.vlgmr.msra.gmra.mxu0 %v29454_v61  ;;  %26267 = vmatprep.subr.mxu1 %v30274_v16 }
0x20de   :  { %26268 = vmatpush3.msra.mxu1 %v27140_v5  ;;  %26269 = vmatprep.mubr.msk.f32.mxu1 %vm26975_vm0, %v30274_v16 }
0x20df   :  { %26270 = vmatmul.mubr.f32.vlgmr.msra.gmra.mxu1 %v29454_v61  ;;  %21975 = vmatprep.subr.mxu1 %v27256_v50 }
0x20e0   :  { %21981 = vmatpush1.msra.mxu1 %v27266_v54  ;;  %21887 = vmatprep.subr.mxu0 %v27195_v21 }
0x20e1   :  { %21987 = vmatprep.subr.mxu1 %v27268_v55  ;;  %22050 = vmatprep.mubr.f32.mxu1 %v30274_v16 }
0x20e2   :  { %21993 = vmatpush1.msra.mxu1 %v27270_v56  ;;  %21889 = vmatpush1.msra.mxu0 %v27197_v25 }
0x20e3   :  { %21999 = vmatprep.subr.mxu1 %v27276_v58  ;;  %21891 = vmatprep.subr.mxu0 %v27199_v26 }
0x20e4   :  { %22005 = vmatpush1.msra.mxu1 %v27296_v1  ;;  %21893 = vmatpush1.msra.mxu0 %v27201_v27 }
0x20e5   :  { %22011 = vmatprep.subr.mxu1 %v27299_v2  ;;  %21895 = vmatprep.subr.mxu0 %v27206_v30 }
0x20e6   :  { %22017 = vmatpush1.msra.mxu1 %v27305_v6  ;;  %21897 = vmatpush1.msra.mxu0 %v27235_v40 }
0x20e7   :  { %22172 = vmatprep.subr.mxu1 %v27195_v21  ;;  %21899 = vmatprep.subr.mxu0 %v27243_v44 }
0x20e8   :  { %21901 = vmatpush1.msra.mxu0 %v27263_v53  ;;  %21934 = vmatprep.mubr.f32.mxu0 %v30274_v16 }
0x20e9   :  { %22084 = vmatprep.subr.mxu0 %v27204_v29 }
0x217f   :  { %v21034_v4 = vpop.f32.mrf.mxu1 }
0x2181   :  { %v26201_v5 = vpop.f32.mrf.mxu1 }
0x2183   :  { %v21185_v8 = vpop.f32.mrf.mxu1 }
0x2185   :  { %v26215_v9 = vpop.f32.mrf.mxu1 }
0x2187   :  { %v20953_v11 = vpop.f32.mrf.mxu0  ;;  %v21335_v12 = vpop.f32.mrf.mxu1 }
0x2188   :  { %v20954_v18 = vadd.f32 %v20953_v11, %v29436_v3  ;;  %v26643_v3 = vld [vmem:[%s30032_s14] ss:$0 sm:$0xff] }
0x2189   :  { %v26194_v50 = vpop.f32.mrf.mxu0  ;;  %v26229_v54 = vpop.f32.mrf.mxu1 }
0x218a   :  { %v21035_v55 = vadd.f32 %v21034_v4, %v20954_v18  ;;  %v29550_v18 = vld [vmem:[#allocation8] sm:$0xff]  ;;  %v30649_v50 = vld [vmem:[#allocation87_spill] sm:$0xff] }
0x218b   :  { %v21110_v56 = vpop.f32.mrf.mxu0  ;;  %v1750_v54 = vmul.f32 %v30649_v50, %v29550_v18 }
0x218c   :  { %v21111_v58 = vadd.f32 %v21110_v56, %v21035_v55  ;;  %v26644_v55 = vld [vmem:[#allocation2] sm:$0xff] }
0x218d   :  { %v26208_v1 = vpop.f32.mrf.mxu0  ;;  %v29555_v56 = vmul.f32 %v26644_v55, %v29550_v18 }
0x218e   :  { %v21186_v2 = vadd.f32 %v21185_v8, %v21111_v58  ;;  %v30650_v1 = vld [vmem:[#allocation88_spill] sm:$0xff] }
0x218f   :  { %v21262_v6 = vpop.f32.mrf.mxu0  ;;  %v1751_v58 = vsub.f32 %v1750_v54, %v29555_v56  ;;  %v29598_v54 = vld [vmem:[#allocation5 + $0x10] sm:$0xff] }
0x2190   :  { %v21263_v15 = vadd.f32 %v21262_v6, %v21186_v2  ;;  %v2742_v2 = vmul.f32 %v30650_v1, %v29550_v18  ;;  %v26645_v6 = vld [vmem:[#allocation2 + $0x8] sm:$0xff] }
0x2191   :  { %v26222_v43 = vpop.f32.mrf.mxu0 }
0x2192   :  { %v21336_v51 = vadd.f32 %v21335_v12, %v21263_v15  ;;  %v21543_v29 = vpop.f32.mrf.mxu1  ;;  %v29561_v15 = vmul.f32 %v26645_v6, %v29550_v18  ;;  %v30651_v43 = vld [vmem:[#allocation58_spill] sm:$0xff] }
0x2193   :  { %v21462_v62 = vpop.f32.mrf.mxu0 }
0x2194   :  { %v21339_v14 = vadd.f32 %v21336_v51, %v29303_v48  ;;  %v21463_v60 = vadd.f32 %v30648_v32, %v21462_v62  ;;  %v26243_v22 = vpop.f32.mrf.mxu1  ;;  %v4298_v51 = vmul.f32 %v30651_v43, %v29550_v18  ;;  %v2743_v62 = vsub.f32 %v2742_v2, %v29555_v56  ;;  %v30656_v2 = vld [vmem:[#allocation97_spill] sm:$0xff] }
0x2195   :  { %v26236_v20 = vpop.f32.mrf.mxu0  ;;  %v30652_v22 = vld [vmem:[#allocation91_spill] sm:$0xff]  ;;  %v11800_v6 = vmul.f32 %v30656_v2, %v29550_v18  ;;  %v26651_v43 = vld [vmem:[#allocation2 + $0x20] sm:$0xff] }
0x2196   :  { %v21340_v28 = vadd.f32 %v26643_v3, %v21339_v14  ;;  %v21544_v35 = vadd.f32 %v21543_v29, %v21463_v60  ;;  %v1752_v29 = vand.u32 2147483647, %v1751_v58  ;;  %v29566_v14 = vld [vmem:[#allocation5] sm:$0xff]  ;;  %v4299_v60 = vsub.f32 %v4298_v51, %v29561_v15 }
0x2197   :  { %v21619_v59 = vpop.f32.mrf.mxu0  ;;  %v220_v32 = vsel %vm219_vm1, %v29566_v14, 0.0  ;;  %v5764_v20 = vmul.f32 %v30652_v22, %v29550_v18  ;;  %v29605_v51 = vmul.f32 %v26651_v43, %v29550_v18  ;;  %v30661_v2 = vld [vmem:[#allocation89_spill] sm:$0xff]  ;;  %v19388_v43 = vmul.f32 %v29311_v37, %v29550_v18 }
0x2198   :  { %26591 = vtanh.f32 %v21340_v28  ;;  %v21620_v38 = vadd.f32 %v21619_v59, %v21544_v35  ;;  %v24475_v63 = vmul.f32 -1.442695, %v21340_v28  ;;  %v1753_v3 = vmul.f32 %v29566_v14, %v1752_v29  ;;  %v30657_v29 = vld [vmem:[#allocation98_spill] sm:$0xff] }
0x2199   :  { %v26250_v42 = vpop.f32.mrf.mxu0  ;;  %v2744_v28 = vand.u32 2147483647, %v2743_v62  ;;  %v4300_v35 = vand.u32 2147483647, %v4299_v60  ;;  %v5765_v59 = vsub.f32 %v5764_v20, %v29561_v15  ;;  %v13352_v62 = vmul.f32 %v30657_v29, %v29550_v18 }
0x219a   :  { %v21694_v13 = vpop.f32.mrf.mxu1  ;;  %26593 = vpow2.f32 %v24475_v63 }
0x219b   :  { %v21695_v57 = vadd.f32 %v21694_v13, %v21620_v38  ;;  %v1754_v38 = vsel %vm219_vm1, %v1753_v3, 0.0  ;;  %v2745_v42 = vmul.f32 %v29566_v14, %v2744_v28  ;;  %v26647_v13 = vld [vmem:[#allocation2 + $0x10] sm:$0xff]  ;;  %v13353_v3 = vsub.f32 %v13352_v62, %v29605_v51  ;;  %v30658_v28 = vld [vmem:[#allocation101_spill] sm:$0xff]  ;;  %v29644_v62 = vld [vmem:[#allocation5 + $0x28] sm:$0xff] }
0x219c   :  { %v26257_v7 = vpop.f32.mrf.mxu1 }
0x219d   :  { %v21771_v24 = vpop.f32.mrf.mxu0  ;;  %v30653_v7 = vld [vmem:[#allocation92_spill] sm:$0xff] }
0x219e   :  { %v21772_v31 = vadd.f32 %v21771_v24, %v21695_v57  ;;  %v29578_v57 = vmul.f32 %v26647_v13, %v29550_v18  ;;  %v7316_v24 = vmul.f32 %v30653_v7, %v29550_v18  ;;  %v13354_v7 = vand.u32 2147483647, %v13353_v3 }
0x219f   :  { %v21844_v48 = vpop.f32.mrf.mxu1  ;;  %v26264_v61 = vpop.f32.mrf.mxu0 }
0x21a0   :  { %v21845_v47 = vadd.f32 %v21844_v48, %v21772_v31  ;;  %v29582_v31 = vld [vmem:[#allocation5 + $0x8] sm:$0xff]  ;;  %v5766_v61 = vand.u32 2147483647, %v5765_v59 }
0x21a1   :  { %v26271_v45 = vpop.f32.mrf.mxu1  ;;  %v4301_v48 = vmul.f32 %v29582_v31, %v4300_v35  ;;  %v14818_v35 = vmul.f32 %v30658_v28, %v29550_v18 }
0x21a2   :  { %v21848_v49 = vmax.f32 %v21845_v47, 0.0  ;;  %v2746_v47 = vsel %vm219_vm1, %v2745_v42, 0.0  ;;  %v7317_v45 = vsub.f32 %v7316_v24, %v29578_v57 }
0x21a3   :  { %v14819_v24 = vsub.f32 %v14818_v35, %v29605_v51 }
0x21a4   :  { %v21849_v4 = vsub.f32 0.0, %v21848_v49  ;;  %v4302_v49 = vsel %vm219_vm1, %v4301_v48, 0.0 }
0x21a5   :  { %v26592_v19 = vpop.eup %26591 }
0x21a6   :  { %21350 = vrot.lane.b32.xlu1 %v26592_v19, %s26977_s4  ;;  %v21850_v5 = vmul.f32 1.442695, %v21849_v4  ;;  %v30654_v19 = vld [vmem:[#allocation95_spill] sm:$0xff] }
0x21a7   :  { %v26594_v36 = vpop.eup %26593  ;;  %v8782_v63 = vmul.f32 %v30654_v19, %v29550_v18  ;;  %v30659_v19 = vld [vmem:[#allocation90_spill] sm:$0xff] }
0x21a8   :  { %v21344_v17 = vadd.f32 1.0, %v26594_v36  ;;  %v5767_v36 = vmul.f32 %v29582_v31, %v5766_v61 }
0x21a9   :  { %v8783_v4 = vsub.f32 %v8782_v63, %v29578_v57  ;;  %v16370_v63 = vmul.f32 %v30659_v19, %v29550_v18 }
0x21aa   :  { %26595 = vrcp.f32 %v21344_v17  ;;  %v7318_v17 = vand.u32 2147483647, %v7317_v45  ;;  %v5768_v50 = vsel %vm219_vm1, %v5767_v36, 0.0 }
0x21ab   :  { %26597 = vpow2.f32 %v21850_v5  ;;  %v26649_v5 = vld [vmem:[#allocation2 + $0x18] sm:$0xff]  ;;  %v8784_v58 = vand.u32 2147483647, %v8783_v4 }
0x21ac   :  { %v7319_v55 = vmul.f32 %v29598_v54, %v7318_v17  ;;  %v14820_v17 = vand.u32 2147483647, %v14819_v24 }
0x21ad   :  { %v8785_v60 = vmul.f32 %v29598_v54, %v8784_v58 }
0x21af   :  { %v8786_v59 = vsel %vm219_vm1, %v8785_v60, 0.0 }
0x21b7   :  { %v29545_v8 = vpop.eup %26595 }
0x21b8   :  { %v26598_v12 = vpop.eup %26597 }
0x2218   :  { %v21351_v9 = vpop.permute.xlu1 %21350 }
0x2219   :  { %v21353_v11 = vmul.f32 %v29545_v8, %v21351_v9  ;;  %v29593_v9 = vmul.f32 %v26649_v5, %v29550_v18 }
0x221b   :  { %21355 = vrot.lane.b32.xlu0 %v21353_v11, %s26978_s9  ;;  %v30655_v11 = vld [vmem:[#allocation49_spill] sm:$0xff]  ;;  %v11801_v20 = vsub.f32 %v11800_v6, %v29593_v9  ;;  %v29639_v6 = vmul.f32 %v30661_v2, %v29550_v18 }
0x221c   :  { %v30663_v2 = vld [vmem:[#allocation61_spill] sm:$0xff] }
0x221d   :  { %v11802_v13 = vand.u32 2147483647, %v11801_v20  ;;  %v20854_v20 = vmul.f32 %v29443_v33, %v29550_v18 }
0x221f   :  { %21853 = vrot.lane.b32.xlu0 %v26598_v12, %s26976_s28  ;;  %v10334_v12 = vmul.f32 %v30655_v11, %v29550_v18  ;;  %v30660_v11 = vld [vmem:[#allocation103_spill] sm:$0xff]  ;;  %v20855_v37 = vsub.f32 %v20854_v20, %v29639_v6 }
0x2221   :  { %v10335_v1 = vsub.f32 %v10334_v12, %v29593_v9  ;;  %v17836_v12 = vmul.f32 %v30660_v11, %v29550_v18 }
0x2223   :  { %v10336_v22 = vand.u32 2147483647, %v10335_v1 }
0x223e   :  { %221 = vadd.xlane.f32.xlu0 %v220_v32  ;;  %v7320_v32 = vsel %vm219_vm1, %v7319_v55, 0.0 }
0x2242   :  { %1755 = vadd.xlane.f32.xlu0 %v1754_v38  ;;  %v29616_v38 = vld [vmem:[#allocation5 + $0x18] sm:$0xff] }
0x2243   :  { %v10337_v42 = vmul.f32 %v29616_v38, %v10336_v22  ;;  %v11803_v61 = vmul.f32 %v29616_v38, %v11802_v13  ;;  %v19389_v22 = vsub.f32 %v19388_v43, %v29639_v6  ;;  %v20856_v13 = vand.u32 2147483647, %v20855_v37 }
0x2244   :  { %v1261_v43 = vmul.f32 %v30663_v2, %v29550_v18  ;;  %v15336_v2 = vsel %vm219_vm1, %v29644_v62, 0.0 }
0x2245   :  { %v10338_v48 = vsel %vm219_vm1, %v10337_v42, 0.0  ;;  %v11804_v4 = vsel %vm219_vm1, %v11803_v61, 0.0  ;;  %v19390_v35 = vand.u32 2147483647, %v19389_v22  ;;  %v20857_v24 = vmul.f32 %v20856_v13, %v29301_v0 }
0x2246   :  { %2747 = vadd.xlane.f32.xlu0 %v2746_v47  ;;  %v26653_v47 = vld [vmem:[#allocation2 + $0x28] sm:$0xff] }
0x2247   :  { %v29623_v45 = vmul.f32 %v26653_v47, %v29550_v18  ;;  %v19391_v42 = vmul.f32 %v19390_v35, %v29301_v0  ;;  %v20858_v33 = vsel %vm219_vm1, %v20857_v24, 0.0  ;;  %v6282_v24 = vsel %vm219_vm1, %v29598_v54, 0.0 }
0x2249   :  { %v16371_v5 = vsub.f32 %v16370_v63, %v29623_v45  ;;  %v17837_v1 = vsub.f32 %v17836_v12, %v29623_v45 }
0x224a   :  { %4303 = vadd.xlane.f32.xlu0 %v4302_v49  ;;  %v29627_v49 = vld [vmem:[#allocation5 + $0x20] sm:$0xff] }
0x224b   :  { %v13355_v36 = vmul.f32 %v29627_v49, %v13354_v7  ;;  %v14821_v55 = vmul.f32 %v29627_v49, %v14820_v17  ;;  %v16372_v58 = vand.u32 2147483647, %v16371_v5  ;;  %v17838_v60 = vand.u32 2147483647, %v17837_v1 }
0x224c   :  { %v19392_v7 = vsel %vm219_vm1, %v19391_v42, 0.0 }
0x224d   :  { %v14822_v29 = vsel %vm219_vm1, %v14821_v55, 0.0  ;;  %v17839_v28 = vmul.f32 %v29644_v62, %v17838_v60 }
0x224e   :  { %5769 = vadd.xlane.f32.xlu0 %v5768_v50  ;;  %v13356_v50 = vsel %vm219_vm1, %v13355_v36, 0.0 }
0x2252   :  { %7321 = vadd.xlane.f32.xlu0 %v7320_v32  ;;  %v16373_v32 = vmul.f32 %v29644_v62, %v16372_v58 }
0x2254   :  { %v16374_v3 = vsel %vm219_vm1, %v16373_v32, 0.0  ;;  %v30664_v32 = vld [vmem:[#allocation86_spill] sm:$0xff] }
0x2255   :  { %v4781_v60 = vmul.f32 %v30664_v32, %v29550_v18 }
0x2256   :  { %8787 = vadd.xlane.f32.xlu0 %v8786_v59  ;;  %v17840_v59 = vsel %vm219_vm1, %v17839_v28, 0.0  ;;  %v30665_v28 = vld [vmem:[#allocation94_spill] sm:$0xff] }
0x225a   :  { %10339 = vadd.xlane.f32.xlu0 %v10338_v48  ;;  %v30662_v48 = vld [vmem:[#allocation102_spill] sm:$0xff] }
0x225b   :  { %v21348_v61 = vmul.f32 %v29545_v8, %v30662_v48 }
0x225e   :  { %11805 = vadd.xlane.f32.xlu0 %v11804_v4 }
0x2262   :  { %13357 = vadd.xlane.f32.xlu0 %v13356_v50 }
0x2266   :  { %14823 = vadd.xlane.f32.xlu0 %v14822_v29  ;;  %v1262_v29 = vsub.f32 %v1261_v43, %v29555_v56 }
0x2268   :  { %v1263_v22 = vand.u32 2147483647, %v1262_v29 }
0x226a   :  { %16375 = vadd.xlane.f32.xlu0 %v16374_v3  ;;  %v1264_v20 = vmul.f32 %v29566_v14, %v1263_v22  ;;  %v4782_v3 = vsub.f32 %v4781_v60, %v29561_v15  ;;  %v30666_v14 = vld [vmem:[#allocation93_spill] sm:$0xff] }
0x226b   :  { %v10817_v13 = vmul.f32 %v30666_v14, %v29550_v18  ;;  %v30680_v14 = vld [vmem:[#allocation56_spill] sm:$0xff] }
0x226c   :  { %v1265_v35 = vsel %vm219_vm1, %v1264_v20, 0.0  ;;  %v4783_v37 = vand.u32 2147483647, %v4782_v3 }
0x226e   :  { %17841 = vadd.xlane.f32.xlu0 %v17840_v59  ;;  %v3264_v59 = vsel %vm219_vm1, %v29582_v31, 0.0  ;;  %v4784_v56 = vmul.f32 %v29582_v31, %v4783_v37  ;;  %v10818_v31 = vsub.f32 %v10817_v13, %v29593_v9  ;;  %v30669_v37 = vld [vmem:[#allocation34_spill] sm:$0xff] }
0x226f   :  { %v30681_v13 = vld [vmem:[#allocation42_spill] sm:$0xff] }
0x2270   :  { %v4785_v15 = vsel %vm219_vm1, %v4784_v56, 0.0  ;;  %v30671_v56 = vld [vmem:[#allocation36_spill] sm:$0xff] }
0x2272   :  { %19393 = vadd.xlane.f32.xlu0 %v19392_v7 }
0x2276   :  { %20859 = vadd.xlane.f32.xlu0 %v20858_v33 }
0x228d   :  { %v21356_v47 = vpop.permute.xlu0 %21355 }
0x228e   :  { %v29660_v19 = vadd.f32 %v21356_v47, %v21348_v61 }
0x2290   :  { %26599 = vtanh.f32 %v29660_v19 }
0x2291   :  { %v29664_v36 = vpop.permute.xlu0 %21853 }
0x229d   :  { %v26600_v63 = vpop.eup %26599 }
0x229e   :  { %21361 = vrot.lane.b32.xlu1 %v26600_v63, %s26977_s4  ;;  %v10819_v63 = vand.u32 2147483647, %v10818_v31 }
0x22c7   :  { %v222_v17 = vpop.xlane.xlu0 %221 }
0x22c8   :  { %v223_v4 = vrot.slane %v222_v17, 4 }
0x22ca   :  { %v224_v0 = vadd.f32 %v223_v4, %v222_v17  ;;  %v9300_v17 = vsel %vm219_vm1, %v29616_v38, 0.0  ;;  %v10820_v4 = vmul.f32 %v29616_v38, %v10819_v63 }
0x22cb   :  { %v1756_v31 = vpop.xlane.xlu0 %1755 }
0x22cc   :  { %v225_v5 = vrot.slane %v224_v0, 2 }
0x22ce   :  { %v226_v11 = vadd.f32 %v225_v5, %v224_v0 }
0x22d0   :  { %v227_v12 = vrot.slane %v226_v11, 1 }
0x22d2   :  { %v228_v50 = vadd.f32 %v227_v12, %v226_v11  ;;  %v10821_v11 = vsel %vm219_vm1, %v10820_v4, 0.0 }
0x22d4   :  { %26398 = vpush %v228_v50  ;;  %v12318_v50 = vsel %vm219_vm1, %v29627_v49, 0.0 }
0x2305   :  { %s26399_s28 = spop %26398 }
0x2306   :  { %s230_s25 = sadd.f32 1e-12, %s26399_s28 }
0x2308   :  { %v231_v33 = vstv %s230_s25 }
0x2309   :  { %26601 = vrcp.f32 %v231_v33  ;;  %v30686_v33 = vld [vmem:[#allocation50_spill] sm:$0xff] }
0x2310   :  { %v21362_v55 = vpop.permute.xlu1 %21361 }
0x2311   :  { %v21364_v58 = vmul.f32 %v29545_v8, %v21362_v55  ;;  %v7799_v8 = vmul.f32 %v30665_v28, %v29550_v18 }
0x2313   :  { %v21856_v1 = vmul.f32 %v29664_v36, %v21364_v58  ;;  %v7800_v42 = vsub.f32 %v7799_v8, %v29578_v57  ;;  %v30667_v57 = vld [vmem:[#allocation100_spill] sm:$0xff] }
0x2314   :  { %v13835_v61 = vmul.f32 %v30667_v57, %v29550_v18  ;;  %v2748_v57 = vpop.xlane.xlu0 %2747 }
0x2315   :  { %21858 = vrot.lane.b32.xlu1 %v21856_v1, %s26978_s9  ;;  %v7801_v7 = vand.u32 2147483647, %v7800_v42  ;;  %v30672_v42 = vld [vmem:[#allocation38_spill] sm:$0xff] }
0x2316   :  { %v13836_v0 = vsub.f32 %v13835_v61, %v29605_v51  ;;  %v26602_v5 = vpop.eup %26601  ;;  %v19871_v51 = vmul.f32 %v29434_v52, %v29550_v18  ;;  %v1757_v61 = vrot.slane %v1756_v31, 4 }
0x2317   :  { %v7802_v48 = vmul.f32 %v29598_v54, %v7801_v7  ;;  %v30668_v54 = vld [vmem:[#allocation99_spill] sm:$0xff]  ;;  %26400 = vpush %v26602_v5  ;;  %v30684_v7 = vld [vmem:[#allocation46_spill] sm:$0xff] }
0x2318   :  { %v16853_v9 = vmul.f32 %v30668_v54, %v29550_v18  ;;  %v13837_v12 = vand.u32 2147483647, %v13836_v0  ;;  %v19872_v29 = vsub.f32 %v19871_v51, %v29639_v6  ;;  %v1758_v63 = vadd.f32 %v1757_v61, %v1756_v31 }
0x2319   :  { %v7803_v47 = vsel %vm219_vm1, %v7802_v48, 0.0  ;;  %v30687_v48 = vld [vmem:[#allocation52_spill] sm:$0xff] }
0x231a   :  { %v13838_v55 = vmul.f32 %v29627_v49, %v13837_v12  ;;  %v16854_v58 = vsub.f32 %v16853_v9, %v29623_v45  ;;  %v19873_v32 = vand.u32 2147483647, %v19872_v29  ;;  %v26656_v45 = vld [vmem:[#allocation5 + $0x30] sm:$0xff]  ;;  %v1759_v4 = vrot.slane %v1758_v63, 2 }
0x231b   :  { %v18354_v60 = vsel %vm219_vm1, %v26656_v45, 0.0 }
0x231c   :  { %v13839_v38 = vsel %vm219_vm1, %v13838_v55, 0.0  ;;  %v16855_v1 = vand.u32 2147483647, %v16854_v58  ;;  %v19874_v52 = vmul.f32 %v26656_v45, %v19873_v32  ;;  %v1760_v12 = vadd.f32 %v1759_v4, %v1758_v63 }
0x231e   :  { %v16856_v43 = vmul.f32 %v29644_v62, %v16855_v1  ;;  %v19875_v22 = vsel %vm219_vm1, %v19874_v52, 0.0  ;;  %v1761_v1 = vrot.slane %v1760_v12, 1 }
0x2320   :  { %v16857_v49 = vsel %vm219_vm1, %v16856_v43, 0.0  ;;  %v1762_v45 = vadd.f32 %v1761_v1, %v1760_v12 }
0x2339   :  { %1266 = vadd.xlane.f32.xlu1 %v1265_v35 }
0x233d   :  { %3265 = vadd.xlane.f32.xlu1 %v3264_v59  ;;  %v30670_v59 = vld [vmem:[#allocation35_spill] sm:$0xff] }
0x2341   :  { %4786 = vadd.xlane.f32.xlu1 %v4785_v15  ;;  %v30683_v15 = vld [vmem:[#allocation57_spill] sm:$0xff] }
0x2345   :  { %6283 = vadd.xlane.f32.xlu1 %v6282_v24  ;;  %v30685_v24 = vld [vmem:[#allocation48_spill] sm:$0xff] }
0x2348   :  { %s26401_s12 = spop %26400 }
0x2349   :  { %7804 = vadd.xlane.f32.xlu1 %v7803_v47  ;;  %v2749_v47 = vrot.slane %v2748_v57, 4 }
0x234d   :  { %9301 = vadd.xlane.f32.xlu1 %v9300_v17  ;;  %v2750_v17 = vadd.f32 %v2749_v47, %v2748_v57 }
0x234f   :  { %v2751_v5 = vrot.slane %v2750_v17, 2 }
0x2351   :  { %10822 = vadd.xlane.f32.xlu1 %v10821_v11  ;;  %v2752_v58 = vadd.f32 %v2751_v5, %v2750_v17 }
0x2353   :  { %v2753_v29 = vrot.slane %v2752_v58, 1 }
0x2355   :  { %12319 = vadd.xlane.f32.xlu1 %v12318_v50 }
0x2359   :  { %13840 = vadd.xlane.f32.xlu1 %v13839_v38 }
0x235d   :  { %15337 = vadd.xlane.f32.xlu1 %v15336_v2 }
0x2361   :  { %16858 = vadd.xlane.f32.xlu1 %v16857_v49 }
0x2365   :  { %18355 = vadd.xlane.f32.xlu1 %v18354_v60  ;;  %v2754_v60 = vadd.f32 %v2753_v29, %v2752_v58 }
0x2369   :  { %19876 = vadd.xlane.f32.xlu1 %v19875_v22 }
0x2387   :  { %v21859_v20 = vpop.permute.xlu1 %21858 }
0x2388   :  { %v21860_v3 = vsel %vm707_vm2, %v21859_v20, 0  ;;  %v4304_v20 = vpop.xlane.xlu0 %4303 }
0x2389   :  { %v21935_v28 = vand.u32 4294901760, %v21860_v3 }
0x238b   :  { %v21936_v62 = vsub.f32 %v21860_v3, %v21935_v28  ;;  %22052 = vmatmul.mubr.f32.vlgmr.msra.gmra.mxu1 %v21935_v28 }
0x238c   :  { %22174 = vmatpush1.msra.mxu1 %v27197_v25  ;;  %22219 = vmatprep.mubr.f32.mxu1 %v30274_v16 }
0x238d   :  { %v21937_v6 = vand.u32 4294901760, %v21936_v62  ;;  %22176 = vmatprep.subr.mxu1 %v27199_v26 }
0x238e   :  { %22178 = vmatpush1.msra.mxu1 %v27201_v27 }
0x238f   :  { %v21938_v8 = vsub.f32 %v21936_v62, %v21937_v6  ;;  %22180 = vmatprep.subr.mxu1 %v27206_v30 }
0x2390   :  { %22182 = vmatpush1.msra.mxu1 %v27235_v40 }
0x2391   :  { %v21939_v35 = vand.u32 4294901760, %v21938_v8  ;;  %22184 = vmatprep.subr.mxu1 %v27243_v44 }
0x2392   :  { %22186 = vmatpush1.msra.mxu1 %v27263_v53 }
0x2393   :  { %22223 = vmatmul.mubr.f32.vlgmr.msra.gmra.mxu1 %v21937_v6  ;;  %22350 = vmatprep.subr.mxu1 %v27195_v21  ;;  %v30673_v21 = vld [vmem:[#allocation43_spill] sm:$0xff] }
0x2394   :  { %21940 = vmatmul.mubr.f32.vlgmr.msra.gmra.mxu0 %v21939_v35  ;;  %22352 = vmatpush1.msra.mxu1 %v27197_v25  ;;  %v30674_v25 = vld [vmem:[#allocation44_spill] sm:$0xff] }
0x2395   :  { %22087 = vmatpush1.msra.mxu0 %v30669_v37  ;;  %22354 = vmatprep.subr.mxu1 %v27199_v26  ;;  %v30675_v26 = vld [vmem:[#allocation47_spill] sm:$0xff] }
0x2396   :  { %22090 = vmatprep.subr.mxu0 %v30670_v59  ;;  %22356 = vmatpush1.msra.mxu1 %v27201_v27  ;;  %v30676_v27 = vld [vmem:[#allocation37_spill] sm:$0xff] }
0x2397   :  { %22093 = vmatpush1.msra.mxu0 %v30671_v56  ;;  %22358 = vmatprep.subr.mxu1 %v27206_v30  ;;  %v30677_v30 = vld [vmem:[#allocation39_spill] sm:$0xff] }
0x2398   :  { %22096 = vmatprep.subr.mxu0 %v30672_v42  ;;  %22360 = vmatpush1.msra.mxu1 %v27235_v40  ;;  %v30678_v40 = vld [vmem:[#allocation40_spill] sm:$0xff] }
0x2399   :  { %22099 = vmatpush1.msra.mxu0 %v30673_v21  ;;  %22362 = vmatprep.subr.mxu1 %v27243_v44  ;;  %v30679_v44 = vld [vmem:[#allocation41_spill] sm:$0xff] }
0x239a   :  { %22102 = vmatprep.subr.mxu0 %v30674_v25  ;;  %22138 = vmatprep.mubr.f32.mxu0 %v30274_v16 }
0x239b   :  { %22105 = vmatpush1.msra.mxu0 %v30675_v26  ;;  %22364 = vmatpush1.msra.mxu1 %v27263_v53  ;;  %v30682_v53 = vld [vmem:[#allocation45_spill] sm:$0xff] }
0x239c   :  { %22397 = vmatprep.mubr.f32.mxu1 %v30274_v16  ;;  %22141 = vmatmul.mubr.f32.vlgmr.msra.gmra.mxu0 %v21936_v62  ;;  %v4305_v62 = vrot.slane %v4304_v20, 4 }
0x239d   :  { %22256 = vmatprep.subr.mxu0 %v30676_v27  ;;  %22399 = vmatmul.mubr.f32.vlgmr.msra.gmra.mxu1 %v21935_v28 }
0x239e   :  { %22260 = vmatpush1.msra.mxu0 %v30677_v30  ;;  %22317 = vmatprep.mubr.f32.mxu0 %v30274_v16  ;;  %v4306_v42 = vadd.f32 %v4305_v62, %v4304_v20 }
0x239f   :  { %22264 = vmatprep.subr.mxu0 %v30678_v40  ;;  %26279 = vmatprep.subr.mxu1 %v30274_v16 }
0x23a0   :  { %22268 = vmatpush1.msra.mxu0 %v30679_v44  ;;  %26280 = vmatpush3.msra.mxu1 %v30680_v14  ;;  %v4307_v14 = vrot.slane %v4306_v42, 2 }
0x23a1   :  { %22272 = vmatprep.subr.mxu0 %v30681_v13  ;;  %26281 = vmatprep.subr.mxu1 %v30274_v16 }
0x23a2   :  { %22276 = vmatpush1.msra.mxu0 %v30682_v53  ;;  %26282 = vmatpush3.msra.mxu1 %v30683_v15 }
0x23a3   :  { %22280 = vmatprep.subr.mxu0 %v30684_v7  ;;  %26283 = vmatprep.mubr.msk.f32.mxu1 %vm26975_vm0, %v30274_v16  ;;  %v4308_v7 = vadd.f32 %v4307_v14, %v4306_v42 }
0x23a4   :  { %22284 = vmatpush1.msra.mxu0 %v30685_v24  ;;  %26293 = vmatprep.subr.mxu1 %v30274_v16 }
0x23a5   :  { %22319 = vmatmul.mubr.f32.vlgmr.msra.gmra.mxu0 %v21935_v28  ;;  %26272 = vmatprep.subr.mxu0 %v30274_v16  ;;  %v5770_v28 = vpop.xlane.xlu0 %5769  ;;  %v4309_v61 = vrot.slane %v4308_v7, 1 }
0x23a6   :  { %26273 = vmatpush3.msra.mxu0 %v30686_v33  ;;  %26276 = vmatprep.mubr.msk.f32.mxu0 %vm26975_vm0, %v30274_v16  ;;  %v5771_v37 = vrot.slane %v5770_v28, 4 }
0x23a7   :  { %26274 = vmatprep.subr.mxu0 %v30274_v16 }
0x23a8   :  { %26275 = vmatpush3.msra.mxu0 %v30687_v48  ;;  %v5772_v30 = vadd.f32 %v5771_v37, %v5770_v28 }
0x23a9   :  { %26286 = vmatprep.subr.mxu0 %v30274_v16 }
0x23aa   :  { %v5773_v15 = vrot.slane %v5772_v30, 2 }
0x23ac   :  { %v5774_v57 = vadd.f32 %v5773_v15, %v5772_v30 }
0x23ae   :  { %v5775_v17 = vrot.slane %v5774_v57, 1 }
0x23c2   :  { %v1267_v0 = vpop.xlane.xlu1 %1266 }
0x23c3   :  { %v1268_v54 = vrot.slane %v1267_v0, 4 }
0x23c5   :  { %v1269_v9 = vadd.f32 %v1268_v54, %v1267_v0  ;;  %v4310_v0 = vadd.f32 %v4309_v61, %v4308_v7  ;;  %v29765_v7 = vld [vmem:[#allocation5 + $0x38] sm:$0xff] }
0x23c6   :  { %v3266_v11 = vpop.xlane.xlu1 %3265  ;;  %v21372_v61 = vsel %vm219_vm1, %v29765_v7, 0.0 }
0x23c7   :  { %v1270_v50 = vrot.slane %v1269_v9, 2  ;;  %v3267_v55 = vrot.slane %v3266_v11, 4  ;;  %21373 = vadd.xlane.f32.xlu1 %v21372_v61 }
0x23c9   :  { %v3268_v51 = vadd.f32 %v3267_v55, %v3266_v11  ;;  %v1271_v38 = vadd.f32 %v1270_v50, %v1269_v9  ;;  %v5776_v9 = vadd.f32 %v5775_v17, %v5774_v57  ;;  %v7322_v11 = vpop.xlane.xlu0 %7321 }
0x23ca   :  { %v4787_v3 = vpop.xlane.xlu1 %4786  ;;  %v7323_v55 = vrot.slane %v7322_v11, 4 }
0x23cb   :  { %v3269_v2 = vrot.slane %v3268_v51, 2  ;;  %v1272_v43 = vrot.slane %v1271_v38, 1  ;;  %v4788_v8 = vrot.slane %v4787_v3, 4 }
0x23cd   :  { %v1273_v49 = vadd.f32 %v1272_v43, %v1271_v38  ;;  %v3270_v32 = vadd.f32 %v3269_v2, %v3268_v51  ;;  %v4789_v25 = vadd.f32 %v4788_v8, %v4787_v3  ;;  %v8788_v50 = vpop.xlane.xlu0 %8787  ;;  %v7324_v43 = vadd.f32 %v7323_v55, %v7322_v11 }
0x23ce   :  { %v6284_v6 = vpop.xlane.xlu1 %6283  ;;  %v8789_v1 = vrot.slane %v8788_v50, 4 }
0x23cf   :  { %26402 = vpush %v1273_v49  ;;  %v3271_v52 = vrot.slane %v3270_v32, 1  ;;  %v6285_v35 = vrot.slane %v6284_v6, 4  ;;  %v4790_v13 = vrot.slane %v4789_v25, 2  ;;  %v7325_v3 = vrot.slane %v7324_v43, 2 }
0x23d0   :  { %26404 = vpush %v1762_v45 }
0x23d1   :  { %26406 = vpush %v2754_v60  ;;  %v3272_v22 = vadd.f32 %v3271_v52, %v3270_v32  ;;  %v6286_v26 = vadd.f32 %v6285_v35, %v6284_v6  ;;  %v4791_v24 = vadd.f32 %v4790_v13, %v4789_v25  ;;  %v8790_v60 = vadd.f32 %v8789_v1, %v8788_v50  ;;  %v21366_v1 = vld [vmem:[#allocation2 + $0x38] sm:$0xff]  ;;  %v10340_v61 = vpop.xlane.xlu0 %10339 }
0x23d2   :  { %v7805_v12 = vpop.xlane.xlu1 %7804 }
0x23d3   :  { %26408 = vpush %v3272_v22  ;;  %v6287_v53 = vrot.slane %v6286_v26, 2  ;;  %v4792_v47 = vrot.slane %v4791_v24, 1  ;;  %v7806_v51 = vrot.slane %v7805_v12, 4  ;;  %v8791_v8 = vrot.slane %v8790_v60, 2 }
0x23d5   :  { %v6288_v31 = vadd.f32 %v6287_v53, %v6286_v26  ;;  %v4793_v5 = vadd.f32 %v4792_v47, %v4791_v24  ;;  %v7807_v49 = vadd.f32 %v7806_v51, %v7805_v12  ;;  %v8792_v25 = vadd.f32 %v8791_v8, %v8790_v60 }
0x23d6   :  { %v9302_v58 = vpop.xlane.xlu1 %9301 }
0x23d7   :  { %v6289_v63 = vrot.slane %v6288_v31, 1  ;;  %v9303_v38 = vrot.slane %v9302_v58, 4  ;;  %v7808_v62 = vrot.slane %v7807_v49, 2 }
0x23d9   :  { %v6290_v54 = vadd.f32 %v6289_v63, %v6288_v31  ;;  %v9304_v32 = vadd.f32 %v9303_v38, %v9302_v58  ;;  %v7809_v42 = vadd.f32 %v7808_v62, %v7807_v49 }
0x23db   :  { %v9305_v6 = vrot.slane %v9304_v32, 2 }
0x2400   :  { %s26403_s13 = spop %26402 }
0x2401   :  { %s1275_s29 = smul.f32 %s26403_s13, %s26401_s12  ;;  %s26405_s27 = spop %26404 }
0x2402   :  { %s1764_s6 = smul.f32 %s26405_s27, %s26401_s12  ;;  %s26407_s26 = spop %26406 }
0x2403   :  { %v1276_v59 = vstv %s1275_s29  ;;  %s2756_s0 = smul.f32 %s26407_s26, %s26401_s12 }
0x2404   :  { %v1765_v56 = vstv %s1764_s6  ;;  %s26409_s20 = spop %26408 }
0x2405   :  { %v1766_v21 = vadd.f32 %v1765_v56, %v1276_v59  ;;  %s3274_s10 = sadd.f32 1e-12, %s26409_s20  ;;  %v2757_v27 = vstv %s2756_s0  ;;  %v7326_v59 = vadd.f32 %v7325_v3, %v7324_v43  ;;  %v22424_v43 = vsub.f32 1.0, %v29765_v7 }
0x2407   :  { %v2758_v40 = vadd.f32 %v2757_v27, %v1766_v21  ;;  %v3275_v44 = vstv %s3274_s10  ;;  %v9306_v21 = vadd.f32 %v9305_v6, %v9304_v32  ;;  %v7327_v26 = vrot.slane %v7326_v59, 1 }
0x2408   :  { %26603 = vrcp.f32 %v3275_v44  ;;  %v7810_v27 = vrot.slane %v7809_v42, 1  ;;  %v8793_v44 = vrot.slane %v8792_v25, 1  ;;  %v29778_v32 = vmul.f32 %v29765_v7, %v21366_v1 }
0x2409   :  { %v9307_v30 = vrot.slane %v9306_v21, 1  ;;  %v7328_v53 = vadd.f32 %v7327_v26, %v7326_v59  ;;  %v22907_v59 = vsel %vm219_vm1, %v29765_v7, 0  ;;  %v30689_v26 = vld [vmem:[#allocation51_spill] sm:$0xff] }
0x240a   :  { %v7811_v24 = vadd.f32 %v7810_v27, %v7809_v42  ;;  %v8794_v63 = vadd.f32 %v8793_v44, %v8792_v25  ;;  %v29804_v42 = vand.u32 4294901760, %v22907_v59  ;;  %v30688_v25 = vld [vmem:[#allocation72_spill] sm:$0xff] }
0x240b   :  { %v9308_v31 = vadd.f32 %v9307_v30, %v9306_v21  ;;  %v30691_v30 = vld [vmem:[#allocation74_spill] sm:$0xff] }
0x240c   :  { %v29811_v27 = vsub.f32 %v22907_v59, %v29804_v42 }
0x240e   :  { %v22980_v44 = vand.u32 4294901760, %v29811_v27 }
0x2415   :  { %v26604_v4 = vpop.eup %26603 }
0x2416   :  { %26410 = vpush %v26604_v4 }
0x2417   :  { %26412 = vpush %v4310_v0 }
0x2418   :  { %26414 = vpush %v4793_v5 }
0x2419   :  { %26416 = vpush %v5776_v9 }
0x241a   :  { %26418 = vpush %v6290_v54 }
0x2447   :  { %s26411_s3 = spop %26410 }
0x2448   :  { %s26413_s21 = spop %26412 }
0x2449   :  { %s4312_s30 = smul.f32 %s26413_s21, %s26411_s3  ;;  %s26415_s5 = spop %26414 }
0x244a   :  { %s4795_s2 = smul.f32 %s26415_s5, %s26411_s3  ;;  %s26417_s23 = spop %26416 }
0x244b   :  { %v4313_v2 = vstv %s4312_s30  ;;  %s5778_s24 = smul.f32 %s26417_s23, %s26411_s3  ;;  %s26419_s22 = spop %26418  ;;  %v22053_v35 = vpop.f32.mrf.mxu1 }
0x244c   :  { %v4314_v29 = vadd.f32 %v4313_v2, %v2758_v40  ;;  %s6292_s8 = sadd.f32 1e-12, %s26419_s22  ;;  %v4796_v45 = vstv %s4795_s2 }
0x244d   :  { %v5779_v20 = vstv %s5778_s24  ;;  %v22055_v13 = vpop.f32.mrf.mxu1 }
0x244e   :  { %v4797_v52 = vadd.f32 %v4796_v45, %v4314_v29  ;;  %v6293_v22 = vstv %s6292_s8  ;;  %v26657_v29 = vld [vmem:[%s30025_s7] ss:$0 sm:$0xff]  ;;  %v29781_v45 = vmul.f32 %v21366_v1, %v29550_v18  ;;  %v30704_v1 = vld [vmem:[#allocation67_spill] sm:$0xff] }
0x244f   :  { %26605 = vrcp.f32 %v6293_v22 }
0x2450   :  { %v29763_v28 = vadd.f32 %v5779_v20, %v4797_v52 }
0x2453   :  { %v22224_v47 = vpop.f32.mrf.mxu1 }
0x2454   :  { %v21941_v37 = vpop.f32.mrf.mxu0 }
0x2455   :  { %v22054_v56 = vadd.f32 %v22053_v35, %v21941_v37  ;;  %v22226_v54 = vpop.f32.mrf.mxu1 }
0x2456   :  { %v21943_v40 = vpop.f32.mrf.mxu0 }
0x2457   :  { %v22056_v0 = vadd.f32 %v22055_v13, %v21943_v40  ;;  %v30692_v40 = vld [vmem:[#allocation54_spill] sm:$0xff]  ;;  %v30695_v13 = vld [vmem:[#allocation53_spill] sm:$0xff] }
0x245c   :  { %v26606_v14 = vpop.eup %26605  ;;  %v22142_v15 = vpop.f32.mrf.mxu0 }
0x245d   :  { %26420 = vpush %v26606_v14  ;;  %v22143_v57 = vadd.f32 %v22142_v15, %v22054_v56  ;;  %v22400_v9 = vpop.f32.mrf.mxu1  ;;  %v30694_v14 = vld [vmem:[#allocation59_spill] sm:$0xff]  ;;  %v30697_v15 = vld [vmem:[#allocation62_spill] sm:$0xff] }
0x245e   :  { %26422 = vpush %v7328_v53  ;;  %v22144_v17 = vpop.f32.mrf.mxu0  ;;  %v30696_v53 = vld [vmem:[#allocation60_spill] sm:$0xff] }
0x245f   :  { %26424 = vpush %v7811_v24  ;;  %v22225_v4 = vadd.f32 %v22224_v47, %v22143_v57  ;;  %v22145_v5 = vadd.f32 %v22144_v17, %v22056_v0  ;;  %v22402_v38 = vpop.f32.mrf.mxu1  ;;  %v30698_v24 = vld [vmem:[#allocation55_spill] sm:$0xff]  ;;  %v10823_v47 = vpop.xlane.xlu1 %10822  ;;  %v23400_v17 = vsel %vm219_vm1, %v29664_v36, 0  ;;  %v10341_v36 = vrot.slane %v10340_v61, 4 }
0x2460   :  { %26426 = vpush %v8794_v63  ;;  %v30699_v57 = vld [vmem:[#allocation63_spill] sm:$0xff]  ;;  %v11806_v0 = vpop.xlane.xlu0 %11805 }
0x2461   :  { %26428 = vpush %v9308_v31  ;;  %v22227_v50 = vadd.f32 %v22226_v54, %v22145_v5  ;;  %v22981_v31 = vsub.f32 %v29811_v27, %v22980_v44  ;;  %v30700_v54 = vld [vmem:[#allocation64_spill] sm:$0xff] }
0x2463   :  { %v22982_v63 = vand.u32 4294901760, %v22981_v31  ;;  %v12320_v5 = vpop.xlane.xlu1 %12319 }
0x2465   :  { %v22320_v11 = vpop.f32.mrf.mxu0 }
0x2466   :  { %v22321_v12 = vadd.f32 %v22320_v11, %v22225_v4  ;;  %v29846_v4 = vand.u32 4294901760, %v23400_v17  ;;  %v12321_v11 = vrot.slane %v12320_v5, 4 }
0x2467   :  { %v22322_v55 = vpop.f32.mrf.mxu0 }
0x2468   :  { %v29769_v58 = vadd.f32 %v22400_v9, %v22321_v12  ;;  %v22323_v51 = vadd.f32 %v22322_v55, %v22227_v50  ;;  %v10824_v9 = vrot.slane %v10823_v47, 4  ;;  %v30701_v12 = vld [vmem:[#allocation65_spill] sm:$0xff]  ;;  %v11807_v50 = vrot.slane %v11806_v0, 4  ;;  %v30702_v55 = vld [vmem:[#allocation82_spill] sm:$0xff] }
0x246a   :  { %v22403_v2 = vadd.f32 %v22402_v38, %v22323_v51  ;;  %v30703_v51 = vld [vmem:[#allocation66_spill] sm:$0xff]  ;;  %v29860_v38 = vsub.f32 %v23400_v17, %v29846_v4  ;;  %v30713_v17 = vld [vmem:[#allocation79_spill] sm:$0xff] }
0x246c   :  { %v29775_v49 = vadd.f32 %v26657_v29, %v22403_v2  ;;  %v10342_v29 = vadd.f32 %v10341_v36, %v10340_v61  ;;  %v30712_v61 = vld [vmem:[#allocation78_spill] sm:$0xff] }
0x246e   :  { %v22425_v60 = vmul.f32 %v22424_v43, %v29775_v49  ;;  %v22406_v52 = vmul.f32 %v29775_v49, %v29550_v18  ;;  %v10343_v59 = vrot.slane %v10342_v29, 2 }
0x2470   :  { %v22426_v22 = vadd.f32 %v22425_v60, %v29778_v32  ;;  %v22407_v20 = vsub.f32 %v22406_v52, %v29781_v45  ;;  %v30705_v60 = vld [vmem:[#allocation83_spill] sm:$0xff] }
0x2472   :  { %v22428_v3 = vsel %vm219_vm1, %v22426_v22, 0  ;;  %v22408_v62 = vand.u32 2147483647, %v22407_v20  ;;  %v10825_v22 = vadd.f32 %v10824_v9, %v10823_v47  ;;  %v12322_v20 = vadd.f32 %v12321_v11, %v12320_v5  ;;  %v30714_v5 = vld [vmem:[#allocation84_spill] sm:$0xff]  ;;  %v30716_v11 = vld [vmem:[#allocation81_spill] sm:$0xff] }
0x2473   :  { %v22497_v6 = vand.u32 4294901760, %v22428_v3  ;;  %v30715_v9 = vld [vmem:[#allocation80_spill] sm:$0xff] }
0x2474   :  { %v22409_v8 = vmul.f32 %v22408_v62, %v29765_v7  ;;  %v11808_v62 = vadd.f32 %v11807_v50, %v11806_v0  ;;  %v13358_v50 = vpop.xlane.xlu0 %13357 }
0x2475   :  { %v22498_v35 = vsub.f32 %v22428_v3, %v22497_v6  ;;  %26284 = vmatmul.mubr.f32.vlgmr.msra.gmra.mxu1 %v22497_v6 }
0x2476   :  { %26294 = vmatpush3.msra.mxu1 %v30686_v33  ;;  %v22410_v37 = vsel %vm219_vm1, %v22409_v8, 0.0  ;;  %26297 = vmatprep.mubr.msk.f32.mxu1 %vm26975_vm0, %v30274_v16 }
0x2477   :  { %26295 = vmatprep.subr.mxu1 %v30274_v16  ;;  %22411 = vadd.xlane.f32.xlu0 %v22410_v37  ;;  %v22499_v18 = vand.u32 4294901760, %v22498_v35  ;;  %v23471_v37 = vand.u32 4294901760, %v29860_v38 }
0x2478   :  { %26296 = vmatpush3.msra.mxu1 %v30687_v48 }
0x2479   :  { %26298 = vmatmul.mubr.f32.vlgmr.msra.gmra.mxu1 %v22499_v18  ;;  %26307 = vmatprep.subr.mxu1 %v30274_v16  ;;  %v22500_v56 = vsub.f32 %v22498_v35, %v22499_v18 }
0x247a   :  { %26308 = vmatpush3.msra.mxu1 %v30686_v33  ;;  %26311 = vmatprep.mubr.msk.f32.mxu1 %vm26975_vm0, %v30274_v16  ;;  %v30690_v33 = vld [vmem:[#allocation73_spill] sm:$0xff] }
0x247b   :  { %26309 = vmatprep.subr.mxu1 %v30274_v16  ;;  %v22501_v21 = vand.u32 4294901760, %v22500_v56 }
0x247c   :  { %26310 = vmatpush3.msra.mxu1 %v30687_v48  ;;  %v30693_v48 = vld [vmem:[#allocation75_spill] sm:$0xff] }
0x247d   :  { %26277 = vmatmul.mubr.f32.vlgmr.msra.gmra.mxu0 %v22501_v21  ;;  %26312 = vmatmul.mubr.f32.vlgmr.msra.gmra.mxu1 %v22497_v6  ;;  %v30708_v21 = vld [vmem:[#allocation76_spill] sm:$0xff] }
0x247e   :  { %23022 = vmatprep.subr.mxu1 %v30688_v25  ;;  %26287 = vmatpush3.msra.mxu0 %v30689_v26  ;;  %v30709_v25 = vld [vmem:[#allocation70_spill] sm:$0xff]  ;;  %v10826_v26 = vrot.slane %v10825_v22, 2 }
0x247f   :  { %23028 = vmatpush1.msra.mxu1 %v30690_v33  ;;  %26288 = vmatprep.subr.mxu0 %v30274_v16  ;;  %v30710_v33 = vld [vmem:[#allocation71_spill] sm:$0xff] }
0x2480   :  { %23034 = vmatprep.subr.mxu1 %v30691_v30  ;;  %26289 = vmatpush3.msra.mxu0 %v30692_v40  ;;  %v11809_v30 = vrot.slane %v11808_v62, 2  ;;  %v30711_v40 = vld [vmem:[#allocation77_spill] sm:$0xff] }
0x2481   :  { %26290 = vmatprep.mubr.msk.f32.mxu0 %vm26975_vm0, %v30274_v16  ;;  %23040 = vmatpush1.msra.mxu1 %v30693_v48  ;;  %v23472_v48 = vsub.f32 %v29860_v38, %v23471_v37 }
0x2482   :  { %23073 = vmatprep.mubr.f32.mxu1 %v30274_v16  ;;  %26291 = vmatmul.mubr.f32.vlgmr.msra.gmra.mxu0 %v22498_v35  ;;  %v30706_v35 = vld [vmem:[#allocation68_spill] sm:$0xff] }
0x2483   :  { %26300 = vmatprep.subr.mxu0 %v30274_v16  ;;  %23075 = vmatmul.mubr.f32.vlgmr.msra.gmra.mxu1 %v29804_v42 }
0x2484   :  { %23191 = vmatprep.subr.mxu1 %v30694_v14  ;;  %26301 = vmatpush3.msra.mxu0 %v30695_v13 }
0x2485   :  { %23193 = vmatpush1.msra.mxu1 %v30696_v53  ;;  %26302 = vmatprep.subr.mxu0 %v30274_v16 }
0x2486   :  { %23195 = vmatprep.subr.mxu1 %v30697_v15  ;;  %26303 = vmatpush3.msra.mxu0 %v30698_v24 }
0x2487   :  { %26304 = vmatprep.mubr.msk.f32.mxu0 %vm26975_vm0, %v30274_v16  ;;  %23197 = vmatpush1.msra.mxu1 %v30699_v57 }
0x2488   :  { %23230 = vmatprep.mubr.f32.mxu1 %v30274_v16  ;;  %26305 = vmatmul.mubr.f32.vlgmr.msra.gmra.mxu0 %v22497_v6 }
0x2489   :  { %22938 = vmatprep.subr.mxu0 %v30694_v14  ;;  %23234 = vmatmul.mubr.f32.vlgmr.msra.gmra.mxu1 %v22980_v44  ;;  %v10344_v44 = vadd.f32 %v10343_v59, %v10342_v29 }
0x248a   :  { %23353 = vmatprep.subr.mxu1 %v30694_v14  ;;  %22940 = vmatpush1.msra.mxu0 %v30696_v53  ;;  %v10827_v14 = vadd.f32 %v10826_v26, %v10825_v22 }
0x248b   :  { %23355 = vmatpush1.msra.mxu1 %v30696_v53  ;;  %22942 = vmatprep.subr.mxu0 %v30697_v15  ;;  %v11810_v53 = vadd.f32 %v11809_v30, %v11808_v62 }
0x248c   :  { %23357 = vmatprep.subr.mxu1 %v30697_v15  ;;  %22944 = vmatpush1.msra.mxu0 %v30699_v57  ;;  %v23473_v15 = vand.u32 4294901760, %v23472_v48  ;;  %v10828_v24 = vrot.slane %v10827_v14, 1 }
0x248d   :  { %22977 = vmatprep.mubr.f32.mxu0 %v30274_v16  ;;  %23359 = vmatpush1.msra.mxu1 %v30699_v57  ;;  %v11811_v57 = vrot.slane %v11810_v53, 1 }
0x248e   :  { %23392 = vmatprep.mubr.f32.mxu1 %v30274_v16  ;;  %22983 = vmatmul.mubr.f32.vlgmr.msra.gmra.mxu0 %v22982_v63  ;;  %s29849_s7 = spop %26420  ;;  %v10829_v0 = vadd.f32 %v10828_v24, %v10827_v14 }
0x248f   :  { %23111 = vmatprep.subr.mxu0 %v30700_v54  ;;  %23394 = vmatmul.mubr.f32.vlgmr.msra.gmra.mxu1 %v29804_v42  ;;  %s26423_s12 = spop %26422  ;;  %v11812_v54 = vadd.f32 %v11811_v57, %v11810_v53 }
0x2490   :  { %26321 = vmatprep.subr.mxu1 %v30274_v16  ;;  %23114 = vmatpush1.msra.mxu0 %v30701_v12  ;;  %s7330_s13 = smul.f32 %s26423_s12, %s29849_s7  ;;  %s26425_s29 = spop %26424  ;;  %v30717_v12 = vld [vmem:[#allocation85_spill] sm:$0xff] }
0x2491   :  { %26322 = vmatpush3.msra.mxu1 %v30702_v55  ;;  %23117 = vmatprep.subr.mxu0 %v30703_v51  ;;  %s7813_s27 = smul.f32 %s26425_s29, %s29849_s7  ;;  %s26427_s6 = spop %26426  ;;  %v14824_v55 = vpop.xlane.xlu0 %14823  ;;  %v13359_v51 = vrot.slane %v13358_v50, 4 }
0x2492   :  { %26323 = vmatprep.subr.mxu1 %v30274_v16  ;;  %23120 = vmatpush1.msra.mxu0 %v30704_v1  ;;  %v7331_v2 = vstv %s7330_s13  ;;  %s8796_s26 = smul.f32 %s26427_s6, %s29849_s7  ;;  %s26429_s0 = spop %26428  ;;  %v14825_v29 = vrot.slane %v14824_v55, 4 }
0x2493   :  { %23153 = vmatprep.mubr.f32.mxu0 %v30274_v16  ;;  %26324 = vmatpush3.msra.mxu1 %v30705_v60  ;;  %v7332_v52 = vadd.f32 %v7331_v2, %v29763_v28  ;;  %s9310_s20 = sadd.f32 1e-12, %s26429_s0  ;;  %v7814_v3 = vstv %s7813_s27  ;;  %v30707_v28 = vld [vmem:[#allocation69_spill] sm:$0xff] }
0x2494   :  { %26325 = vmatprep.mubr.msk.f32.mxu1 %vm26975_vm0, %v30274_v16  ;;  %23156 = vmatmul.mubr.f32.vlgmr.msra.gmra.mxu0 %v29811_v27  ;;  %v8797_v18 = vstv %s8796_s26  ;;  %v12323_v27 = vrot.slane %v12322_v20, 2 }
0x2495   :  { %v7815_v6 = vadd.f32 %v7814_v3, %v7332_v52  ;;  %v9311_v8 = vstv %s9310_s20  ;;  %23271 = vmatprep.subr.mxu0 %v30706_v35  ;;  %26326 = vmatmul.mubr.f32.vlgmr.msra.gmra.mxu1 %v29846_v4  ;;  %v13360_v52 = vadd.f32 %v13359_v51, %v13358_v50  ;;  %v16376_v24 = vpop.xlane.xlu0 %16375 }
0x2496   :  { %26607 = vrcp.f32 %v9311_v8  ;;  %26335 = vmatprep.subr.mxu1 %v30274_v16  ;;  %23275 = vmatpush1.msra.mxu0 %v30707_v28  ;;  %v12324_v13 = vadd.f32 %v12323_v27, %v12322_v20 }
0x2497   :  { %v29876_v56 = vadd.f32 %v8797_v18, %v7815_v6  ;;  %26336 = vmatpush3.msra.mxu1 %v30708_v21  ;;  %23279 = vmatprep.subr.mxu0 %v30709_v25  ;;  %v14826_v6 = vadd.f32 %v14825_v29, %v14824_v55  ;;  %v13361_v18 = vrot.slane %v13360_v52, 2 }
0x2498   :  { %26337 = vmatprep.subr.mxu1 %v30274_v16  ;;  %23283 = vmatpush1.msra.mxu0 %v30710_v33  ;;  %v12325_v31 = vrot.slane %v12324_v13, 1 }
0x2499   :  { %23316 = vmatprep.mubr.f32.mxu0 %v30274_v16  ;;  %26338 = vmatpush3.msra.mxu1 %v30711_v40  ;;  %v14827_v25 = vrot.slane %v14826_v6, 2  ;;  %v13362_v26 = vadd.f32 %v13361_v18, %v13360_v52  ;;  %v17842_v57 = vpop.xlane.xlu0 %17841 }
0x249a   :  { %26339 = vmatprep.mubr.msk.f32.mxu1 %vm26975_vm0, %v30274_v16  ;;  %23318 = vmatmul.mubr.f32.vlgmr.msra.gmra.mxu0 %v29804_v42  ;;  %v10345_v42 = vrot.slane %v10344_v44, 1  ;;  %v12326_v36 = vadd.f32 %v12325_v31, %v12324_v13 }
0x249b   :  { %26314 = vmatprep.subr.mxu0 %v30274_v16  ;;  %26340 = vmatmul.mubr.f32.vlgmr.msra.gmra.mxu1 %v23471_v37  ;;  %v14828_v30 = vadd.f32 %v14827_v25, %v14826_v6 }
0x249c   :  { %26349 = vmatprep.subr.mxu1 %v30274_v16  ;;  %26315 = vmatpush3.msra.mxu0 %v30708_v21  ;;  %v10346_v63 = vadd.f32 %v10345_v42, %v10344_v44 }
0x249d   :  { %26350 = vmatpush3.msra.mxu1 %v30708_v21  ;;  %26316 = vmatprep.subr.mxu0 %v30274_v16  ;;  %v14829_v44 = vrot.slane %v14828_v30, 1 }
0x249e   :  { %26351 = vmatprep.subr.mxu1 %v30274_v16  ;;  %26317 = vmatpush3.msra.mxu0 %v30711_v40 }
0x249f   :  { %26318 = vmatprep.mubr.msk.f32.mxu0 %vm26975_vm0, %v30274_v16  ;;  %26352 = vmatpush3.msra.mxu1 %v30711_v40  ;;  %v13363_v40 = vrot.slane %v13362_v26, 1  ;;  %v14830_v42 = vadd.f32 %v14829_v44, %v14828_v30 }
0x24a0   :  { %26353 = vmatprep.mubr.msk.f32.mxu1 %vm26975_vm0, %v30274_v16  ;;  %26319 = vmatmul.mubr.f32.vlgmr.msra.gmra.mxu0 %v23473_v15 }
0x24a1   :  { %26328 = vmatprep.subr.mxu0 %v30274_v16  ;;  %26354 = vmatmul.mubr.f32.vlgmr.msra.gmra.mxu1 %v29846_v4  ;;  %v13364_v13 = vadd.f32 %v13363_v40, %v13362_v26 }
0x24a2   :  { %26329 = vmatpush3.msra.mxu0 %v30712_v61  ;;  %26332 = vmatprep.mubr.msk.f32.mxu0 %vm26975_vm0, %v30274_v16  ;;  %v16377_v61 = vrot.slane %v16376_v24, 4 }
0x24a3   :  { %v26608_v47 = vpop.eup %26607  ;;  %26330 = vmatprep.subr.mxu0 %v30274_v16  ;;  %26363 = vmatprep.subr.mxu1 %v30274_v16 }
0x24a4   :  { %26331 = vmatpush3.msra.mxu0 %v30713_v17  ;;  %26430 = vpush %v26608_v47  ;;  %26364 = vmatpush3.msra.mxu1 %v30714_v5  ;;  %v16378_v5 = vadd.f32 %v16377_v61, %v16376_v24 }
0x24a5   :  { %26333 = vmatmul.mubr.f32.vlgmr.msra.gmra.mxu0 %v29860_v38  ;;  %26342 = vmatprep.subr.mxu0 %v30274_v16  ;;  %26432 = vpush %v10346_v63 }
0x24a6   :  { %26343 = vmatpush3.msra.mxu0 %v30715_v9  ;;  %26346 = vmatprep.mubr.msk.f32.mxu0 %vm26975_vm0, %v30274_v16  ;;  %26434 = vpush %v10829_v0  ;;  %v17843_v0 = vrot.slane %v17842_v57, 4 }
0x24a7   :  { %26344 = vmatprep.subr.mxu0 %v30274_v16  ;;  %26436 = vpush %v11812_v54  ;;  %26365 = vmatprep.subr.mxu1 %v30274_v16 }
0x24a8   :  { %26345 = vmatpush3.msra.mxu0 %v30716_v11  ;;  %26438 = vpush %v12326_v36  ;;  %26366 = vmatpush3.msra.mxu1 %v30717_v12  ;;  %v17844_v50 = vadd.f32 %v17843_v0, %v17842_v57 }
0x24a9   :  { %26347 = vmatmul.mubr.f32.vlgmr.msra.gmra.mxu0 %v29846_v4  ;;  %26367 = vmatprep.mubr.msk.f32.mxu1 %vm26975_vm0, %v30274_v16  ;;  %v13841_v4 = vpop.xlane.xlu1 %13840 }
0x24aa   :  { %26377 = vmatprep.subr.mxu1 %v30274_v16  ;;  %26356 = vmatprep.subr.mxu0 %v30274_v16  ;;  %v13842_v1 = vrot.slane %v13841_v4, 4 }
0x24ab   :  { %26357 = vmatpush3.msra.mxu0 %v27597_v46  ;;  %26360 = vmatprep.mubr.msk.f32.mxu0 %vm26975_vm0, %v30274_v16 }
0x24ac   :  { %26358 = vmatprep.subr.mxu0 %v30274_v16  ;;  %v13843_v20 = vadd.f32 %v13842_v1, %v13841_v4 }
0x24ad   :  { %26359 = vmatpush3.msra.mxu0 %v27599_v41  ;;  %v15338_v38 = vpop.xlane.xlu1 %15337 }
0x24ae   :  { %26370 = vmatprep.subr.mxu0 %v30274_v16  ;;  %v15339_v2 = vrot.slane %v15338_v38, 4  ;;  %v13844_v59 = vrot.slane %v13843_v20, 2 }
0x24b0   :  { %v15340_v3 = vadd.f32 %v15339_v2, %v15338_v38  ;;  %v13845_v27 = vadd.f32 %v13844_v59, %v13843_v20  ;;  %v16379_v38 = vrot.slane %v16378_v5, 2 }
0x24b1   :  { %v16859_v31 = vpop.xlane.xlu1 %16858 }
0x24b2   :  { %v15341_v21 = vrot.slane %v15340_v3, 2  ;;  %v16860_v63 = vrot.slane %v16859_v31, 4  ;;  %v16380_v52 = vadd.f32 %v16379_v38, %v16378_v5  ;;  %v29934_v5 = vld [vmem:[#allocation8] sm:$0xff] }
0x24b4   :  { %v15342_v33 = vadd.f32 %v15341_v21, %v15340_v3  ;;  %v16861_v9 = vadd.f32 %v16860_v63, %v16859_v31 }
0x24b5   :  { %v18356_v47 = vpop.xlane.xlu1 %18355 }
0x24b6   :  { %v15343_v48 = vrot.slane %v15342_v33, 1  ;;  %v18357_v17 = vrot.slane %v18356_v47, 4  ;;  %v16862_v2 = vrot.slane %v16861_v9, 2 }
0x24b8   :  { %v15344_v15 = vadd.f32 %v15343_v48, %v15342_v33  ;;  %v18358_v11 = vadd.f32 %v18357_v17, %v18356_v47 }
0x24ba   :  { %v18359_v29 = vrot.slane %v18358_v11, 2 }
0x24bc   :  { %v18360_v20 = vadd.f32 %v18359_v29, %v18358_v11 }
0x24d5   :  { %s26431_s10 = spop %26430 }
0x24d6   :  { %s26433_s3 = spop %26432 }
0x24d7   :  { %s10348_s21 = smul.f32 %s26433_s3, %s26431_s10  ;;  %s26435_s30 = spop %26434 }
0x24d8   :  { %s10831_s5 = smul.f32 %s26435_s30, %s26431_s10  ;;  %s26437_s2 = spop %26436 }
0x24d9   :  { %v10349_v60 = vstv %s10348_s21  ;;  %s11814_s23 = smul.f32 %s26437_s2, %s26431_s10  ;;  %s26439_s24 = spop %26438 }
0x24da   :  { %v10350_v22 = vadd.f32 %v10349_v60, %v29876_v56  ;;  %s12328_s22 = sadd.f32 1e-12, %s26439_s24  ;;  %v10832_v62 = vstv %s10831_s5  ;;  %v13846_v56 = vrot.slane %v13845_v27, 1  ;;  %v17845_v60 = vrot.slane %v17844_v50, 2 }
0x24db   :  { %v11815_v37 = vstv %s11814_s23 }
0x24dc   :  { %v10833_v8 = vadd.f32 %v10832_v62, %v10350_v22  ;;  %v12329_v35 = vstv %s12328_s22  ;;  %v13847_v53 = vadd.f32 %v13846_v56, %v13845_v27  ;;  %v16863_v22 = vadd.f32 %v16862_v2, %v16861_v9  ;;  %v26658_v56 = vld [vmem:[#allocation14] ss:$0 sm:$0xff] }
0x24dd   :  { %26609 = vrcp.f32 %v12329_v35  ;;  %v17846_v3 = vadd.f32 %v17845_v60, %v17844_v50  ;;  %v16381_v62 = vrot.slane %v16380_v52, 1 }
0x24de   :  { %v11816_v28 = vadd.f32 %v11815_v37, %v10833_v8  ;;  %v16864_v6 = vrot.slane %v16863_v22, 1  ;;  %v18361_v8 = vrot.slane %v18360_v20, 1 }
0x24df   :  { %v17847_v35 = vrot.slane %v17846_v3, 1  ;;  %v16382_v18 = vadd.f32 %v16381_v62, %v16380_v52 }
0x24e0   :  { %v18362_v59 = vadd.f32 %v18361_v8, %v18360_v20 }
0x24e1   :  { %v17848_v21 = vadd.f32 %v17847_v35, %v17846_v3 }
0x24ea   :  { %v26610_v14 = vpop.eup %26609 }
0x24eb   :  { %26440 = vpush %v26610_v14 }
0x24ec   :  { %26442 = vpush %v13364_v13 }
0x24ed   :  { %26444 = vpush %v13847_v53 }
0x24ee   :  { %26446 = vpush %v14830_v42 }
0x24ef   :  { %26448 = vpush %v15344_v15 }
0x251c   :  { %s26441_s8 = spop %26440 }
0x251d   :  { %s26443_s28 = spop %26442 }
0x251e   :  { %s13366_s25 = smul.f32 %s26443_s28, %s26441_s8  ;;  %s26445_s7 = spop %26444 }
0x251f   :  { %s13849_s12 = smul.f32 %s26445_s7, %s26441_s8  ;;  %s26447_s13 = spop %26446 }
0x2520   :  { %v13367_v36 = vstv %s13366_s25  ;;  %s14832_s29 = smul.f32 %s26447_s13, %s26441_s8  ;;  %s26449_s27 = spop %26448 }
0x2521   :  { %v13368_v54 = vadd.f32 %v13367_v36, %v11816_v28  ;;  %s15346_s6 = sadd.f32 1e-12, %s26449_s27  ;;  %v13850_v12 = vstv %s13849_s12  ;;  %v16865_v28 = vadd.f32 %v16864_v6, %v16863_v22 }
0x2522   :  { %v14833_v51 = vstv %s14832_s29 }
0x2523   :  { %v13851_v4 = vadd.f32 %v13850_v12, %v13368_v54  ;;  %v15347_v55 = vstv %s15346_s6 }
0x2524   :  { %26611 = vrcp.f32 %v15347_v55 }
0x2525   :  { %v29930_v1 = vadd.f32 %v14833_v51, %v13851_v4 }
0x2531   :  { %v26612_v37 = vpop.eup %26611 }
0x2532   :  { %26450 = vpush %v26612_v37 }
0x2533   :  { %26452 = vpush %v16382_v18 }
0x2534   :  { %26454 = vpush %v16865_v28 }
0x2535   :  { %26456 = vpush %v17848_v21  ;;  %v22584_v25 = vpop.f32.mrf.mxu1 }
0x2536   :  { %26458 = vpush %v18362_v59  ;;  %v19394_v59 = vpop.xlane.xlu0 %19393 }
0x2537   :  { %v26285_v26 = vpop.f32.mrf.mxu1 }
0x2539   :  { %v22735_v27 = vpop.f32.mrf.mxu1 }
0x253b   :  { %v26299_v33 = vpop.f32.mrf.mxu1 }
0x253d   :  { %v22503_v30 = vpop.f32.mrf.mxu0  ;;  %v22885_v40 = vpop.f32.mrf.mxu1 }
0x253e   :  { %v22504_v48 = vadd.f32 %v26658_v56, %v22503_v30 }
0x253f   :  { %v26278_v44 = vpop.f32.mrf.mxu0  ;;  %v26313_v14 = vpop.f32.mrf.mxu1 }
0x2540   :  { %v22585_v13 = vadd.f32 %v22584_v25, %v22504_v48  ;;  %v20860_v14 = vpop.xlane.xlu0 %20859 }
0x2542   :  { %v22660_v53 = vpop.f32.mrf.mxu0 }
0x2543   :  { %v22661_v15 = vadd.f32 %v22660_v53, %v22585_v13  ;;  %v23076_v42 = vpop.f32.mrf.mxu1 }
0x2544   :  { %v26292_v24 = vpop.f32.mrf.mxu0 }
0x2545   :  { %v23078_v31 = vpop.f32.mrf.mxu1  ;;  %v22736_v57 = vadd.f32 %v22735_v27, %v22661_v15  ;;  %v19877_v27 = vpop.xlane.xlu1 %19876  ;;  %v19395_v15 = vrot.slane %v19394_v59, 4 }
0x2548   :  { %v22812_v61 = vpop.f32.mrf.mxu0 }
0x2549   :  { %v22813_v47 = vadd.f32 %v22812_v61, %v22736_v57  ;;  %v23235_v63 = vpop.f32.mrf.mxu1  ;;  %v21374_v44 = vpop.xlane.xlu1 %21373  ;;  %v20861_v57 = vrot.slane %v20860_v14, 4 }
0x254a   :  { %v26306_v17 = vpop.f32.mrf.mxu0 }
0x254b   :  { %v29932_v0 = vadd.f32 %v22885_v40, %v22813_v47  ;;  %v23237_v36 = vpop.f32.mrf.mxu1  ;;  %v19396_v17 = vadd.f32 %v19395_v15, %v19394_v59 }
0x254d   :  { %v22889_v54 = vmul.f32 %v29934_v5, %v29932_v0 }
0x254e   :  { %v22984_v9 = vpop.f32.mrf.mxu0 }
0x254f   :  { %v23077_v11 = vadd.f32 %v23076_v42, %v22984_v9  ;;  %v23395_v12 = vpop.f32.mrf.mxu1  ;;  %v22890_v50 = vsub.f32 %v22889_v54, %v29781_v45  ;;  %v19878_v42 = vrot.slane %v19877_v27, 4 }
0x2550   :  { %v22986_v4 = vpop.f32.mrf.mxu0 }
0x2551   :  { %v23397_v55 = vpop.f32.mrf.mxu1  ;;  %v22891_v51 = vand.u32 2147483647, %v22890_v50  ;;  %v23079_v29 = vadd.f32 %v23078_v31, %v22986_v4  ;;  %v21375_v31 = vrot.slane %v21374_v44, 4  ;;  %v19879_v9 = vadd.f32 %v19878_v42, %v19877_v27 }
0x2552   :  { %v20862_v4 = vadd.f32 %v20861_v57, %v20860_v14 }
0x2553   :  { %v22892_v38 = vmul.f32 %v22891_v51, %v29765_v7 }
0x2554   :  { %v23157_v2 = vpop.f32.mrf.mxu0 }
0x2555   :  { %v23158_v60 = vadd.f32 %v23157_v2, %v23077_v11  ;;  %v23556_v52 = vpop.f32.mrf.mxu1  ;;  %v22893_v22 = vsel %vm219_vm1, %v22892_v38, 0.0 }
0x2556   :  { %v23159_v20 = vpop.f32.mrf.mxu0  ;;  %22894 = vadd.xlane.f32.xlu1 %v22893_v22 }
0x2557   :  { %v23160_v3 = vadd.f32 %v23159_v20, %v23079_v29  ;;  %v26327_v62 = vpop.f32.mrf.mxu1  ;;  %v23236_v6 = vadd.f32 %v23235_v63, %v23158_v60  ;;  %v19397_v60 = vrot.slane %v19396_v17, 2  ;;  %v19880_v20 = vrot.slane %v19879_v9, 2 }
0x2558   :  { %v26660_v62 = vld [vmem:[%s30029_s11] ss:$0 sm:$0xff] }
0x2559   :  { %v23238_v8 = vadd.f32 %v23237_v36, %v23160_v3 }
0x255a   :  { %v23319_v35 = vpop.f32.mrf.mxu0 }
0x255b   :  { %v23320_v37 = vadd.f32 %v23319_v35, %v23236_v6  ;;  %v23707_v18 = vpop.f32.mrf.mxu1  ;;  %v19398_v35 = vadd.f32 %v19397_v60, %v19396_v17 }
0x255c   :  { %v23321_v28 = vpop.f32.mrf.mxu0 }
0x255d   :  { %v23322_v21 = vadd.f32 %v23321_v28, %v23238_v8  ;;  %v26341_v25 = vpop.f32.mrf.mxu1  ;;  %v29941_v26 = vadd.f32 %v23395_v12, %v23320_v37  ;;  %v21376_v12 = vadd.f32 %v21375_v31, %v21374_v44  ;;  %v19881_v37 = vadd.f32 %v19880_v20, %v19879_v9 }
0x255e   :  { %v19399_v59 = vrot.slane %v19398_v35, 1 }
0x255f   :  { %v23398_v33 = vadd.f32 %v23397_v55, %v23322_v21  ;;  %v21377_v3 = vrot.slane %v21376_v12, 2  ;;  %v19882_v21 = vrot.slane %v19881_v37, 1 }
0x2560   :  { %v23475_v30 = vpop.f32.mrf.mxu0 }
0x2561   :  { %v23476_v40 = vadd.f32 %v23475_v30, %v23398_v33  ;;  %v23857_v56 = vpop.f32.mrf.mxu1  ;;  %v19400_v30 = vadd.f32 %v19399_v59, %v19398_v35 }
0x2562   :  { %v26320_v48 = vpop.f32.mrf.mxu0 }
0x2563   :  { %s29943_s26 = spop %26450  ;;  %v26355_v13 = vpop.f32.mrf.mxu1  ;;  %v23557_v53 = vadd.f32 %v23556_v52, %v23476_v40  ;;  %v19883_v40 = vadd.f32 %v19882_v21, %v19881_v37 }
0x2564   :  { %s26453_s0 = spop %26452 }
0x2565   :  { %s16384_s20 = smul.f32 %s26453_s0, %s29943_s26  ;;  %s26455_s10 = spop %26454  ;;  %v23632_v24 = vpop.f32.mrf.mxu0 }
0x2566   :  { %s16867_s3 = smul.f32 %s26455_s10, %s29943_s26  ;;  %s26457_s21 = spop %26456  ;;  %v23633_v61 = vadd.f32 %v23632_v24, %v23557_v53 }
0x2567   :  { %v16385_v47 = vstv %s16384_s20  ;;  %s17850_s30 = smul.f32 %s26457_s21, %s29943_s26  ;;  %s26459_s5 = spop %26458  ;;  %v26334_v63 = vpop.f32.mrf.mxu0 }
0x2568   :  { %v16386_v36 = vadd.f32 %v16385_v47, %v29930_v1  ;;  %s18364_s2 = sadd.f32 1e-12, %s26459_s5  ;;  %v23708_v54 = vadd.f32 %v23707_v18, %v23633_v61  ;;  %v16868_v11 = vstv %s16867_s3  ;;  %v20863_v1 = vrot.slane %v20862_v4, 2 }
0x2569   :  { %v23784_v50 = vpop.f32.mrf.mxu0  ;;  %v17851_v2 = vstv %s17850_s30  ;;  %v21378_v18 = vadd.f32 %v21377_v3, %v21376_v12 }
0x256a   :  { %v16869_v55 = vadd.f32 %v16868_v11, %v16386_v36  ;;  %v18365_v51 = vstv %s18364_s2  ;;  %v23785_v38 = vadd.f32 %v23784_v50, %v23708_v54  ;;  %v20864_v28 = vadd.f32 %v20863_v1, %v20862_v4  ;;  %s26980_s2 = smov [#allocation19]  }
0x256b   :  { %26613 = vrcp.f32 %v18365_v51  ;;  %v26348_v29 = vpop.f32.mrf.mxu0  ;;  %v21379_v25 = vrot.slane %v21378_v18, 1  ;;  %s24397_s23 = sshll.u32 %s26980_s2, 4  ;;  %s24398_s23 = int_to_ptr.vmem [resolvable:$true] %s24397_s23 }
0x256c   :  { %v29949_v52 = vadd.f32 %v17851_v2, %v16869_v55  ;;  %v23858_v22 = vadd.f32 %v23857_v56, %v23785_v38  ;;  %v20865_v27 = vrot.slane %v20864_v28, 1 }
0x256d   :  { %v21380_v56 = vadd.f32 %v21379_v25, %v21378_v18 }
0x256e   :  { %v23861_v6 = vadd.f32 %v26660_v62, %v23858_v22  ;;  %v20866_v48 = vadd.f32 %v20865_v27, %v20864_v28 }
0x2570   :  { %v24476_v8 = vmul.f32 -1.442695, %v23861_v6 }
0x2572   :  { %26615 = vpow2.f32 %v24476_v8 }
0x2578   :  { %v26614_v33 = vpop.eup %26613 }
0x2579   :  { %26460 = vpush %v26614_v33 }
0x257a   :  { %26462 = vpush %v19400_v30 }
0x257b   :  { %26464 = vpush %v19883_v40 }
0x257c   :  { %26466 = vpush %v20866_v48 }
0x257d   :  { %26468 = vpush %v21380_v56 }
0x257f   :  { %v26616_v44 = vpop.eup %26615 }
0x2580   :  { %v23865_v14 = vadd.f32 1.0, %v26616_v44 }
0x2582   :  { %26617 = vrcp.f32 %v23865_v14 }
0x258f   :  { %v26618_v13 = vpop.eup %26617 }
0x2590   :  { %v23869_v53 = vsub.f32 1.0, %v26618_v13  ;;  %v23868_v15 = vmul.f32 %v26618_v13, %v29932_v0 }
0x2592   :  { %v23870_v42 = vmul.f32 %v23869_v53, %v29775_v49 }
0x2594   :  { %v23871_v24 = vadd.f32 %v23870_v42, %v23868_v15 }
0x2596   :  { %v23889_v31 = vmul.f32 %v23871_v24, %v22424_v43  ;;  %23892 = vst.msk [vmem:[#allocation19 + $0x38] sm:$0xff] %vm219_vm1, %v23871_v24  ;;  %v23872_v57 = vmul.f32 %v29934_v5, %v23871_v24  ;;  %v22412_v5 = vpop.xlane.xlu0 %22411 }
0x2598   :  { %v23890_v61 = vadd.f32 %v23889_v31, %v29778_v32  ;;  %v23873_v47 = vsub.f32 %v23872_v57, %v29781_v45 }
0x259a   :  { %23894 = vst.msk [vmem:[#allocation20 + $0x38] sm:$0xff] %vm219_vm1, %v23890_v61  ;;  %v23896_v63 = vsel %vm219_vm1, %v23890_v61, 0  ;;  %v23874_v17 = vand.u32 2147483647, %v23873_v47 }
0x259b   :  { %v23965_v0 = vand.u32 4294901760, %v23896_v63 }
0x259c   :  { %v23875_v49 = vmul.f32 %v23874_v17, %v29765_v7 }
0x259d   :  { %v23966_v36 = vsub.f32 %v23896_v63, %v23965_v0  ;;  %26368 = vmatmul.mubr.f32.vlgmr.msra.gmra.mxu1 %v23965_v0 }
0x259e   :  { %26378 = vmatpush3.msra.mxu1 %v27597_v46  ;;  %v23876_v43 = vsel %vm219_vm1, %v23875_v49, 0.0  ;;  %26381 = vmatprep.mubr.msk.f32.mxu1 %vm26975_vm0, %v30274_v16 }
0x259f   :  { %26379 = vmatprep.subr.mxu1 %v30274_v16  ;;  %23877 = vadd.xlane.f32.xlu0 %v23876_v43  ;;  %v23967_v32 = vand.u32 4294901760, %v23966_v36 }
0x25a0   :  { %26380 = vmatpush3.msra.mxu1 %v27599_v41 }
0x25a1   :  { %26382 = vmatmul.mubr.f32.vlgmr.msra.gmra.mxu1 %v23967_v32  ;;  %26391 = vmatprep.subr.mxu1 %v30274_v16  ;;  %v23968_v45 = vsub.f32 %v23966_v36, %v23967_v32 }
0x25a2   :  { %26392 = vmatpush3.msra.mxu1 %v27597_v46  ;;  %26395 = vmatprep.mubr.msk.f32.mxu1 %vm26975_vm0, %v30274_v16  ;;  %v22413_v46 = vrot.slane %v22412_v5, 4 }
0x25a3   :  { %26393 = vmatprep.subr.mxu1 %v30274_v16  ;;  %v23969_v7 = vand.u32 4294901760, %v23968_v45 }
0x25a4   :  { %26394 = vmatpush3.msra.mxu1 %v27599_v41 }
0x25a5   :  { %26361 = vmatmul.mubr.f32.vlgmr.msra.gmra.mxu0 %v23969_v7  ;;  %26396 = vmatmul.mubr.f32.vlgmr.msra.gmra.mxu1 %v23965_v0 }
0x25a6   :  { %26371 = vmatpush3.msra.mxu0 %v27602_v23  ;;  %26374 = vmatprep.mubr.msk.f32.mxu0 %vm26975_vm0, %v30274_v16  ;;  %v22414_v23 = vadd.f32 %v22413_v46, %v22412_v5 }
0x25a7   :  { %26372 = vmatprep.subr.mxu0 %v30274_v16 }
0x25a8   :  { %26373 = vmatpush3.msra.mxu0 %v27605_v34 }
0x25a9   :  { %26375 = vmatmul.mubr.f32.vlgmr.msra.gmra.mxu0 %v23966_v36  ;;  %26384 = vmatprep.subr.mxu0 %v30274_v16 }
0x25aa   :  { %s26461_s11 = spop %26460  ;;  %26385 = vmatpush3.msra.mxu0 %v27610_v39  ;;  %26388 = vmatprep.mubr.msk.f32.mxu0 %vm26975_vm0, %v30274_v16 }
0x25ab   :  { %s26463_s22 = spop %26462  ;;  %26386 = vmatprep.subr.mxu0 %v30274_v16  ;;  %v22415_v16 = vrot.slane %v22414_v23, 2 }
0x25ac   :  { %s19402_s8 = smul.f32 %s26463_s22, %s26461_s11  ;;  %s26465_s28 = spop %26464  ;;  %26387 = vmatpush3.msra.mxu0 %v27613_v10 }
0x25ad   :  { %s19885_s25 = smul.f32 %s26465_s28, %s26461_s11  ;;  %s26467_s7 = spop %26466  ;;  %26389 = vmatmul.mubr.f32.vlgmr.msra.gmra.mxu0 %v23965_v0  ;;  %v22416_v50 = vadd.f32 %v22415_v16, %v22414_v23  ;;  %v26661_v0 = vld [vmem:[%s30032_s14] ss:$0 sm:$0xff] }
0x25ae   :  { %v19403_v41 = vstv %s19402_s8  ;;  %s20868_s12 = smul.f32 %s26467_s7, %s26461_s11  ;;  %s26469_s13 = spop %26468 }
0x25af   :  { %v19404_v34 = vadd.f32 %v19403_v41, %v29949_v52  ;;  %s21382_s29 = sadd.f32 1e-12, %s26469_s13  ;;  %v19886_v39 = vstv %s19885_s25  ;;  %v22417_v4 = vrot.slane %v22416_v50, 1  ;;  %s26979_s14 = smov [#allocation20]  }
0x25b0   :  { %v20869_v11 = vstv %s20868_s12  ;;  %s24409_s5 = sshll.u32 %s26979_s14, 4  ;;  %s24410_s5 = int_to_ptr.vmem [resolvable:$true] %s24409_s5 }
0x25b1   :  { %v19887_v54 = vadd.f32 %v19886_v39, %v19404_v34  ;;  %v21383_v9 = vstv %s21382_s29  ;;  %v22418_v55 = vadd.f32 %v22417_v4, %v22416_v50  ;;  %s26862_s24 = scalar_lea.vmem %s24410_s5, 1024  ;;  %p26867_p9 = scmp.lt.s32.totalorder %s24410_s5, %s24410_s5 }
0x25b2   :  { %26619 = vrcp.f32 %v21383_v9  ;;  %p26863_p8 = scmp.ne.s32.totalorder %s24410_s5, %s26862_s24  ;;  %p26868_p10 = scmp.lt.s32.totalorder %s26862_s24, %s26862_s24 }
0x25b3   :  { %v20870_v12 = vadd.f32 %v20869_v11, %v19887_v54 }
0x25b4   :  { %p26869_p11 = por %p26868_p10, %p26867_p9 }
0x25b6   :  { %p26870_p12 = pnand %p26869_p11, %p26863_p8 }
0x25bf   :  { %v26620_v10 = vpop.eup %26619 }
0x25c0   :  { %26470 = vpush %v26620_v10 }
0x25c1   :  { %26472 = vpush %v22418_v55 }
0x25df   :  { %v22895_v51 = vpop.xlane.xlu1 %22894 }
0x25e0   :  { %v22896_v38 = vrot.slane %v22895_v51, 4 }
0x25e2   :  { %v22897_v2 = vadd.f32 %v22896_v38, %v22895_v51 }
0x25e4   :  { %v22898_v29 = vrot.slane %v22897_v2, 2 }
0x25e6   :  { %v22899_v60 = vadd.f32 %v22898_v29, %v22897_v2 }
0x25e8   :  { %v22900_v52 = vrot.slane %v22899_v60, 1 }
0x25ea   :  { %v22901_v22 = vadd.f32 %v22900_v52, %v22899_v60 }
0x25ec   :  { %26474 = vpush %v22901_v22 }
0x25f1   :  { %s26471_s27 = spop %26470 }
0x25f2   :  { %s26473_s6 = spop %26472 }
0x25f3   :  { %s22420_s0 = smul.f32 %s26473_s6, %s26471_s27 }
0x25f5   :  { %v22421_v59 = vstv %s22420_s0 }
0x25f6   :  { %v22422_v30 = vadd.f32 %v22421_v59, %v20870_v12 }
0x261d   :  { %s26475_s26 = spop %26474 }
0x261e   :  { %s22903_s20 = smul.f32 %s26475_s26, %s26471_s27 }
0x2620   :  { %v22904_v25 = vstv %s22903_s20 }
0x2621   :  { %v22905_v44 = vadd.f32 %v22904_v25, %v22422_v30 }
0x2628   :  { %v23878_v20 = vpop.xlane.xlu0 %23877 }
0x2629   :  { %v23879_v3 = vrot.slane %v23878_v20, 4 }
0x262b   :  { %v23880_v1 = vadd.f32 %v23879_v3, %v23878_v20 }
0x262d   :  { %v23881_v62 = vrot.slane %v23880_v1, 2 }
0x262f   :  { %v23882_v6 = vadd.f32 %v23881_v62, %v23880_v1 }
0x2631   :  { %v23883_v8 = vrot.slane %v23882_v6, 1 }
0x2633   :  { %v23884_v35 = vadd.f32 %v23883_v8, %v23882_v6 }
0x2635   :  { %26476 = vpush %v23884_v35 }
0x265d   :  { %v24052_v37 = vpop.f32.mrf.mxu1 }
0x265f   :  { %v26369_v18 = vpop.f32.mrf.mxu1 }
0x2661   :  { %v24203_v28 = vpop.f32.mrf.mxu1 }
0x2663   :  { %v26383_v21 = vpop.f32.mrf.mxu1 }
0x2665   :  { %v23971_v27 = vpop.f32.mrf.mxu0  ;;  %v24353_v33 = vpop.f32.mrf.mxu1 }
0x2666   :  { %v23972_v40 = vadd.f32 %v23971_v27, %v29941_v26  ;;  %s26477_s10 = spop %26476 }
0x2667   :  { %s23886_s3 = smul.f32 %s26477_s10, %s26471_s27  ;;  %v26362_v56 = vpop.f32.mrf.mxu0  ;;  %v26397_v48 = vpop.f32.mrf.mxu1 }
0x2668   :  { %v24053_v14 = vadd.f32 %v24052_v37, %v23972_v40 }
0x2669   :  { %v23887_v13 = vstv %s23886_s3  ;;  %v24128_v53 = vpop.f32.mrf.mxu0 }
0x266a   :  { %v23888_v15 = vadd.f32 %v23887_v13, %v22905_v44  ;;  %v24129_v42 = vadd.f32 %v24128_v53, %v24053_v14 }
0x266b   :  { %v26376_v24 = vpop.f32.mrf.mxu0 }
0x266c   :  { %v24389_v31 = vmul.f32 0.041666668, %v23888_v15  ;;  %v24204_v57 = vadd.f32 %v24203_v28, %v24129_v42 }
0x266d   :  { %v24280_v61 = vpop.f32.mrf.mxu0 }
0x266e   :  { %v24281_v47 = vadd.f32 %v24280_v61, %v24204_v57  ;;  %24391 = vst.msk [vmem:[#allocation23] sm:$0x1] %vm24390_vm3, %v24389_v31 }
0x266f   :  { %v26390_v63 = vpop.f32.mrf.mxu0 }
0x2670   :  { %v24354_v17 = vadd.f32 %v24353_v33, %v24281_v47 }
0x2672   :  { %v24357_v26 = vadd.f32 %v24354_v17, %v29769_v58 }
0x2674   :  { %v24358_v49 = vadd.f32 %v26661_v0, %v24357_v26 }
0x2676   :  { %26621 = vtanh.f32 %v24358_v49  ;;  %v24477_v43 = vmul.f32 -1.442695, %v24358_v49 }
0x2678   :  { %26623 = vpow2.f32 %v24477_v43 }
0x2683   :  { %v26622_v36 = vpop.eup %26621 }
0x2684   :  { %24368 = vrot.lane.b32.xlu1 %v26622_v36, %s26977_s4 }
0x2685   :  { %v26624_v32 = vpop.eup %26623 }
0x2686   :  { %v24362_v45 = vadd.f32 1.0, %v26624_v32 }
0x2688   :  { %26625 = vrcp.f32 %v24362_v45 }
0x2695   :  { %v26626_v7 = vpop.eup %26625 }
0x2696   :  { %v24366_v58 = vmul.f32 %v26626_v7, %v29660_v19 }
0x26f6   :  { %v24369_v5 = vpop.permute.xlu1 %24368 }
0x26f7   :  { %v24371_v46 = vmul.f32 %v26626_v7, %v24369_v5 }
0x26f9   :  { %24373 = vrot.lane.b32.xlu0 %v24371_v46, %s26978_s9 }
0x276b   :  { %v24374_v41 = vpop.permute.xlu0 %24373 }
0x276c   :  { %v24376_v23 = vadd.f32 %v24374_v41, %v24366_v58 }
0x276e   :  { %26627 = vtanh.f32 %v24376_v23 }
0x277b   :  { %v26628_v34 = vpop.eup %26627 }
0x277c   :  { %24379 = vrot.lane.b32.xlu1 %v26628_v34, %s26977_s4 }
0x277d   :  { %26873 = shalt.err (!%p26870_p12)
}
0x277e   :  { %24415 = dma.vmem_to_hbm [thread:$0]  %s24410_s5, 1024, %s30034_s16, [#allocation21], %s26962_s19, %s26962_s19, %s26963_s1  }
0x277f   :  { %s26882_s4 = scalar_lea.vmem %s24398_s23, 1024  ;;  %p26887_p0 = scmp.lt.s32.totalorder %s24398_s23, %s24398_s23 }
0x2780   :  { %p26883_p13 = scmp.ne.s32.totalorder %s24398_s23, %s26882_s4  ;;  %p26888_p1 = scmp.lt.s32.totalorder %s26882_s4, %s26882_s4 }
0x2782   :  { %p26889_p2 = por %p26888_p1, %p26887_p0 }
0x2784   :  { %p26890_p3 = pnand %p26889_p2, %p26883_p13 }
0x2786   :  { %26893 = shalt.err (!%p26890_p3)
}
0x2787   :  { %24403 = dma.vmem_to_hbm [thread:$0]  %s24398_s23, 1024, %s30033_s15, [#allocation4], %s26962_s19, %s26962_s19, %s26963_s1  }
0x2788   :  { %s26981_s25 = smov [#allocation23]  }
0x2789   :  { %s24432_s7 = sshll.u32 %s26981_s25, 4  ;;  %s24433_s7 = int_to_ptr.vmem [resolvable:$true] %s24432_s7 }
0x278a   :  { %s26902_s12 = scalar_lea.vmem %s24433_s7, 16  ;;  %s26906_s16 = scalar_lea.vmem %s24433_s7, 32 }
0x278b   :  { %p26903_p4 = scmp.ne.s32.totalorder %s24433_s7, %s26902_s12  ;;  %p26907_p5 = scmp.lt.s32.totalorder %s24433_s7, %s24433_s7 }
0x278c   :  { %p26908_p6 = scmp.lt.s32.totalorder %s26906_s16, %s26902_s12 }
0x278e   :  { %p26909_p7 = por %p26908_p6, %p26907_p5 }
0x2790   :  { %p26910_p8 = pnand %p26909_p7, %p26903_p4 }
0x2792   :  { %26913 = shalt.err (!%p26910_p8)
}
0x2793   :  { %24435 = dma.vmem_to_hbm [thread:$0]  %s24433_s7, 16, %s30036_s18, [#allocation24]  }
0x2794   :  { %s26982_s15 = smov [#allocation22]  }
0x2795   :  { %s24422_s19 = sshll.u32 %s26982_s15, 4  ;;  %s24423_s19 = int_to_ptr.vmem [resolvable:$true] %s24422_s19 }
0x2796   :  { %s26922_s1 = scalar_lea.vmem %s24423_s19, 128  ;;  %p26927_p10 = scmp.lt.s32.totalorder %s24423_s19, %s24423_s19 }
0x2797   :  { %p26923_p9 = scmp.ne.s32.totalorder %s24423_s19, %s26922_s1  ;;  %p26928_p11 = scmp.lt.s32.totalorder %s26922_s1, %s26922_s1 }
0x2799   :  { %p26929_p12 = por %p26928_p11, %p26927_p10 }
0x279b   :  { %p26930_p13 = pnand %p26929_p12, %p26923_p9 }
0x27ee   :  { %v24380_v19 = vpop.permute.xlu1 %24379 }
0x27ef   :  { %v24382_v39 = vmul.f32 %v26626_v7, %v24380_v19 }
0x27f1   :  { %24384 = vrot.lane.b32.xlu1 %v24382_v39, %s26978_s9 }
0x2863   :  { %v24385_v54 = vpop.permute.xlu1 %24384 }
0x2864   :  { %24387 = vst.msk [vmem:[#allocation22] sm:$0xff] %vm707_vm2, %v24385_v54 }
0x2865   :  { %26933 = shalt.err (!%p26930_p13)
}
0x2866   :  { %24425 = dma.vmem_to_hbm [thread:$0]  %s24423_s19, 128, %s30035_s17, [#allocation21]  }
0x2867   :  { %26954 = dma.done.wait [#allocation4], 1024  }
0x2868   :  { %26955 = vsyncadd [#allocation4], 4294966272 }
0x2869   :  { %26956 = dma.done.wait [#allocation21], 1152  }
0x286a   :  { %26957 = vsyncadd [#allocation21], 4294966144 }
0x286b   :  { %26958 = dma.done.wait [#allocation24], 16  }
0x286c   :  { %26959 = vsyncadd [#allocation24], 4294967280 }
0x286d   :  { %24448 = vsyncpa [#allocation3], 1 }
0x286e   :  { %24449 = vsyncpa [#allocation6], 1 }
0x286f   :  { %24450 = vsyncpa [#allocation9], 1 }
0x2870   :  { %24451 = vsyncpa [#allocation12], 1 }
0x2871   :  { %24452 = vsyncpa [#allocation15], 1 }
0x2872   :  { %24453 = vsyncpa [#allocation18], 1 }
0x2873   :  { %24454 = vsyncpa [#allocation4], 1 }
0x2874   :  { %24455 = vsyncpa [#allocation21], 1 }
0x2875   :  { %24456 = vsyncpa [#allocation24], 1 }

</bundles_post_ra>
